<compile_context>
chip_gen: v5e
topology: v5e:2x2
jax: 0.10.0
libtpu: 0.0.40
codegen_flags: <defaults>
</compile_context>

<pallas_src>
import functools

import jax
import jax.numpy as jnp
from jax.experimental import pallas as pl
from jax.experimental.pallas import tpu as pltpu


# ----------------------------------------------------------------------------
# In-kernel helpers (channel-major activations: (C, H*W), lane-dense)
# ----------------------------------------------------------------------------
def _pad_flat(x, W):
    """Zero-pad a (C, H*W) activation by W+1 zeros on both ends of the lane axis."""
    C = x.shape[0]
    z = jnp.zeros((C, W + 1), x.dtype)
    return jnp.concatenate([z, x, z], axis=1)            # (C, H*W + 2W + 2)


def _shift(xpad, ry, rx, H, W, mask_l, mask_r):
    """One 3x3-conv tap: value at (y+ry, x+rx), zero outside the image.

    xpad: (C, H*W + 2W + 2) flat-padded activation; ry, rx in {-1, 0, 1}.
    Vertical out-of-range indices land in the zero pad; horizontal wrap-around
    is fixed with the static column masks.
    """
    start = (W + 1) + ry * W + rx                        # python int -> static slice
    t = xpad[:, start:start + H * W]
    if rx == -1:
        t = jnp.where(mask_l, t, jnp.zeros_like(t))
    elif rx == 1:
        t = jnp.where(mask_r, t, jnp.zeros_like(t))
    return t                                             # (C, H*W)


def _patches3x3(x, H, W, cd, mask_l, mask_r):
    """(C, H*W) -> (9*C, H*W) im2col patches, row layout (dy*3+dx)*C + c."""
    xp = _pad_flat(x.astype(cd), W)
    taps = [_shift(xp, dy - 1, dx - 1, H, W, mask_l, mask_r)
            for dy in range(3) for dx in range(3)]
    return jnp.concatenate(taps, axis=0)


def _conv3x3(x, w, b, *, H, W, relu, cd, mask_l, mask_r):
    """3x3 'same' conv, channel-major. x:(Cin,H*W); w:(Cout,9*Cin); b:(Cout,1)."""
    patches = _patches3x3(x, H, W, cd, mask_l, mask_r)
    acc = jnp.dot(w.astype(cd), patches, preferred_element_type=jnp.float32)
    acc = acc + b.astype(jnp.float32)
    if relu:
        acc = jnp.maximum(acc, 0.0)
    return acc                                           # (Cout, H*W) f32


# ----------------------------------------------------------------------------
# Fused EDSR kernel: one grid step == one image, everything stays in VMEM.
# ----------------------------------------------------------------------------
def _edsr_kernel(x_ref, hw_ref, hb_ref, bw1_ref, bb1_ref, bw2_ref, bb2_ref,
                 bodyw_ref, bodyb_ref, upw_ref, upb_ref, tw_ref, tb_ref,
                 out_ref, *, H, W, nf, nComp, num_blocks, r, cd):
    HW = H * W
    col = jax.lax.broadcasted_iota(jnp.int32, (1, HW), 1) % W
    mask_l = col != 0            # taps reading x-1 are invalid at x == 0
    mask_r = col != (W - 1)      # taps reading x+1 are invalid at x == W-1

    conv = functools.partial(_conv3x3, H=H, W=W, cd=cd,
                             mask_l=mask_l, mask_r=mask_r)

    x = x_ref[0]                                         # (nComp, HW) f32

    # ---- head ----
    h = conv(x, hw_ref[...], hb_ref[...], relu=False)    # (nf, HW) f32
    skip = h

    # ---- body: ResBlocks (res_scale folded into bw2/bb2), final conv, skip ----
    # TODO(synk): at EDSR-scale depth (num_blocks=16-32) replace this unroll
    # with lax.fori_loop over the stacked weight refs to bound vreg live ranges.
    for blk in range(num_blocks):
        t = conv(h, bw1_ref[blk], bb1_ref[blk], relu=True)
        t = conv(t, bw2_ref[blk], bb2_ref[blk], relu=False)
        h = t + h
    h = conv(h, bodyw_ref[...], bodyb_ref[...], relu=False) + skip

    # ---- tail: up-conv with ALL r*r sub-pixel groups fused into one dot ----
    hpat = _patches3x3(h, H, W, cd, mask_l, mask_r)      # (9*nf, HW)
    u = jnp.dot(upw_ref[...].astype(cd), hpat,
                preferred_element_type=jnp.float32)      # (r*r*nf, HW)
    u = u + upb_ref[...].astype(jnp.float32)

    # pad each sub-pixel group once; group g = i*r+j lives in rows [g*nf,(g+1)*nf)
    upad = [_pad_flat(u[g * nf:(g + 1) * nf, :].astype(cd), W)
            for g in range(r * r)]

    # final 3x3 conv evaluated on the low-res grid for every output sub-pixel,
    # all r*r sub-pixels batched into ONE (nComp, 9*nf) @ (9*nf, r*r*HW) dot.
    pats = []
    for i in range(r):
        for j in range(r):
            taps = []
            for dy in range(3):
                for dx in range(3):
                    my, mx = i + dy - 1, j + dx - 1
                    g = (my % r) * r + (mx % r)          # source sub-pixel group
                    taps.append(_shift(upad[g], my // r, mx // r,
                                       H, W, mask_l, mask_r))
            pats.append(jnp.concatenate(taps, axis=0))   # (9*nf, HW)
    pat_all = jnp.concatenate(pats, axis=1)              # (9*nf, r*r*HW)
    y = jnp.dot(tw_ref[...].astype(cd), pat_all,
                preferred_element_type=jnp.float32)      # (nComp, r*r*HW)
    y = y + tb_ref[...].astype(jnp.float32)
    # lane-dense store: (nComp*r*r, HW) = (16, 256); row index = c*r*r + (i*r+j)
    out_ref[0] = y.reshape(nComp * r * r, HW).astype(out_ref.dtype)


# ----------------------------------------------------------------------------
# Wrapper: NCHW in/out, packs weights into channel-major im2col layout.
# ----------------------------------------------------------------------------
def edsr_forward(x_nchw, params, *, res_scale=0.1, scale=2,
                 compute_dtype=jnp.float32):
    N, nComp, H, W = x_nchw.shape
    nf = params["head_w"].shape[-1]
    num_blocks = len(params["blocks"])
    r = scale
    cd = compute_dtype
    HW = H * W

    x = x_nchw.reshape(N, nComp, HW)                     # NCHW is already channel-major

    def pack_wT(w, s=1.0):                               # (3,3,Cin,Cout) -> (Cout, 9*Cin)
        kh, kw, ci, co = w.shape
        return (w.reshape(kh * kw * ci, co).T * s).astype(cd)

    head_w = pack_wT(params["head_w"])
    head_b = params["head_b"].reshape(nf, 1)
    bw1 = jnp.stack([pack_wT(b[0]) for b in params["blocks"]])
    bb1 = jnp.stack([b[1].reshape(nf, 1) for b in params["blocks"]])
    # fold res_scale into the second conv of every ResBlock
    bw2 = jnp.stack([pack_wT(b[2], res_scale) for b in params["blocks"]])
    bb2 = jnp.stack([(b[3] * res_scale).reshape(nf, 1) for b in params["blocks"]])
    body_w = pack_wT(params["body_w"])
    body_b = params["body_b"].reshape(nf, 1)

    # Up-conv split into r*r PixelShuffle groups and concatenated along the
    # output dim: row g*nf + c of uw corresponds to original out-channel c*r*r+g.
    uw = params["up_w"].reshape(9 * nf, nf, r * r)       # (9*nf, c, g)
    uw = jnp.transpose(uw, (2, 1, 0)).reshape(r * r * nf, 9 * nf).astype(cd)
    ub = params["up_b"].reshape(nf, r * r).T.reshape(r * r * nf, 1)

    tail_w = pack_wT(params["tail_w"])                   # (nComp, 9*nf)
    tail_b = params["tail_b"].reshape(nComp, 1)

    kernel = functools.partial(_edsr_kernel, H=H, W=W, nf=nf, nComp=nComp,
                               num_blocks=num_blocks, r=r, cd=cd)

    # TODO(synk): for realistic EDSR sizes (large HxW, nf=64/256) tile the grid
    # over H with a 1-row halo and single-buffer the grid-invariant weights
    # (pipeline_mode=pl.Buffered(1) or a one-shot scratch DMA) so the working
    # set fits v7x's 64 MiB VMEM; at the 16x16 sizes here everything fits.
    out = pl.pallas_call(
        kernel,
        out_shape=jax.ShapeDtypeStruct((N, nComp * r * r, HW), x_nchw.dtype),
        grid=(N,),
        in_specs=[
            pl.BlockSpec((1, nComp, HW), lambda n: (n, 0, 0)),
            pl.BlockSpec((nf, 9 * nComp), lambda n: (0, 0)),
            pl.BlockSpec((nf, 1), lambda n: (0, 0)),
            pl.BlockSpec((num_blocks, nf, 9 * nf), lambda n: (0, 0, 0)),
            pl.BlockSpec((num_blocks, nf, 1), lambda n: (0, 0, 0)),
            pl.BlockSpec((num_blocks, nf, 9 * nf), lambda n: (0, 0, 0)),
            pl.BlockSpec((num_blocks, nf, 1), lambda n: (0, 0, 0)),
            pl.BlockSpec((nf, 9 * nf), lambda n: (0, 0)),
            pl.BlockSpec((nf, 1), lambda n: (0, 0)),
            pl.BlockSpec((r * r * nf, 9 * nf), lambda n: (0, 0)),
            pl.BlockSpec((r * r * nf, 1), lambda n: (0, 0)),
            pl.BlockSpec((nComp, 9 * nf), lambda n: (0, 0)),
            pl.BlockSpec((nComp, 1), lambda n: (0, 0)),
        ],
        out_specs=pl.BlockSpec((1, nComp * r * r, HW), lambda n: (n, 0, 0)),
        compiler_params=pltpu.CompilerParams(
            dimension_semantics=("parallel",),
            vmem_limit_bytes=32 * 1024 * 1024),
    )(x, head_w, head_b, bw1, bb1, bw2, bb2, body_w, body_b, uw, ub,
      tail_w, tail_b)

    # Tiny sub-pixel rearrange (N*nComp*r*r*H*W elements) to NCHW high-res.
    out = out.reshape(N, nComp, r, r, H, W)
    out = jnp.transpose(out, (0, 1, 4, 2, 5, 3)).reshape(N, nComp, H * r, W * r)
    return out


# ----------------------------------------------------------------------------
# Parameter construction (deterministic, synthetic, PyTorch channel order)
# ----------------------------------------------------------------------------
def make_params(key, nComp, nf, num_blocks, scale):
    def conv_w(k, cin, cout):
        return (jax.random.normal(k, (3, 3, cin, cout), jnp.float32)
                * (0.05 / jnp.sqrt(cin)))

    keys = iter(jax.random.split(key, 4 + 2 * num_blocks + 4))
    p = {}
    p["head_w"] = conv_w(next(keys), nComp, nf)
    p["head_b"] = jnp.zeros((nf,), jnp.float32)
    p["blocks"] = []
    for _ in range(num_blocks):
        w1 = conv_w(next(keys), nf, nf)
        w2 = conv_w(next(keys), nf, nf)
        p["blocks"].append((w1, jnp.zeros((nf,), jnp.float32),
                            w2, jnp.zeros((nf,), jnp.float32)))
    p["body_w"] = conv_w(next(keys), nf, nf)
    p["body_b"] = jnp.zeros((nf,), jnp.float32)
    p["up_w"] = conv_w(next(keys), nf, nf * scale * scale)
    p["up_b"] = jnp.zeros((nf * scale * scale,), jnp.float32)
    p["tail_w"] = conv_w(next(keys), nf, nComp)
    p["tail_b"] = jnp.zeros((nComp,), jnp.float32)
    return p


# ----------------------------------------------------------------------------
# Pure-JAX reference (lax.conv + PixelShuffle) for correctness checking
# ----------------------------------------------------------------------------
def _conv_ref(x, w, b):
    y = jax.lax.conv_general_dilated(
        x, w, window_strides=(1, 1), padding="SAME",
        dimension_numbers=("NHWC", "HWIO", "NHWC"))
    return y + b[None, None, None, :]


def pixel_shuffle_nhwc(x, r):
    N, H, W, Crr = x.shape
    C = Crr // (r * r)
    x = x.reshape(N, H, W, C, r, r)
    x = jnp.transpose(x, (0, 1, 4, 2, 5, 3))             # N, H, i, W, j, C
    return x.reshape(N, H * r, W * r, C)


def edsr_forward_ref(x_nchw, params, *, res_scale=0.1, scale=2):
    # TODO(synk): basic.ResBlock norm path and basic.Upsample direction='down'
    # are not specified; implemented standard EDSR (norm=None, direction='up'
    # -> conv + PixelShuffle), matching the Pallas kernel.
    x = jnp.transpose(x_nchw, (0, 2, 3, 1))
    x = _conv_ref(x, params["head_w"], params["head_b"])
    h = x
    for (w1, b1, w2, b2) in params["blocks"]:
        t = jnp.maximum(_conv_ref(h, w1, b1), 0.0)
        h = _conv_ref(t, w2, b2) * res_scale + h
    h = _conv_ref(h, params["body_w"], params["body_b"]) + x
    u = _conv_ref(h, params["up_w"], params["up_b"])
    u = pixel_shuffle_nhwc(u, scale)
    y = _conv_ref(u, params["tail_w"], params["tail_b"])
    return jnp.transpose(y, (0, 3, 1, 2))


if __name__ == "__main__":
    # args: nComp=4, num_features=32, num_blocks=2, res_scale=0.1, scale=2,
    #       bias=True, norm=None
    N, nComp, H, W = 2, 4, 16, 16
    nf, num_blocks, res_scale, scale = 32, 2, 0.1, 2

    key = jax.random.PRNGKey(0)
    kx, kp = jax.random.split(key)
    x = jax.random.normal(kx, (N, nComp, H, W), jnp.float32)
    params = make_params(kp, nComp, nf, num_blocks, scale)

    fwd_f32 = jax.jit(lambda xx, pp: edsr_forward(
        xx, pp, res_scale=res_scale, scale=scale, compute_dtype=jnp.float32))
    fwd_bf16 = jax.jit(lambda xx, pp: edsr_forward(
        xx, pp, res_scale=res_scale, scale=scale, compute_dtype=jnp.bfloat16))
    ref_fn = jax.jit(lambda xx, pp: edsr_forward_ref(
        xx, pp, res_scale=res_scale, scale=scale))

    out = jax.block_until_ready(fwd_f32(x, params))
    ref = jax.block_until_ready(ref_fn(x, params))

    assert out.shape == (N, nComp, H * scale, W * scale), out.shape
    assert jnp.allclose(out, ref, atol=1e-4, rtol=1e-4), \
        float(jnp.max(jnp.abs(out - ref)))

    # v6e/v7x path: bf16 patch marshalling + bf16 MXU operands, f32 accumulate.
    out_bf16 = jax.block_until_ready(fwd_bf16(x, params))
    assert out_bf16.shape == (N, nComp, H * scale, W * scale)
    assert float(jnp.max(jnp.abs(out_bf16 - ref))) < 1e-2

    print("KERNEL_OK")
</pallas_src>

<mosaic_0001>
module attributes {stable_mosaic.version = 11 : i64} {
  func.func @_edsr_kernel(%arg0: i32, %arg1: memref<1x4x256xf32, #tpu.memory_space<vmem>>, %arg2: memref<32x36xf32, #tpu.memory_space<vmem>>, %arg3: memref<32x1xf32, #tpu.memory_space<vmem>>, %arg4: memref<2x32x288xf32, #tpu.memory_space<vmem>>, %arg5: memref<2x32x1xf32, #tpu.memory_space<vmem>>, %arg6: memref<2x32x288xf32, #tpu.memory_space<vmem>>, %arg7: memref<2x32x1xf32, #tpu.memory_space<vmem>>, %arg8: memref<32x288xf32, #tpu.memory_space<vmem>>, %arg9: memref<32x1xf32, #tpu.memory_space<vmem>>, %arg10: memref<128x288xf32, #tpu.memory_space<vmem>>, %arg11: memref<128x1xf32, #tpu.memory_space<vmem>>, %arg12: memref<4x288xf32, #tpu.memory_space<vmem>>, %arg13: memref<4x1xf32, #tpu.memory_space<vmem>>, %arg14: memref<1x16x256xf32, #tpu.memory_space<vmem>>) attributes {dimension_semantics = [#tpu.dimension_semantics<parallel>], iteration_bounds = array<i64: 2>, scalar_prefetch = 0 : i64, scratch_operands = 0 : i64, tpu.core_type = #tpu.core_type<tc>, window_params = [{transform_indices = @transform_0, window_bounds = array<i64: 1, 4, 256>}, {pipeline_mode = #tpu.pipeline_mode<synchronous>, transform_indices = @transform_1, window_bounds = array<i64: 32, 36>}, {pipeline_mode = #tpu.pipeline_mode<synchronous>, transform_indices = @transform_2, window_bounds = array<i64: 32, 1>}, {pipeline_mode = #tpu.pipeline_mode<synchronous>, transform_indices = @transform_3, window_bounds = array<i64: 2, 32, 288>}, {pipeline_mode = #tpu.pipeline_mode<synchronous>, transform_indices = @transform_4, window_bounds = array<i64: 2, 32, 1>}, {pipeline_mode = #tpu.pipeline_mode<synchronous>, transform_indices = @transform_5, window_bounds = array<i64: 2, 32, 288>}, {pipeline_mode = #tpu.pipeline_mode<synchronous>, transform_indices = @transform_6, window_bounds = array<i64: 2, 32, 1>}, {pipeline_mode = #tpu.pipeline_mode<synchronous>, transform_indices = @transform_7, window_bounds = array<i64: 32, 288>}, {pipeline_mode = #tpu.pipeline_mode<synchronous>, transform_indices = @transform_8, window_bounds = array<i64: 32, 1>}, {pipeline_mode = #tpu.pipeline_mode<synchronous>, transform_indices = @transform_9, window_bounds = array<i64: 128, 288>}, {pipeline_mode = #tpu.pipeline_mode<synchronous>, transform_indices = @transform_10, window_bounds = array<i64: 128, 1>}, {pipeline_mode = #tpu.pipeline_mode<synchronous>, transform_indices = @transform_11, window_bounds = array<i64: 4, 288>}, {pipeline_mode = #tpu.pipeline_mode<synchronous>, transform_indices = @transform_12, window_bounds = array<i64: 4, 1>}, {transform_indices = @transform_13, window_bounds = array<i64: 1, 16, 256>}]} {
    %0 = tpu.iota {dimensions = array<i32: 1>} : vector<1x256xi32>
    %c16_i32 = arith.constant 16 : i32
    %c0_i32 = arith.constant 0 : i32
    %1 = arith.cmpi eq, %c16_i32, %c0_i32 : i32
    %c1_i32 = arith.constant 1 : i32
    %2 = arith.select %1, %c1_i32, %c16_i32 : i32
    %3 = vector.broadcast %2 : i32 to vector<1x256xi32>
    %4 = arith.remsi %0, %3 : vector<1x256xi32>
    %c0_i32_0 = arith.constant 0 : i32
    %5 = vector.broadcast %c0_i32_0 : i32 to vector<1x256xi32>
    %6 = arith.cmpi ne, %4, %5 : vector<1x256xi32>
    %c0_i32_1 = arith.constant 0 : i32
    %7 = vector.broadcast %c0_i32_1 : i32 to vector<1x256xi32>
    %8 = arith.cmpi slt, %4, %7 : vector<1x256xi32>
    %c0_i32_2 = arith.constant 0 : i32
    %9 = arith.cmpi slt, %2, %c0_i32_2 : i32
    %10 = vector.broadcast %9 : i1 to vector<1x256xi1>
    %11 = vector.broadcast %10 : vector<1x256xi1> to vector<1x256xi1>
    %12 = arith.xori %8, %11 : vector<1x256xi1>
    %13 = arith.andi %12, %6 : vector<1x256xi1>
    %14 = vector.broadcast %2 : i32 to vector<1x256xi32>
    %15 = arith.addi %4, %14 : vector<1x256xi32>
    %16 = arith.select %13, %15, %4 : vector<1x256xi1>, vector<1x256xi32>
    %c0_i32_3 = arith.constant 0 : i32
    %17 = vector.broadcast %c0_i32_3 : i32 to vector<1x256xi32>
    %18 = arith.cmpi ne, %16, %17 : vector<1x256xi32>
    %c15_i32 = arith.constant 15 : i32
    %19 = vector.broadcast %c15_i32 : i32 to vector<1x256xi32>
    %20 = arith.cmpi ne, %16, %19 : vector<1x256xi32>
    %c0 = arith.constant 0 : index
    %c0_4 = arith.constant 0 : index
    %c0_5 = arith.constant 0 : index
    %21 = vector.load %arg1[%c0, %c0_4, %c0_5] : memref<1x4x256xf32, #tpu.memory_space<vmem>>, vector<1x4x256xf32>
    %22 = vector.shape_cast %21 : vector<1x4x256xf32> to vector<4x256xf32>
    %c0_6 = arith.constant 0 : index
    %c0_7 = arith.constant 0 : index
    %23 = vector.load %arg2[%c0_6, %c0_7] : memref<32x36xf32, #tpu.memory_space<vmem>>, vector<32x36xf32>
    %c0_8 = arith.constant 0 : index
    %c0_9 = arith.constant 0 : index
    %24 = vector.load %arg3[%c0_8, %c0_9] : memref<32x1xf32, #tpu.memory_space<vmem>>, vector<32x1xf32>
    %cst = arith.constant 0.000000e+00 : f32
    %25 = vector.broadcast %cst : f32 to vector<4x17xf32>
    %26 = tpu.concatenate %25, %22, %25 in 1 : vector<4x17xf32>, vector<4x256xf32>, vector<4x17xf32> -> vector<4x290xf32>
    %27 = vector.extract_strided_slice %26 {offsets = [0, 0], sizes = [4, 256], strides = [1, 1]} : vector<4x290xf32> to vector<4x256xf32>
    %cst_10 = arith.constant 0.000000e+00 : f32
    %28 = vector.broadcast %cst_10 : f32 to vector<4x256xf32>
    %29 = vector.shape_cast %18 : vector<1x256xi1> to vector<1x256xi1>
    %30 = vector.broadcast %29 : vector<1x256xi1> to vector<4x256xi1>
    %31 = arith.select %30, %27, %28 : vector<4x256xi1>, vector<4x256xf32>
    %32 = vector.extract_strided_slice %26 {offsets = [0, 1], sizes = [4, 256], strides = [1, 1]} : vector<4x290xf32> to vector<4x256xf32>
    %33 = vector.extract_strided_slice %26 {offsets = [0, 2], sizes = [4, 256], strides = [1, 1]} : vector<4x290xf32> to vector<4x256xf32>
    %cst_11 = arith.constant 0.000000e+00 : f32
    %34 = vector.broadcast %cst_11 : f32 to vector<4x256xf32>
    %35 = vector.shape_cast %20 : vector<1x256xi1> to vector<1x256xi1>
    %36 = vector.broadcast %35 : vector<1x256xi1> to vector<4x256xi1>
    %37 = arith.select %36, %33, %34 : vector<4x256xi1>, vector<4x256xf32>
    %38 = vector.extract_strided_slice %26 {offsets = [0, 16], sizes = [4, 256], strides = [1, 1]} : vector<4x290xf32> to vector<4x256xf32>
    %cst_12 = arith.constant 0.000000e+00 : f32
    %39 = vector.broadcast %cst_12 : f32 to vector<4x256xf32>
    %40 = vector.shape_cast %18 : vector<1x256xi1> to vector<1x256xi1>
    %41 = vector.broadcast %40 : vector<1x256xi1> to vector<4x256xi1>
    %42 = arith.select %41, %38, %39 : vector<4x256xi1>, vector<4x256xf32>
    %43 = vector.extract_strided_slice %26 {offsets = [0, 17], sizes = [4, 256], strides = [1, 1]} : vector<4x290xf32> to vector<4x256xf32>
    %44 = vector.extract_strided_slice %26 {offsets = [0, 18], sizes = [4, 256], strides = [1, 1]} : vector<4x290xf32> to vector<4x256xf32>
    %cst_13 = arith.constant 0.000000e+00 : f32
    %45 = vector.broadcast %cst_13 : f32 to vector<4x256xf32>
    %46 = vector.shape_cast %20 : vector<1x256xi1> to vector<1x256xi1>
    %47 = vector.broadcast %46 : vector<1x256xi1> to vector<4x256xi1>
    %48 = arith.select %47, %44, %45 : vector<4x256xi1>, vector<4x256xf32>
    %49 = vector.extract_strided_slice %26 {offsets = [0, 32], sizes = [4, 256], strides = [1, 1]} : vector<4x290xf32> to vector<4x256xf32>
    %cst_14 = arith.constant 0.000000e+00 : f32
    %50 = vector.broadcast %cst_14 : f32 to vector<4x256xf32>
    %51 = vector.shape_cast %18 : vector<1x256xi1> to vector<1x256xi1>
    %52 = vector.broadcast %51 : vector<1x256xi1> to vector<4x256xi1>
    %53 = arith.select %52, %49, %50 : vector<4x256xi1>, vector<4x256xf32>
    %54 = vector.extract_strided_slice %26 {offsets = [0, 33], sizes = [4, 256], strides = [1, 1]} : vector<4x290xf32> to vector<4x256xf32>
    %55 = vector.extract_strided_slice %26 {offsets = [0, 34], sizes = [4, 256], strides = [1, 1]} : vector<4x290xf32> to vector<4x256xf32>
    %cst_15 = arith.constant 0.000000e+00 : f32
    %56 = vector.broadcast %cst_15 : f32 to vector<4x256xf32>
    %57 = vector.shape_cast %20 : vector<1x256xi1> to vector<1x256xi1>
    %58 = vector.broadcast %57 : vector<1x256xi1> to vector<4x256xi1>
    %59 = arith.select %58, %55, %56 : vector<4x256xi1>, vector<4x256xf32>
    %60 = tpu.concatenate %31, %32, %37, %42, %43, %48, %53, %54, %59 in 0 : vector<4x256xf32>, vector<4x256xf32>, vector<4x256xf32>, vector<4x256xf32>, vector<4x256xf32>, vector<4x256xf32>, vector<4x256xf32>, vector<4x256xf32>, vector<4x256xf32> -> vector<36x256xf32>
    %cst_16 = arith.constant dense<0.000000e+00> : vector<32x256xf32>
    %61 = tpu.matmul %23, %60, %cst_16 {dimension_numbers = #tpu.dot_dimension_numbers<[1], [0], [0], [1], [0, 0, 1, 1], [], []>} : vector<32x36xf32>, vector<36x256xf32>, vector<32x256xf32> -> vector<32x256xf32>
    %62 = vector.broadcast %24 : vector<32x1xf32> to vector<32x256xf32>
    %63 = arith.addf %61, %62 : vector<32x256xf32>
    %c0_17 = arith.constant 0 : index
    %c0_18 = arith.constant 0 : index
    %c0_19 = arith.constant 0 : index
    %64 = vector.load %arg4[%c0_17, %c0_18, %c0_19] : memref<2x32x288xf32, #tpu.memory_space<vmem>>, vector<1x32x288xf32>
    %65 = vector.shape_cast %64 : vector<1x32x288xf32> to vector<32x288xf32>
    %c0_20 = arith.constant 0 : index
    %c0_21 = arith.constant 0 : index
    %c0_22 = arith.constant 0 : index
    %66 = vector.load %arg5[%c0_20, %c0_21, %c0_22] : memref<2x32x1xf32, #tpu.memory_space<vmem>>, vector<1x32x1xf32>
    %67 = vector.shape_cast %66 : vector<1x32x1xf32> to vector<32x1xf32>
    %cst_23 = arith.constant 0.000000e+00 : f32
    %68 = vector.broadcast %cst_23 : f32 to vector<32x17xf32>
    %69 = tpu.concatenate %68, %63, %68 in 1 : vector<32x17xf32>, vector<32x256xf32>, vector<32x17xf32> -> vector<32x290xf32>
    %70 = vector.extract_strided_slice %69 {offsets = [0, 0], sizes = [32, 256], strides = [1, 1]} : vector<32x290xf32> to vector<32x256xf32>
    %cst_24 = arith.constant 0.000000e+00 : f32
    %71 = vector.broadcast %cst_24 : f32 to vector<32x256xf32>
    %72 = vector.shape_cast %18 : vector<1x256xi1> to vector<1x256xi1>
    %73 = vector.broadcast %72 : vector<1x256xi1> to vector<32x256xi1>
    %74 = arith.select %73, %70, %71 : vector<32x256xi1>, vector<32x256xf32>
    %75 = vector.extract_strided_slice %69 {offsets = [0, 1], sizes = [32, 256], strides = [1, 1]} : vector<32x290xf32> to vector<32x256xf32>
    %76 = vector.extract_strided_slice %69 {offsets = [0, 2], sizes = [32, 256], strides = [1, 1]} : vector<32x290xf32> to vector<32x256xf32>
    %cst_25 = arith.constant 0.000000e+00 : f32
    %77 = vector.broadcast %cst_25 : f32 to vector<32x256xf32>
    %78 = vector.shape_cast %20 : vector<1x256xi1> to vector<1x256xi1>
    %79 = vector.broadcast %78 : vector<1x256xi1> to vector<32x256xi1>
    %80 = arith.select %79, %76, %77 : vector<32x256xi1>, vector<32x256xf32>
    %81 = vector.extract_strided_slice %69 {offsets = [0, 16], sizes = [32, 256], strides = [1, 1]} : vector<32x290xf32> to vector<32x256xf32>
    %cst_26 = arith.constant 0.000000e+00 : f32
    %82 = vector.broadcast %cst_26 : f32 to vector<32x256xf32>
    %83 = vector.shape_cast %18 : vector<1x256xi1> to vector<1x256xi1>
    %84 = vector.broadcast %83 : vector<1x256xi1> to vector<32x256xi1>
    %85 = arith.select %84, %81, %82 : vector<32x256xi1>, vector<32x256xf32>
    %86 = vector.extract_strided_slice %69 {offsets = [0, 17], sizes = [32, 256], strides = [1, 1]} : vector<32x290xf32> to vector<32x256xf32>
    %87 = vector.extract_strided_slice %69 {offsets = [0, 18], sizes = [32, 256], strides = [1, 1]} : vector<32x290xf32> to vector<32x256xf32>
    %cst_27 = arith.constant 0.000000e+00 : f32
    %88 = vector.broadcast %cst_27 : f32 to vector<32x256xf32>
    %89 = vector.shape_cast %20 : vector<1x256xi1> to vector<1x256xi1>
    %90 = vector.broadcast %89 : vector<1x256xi1> to vector<32x256xi1>
    %91 = arith.select %90, %87, %88 : vector<32x256xi1>, vector<32x256xf32>
    %92 = vector.extract_strided_slice %69 {offsets = [0, 32], sizes = [32, 256], strides = [1, 1]} : vector<32x290xf32> to vector<32x256xf32>
    %cst_28 = arith.constant 0.000000e+00 : f32
    %93 = vector.broadcast %cst_28 : f32 to vector<32x256xf32>
    %94 = vector.shape_cast %18 : vector<1x256xi1> to vector<1x256xi1>
    %95 = vector.broadcast %94 : vector<1x256xi1> to vector<32x256xi1>
    %96 = arith.select %95, %92, %93 : vector<32x256xi1>, vector<32x256xf32>
    %97 = vector.extract_strided_slice %69 {offsets = [0, 33], sizes = [32, 256], strides = [1, 1]} : vector<32x290xf32> to vector<32x256xf32>
    %98 = vector.extract_strided_slice %69 {offsets = [0, 34], sizes = [32, 256], strides = [1, 1]} : vector<32x290xf32> to vector<32x256xf32>
    %cst_29 = arith.constant 0.000000e+00 : f32
    %99 = vector.broadcast %cst_29 : f32 to vector<32x256xf32>
    %100 = vector.shape_cast %20 : vector<1x256xi1> to vector<1x256xi1>
    %101 = vector.broadcast %100 : vector<1x256xi1> to vector<32x256xi1>
    %102 = arith.select %101, %98, %99 : vector<32x256xi1>, vector<32x256xf32>
    %103 = tpu.concatenate %74, %75, %80, %85, %86, %91, %96, %97, %102 in 0 : vector<32x256xf32>, vector<32x256xf32>, vector<32x256xf32>, vector<32x256xf32>, vector<32x256xf32>, vector<32x256xf32>, vector<32x256xf32>, vector<32x256xf32>, vector<32x256xf32> -> vector<288x256xf32>
    %cst_30 = arith.constant dense<0.000000e+00> : vector<32x256xf32>
    %104 = tpu.matmul %65, %103, %cst_30 {dimension_numbers = #tpu.dot_dimension_numbers<[1], [0], [0], [1], [0, 0, 1, 1], [], []>} : vector<32x288xf32>, vector<288x256xf32>, vector<32x256xf32> -> vector<32x256xf32>
    %105 = vector.broadcast %67 : vector<32x1xf32> to vector<32x256xf32>
    %106 = arith.addf %104, %105 : vector<32x256xf32>
    %cst_31 = arith.constant 0.000000e+00 : f32
    %107 = vector.broadcast %cst_31 : f32 to vector<32x256xf32>
    %108 = arith.maximumf %106, %107 : vector<32x256xf32>
    %c0_32 = arith.constant 0 : index
    %c0_33 = arith.constant 0 : index
    %c0_34 = arith.constant 0 : index
    %109 = vector.load %arg6[%c0_32, %c0_33, %c0_34] : memref<2x32x288xf32, #tpu.memory_space<vmem>>, vector<1x32x288xf32>
    %110 = vector.shape_cast %109 : vector<1x32x288xf32> to vector<32x288xf32>
    %c0_35 = arith.constant 0 : index
    %c0_36 = arith.constant 0 : index
    %c0_37 = arith.constant 0 : index
    %111 = vector.load %arg7[%c0_35, %c0_36, %c0_37] : memref<2x32x1xf32, #tpu.memory_space<vmem>>, vector<1x32x1xf32>
    %112 = vector.shape_cast %111 : vector<1x32x1xf32> to vector<32x1xf32>
    %cst_38 = arith.constant 0.000000e+00 : f32
    %113 = vector.broadcast %cst_38 : f32 to vector<32x17xf32>
    %114 = tpu.concatenate %113, %108, %113 in 1 : vector<32x17xf32>, vector<32x256xf32>, vector<32x17xf32> -> vector<32x290xf32>
    %115 = vector.extract_strided_slice %114 {offsets = [0, 0], sizes = [32, 256], strides = [1, 1]} : vector<32x290xf32> to vector<32x256xf32>
    %cst_39 = arith.constant 0.000000e+00 : f32
    %116 = vector.broadcast %cst_39 : f32 to vector<32x256xf32>
    %117 = vector.shape_cast %18 : vector<1x256xi1> to vector<1x256xi1>
    %118 = vector.broadcast %117 : vector<1x256xi1> to vector<32x256xi1>
    %119 = arith.select %118, %115, %116 : vector<32x256xi1>, vector<32x256xf32>
    %120 = vector.extract_strided_slice %114 {offsets = [0, 1], sizes = [32, 256], strides = [1, 1]} : vector<32x290xf32> to vector<32x256xf32>
    %121 = vector.extract_strided_slice %114 {offsets = [0, 2], sizes = [32, 256], strides = [1, 1]} : vector<32x290xf32> to vector<32x256xf32>
    %cst_40 = arith.constant 0.000000e+00 : f32
    %122 = vector.broadcast %cst_40 : f32 to vector<32x256xf32>
    %123 = vector.shape_cast %20 : vector<1x256xi1> to vector<1x256xi1>
    %124 = vector.broadcast %123 : vector<1x256xi1> to vector<32x256xi1>
    %125 = arith.select %124, %121, %122 : vector<32x256xi1>, vector<32x256xf32>
    %126 = vector.extract_strided_slice %114 {offsets = [0, 16], sizes = [32, 256], strides = [1, 1]} : vector<32x290xf32> to vector<32x256xf32>
    %cst_41 = arith.constant 0.000000e+00 : f32
    %127 = vector.broadcast %cst_41 : f32 to vector<32x256xf32>
    %128 = vector.shape_cast %18 : vector<1x256xi1> to vector<1x256xi1>
    %129 = vector.broadcast %128 : vector<1x256xi1> to vector<32x256xi1>
    %130 = arith.select %129, %126, %127 : vector<32x256xi1>, vector<32x256xf32>
    %131 = vector.extract_strided_slice %114 {offsets = [0, 17], sizes = [32, 256], strides = [1, 1]} : vector<32x290xf32> to vector<32x256xf32>
    %132 = vector.extract_strided_slice %114 {offsets = [0, 18], sizes = [32, 256], strides = [1, 1]} : vector<32x290xf32> to vector<32x256xf32>
    %cst_42 = arith.constant 0.000000e+00 : f32
    %133 = vector.broadcast %cst_42 : f32 to vector<32x256xf32>
    %134 = vector.shape_cast %20 : vector<1x256xi1> to vector<1x256xi1>
    %135 = vector.broadcast %134 : vector<1x256xi1> to vector<32x256xi1>
    %136 = arith.select %135, %132, %133 : vector<32x256xi1>, vector<32x256xf32>
    %137 = vector.extract_strided_slice %114 {offsets = [0, 32], sizes = [32, 256], strides = [1, 1]} : vector<32x290xf32> to vector<32x256xf32>
    %cst_43 = arith.constant 0.000000e+00 : f32
    %138 = vector.broadcast %cst_43 : f32 to vector<32x256xf32>
    %139 = vector.shape_cast %18 : vector<1x256xi1> to vector<1x256xi1>
    %140 = vector.broadcast %139 : vector<1x256xi1> to vector<32x256xi1>
    %141 = arith.select %140, %137, %138 : vector<32x256xi1>, vector<32x256xf32>
    %142 = vector.extract_strided_slice %114 {offsets = [0, 33], sizes = [32, 256], strides = [1, 1]} : vector<32x290xf32> to vector<32x256xf32>
    %143 = vector.extract_strided_slice %114 {offsets = [0, 34], sizes = [32, 256], strides = [1, 1]} : vector<32x290xf32> to vector<32x256xf32>
    %cst_44 = arith.constant 0.000000e+00 : f32
    %144 = vector.broadcast %cst_44 : f32 to vector<32x256xf32>
    %145 = vector.shape_cast %20 : vector<1x256xi1> to vector<1x256xi1>
    %146 = vector.broadcast %145 : vector<1x256xi1> to vector<32x256xi1>
    %147 = arith.select %146, %143, %144 : vector<32x256xi1>, vector<32x256xf32>
    %148 = tpu.concatenate %119, %120, %125, %130, %131, %136, %141, %142, %147 in 0 : vector<32x256xf32>, vector<32x256xf32>, vector<32x256xf32>, vector<32x256xf32>, vector<32x256xf32>, vector<32x256xf32>, vector<32x256xf32>, vector<32x256xf32>, vector<32x256xf32> -> vector<288x256xf32>
    %cst_45 = arith.constant dense<0.000000e+00> : vector<32x256xf32>
    %149 = tpu.matmul %110, %148, %cst_45 {dimension_numbers = #tpu.dot_dimension_numbers<[1], [0], [0], [1], [0, 0, 1, 1], [], []>} : vector<32x288xf32>, vector<288x256xf32>, vector<32x256xf32> -> vector<32x256xf32>
    %150 = vector.broadcast %112 : vector<32x1xf32> to vector<32x256xf32>
    %151 = arith.addf %149, %150 : vector<32x256xf32>
    %152 = arith.addf %151, %63 : vector<32x256xf32>
    %c1 = arith.constant 1 : index
    %c0_46 = arith.constant 0 : index
    %c0_47 = arith.constant 0 : index
    %153 = vector.load %arg4[%c1, %c0_46, %c0_47] : memref<2x32x288xf32, #tpu.memory_space<vmem>>, vector<1x32x288xf32>
    %154 = vector.shape_cast %153 : vector<1x32x288xf32> to vector<32x288xf32>
    %c1_48 = arith.constant 1 : index
    %c0_49 = arith.constant 0 : index
    %c0_50 = arith.constant 0 : index
    %155 = vector.load %arg5[%c1_48, %c0_49, %c0_50] : memref<2x32x1xf32, #tpu.memory_space<vmem>>, vector<1x32x1xf32>
    %156 = vector.shape_cast %155 : vector<1x32x1xf32> to vector<32x1xf32>
    %cst_51 = arith.constant 0.000000e+00 : f32
    %157 = vector.broadcast %cst_51 : f32 to vector<32x17xf32>
    %158 = tpu.concatenate %157, %152, %157 in 1 : vector<32x17xf32>, vector<32x256xf32>, vector<32x17xf32> -> vector<32x290xf32>
    %159 = vector.extract_strided_slice %158 {offsets = [0, 0], sizes = [32, 256], strides = [1, 1]} : vector<32x290xf32> to vector<32x256xf32>
    %cst_52 = arith.constant 0.000000e+00 : f32
    %160 = vector.broadcast %cst_52 : f32 to vector<32x256xf32>
    %161 = vector.shape_cast %18 : vector<1x256xi1> to vector<1x256xi1>
    %162 = vector.broadcast %161 : vector<1x256xi1> to vector<32x256xi1>
    %163 = arith.select %162, %159, %160 : vector<32x256xi1>, vector<32x256xf32>
    %164 = vector.extract_strided_slice %158 {offsets = [0, 1], sizes = [32, 256], strides = [1, 1]} : vector<32x290xf32> to vector<32x256xf32>
    %165 = vector.extract_strided_slice %158 {offsets = [0, 2], sizes = [32, 256], strides = [1, 1]} : vector<32x290xf32> to vector<32x256xf32>
    %cst_53 = arith.constant 0.000000e+00 : f32
    %166 = vector.broadcast %cst_53 : f32 to vector<32x256xf32>
    %167 = vector.shape_cast %20 : vector<1x256xi1> to vector<1x256xi1>
    %168 = vector.broadcast %167 : vector<1x256xi1> to vector<32x256xi1>
    %169 = arith.select %168, %165, %166 : vector<32x256xi1>, vector<32x256xf32>
    %170 = vector.extract_strided_slice %158 {offsets = [0, 16], sizes = [32, 256], strides = [1, 1]} : vector<32x290xf32> to vector<32x256xf32>
    %cst_54 = arith.constant 0.000000e+00 : f32
    %171 = vector.broadcast %cst_54 : f32 to vector<32x256xf32>
    %172 = vector.shape_cast %18 : vector<1x256xi1> to vector<1x256xi1>
    %173 = vector.broadcast %172 : vector<1x256xi1> to vector<32x256xi1>
    %174 = arith.select %173, %170, %171 : vector<32x256xi1>, vector<32x256xf32>
    %175 = vector.extract_strided_slice %158 {offsets = [0, 17], sizes = [32, 256], strides = [1, 1]} : vector<32x290xf32> to vector<32x256xf32>
    %176 = vector.extract_strided_slice %158 {offsets = [0, 18], sizes = [32, 256], strides = [1, 1]} : vector<32x290xf32> to vector<32x256xf32>
    %cst_55 = arith.constant 0.000000e+00 : f32
    %177 = vector.broadcast %cst_55 : f32 to vector<32x256xf32>
    %178 = vector.shape_cast %20 : vector<1x256xi1> to vector<1x256xi1>
    %179 = vector.broadcast %178 : vector<1x256xi1> to vector<32x256xi1>
    %180 = arith.select %179, %176, %177 : vector<32x256xi1>, vector<32x256xf32>
    %181 = vector.extract_strided_slice %158 {offsets = [0, 32], sizes = [32, 256], strides = [1, 1]} : vector<32x290xf32> to vector<32x256xf32>
    %cst_56 = arith.constant 0.000000e+00 : f32
    %182 = vector.broadcast %cst_56 : f32 to vector<32x256xf32>
    %183 = vector.shape_cast %18 : vector<1x256xi1> to vector<1x256xi1>
    %184 = vector.broadcast %183 : vector<1x256xi1> to vector<32x256xi1>
    %185 = arith.select %184, %181, %182 : vector<32x256xi1>, vector<32x256xf32>
    %186 = vector.extract_strided_slice %158 {offsets = [0, 33], sizes = [32, 256], strides = [1, 1]} : vector<32x290xf32> to vector<32x256xf32>
    %187 = vector.extract_strided_slice %158 {offsets = [0, 34], sizes = [32, 256], strides = [1, 1]} : vector<32x290xf32> to vector<32x256xf32>
    %cst_57 = arith.constant 0.000000e+00 : f32
    %188 = vector.broadcast %cst_57 : f32 to vector<32x256xf32>
    %189 = vector.shape_cast %20 : vector<1x256xi1> to vector<1x256xi1>
    %190 = vector.broadcast %189 : vector<1x256xi1> to vector<32x256xi1>
    %191 = arith.select %190, %187, %188 : vector<32x256xi1>, vector<32x256xf32>
    %192 = tpu.concatenate %163, %164, %169, %174, %175, %180, %185, %186, %191 in 0 : vector<32x256xf32>, vector<32x256xf32>, vector<32x256xf32>, vector<32x256xf32>, vector<32x256xf32>, vector<32x256xf32>, vector<32x256xf32>, vector<32x256xf32>, vector<32x256xf32> -> vector<288x256xf32>
    %cst_58 = arith.constant dense<0.000000e+00> : vector<32x256xf32>
    %193 = tpu.matmul %154, %192, %cst_58 {dimension_numbers = #tpu.dot_dimension_numbers<[1], [0], [0], [1], [0, 0, 1, 1], [], []>} : vector<32x288xf32>, vector<288x256xf32>, vector<32x256xf32> -> vector<32x256xf32>
    %194 = vector.broadcast %156 : vector<32x1xf32> to vector<32x256xf32>
    %195 = arith.addf %193, %194 : vector<32x256xf32>
    %cst_59 = arith.constant 0.000000e+00 : f32
    %196 = vector.broadcast %cst_59 : f32 to vector<32x256xf32>
    %197 = arith.maximumf %195, %196 : vector<32x256xf32>
    %c1_60 = arith.constant 1 : index
    %c0_61 = arith.constant 0 : index
    %c0_62 = arith.constant 0 : index
    %198 = vector.load %arg6[%c1_60, %c0_61, %c0_62] : memref<2x32x288xf32, #tpu.memory_space<vmem>>, vector<1x32x288xf32>
    %199 = vector.shape_cast %198 : vector<1x32x288xf32> to vector<32x288xf32>
    %c1_63 = arith.constant 1 : index
    %c0_64 = arith.constant 0 : index
    %c0_65 = arith.constant 0 : index
    %200 = vector.load %arg7[%c1_63, %c0_64, %c0_65] : memref<2x32x1xf32, #tpu.memory_space<vmem>>, vector<1x32x1xf32>
    %201 = vector.shape_cast %200 : vector<1x32x1xf32> to vector<32x1xf32>
    %cst_66 = arith.constant 0.000000e+00 : f32
    %202 = vector.broadcast %cst_66 : f32 to vector<32x17xf32>
    %203 = tpu.concatenate %202, %197, %202 in 1 : vector<32x17xf32>, vector<32x256xf32>, vector<32x17xf32> -> vector<32x290xf32>
    %204 = vector.extract_strided_slice %203 {offsets = [0, 0], sizes = [32, 256], strides = [1, 1]} : vector<32x290xf32> to vector<32x256xf32>
    %cst_67 = arith.constant 0.000000e+00 : f32
    %205 = vector.broadcast %cst_67 : f32 to vector<32x256xf32>
    %206 = vector.shape_cast %18 : vector<1x256xi1> to vector<1x256xi1>
    %207 = vector.broadcast %206 : vector<1x256xi1> to vector<32x256xi1>
    %208 = arith.select %207, %204, %205 : vector<32x256xi1>, vector<32x256xf32>
    %209 = vector.extract_strided_slice %203 {offsets = [0, 1], sizes = [32, 256], strides = [1, 1]} : vector<32x290xf32> to vector<32x256xf32>
    %210 = vector.extract_strided_slice %203 {offsets = [0, 2], sizes = [32, 256], strides = [1, 1]} : vector<32x290xf32> to vector<32x256xf32>
    %cst_68 = arith.constant 0.000000e+00 : f32
    %211 = vector.broadcast %cst_68 : f32 to vector<32x256xf32>
    %212 = vector.shape_cast %20 : vector<1x256xi1> to vector<1x256xi1>
    %213 = vector.broadcast %212 : vector<1x256xi1> to vector<32x256xi1>
    %214 = arith.select %213, %210, %211 : vector<32x256xi1>, vector<32x256xf32>
    %215 = vector.extract_strided_slice %203 {offsets = [0, 16], sizes = [32, 256], strides = [1, 1]} : vector<32x290xf32> to vector<32x256xf32>
    %cst_69 = arith.constant 0.000000e+00 : f32
    %216 = vector.broadcast %cst_69 : f32 to vector<32x256xf32>
    %217 = vector.shape_cast %18 : vector<1x256xi1> to vector<1x256xi1>
    %218 = vector.broadcast %217 : vector<1x256xi1> to vector<32x256xi1>
    %219 = arith.select %218, %215, %216 : vector<32x256xi1>, vector<32x256xf32>
    %220 = vector.extract_strided_slice %203 {offsets = [0, 17], sizes = [32, 256], strides = [1, 1]} : vector<32x290xf32> to vector<32x256xf32>
    %221 = vector.extract_strided_slice %203 {offsets = [0, 18], sizes = [32, 256], strides = [1, 1]} : vector<32x290xf32> to vector<32x256xf32>
    %cst_70 = arith.constant 0.000000e+00 : f32
    %222 = vector.broadcast %cst_70 : f32 to vector<32x256xf32>
    %223 = vector.shape_cast %20 : vector<1x256xi1> to vector<1x256xi1>
    %224 = vector.broadcast %223 : vector<1x256xi1> to vector<32x256xi1>
    %225 = arith.select %224, %221, %222 : vector<32x256xi1>, vector<32x256xf32>
    %226 = vector.extract_strided_slice %203 {offsets = [0, 32], sizes = [32, 256], strides = [1, 1]} : vector<32x290xf32> to vector<32x256xf32>
    %cst_71 = arith.constant 0.000000e+00 : f32
    %227 = vector.broadcast %cst_71 : f32 to vector<32x256xf32>
    %228 = vector.shape_cast %18 : vector<1x256xi1> to vector<1x256xi1>
    %229 = vector.broadcast %228 : vector<1x256xi1> to vector<32x256xi1>
    %230 = arith.select %229, %226, %227 : vector<32x256xi1>, vector<32x256xf32>
    %231 = vector.extract_strided_slice %203 {offsets = [0, 33], sizes = [32, 256], strides = [1, 1]} : vector<32x290xf32> to vector<32x256xf32>
    %232 = vector.extract_strided_slice %203 {offsets = [0, 34], sizes = [32, 256], strides = [1, 1]} : vector<32x290xf32> to vector<32x256xf32>
    %cst_72 = arith.constant 0.000000e+00 : f32
    %233 = vector.broadcast %cst_72 : f32 to vector<32x256xf32>
    %234 = vector.shape_cast %20 : vector<1x256xi1> to vector<1x256xi1>
    %235 = vector.broadcast %234 : vector<1x256xi1> to vector<32x256xi1>
    %236 = arith.select %235, %232, %233 : vector<32x256xi1>, vector<32x256xf32>
    %237 = tpu.concatenate %208, %209, %214, %219, %220, %225, %230, %231, %236 in 0 : vector<32x256xf32>, vector<32x256xf32>, vector<32x256xf32>, vector<32x256xf32>, vector<32x256xf32>, vector<32x256xf32>, vector<32x256xf32>, vector<32x256xf32>, vector<32x256xf32> -> vector<288x256xf32>
    %cst_73 = arith.constant dense<0.000000e+00> : vector<32x256xf32>
    %238 = tpu.matmul %199, %237, %cst_73 {dimension_numbers = #tpu.dot_dimension_numbers<[1], [0], [0], [1], [0, 0, 1, 1], [], []>} : vector<32x288xf32>, vector<288x256xf32>, vector<32x256xf32> -> vector<32x256xf32>
    %239 = vector.broadcast %201 : vector<32x1xf32> to vector<32x256xf32>
    %240 = arith.addf %238, %239 : vector<32x256xf32>
    %241 = arith.addf %240, %152 : vector<32x256xf32>
    %c0_74 = arith.constant 0 : index
    %c0_75 = arith.constant 0 : index
    %242 = vector.load %arg8[%c0_74, %c0_75] : memref<32x288xf32, #tpu.memory_space<vmem>>, vector<32x288xf32>
    %c0_76 = arith.constant 0 : index
    %c0_77 = arith.constant 0 : index
    %243 = vector.load %arg9[%c0_76, %c0_77] : memref<32x1xf32, #tpu.memory_space<vmem>>, vector<32x1xf32>
    %cst_78 = arith.constant 0.000000e+00 : f32
    %244 = vector.broadcast %cst_78 : f32 to vector<32x17xf32>
    %245 = tpu.concatenate %244, %241, %244 in 1 : vector<32x17xf32>, vector<32x256xf32>, vector<32x17xf32> -> vector<32x290xf32>
    %246 = vector.extract_strided_slice %245 {offsets = [0, 0], sizes = [32, 256], strides = [1, 1]} : vector<32x290xf32> to vector<32x256xf32>
    %cst_79 = arith.constant 0.000000e+00 : f32
    %247 = vector.broadcast %cst_79 : f32 to vector<32x256xf32>
    %248 = vector.shape_cast %18 : vector<1x256xi1> to vector<1x256xi1>
    %249 = vector.broadcast %248 : vector<1x256xi1> to vector<32x256xi1>
    %250 = arith.select %249, %246, %247 : vector<32x256xi1>, vector<32x256xf32>
    %251 = vector.extract_strided_slice %245 {offsets = [0, 1], sizes = [32, 256], strides = [1, 1]} : vector<32x290xf32> to vector<32x256xf32>
    %252 = vector.extract_strided_slice %245 {offsets = [0, 2], sizes = [32, 256], strides = [1, 1]} : vector<32x290xf32> to vector<32x256xf32>
    %cst_80 = arith.constant 0.000000e+00 : f32
    %253 = vector.broadcast %cst_80 : f32 to vector<32x256xf32>
    %254 = vector.shape_cast %20 : vector<1x256xi1> to vector<1x256xi1>
    %255 = vector.broadcast %254 : vector<1x256xi1> to vector<32x256xi1>
    %256 = arith.select %255, %252, %253 : vector<32x256xi1>, vector<32x256xf32>
    %257 = vector.extract_strided_slice %245 {offsets = [0, 16], sizes = [32, 256], strides = [1, 1]} : vector<32x290xf32> to vector<32x256xf32>
    %cst_81 = arith.constant 0.000000e+00 : f32
    %258 = vector.broadcast %cst_81 : f32 to vector<32x256xf32>
    %259 = vector.shape_cast %18 : vector<1x256xi1> to vector<1x256xi1>
    %260 = vector.broadcast %259 : vector<1x256xi1> to vector<32x256xi1>
    %261 = arith.select %260, %257, %258 : vector<32x256xi1>, vector<32x256xf32>
    %262 = vector.extract_strided_slice %245 {offsets = [0, 17], sizes = [32, 256], strides = [1, 1]} : vector<32x290xf32> to vector<32x256xf32>
    %263 = vector.extract_strided_slice %245 {offsets = [0, 18], sizes = [32, 256], strides = [1, 1]} : vector<32x290xf32> to vector<32x256xf32>
    %cst_82 = arith.constant 0.000000e+00 : f32
    %264 = vector.broadcast %cst_82 : f32 to vector<32x256xf32>
    %265 = vector.shape_cast %20 : vector<1x256xi1> to vector<1x256xi1>
    %266 = vector.broadcast %265 : vector<1x256xi1> to vector<32x256xi1>
    %267 = arith.select %266, %263, %264 : vector<32x256xi1>, vector<32x256xf32>
    %268 = vector.extract_strided_slice %245 {offsets = [0, 32], sizes = [32, 256], strides = [1, 1]} : vector<32x290xf32> to vector<32x256xf32>
    %cst_83 = arith.constant 0.000000e+00 : f32
    %269 = vector.broadcast %cst_83 : f32 to vector<32x256xf32>
    %270 = vector.shape_cast %18 : vector<1x256xi1> to vector<1x256xi1>
    %271 = vector.broadcast %270 : vector<1x256xi1> to vector<32x256xi1>
    %272 = arith.select %271, %268, %269 : vector<32x256xi1>, vector<32x256xf32>
    %273 = vector.extract_strided_slice %245 {offsets = [0, 33], sizes = [32, 256], strides = [1, 1]} : vector<32x290xf32> to vector<32x256xf32>
    %274 = vector.extract_strided_slice %245 {offsets = [0, 34], sizes = [32, 256], strides = [1, 1]} : vector<32x290xf32> to vector<32x256xf32>
    %cst_84 = arith.constant 0.000000e+00 : f32
    %275 = vector.broadcast %cst_84 : f32 to vector<32x256xf32>
    %276 = vector.shape_cast %20 : vector<1x256xi1> to vector<1x256xi1>
    %277 = vector.broadcast %276 : vector<1x256xi1> to vector<32x256xi1>
    %278 = arith.select %277, %274, %275 : vector<32x256xi1>, vector<32x256xf32>
    %279 = tpu.concatenate %250, %251, %256, %261, %262, %267, %272, %273, %278 in 0 : vector<32x256xf32>, vector<32x256xf32>, vector<32x256xf32>, vector<32x256xf32>, vector<32x256xf32>, vector<32x256xf32>, vector<32x256xf32>, vector<32x256xf32>, vector<32x256xf32> -> vector<288x256xf32>
    %cst_85 = arith.constant dense<0.000000e+00> : vector<32x256xf32>
    %280 = tpu.matmul %242, %279, %cst_85 {dimension_numbers = #tpu.dot_dimension_numbers<[1], [0], [0], [1], [0, 0, 1, 1], [], []>} : vector<32x288xf32>, vector<288x256xf32>, vector<32x256xf32> -> vector<32x256xf32>
    %281 = vector.broadcast %243 : vector<32x1xf32> to vector<32x256xf32>
    %282 = arith.addf %280, %281 : vector<32x256xf32>
    %283 = arith.addf %282, %63 : vector<32x256xf32>
    %cst_86 = arith.constant 0.000000e+00 : f32
    %284 = vector.broadcast %cst_86 : f32 to vector<32x17xf32>
    %285 = tpu.concatenate %284, %283, %284 in 1 : vector<32x17xf32>, vector<32x256xf32>, vector<32x17xf32> -> vector<32x290xf32>
    %286 = vector.extract_strided_slice %285 {offsets = [0, 0], sizes = [32, 256], strides = [1, 1]} : vector<32x290xf32> to vector<32x256xf32>
    %cst_87 = arith.constant 0.000000e+00 : f32
    %287 = vector.broadcast %cst_87 : f32 to vector<32x256xf32>
    %288 = vector.shape_cast %18 : vector<1x256xi1> to vector<1x256xi1>
    %289 = vector.broadcast %288 : vector<1x256xi1> to vector<32x256xi1>
    %290 = arith.select %289, %286, %287 : vector<32x256xi1>, vector<32x256xf32>
    %291 = vector.extract_strided_slice %285 {offsets = [0, 1], sizes = [32, 256], strides = [1, 1]} : vector<32x290xf32> to vector<32x256xf32>
    %292 = vector.extract_strided_slice %285 {offsets = [0, 2], sizes = [32, 256], strides = [1, 1]} : vector<32x290xf32> to vector<32x256xf32>
    %cst_88 = arith.constant 0.000000e+00 : f32
    %293 = vector.broadcast %cst_88 : f32 to vector<32x256xf32>
    %294 = vector.shape_cast %20 : vector<1x256xi1> to vector<1x256xi1>
    %295 = vector.broadcast %294 : vector<1x256xi1> to vector<32x256xi1>
    %296 = arith.select %295, %292, %293 : vector<32x256xi1>, vector<32x256xf32>
    %297 = vector.extract_strided_slice %285 {offsets = [0, 16], sizes = [32, 256], strides = [1, 1]} : vector<32x290xf32> to vector<32x256xf32>
    %cst_89 = arith.constant 0.000000e+00 : f32
    %298 = vector.broadcast %cst_89 : f32 to vector<32x256xf32>
    %299 = vector.shape_cast %18 : vector<1x256xi1> to vector<1x256xi1>
    %300 = vector.broadcast %299 : vector<1x256xi1> to vector<32x256xi1>
    %301 = arith.select %300, %297, %298 : vector<32x256xi1>, vector<32x256xf32>
    %302 = vector.extract_strided_slice %285 {offsets = [0, 17], sizes = [32, 256], strides = [1, 1]} : vector<32x290xf32> to vector<32x256xf32>
    %303 = vector.extract_strided_slice %285 {offsets = [0, 18], sizes = [32, 256], strides = [1, 1]} : vector<32x290xf32> to vector<32x256xf32>
    %cst_90 = arith.constant 0.000000e+00 : f32
    %304 = vector.broadcast %cst_90 : f32 to vector<32x256xf32>
    %305 = vector.shape_cast %20 : vector<1x256xi1> to vector<1x256xi1>
    %306 = vector.broadcast %305 : vector<1x256xi1> to vector<32x256xi1>
    %307 = arith.select %306, %303, %304 : vector<32x256xi1>, vector<32x256xf32>
    %308 = vector.extract_strided_slice %285 {offsets = [0, 32], sizes = [32, 256], strides = [1, 1]} : vector<32x290xf32> to vector<32x256xf32>
    %cst_91 = arith.constant 0.000000e+00 : f32
    %309 = vector.broadcast %cst_91 : f32 to vector<32x256xf32>
    %310 = vector.shape_cast %18 : vector<1x256xi1> to vector<1x256xi1>
    %311 = vector.broadcast %310 : vector<1x256xi1> to vector<32x256xi1>
    %312 = arith.select %311, %308, %309 : vector<32x256xi1>, vector<32x256xf32>
    %313 = vector.extract_strided_slice %285 {offsets = [0, 33], sizes = [32, 256], strides = [1, 1]} : vector<32x290xf32> to vector<32x256xf32>
    %314 = vector.extract_strided_slice %285 {offsets = [0, 34], sizes = [32, 256], strides = [1, 1]} : vector<32x290xf32> to vector<32x256xf32>
    %cst_92 = arith.constant 0.000000e+00 : f32
    %315 = vector.broadcast %cst_92 : f32 to vector<32x256xf32>
    %316 = vector.shape_cast %20 : vector<1x256xi1> to vector<1x256xi1>
    %317 = vector.broadcast %316 : vector<1x256xi1> to vector<32x256xi1>
    %318 = arith.select %317, %314, %315 : vector<32x256xi1>, vector<32x256xf32>
    %319 = tpu.concatenate %290, %291, %296, %301, %302, %307, %312, %313, %318 in 0 : vector<32x256xf32>, vector<32x256xf32>, vector<32x256xf32>, vector<32x256xf32>, vector<32x256xf32>, vector<32x256xf32>, vector<32x256xf32>, vector<32x256xf32>, vector<32x256xf32> -> vector<288x256xf32>
    %c0_93 = arith.constant 0 : index
    %c0_94 = arith.constant 0 : index
    %320 = vector.load %arg10[%c0_93, %c0_94] : memref<128x288xf32, #tpu.memory_space<vmem>>, vector<128x288xf32>
    %cst_95 = arith.constant dense<0.000000e+00> : vector<128x256xf32>
    %321 = tpu.matmul %320, %319, %cst_95 {dimension_numbers = #tpu.dot_dimension_numbers<[1], [0], [0], [1], [0, 0, 1, 1], [], []>} : vector<128x288xf32>, vector<288x256xf32>, vector<128x256xf32> -> vector<128x256xf32>
    %c0_96 = arith.constant 0 : index
    %c0_97 = arith.constant 0 : index
    %322 = vector.load %arg11[%c0_96, %c0_97] : memref<128x1xf32, #tpu.memory_space<vmem>>, vector<128x1xf32>
    %323 = vector.broadcast %322 : vector<128x1xf32> to vector<128x256xf32>
    %324 = arith.addf %321, %323 : vector<128x256xf32>
    %325 = vector.extract_strided_slice %324 {offsets = [0, 0], sizes = [32, 256], strides = [1, 1]} : vector<128x256xf32> to vector<32x256xf32>
    %cst_98 = arith.constant 0.000000e+00 : f32
    %326 = vector.broadcast %cst_98 : f32 to vector<32x17xf32>
    %327 = tpu.concatenate %326, %325, %326 in 1 : vector<32x17xf32>, vector<32x256xf32>, vector<32x17xf32> -> vector<32x290xf32>
    %328 = vector.extract_strided_slice %324 {offsets = [32, 0], sizes = [32, 256], strides = [1, 1]} : vector<128x256xf32> to vector<32x256xf32>
    %cst_99 = arith.constant 0.000000e+00 : f32
    %329 = vector.broadcast %cst_99 : f32 to vector<32x17xf32>
    %330 = tpu.concatenate %329, %328, %329 in 1 : vector<32x17xf32>, vector<32x256xf32>, vector<32x17xf32> -> vector<32x290xf32>
    %331 = vector.extract_strided_slice %324 {offsets = [64, 0], sizes = [32, 256], strides = [1, 1]} : vector<128x256xf32> to vector<32x256xf32>
    %cst_100 = arith.constant 0.000000e+00 : f32
    %332 = vector.broadcast %cst_100 : f32 to vector<32x17xf32>
    %333 = tpu.concatenate %332, %331, %332 in 1 : vector<32x17xf32>, vector<32x256xf32>, vector<32x17xf32> -> vector<32x290xf32>
    %334 = vector.extract_strided_slice %324 {offsets = [96, 0], sizes = [32, 256], strides = [1, 1]} : vector<128x256xf32> to vector<32x256xf32>
    %cst_101 = arith.constant 0.000000e+00 : f32
    %335 = vector.broadcast %cst_101 : f32 to vector<32x17xf32>
    %336 = tpu.concatenate %335, %334, %335 in 1 : vector<32x17xf32>, vector<32x256xf32>, vector<32x17xf32> -> vector<32x290xf32>
    %337 = vector.extract_strided_slice %336 {offsets = [0, 0], sizes = [32, 256], strides = [1, 1]} : vector<32x290xf32> to vector<32x256xf32>
    %cst_102 = arith.constant 0.000000e+00 : f32
    %338 = vector.broadcast %cst_102 : f32 to vector<32x256xf32>
    %339 = vector.shape_cast %18 : vector<1x256xi1> to vector<1x256xi1>
    %340 = vector.broadcast %339 : vector<1x256xi1> to vector<32x256xi1>
    %341 = arith.select %340, %337, %338 : vector<32x256xi1>, vector<32x256xf32>
    %342 = vector.extract_strided_slice %333 {offsets = [0, 1], sizes = [32, 256], strides = [1, 1]} : vector<32x290xf32> to vector<32x256xf32>
    %343 = vector.extract_strided_slice %336 {offsets = [0, 1], sizes = [32, 256], strides = [1, 1]} : vector<32x290xf32> to vector<32x256xf32>
    %344 = vector.extract_strided_slice %330 {offsets = [0, 16], sizes = [32, 256], strides = [1, 1]} : vector<32x290xf32> to vector<32x256xf32>
    %cst_103 = arith.constant 0.000000e+00 : f32
    %345 = vector.broadcast %cst_103 : f32 to vector<32x256xf32>
    %346 = vector.shape_cast %18 : vector<1x256xi1> to vector<1x256xi1>
    %347 = vector.broadcast %346 : vector<1x256xi1> to vector<32x256xi1>
    %348 = arith.select %347, %344, %345 : vector<32x256xi1>, vector<32x256xf32>
    %349 = vector.extract_strided_slice %327 {offsets = [0, 17], sizes = [32, 256], strides = [1, 1]} : vector<32x290xf32> to vector<32x256xf32>
    %350 = vector.extract_strided_slice %330 {offsets = [0, 17], sizes = [32, 256], strides = [1, 1]} : vector<32x290xf32> to vector<32x256xf32>
    %351 = vector.extract_strided_slice %336 {offsets = [0, 16], sizes = [32, 256], strides = [1, 1]} : vector<32x290xf32> to vector<32x256xf32>
    %cst_104 = arith.constant 0.000000e+00 : f32
    %352 = vector.broadcast %cst_104 : f32 to vector<32x256xf32>
    %353 = vector.shape_cast %18 : vector<1x256xi1> to vector<1x256xi1>
    %354 = vector.broadcast %353 : vector<1x256xi1> to vector<32x256xi1>
    %355 = arith.select %354, %351, %352 : vector<32x256xi1>, vector<32x256xf32>
    %356 = vector.extract_strided_slice %333 {offsets = [0, 17], sizes = [32, 256], strides = [1, 1]} : vector<32x290xf32> to vector<32x256xf32>
    %357 = vector.extract_strided_slice %336 {offsets = [0, 17], sizes = [32, 256], strides = [1, 1]} : vector<32x290xf32> to vector<32x256xf32>
    %358 = tpu.concatenate %341, %342, %343, %348, %349, %350, %355, %356, %357 in 0 : vector<32x256xf32>, vector<32x256xf32>, vector<32x256xf32>, vector<32x256xf32>, vector<32x256xf32>, vector<32x256xf32>, vector<32x256xf32>, vector<32x256xf32>, vector<32x256xf32> -> vector<288x256xf32>
    %359 = vector.extract_strided_slice %333 {offsets = [0, 1], sizes = [32, 256], strides = [1, 1]} : vector<32x290xf32> to vector<32x256xf32>
    %360 = vector.extract_strided_slice %336 {offsets = [0, 1], sizes = [32, 256], strides = [1, 1]} : vector<32x290xf32> to vector<32x256xf32>
    %361 = vector.extract_strided_slice %333 {offsets = [0, 2], sizes = [32, 256], strides = [1, 1]} : vector<32x290xf32> to vector<32x256xf32>
    %cst_105 = arith.constant 0.000000e+00 : f32
    %362 = vector.broadcast %cst_105 : f32 to vector<32x256xf32>
    %363 = vector.shape_cast %20 : vector<1x256xi1> to vector<1x256xi1>
    %364 = vector.broadcast %363 : vector<1x256xi1> to vector<32x256xi1>
    %365 = arith.select %364, %361, %362 : vector<32x256xi1>, vector<32x256xf32>
    %366 = vector.extract_strided_slice %327 {offsets = [0, 17], sizes = [32, 256], strides = [1, 1]} : vector<32x290xf32> to vector<32x256xf32>
    %367 = vector.extract_strided_slice %330 {offsets = [0, 17], sizes = [32, 256], strides = [1, 1]} : vector<32x290xf32> to vector<32x256xf32>
    %368 = vector.extract_strided_slice %327 {offsets = [0, 18], sizes = [32, 256], strides = [1, 1]} : vector<32x290xf32> to vector<32x256xf32>
    %cst_106 = arith.constant 0.000000e+00 : f32
    %369 = vector.broadcast %cst_106 : f32 to vector<32x256xf32>
    %370 = vector.shape_cast %20 : vector<1x256xi1> to vector<1x256xi1>
    %371 = vector.broadcast %370 : vector<1x256xi1> to vector<32x256xi1>
    %372 = arith.select %371, %368, %369 : vector<32x256xi1>, vector<32x256xf32>
    %373 = vector.extract_strided_slice %333 {offsets = [0, 17], sizes = [32, 256], strides = [1, 1]} : vector<32x290xf32> to vector<32x256xf32>
    %374 = vector.extract_strided_slice %336 {offsets = [0, 17], sizes = [32, 256], strides = [1, 1]} : vector<32x290xf32> to vector<32x256xf32>
    %375 = vector.extract_strided_slice %333 {offsets = [0, 18], sizes = [32, 256], strides = [1, 1]} : vector<32x290xf32> to vector<32x256xf32>
    %cst_107 = arith.constant 0.000000e+00 : f32
    %376 = vector.broadcast %cst_107 : f32 to vector<32x256xf32>
    %377 = vector.shape_cast %20 : vector<1x256xi1> to vector<1x256xi1>
    %378 = vector.broadcast %377 : vector<1x256xi1> to vector<32x256xi1>
    %379 = arith.select %378, %375, %376 : vector<32x256xi1>, vector<32x256xf32>
    %380 = tpu.concatenate %359, %360, %365, %366, %367, %372, %373, %374, %379 in 0 : vector<32x256xf32>, vector<32x256xf32>, vector<32x256xf32>, vector<32x256xf32>, vector<32x256xf32>, vector<32x256xf32>, vector<32x256xf32>, vector<32x256xf32>, vector<32x256xf32> -> vector<288x256xf32>
    %381 = vector.extract_strided_slice %330 {offsets = [0, 16], sizes = [32, 256], strides = [1, 1]} : vector<32x290xf32> to vector<32x256xf32>
    %cst_108 = arith.constant 0.000000e+00 : f32
    %382 = vector.broadcast %cst_108 : f32 to vector<32x256xf32>
    %383 = vector.shape_cast %18 : vector<1x256xi1> to vector<1x256xi1>
    %384 = vector.broadcast %383 : vector<1x256xi1> to vector<32x256xi1>
    %385 = arith.select %384, %381, %382 : vector<32x256xi1>, vector<32x256xf32>
    %386 = vector.extract_strided_slice %327 {offsets = [0, 17], sizes = [32, 256], strides = [1, 1]} : vector<32x290xf32> to vector<32x256xf32>
    %387 = vector.extract_strided_slice %330 {offsets = [0, 17], sizes = [32, 256], strides = [1, 1]} : vector<32x290xf32> to vector<32x256xf32>
    %388 = vector.extract_strided_slice %336 {offsets = [0, 16], sizes = [32, 256], strides = [1, 1]} : vector<32x290xf32> to vector<32x256xf32>
    %cst_109 = arith.constant 0.000000e+00 : f32
    %389 = vector.broadcast %cst_109 : f32 to vector<32x256xf32>
    %390 = vector.shape_cast %18 : vector<1x256xi1> to vector<1x256xi1>
    %391 = vector.broadcast %390 : vector<1x256xi1> to vector<32x256xi1>
    %392 = arith.select %391, %388, %389 : vector<32x256xi1>, vector<32x256xf32>
    %393 = vector.extract_strided_slice %333 {offsets = [0, 17], sizes = [32, 256], strides = [1, 1]} : vector<32x290xf32> to vector<32x256xf32>
    %394 = vector.extract_strided_slice %336 {offsets = [0, 17], sizes = [32, 256], strides = [1, 1]} : vector<32x290xf32> to vector<32x256xf32>
    %395 = vector.extract_strided_slice %330 {offsets = [0, 32], sizes = [32, 256], strides = [1, 1]} : vector<32x290xf32> to vector<32x256xf32>
    %cst_110 = arith.constant 0.000000e+00 : f32
    %396 = vector.broadcast %cst_110 : f32 to vector<32x256xf32>
    %397 = vector.shape_cast %18 : vector<1x256xi1> to vector<1x256xi1>
    %398 = vector.broadcast %397 : vector<1x256xi1> to vector<32x256xi1>
    %399 = arith.select %398, %395, %396 : vector<32x256xi1>, vector<32x256xf32>
    %400 = vector.extract_strided_slice %327 {offsets = [0, 33], sizes = [32, 256], strides = [1, 1]} : vector<32x290xf32> to vector<32x256xf32>
    %401 = vector.extract_strided_slice %330 {offsets = [0, 33], sizes = [32, 256], strides = [1, 1]} : vector<32x290xf32> to vector<32x256xf32>
    %402 = tpu.concatenate %385, %386, %387, %392, %393, %394, %399, %400, %401 in 0 : vector<32x256xf32>, vector<32x256xf32>, vector<32x256xf32>, vector<32x256xf32>, vector<32x256xf32>, vector<32x256xf32>, vector<32x256xf32>, vector<32x256xf32>, vector<32x256xf32> -> vector<288x256xf32>
    %403 = vector.extract_strided_slice %327 {offsets = [0, 17], sizes = [32, 256], strides = [1, 1]} : vector<32x290xf32> to vector<32x256xf32>
    %404 = vector.extract_strided_slice %330 {offsets = [0, 17], sizes = [32, 256], strides = [1, 1]} : vector<32x290xf32> to vector<32x256xf32>
    %405 = vector.extract_strided_slice %327 {offsets = [0, 18], sizes = [32, 256], strides = [1, 1]} : vector<32x290xf32> to vector<32x256xf32>
    %cst_111 = arith.constant 0.000000e+00 : f32
    %406 = vector.broadcast %cst_111 : f32 to vector<32x256xf32>
    %407 = vector.shape_cast %20 : vector<1x256xi1> to vector<1x256xi1>
    %408 = vector.broadcast %407 : vector<1x256xi1> to vector<32x256xi1>
    %409 = arith.select %408, %405, %406 : vector<32x256xi1>, vector<32x256xf32>
    %410 = vector.extract_strided_slice %333 {offsets = [0, 17], sizes = [32, 256], strides = [1, 1]} : vector<32x290xf32> to vector<32x256xf32>
    %411 = vector.extract_strided_slice %336 {offsets = [0, 17], sizes = [32, 256], strides = [1, 1]} : vector<32x290xf32> to vector<32x256xf32>
    %412 = vector.extract_strided_slice %333 {offsets = [0, 18], sizes = [32, 256], strides = [1, 1]} : vector<32x290xf32> to vector<32x256xf32>
    %cst_112 = arith.constant 0.000000e+00 : f32
    %413 = vector.broadcast %cst_112 : f32 to vector<32x256xf32>
    %414 = vector.shape_cast %20 : vector<1x256xi1> to vector<1x256xi1>
    %415 = vector.broadcast %414 : vector<1x256xi1> to vector<32x256xi1>
    %416 = arith.select %415, %412, %413 : vector<32x256xi1>, vector<32x256xf32>
    %417 = vector.extract_strided_slice %327 {offsets = [0, 33], sizes = [32, 256], strides = [1, 1]} : vector<32x290xf32> to vector<32x256xf32>
    %418 = vector.extract_strided_slice %330 {offsets = [0, 33], sizes = [32, 256], strides = [1, 1]} : vector<32x290xf32> to vector<32x256xf32>
    %419 = vector.extract_strided_slice %327 {offsets = [0, 34], sizes = [32, 256], strides = [1, 1]} : vector<32x290xf32> to vector<32x256xf32>
    %cst_113 = arith.constant 0.000000e+00 : f32
    %420 = vector.broadcast %cst_113 : f32 to vector<32x256xf32>
    %421 = vector.shape_cast %20 : vector<1x256xi1> to vector<1x256xi1>
    %422 = vector.broadcast %421 : vector<1x256xi1> to vector<32x256xi1>
    %423 = arith.select %422, %419, %420 : vector<32x256xi1>, vector<32x256xf32>
    %424 = tpu.concatenate %403, %404, %409, %410, %411, %416, %417, %418, %423 in 0 : vector<32x256xf32>, vector<32x256xf32>, vector<32x256xf32>, vector<32x256xf32>, vector<32x256xf32>, vector<32x256xf32>, vector<32x256xf32>, vector<32x256xf32>, vector<32x256xf32> -> vector<288x256xf32>
    %425 = tpu.concatenate %358, %380, %402, %424 in 1 : vector<288x256xf32>, vector<288x256xf32>, vector<288x256xf32>, vector<288x256xf32> -> vector<288x1024xf32>
    %c0_114 = arith.constant 0 : index
    %c0_115 = arith.constant 0 : index
    %426 = vector.load %arg12[%c0_114, %c0_115] : memref<4x288xf32, #tpu.memory_space<vmem>>, vector<4x288xf32>
    %cst_116 = arith.constant dense<0.000000e+00> : vector<4x1024xf32>
    %427 = tpu.matmul %426, %425, %cst_116 {dimension_numbers = #tpu.dot_dimension_numbers<[1], [0], [0], [1], [0, 0, 1, 1], [], []>} : vector<4x288xf32>, vector<288x1024xf32>, vector<4x1024xf32> -> vector<4x1024xf32>
    %c0_117 = arith.constant 0 : index
    %c0_118 = arith.constant 0 : index
    %428 = vector.load %arg13[%c0_117, %c0_118] : memref<4x1xf32, #tpu.memory_space<vmem>>, vector<4x1xf32>
    %429 = vector.broadcast %428 : vector<4x1xf32> to vector<4x1024xf32>
    %430 = arith.addf %427, %429 : vector<4x1024xf32>
    %431 = vector.shape_cast %430 : vector<4x1024xf32> to vector<16x256xf32>
    %c0_119 = arith.constant 0 : index
    %c0_120 = arith.constant 0 : index
    %c0_121 = arith.constant 0 : index
    %432 = vector.load %arg14[%c0_119, %c0_120, %c0_121] : memref<1x16x256xf32, #tpu.memory_space<vmem>>, vector<1x16x256xf32>
    %433 = vector.shape_cast %432 : vector<1x16x256xf32> to vector<16x256xf32>
    %434 = vector.shape_cast %431 : vector<16x256xf32> to vector<1x16x256xf32>
    tpu.vector_store %arg14[%c0_119, %c0_120, %c0_121], %434 {strides = array<i32>} : memref<1x16x256xf32, #tpu.memory_space<vmem>>, vector<1x16x256xf32>,
    return
  }
  func.func @transform_0(%arg0: i32) -> (i32, i32, i32) {
    %c0_i32 = arith.constant 0 : i32
    %c0_i32_0 = arith.constant 0 : i32
    %c0_i32_1 = arith.constant 0 : i32
    return %arg0, %c0_i32, %c0_i32_0 : i32, i32, i32
  }
  func.func @transform_1(%arg0: i32) -> (i32, i32) {
    %c0_i32 = arith.constant 0 : i32
    %c0_i32_0 = arith.constant 0 : i32
    %c0_i32_1 = arith.constant 0 : i32
    return %c0_i32, %c0_i32_0 : i32, i32
  }
  func.func @transform_2(%arg0: i32) -> (i32, i32) {
    %c0_i32 = arith.constant 0 : i32
    %c0_i32_0 = arith.constant 0 : i32
    %c0_i32_1 = arith.constant 0 : i32
    return %c0_i32, %c0_i32_0 : i32, i32
  }
  func.func @transform_3(%arg0: i32) -> (i32, i32, i32) {
    %c0_i32 = arith.constant 0 : i32
    %c0_i32_0 = arith.constant 0 : i32
    %c0_i32_1 = arith.constant 0 : i32
    %c0_i32_2 = arith.constant 0 : i32
    return %c0_i32, %c0_i32_0, %c0_i32_1 : i32, i32, i32
  }
  func.func @transform_4(%arg0: i32) -> (i32, i32, i32) {
    %c0_i32 = arith.constant 0 : i32
    %c0_i32_0 = arith.constant 0 : i32
    %c0_i32_1 = arith.constant 0 : i32
    %c0_i32_2 = arith.constant 0 : i32
    return %c0_i32, %c0_i32_0, %c0_i32_1 : i32, i32, i32
  }
  func.func @transform_5(%arg0: i32) -> (i32, i32, i32) {
    %c0_i32 = arith.constant 0 : i32
    %c0_i32_0 = arith.constant 0 : i32
    %c0_i32_1 = arith.constant 0 : i32
    %c0_i32_2 = arith.constant 0 : i32
    return %c0_i32, %c0_i32_0, %c0_i32_1 : i32, i32, i32
  }
  func.func @transform_6(%arg0: i32) -> (i32, i32, i32) {
    %c0_i32 = arith.constant 0 : i32
    %c0_i32_0 = arith.constant 0 : i32
    %c0_i32_1 = arith.constant 0 : i32
    %c0_i32_2 = arith.constant 0 : i32
    return %c0_i32, %c0_i32_0, %c0_i32_1 : i32, i32, i32
  }
  func.func @transform_7(%arg0: i32) -> (i32, i32) {
    %c0_i32 = arith.constant 0 : i32
    %c0_i32_0 = arith.constant 0 : i32
    %c0_i32_1 = arith.constant 0 : i32
    return %c0_i32, %c0_i32_0 : i32, i32
  }
  func.func @transform_8(%arg0: i32) -> (i32, i32) {
    %c0_i32 = arith.constant 0 : i32
    %c0_i32_0 = arith.constant 0 : i32
    %c0_i32_1 = arith.constant 0 : i32
    return %c0_i32, %c0_i32_0 : i32, i32
  }
  func.func @transform_9(%arg0: i32) -> (i32, i32) {
    %c0_i32 = arith.constant 0 : i32
    %c0_i32_0 = arith.constant 0 : i32
    %c0_i32_1 = arith.constant 0 : i32
    return %c0_i32, %c0_i32_0 : i32, i32
  }
  func.func @transform_10(%arg0: i32) -> (i32, i32) {
    %c0_i32 = arith.constant 0 : i32
    %c0_i32_0 = arith.constant 0 : i32
    %c0_i32_1 = arith.constant 0 : i32
    return %c0_i32, %c0_i32_0 : i32, i32
  }
  func.func @transform_11(%arg0: i32) -> (i32, i32) {
    %c0_i32 = arith.constant 0 : i32
    %c0_i32_0 = arith.constant 0 : i32
    %c0_i32_1 = arith.constant 0 : i32
    return %c0_i32, %c0_i32_0 : i32, i32
  }
  func.func @transform_12(%arg0: i32) -> (i32, i32) {
    %c0_i32 = arith.constant 0 : i32
    %c0_i32_0 = arith.constant 0 : i32
    %c0_i32_1 = arith.constant 0 : i32
    return %c0_i32, %c0_i32_0 : i32, i32
  }
  func.func @transform_13(%arg0: i32) -> (i32, i32, i32) {
    %c0_i32 = arith.constant 0 : i32
    %c0_i32_0 = arith.constant 0 : i32
    %c0_i32_1 = arith.constant 0 : i32
    return %arg0, %c0_i32, %c0_i32_0 : i32, i32, i32
  }
}

</mosaic_0001>

<bundles_post_ra>
// kernel: _lambda_.1
= control target key start
LH: loop header
LB: loop body
LE: loop exit
PB: predicated region body
PF: predicated region fallthrough
CT: control target
= control target key end

     0   :  { %s9346_s25 = smov 0   ;;  %s16075_s0 = inlined_call_operand.vmem [shape: f32[2,4,256], index: 0, kind: input, shape index: {}]   ;;  %s16076_s1 = inlined_call_operand.vmem [shape: f32[32,36], index: 1, kind: input, shape index: {}]   ;;  %s16077_s2 = inlined_call_operand.vmem [shape: f32[32,1], index: 2, kind: input, shape index: {}]   ;;  %s16078_s3 = inlined_call_operand.vmem [shape: f32[2,32,288], index: 3, kind: input, shape index: {}]   ;;  %s16079_s4 = inlined_call_operand.vmem [shape: f32[2,32,1], index: 4, kind: input, shape index: {}]   ;;  %s16080_s5 = inlined_call_operand.vmem [shape: f32[2,32,288], index: 5, kind: input, shape index: {}]   ;;  %s16081_s6 = inlined_call_operand.vmem [shape: f32[2,32,1], index: 6, kind: input, shape index: {}]   ;;  %s16082_s7 = inlined_call_operand.vmem [shape: f32[32,288], index: 7, kind: input, shape index: {}]   ;;  %s16083_s8 = inlined_call_operand.vmem [shape: f32[32,1], index: 8, kind: input, shape index: {}]   ;;  %s16084_s9 = inlined_call_operand.vmem [shape: f32[128,288], index: 9, kind: input, shape index: {}]   ;;  %s16085_s10 = inlined_call_operand.vmem [shape: f32[128,1], index: 10, kind: input, shape index: {}]   ;;  %s16086_s11 = inlined_call_operand.vmem [shape: f32[4,288], index: 11, kind: input, shape index: {}]   ;;  %s16087_s12 = inlined_call_operand.vmem [shape: f32[4,1], index: 12, kind: input, shape index: {}]   ;;  %s16088_s13 = inlined_call_operand.vmem [shape: f32[2,16,256], index: 13, kind: output, shape index: {}]  }
   0x1 LB: > { %s7244_s26 = sadd.s32 4294967295, %s9262_s25   ;;  %p7248_p0 = scmp.ge.s32.totalorder %s9262_s25, 1  ;;  %s9262_s25 = sphi %s9346_s25, %s23_s25  }
   0x2   : > { %p387_p1 = scmp.lt.s32.totalorder %s9262_s25, 3 }
   0x4   : > { %p388_p2 = pnand %p7248_p0, %p387_p1 }
   0x6   : > { %391 = sbr.rel (%p388_p2) target bundleno = 5372 (0x14fc), region = 72 }
   0xb   : > { %p431_p3 = scmp.lt.s32.totalorder %s7244_s26, 1  ;;  %v6581_v1 = vld [vmem:[%s16086_s11] sm:$0xff]  ;;  %s9264_s16 = smov 17   ;;  %vm489_vm0 = vcmask 138240   ;;  %v441_v20 = vlaneseq  ;;  %vm566_vm1 = vcmask 769024   ;;  %v9273_v29 = vmov 0  }
   0xc   : > { %s9265_s17 = smov 110   ;;  %s9266_s18 = smov 112   ;;  %v477_v27 = vld [vmem:[%s16077_s2] sm:$0xff]  ;;  %7770 = vset.pattern.permute.xlu1 %v9273_v29  ;;  %7772 = vset.pattern.permute.xlu0 %v9273_v29  ;;  %vm621_vm3 = vcmask 1043456   ;;  %vm540_vm4 = vcmask 900096   ;;  %vm527_vm5 = vcmask 916480  }
   0xd   : > { %s16987_s26 = smov (!%p431_p3, %s7244_s26), 1  ;;  %s16175_s19 = smov 126   ;;  %v442_v22 = vand.u32 127, %v441_v20  ;;  %7771 = vset.pattern.permute.xlu2 %v9273_v29  ;;  %vm553_vm6 = vcmask 785408   ;;  %vm616_vm8 = vcmask 777216   ;;  %v480_v48 = vld [vmem:[%s16077_s2 + $0x18] sm:$0xff] }
   0xe   : > { %s7713_s27 = sshll.u32 %s16987_s26, 3  ;;  %s9268_s20 = smov 96   ;;  %vm514_vm9 = vcmask 1031168   ;;  %vm599_vm10 = vcmask 908288   ;;  %v16349_v58 = vmov 0  ;;  %vm582_vm13 = vcmask 1039360  }
   0xf   : > { %s435_s30 = scalar_lea.vmem %s16075_s0, %s7713_s27  ;;  %s9269_s21 = smov 94   ;;  %v9409_v25 = vadd.s32 128, %v442_v22  ;;  %v448_v39 = vand.u32 15, %v442_v22  ;;  %vm650_vm14 = vcmask 293888   ;;  %vm1187_vm15 = vcmask 261120  }
  0x10   : > { %v472_v0 = vld [vmem:[%s435_s30] sm:$0xff]  ;;  %s16139_s22 = smov 111   ;;  %s16137_s23 = smov 95  }
  0x11   : > { %482 = vst [vmem:[#allocation1] ss:$2 sm:$0xff] %v472_v0  ;;  %s16142_s24 = smov 127   ;;  %v455_v26 = vand.u32 15, %v9409_v25  ;;  %vm9427_vm7 = vcmp.ne.s32.totalorder %v448_v39, 15  ;;  %vm9443_vm11 = vcmp.ne.s32.totalorder %v448_v39, 0 }
  0x12   : > { %v16350_v58 = vsel %vm9443_vm11, 4294967295, %v16349_v58  ;;  %s16585_s28 = smov 127   ;;  %s16587_s29 = smov 95  }
  0x13   : > { %vm9415_vm2 = vcmp.ne.s32.totalorder %v455_v26, 15  ;;  %16351 = vst [vmem:[#allocation2_spill] sm:$0xff] %v16350_v58  ;;  %vm9467_vm12 = vcmp.ne.s32.totalorder %v455_v26, 0 }
  0x18   : > { %v483_v2 = vld.sshfl [vmem:[#allocation1] sm:$0xff pattern:$0x75316420]  ;;  %v484_v3 = vld.sshfl [vmem:[#allocation1 + $0x8] sm:$0xff pattern:$0x75316420] }
  0x19   : > { %485 = vrot.lane.b32.xlu0 %v483_v2, %s9264_s16  ;;  %6591 = vst [vmem:[#allocation1] ss:$2 sm:$0xff] %v6581_v1 }
  0x21   : > { %487 = vrot.lane.b32.xlu0 %v484_v3, %s9264_s16 }
  0x8b   : > { %v486_v4 = vpop.permute.xlu0 %485 }
  0x8c   : > { %v9366_v6 = vsel %vm489_vm0, 0.0, %v486_v4 }
  0x8d   : > { %v573_v12 = vrot.slane %v9366_v6, 4 }
  0x93   : > { %v488_v5 = vpop.permute.xlu0 %487 }
  0x94   : > { %v9369_v7 = vsel %vm489_vm0, %v486_v4, %v488_v5  ;;  %v495_v9 = vsel %vm489_vm0, %v488_v5, 0.0 }
  0x95   : > { %v7745_v8 = vpack.i.bf16 %v9369_v7, %v9366_v6  ;;  %v575_v10 = vrot.slane %v495_v9, 4  ;;  %v574_v11 = vrot.slane %v9369_v7, 4 }
  0x97   : > { %7746 = vrot.lane.b32.xlu0 %v7745_v8, %s9265_s17  ;;  %7741 = vrot.lane.b32.xlu2 %v7745_v8, %s9266_s18  ;;  %v7765_v13 = vpack.i.bf16 %v574_v11, %v573_v12  ;;  %v16352_v11 = vmov 0 }
  0x98   : > { %7736 = vrot.lane.b32.xlu1 %v7745_v8, %s16175_s19  ;;  %v16353_v11 = vsel %vm9467_vm12, 4294967295, %v16352_v11 }
  0x99   : > { %16354 = vst [vmem:[#allocation3_spill] sm:$0xff] %v16353_v11 }
  0x9f   : > { %551 = vrot.lane.b32.xlu0 %v495_v9, %s9268_s20  ;;  %525 = vrot.lane.b32.xlu2 %v495_v9, %s9266_s18 }
  0xa0   : > { %512 = vrot.lane.b32.xlu1 %v495_v9, %s16175_s19 }
  0xa7   : > { %564 = vrot.lane.b32.xlu0 %v495_v9, %s9269_s21  ;;  %7751 = vrot.lane.b32.xlu2 %v7745_v8, %s9268_s20 }
  0xa8   : > { %538 = vrot.lane.b32.xlu1 %v495_v9, %s9265_s17 }
  0xaf   : > { %7756 = vrot.lane.b32.xlu0 %v7745_v8, %s16139_s22  ;;  %562 = vrot.lane.b32.xlu2 %v9369_v7, %s9269_s21 }
  0xb0   : > { %560 = vrot.lane.b32.xlu1 %v9366_v6, %s9269_s21 }
  0xb7   : > { %614 = vrot.lane.b32.xlu0 %v575_v10, %s16137_s23  ;;  %580 = vrot.lane.b32.xlu2 %v575_v10, %s16142_s24 }
  0xb8   : > { %597 = vrot.lane.b32.xlu1 %v495_v9, %s16139_s22 }
  0xbf   : > { %7766 = vrot.lane.b32.xlu2 %v7765_v13, %s16137_s23 }
  0xc0   : > { %7761 = vrot.lane.b32.xlu1 %v7765_v13, %s16142_s24 }
  0xc8   : > { %632 = vperm.xlu1 %7770, %v477_v27   ;;  %v479_v27 = vld [vmem:[%s16077_s2 + $0x10] sm:$0xff] }
  0xc9   : > { %642 = vperm.xlu0 %7772, %v479_v27  }
  0xd0   : > { %647 = vperm.xlu1 %7770, %v480_v48  }
  0xf1   : > { %v9395_v14 = vpop.permute.xlu2 %7741 }
  0xf2   : > { %v7744_v37 = vunpack.i.h.bf16 %v9395_v14  ;;  %v7743_v38 = vunpack.i.l.bf16 %v9395_v14 }
  0xf4   : > { %v528_v50 = vsel %vm527_vm5, %v7743_v38, %v7744_v37 }
  0xf5   : > { %v532_v0 = vsel %vm9443_vm11, %v528_v50, 0.0 }
  0xf6   : > { %v589_v10 = vrot.slane %v532_v0, 4 }
  0xf9   : > { %v9397_v15 = vpop.permute.xlu2 %525 }
  0xfa   : > { %v529_v3 = vsel %vm527_vm5, %v7744_v37, %v9397_v15  ;;  %v473_v37 = vld [vmem:[%s16076_s1] sm:$0xff] }
  0xfb   : > { %v533_v14 = vsel %vm9467_vm12, %v529_v3, 0.0 }
 0x101   : > { %v9399_v16 = vpop.permute.xlu2 %7751 }
 0x102   : > { %v7754_v40 = vunpack.i.h.bf16 %v9399_v16  ;;  %v7753_v41 = vunpack.i.l.bf16 %v9399_v16 }
 0x104   : > { %v554_v54 = vsel %vm553_vm6, %v7753_v41, %v7754_v40 }
 0x105   : > { %v558_v62 = vsel %vm9443_vm11, %v554_v54, 0.0 }
 0x109   : > { %v7747_v17 = vpop.permute.xlu0 %7746  ;;  %v563_v18 = vpop.permute.xlu2 %562 }
 0x10a   : > { %v9401_v19 = vpop.permute.xlu1 %7736  ;;  %v7749_v34 = vunpack.i.h.bf16 %v7747_v17  ;;  %v7748_v35 = vunpack.i.l.bf16 %v7747_v17 }
 0x10b   : > { %v7739_v45 = vunpack.i.h.bf16 %v9401_v19  ;;  %v7738_v46 = vunpack.i.l.bf16 %v9401_v19 }
 0x10c   : > { %v541_v47 = vsel %vm540_vm4, %v7748_v35, %v7749_v34  ;;  %v501_v35 = vsel %vm9467_vm12, %v9369_v7, 0.0  ;;  %v475_v7 = vld [vmem:[%s16076_s1 + $0x10] sm:$0xff] }
 0x10d   : > { %v545_v57 = vsel %vm9427_vm7, %v541_v47, 0.0  ;;  %v515_v60 = vsel %vm514_vm9, %v7738_v46, %v7739_v45 }
 0x10e   : > { %v606_v2 = vrot.slane %v545_v57, 4  ;;  %v519_v5 = vsel %vm9427_vm7, %v515_v60, 0.0 }
 0x10f   : > { %v624_v17 = vsel %vm621_vm3, %v519_v5, %v589_v10 }
 0x111   : > { %v9403_v21 = vpop.permute.xlu0 %551  ;;  %v9405_v23 = vpop.permute.xlu2 %580 }
 0x112   : > { %v9407_v24 = vpop.permute.xlu1 %512  ;;  %v555_v4 = vsel %vm553_vm6, %v7754_v40, %v9403_v21 }
 0x113   : > { %v516_v12 = vsel %vm514_vm9, %v7739_v45, %v9407_v24  ;;  %v590_v24 = vrot.slane %v533_v14, 4 }
 0x114   : > { %v520_v22 = vsel %vm9415_vm2, %v516_v12, 0.0 }
 0x115   : > { %v625_v26 = vsel %vm621_vm3, %v520_v22, %v590_v24 }
 0x119   : > { %v565_v28 = vpop.permute.xlu0 %564  ;;  %v7767_v36 = vpop.permute.xlu2 %7766 }
 0x11a   : > { %v539_v31 = vpop.permute.xlu1 %538  ;;  %v568_v32 = vsel %vm566_vm1, %v563_v18, %v565_v28  ;;  %v7769_v42 = vunpack.i.h.bf16 %v7767_v36  ;;  %v7768_v43 = vunpack.i.l.bf16 %v7767_v36  ;;  %v478_v28 = vld [vmem:[%s16077_s2 + $0x8] sm:$0xff] }
 0x11b   : > { %v572_v33 = vsel %vm9415_vm2, %v568_v32, 0.0  ;;  %v542_v61 = vsel %vm540_vm4, %v7749_v34, %v539_v31  ;;  %637 = vperm.xlu2 %7771, %v478_v28  }
 0x11c   : > { %7258 = vmatpush.msk.msra.mxu1 %vm621_vm3, %v572_v33  ;;  %v617_v56 = vsel %vm616_vm8, %v7768_v43, %v7769_v42  ;;  %v546_v8 = vsel %vm9415_vm2, %v542_v61, 0.0  ;;  %v500_v33 = vsel %vm9443_vm11, %v9366_v6, 0.0  ;;  %v474_v6 = vld [vmem:[%s16076_s1 + $0x8] sm:$0xff] }
 0x11d   : > { %v628_v1 = vsel %vm621_vm3, %v558_v62, %v617_v56  ;;  %v607_v19 = vrot.slane %v546_v8, 4 }
 0x121   : > { %v7757_v49 = vpop.permute.xlu0 %7756 }
 0x122   : > { %v7759_v51 = vunpack.i.h.bf16 %v7757_v49  ;;  %v7758_v52 = vunpack.i.l.bf16 %v7757_v49  ;;  %v561_v53 = vpop.permute.xlu1 %560 }
 0x123   : > { %v567_v55 = vsel %vm566_vm1, %v561_v53, %v563_v18  ;;  %v559_v18 = vsel %vm9467_vm12, %v555_v4, 0.0 }
 0x124   : > { %v571_v59 = vsel %vm9427_vm7, %v567_v55, 0.0  ;;  %v600_v63 = vsel %vm599_vm10, %v7758_v52, %v7759_v51 }
 0x125   : > { %7253 = vmatpush.msk.msra.mxu3 %vm621_vm3, %v571_v59  ;;  %v626_v9 = vsel %vm621_vm3, %v600_v63, %v606_v2 }
 0x127   : > { %681 = vmatpush.msra.mxu3 %v628_v1 }
 0x129   : > { %682 = vmatpush.msra.mxu3 %v626_v9  ;;  %v615_v13 = vpop.permute.xlu0 %614 }
 0x12a   : > { %v618_v15 = vsel %vm616_vm8, %v7769_v42, %v615_v13  ;;  %v598_v16 = vpop.permute.xlu1 %597 }
 0x12b   : > { %v601_v20 = vsel %vm599_vm10, %v7759_v51, %v598_v16  ;;  %683 = vmatpush.msra.mxu3 %v624_v17  ;;  %v629_v21 = vsel %vm621_vm3, %v559_v18, %v618_v15 }
 0x12c   : > { %710 = vmatpush.msra.mxu1 %v629_v21  ;;  %v627_v25 = vsel %vm621_vm3, %v601_v20, %v607_v19 }
 0x12e   : > { %711 = vmatpush.msra.mxu1 %v627_v25 }
 0x130   : > { %712 = vmatpush.msra.mxu1 %v625_v26 }
 0x132   : > { %v7762_v29 = vpop.permute.xlu1 %7761 }
 0x133   : > { %v7764_v31 = vunpack.i.h.bf16 %v7762_v29  ;;  %v7763_v32 = vunpack.i.l.bf16 %v7762_v29 }
 0x135   : > { %v583_v34 = vsel %vm582_vm13, %v7763_v32, %v7764_v31  ;;  %v584_v36 = vsel %vm582_vm13, %v7764_v31, %v9405_v23  ;;  %v476_v23 = vld [vmem:[%s16076_s1 + $0x18] sm:$0xff] }
 0x136   : > { %v622_v38 = vsel %vm621_vm3, %v500_v33, %v583_v34  ;;  %v623_v39 = vsel %vm621_vm3, %v501_v35, %v584_v36 }
 0x137   : > { %684 = vmatpush.msra.mxu3 %v622_v38  ;;  %713 = vmatpush.msra.mxu1 %v623_v39 }
 0x138   : > { %7254 = vmatmul.msk.f32.vlgmr.msra.gmra.mxu3 %vm650_vm14, %v473_v37  ;;  %7259 = vmatmul.msk.f32.vlgmr.msra.gmra.mxu1 %vm650_vm14, %v473_v37 }
 0x13a   : > { %v633_v40 = vpop.permute.xlu1 %632 }
 0x13b   : > { %v643_v52 = vpop.permute.xlu0 %642 }
 0x140   : > { %7255 = vmatmul.msk.f32.gmra.mxu3 %vm650_vm14, %v474_v6  ;;  %7260 = vmatmul.msk.f32.gmra.mxu1 %vm650_vm14, %v474_v6 }
 0x142   : > { %v648_v57 = vpop.permute.xlu1 %647 }
 0x148   : > { %7256 = vmatmul.msk.f32.gmra.mxu3 %vm650_vm14, %v475_v7  ;;  %7261 = vmatmul.msk.f32.gmra.mxu1 %vm650_vm14, %v475_v7 }
 0x150   : > { %7257 = vmatmul.msk.f32.gmra.mxu3 %vm650_vm14, %v476_v23  ;;  %7262 = vmatmul.msk.f32.gmra.mxu1 %vm650_vm14, %v476_v23  ;;  %vm7106_vm14 = vcmask 1045508  }
 0x175   : > { %v638_v45 = vpop.permute.xlu2 %637 }
 0x1b5   : > { %v715_v41 = vpop.f32.mrf.mxu1 }
 0x1b6   : > { %v9514_v42 = vadd.f32 %v715_v41, %v633_v40 }
 0x1b8   : > { %16355 = vst [vmem:[#allocation4_spill] sm:$0xff] %v9514_v42  ;;  %753 = vrot.lane.b32.xlu1 %v9514_v42, %s9264_s16 }
 0x1bb   : > { %v686_v43 = vpop.f32.mrf.mxu3 }
 0x1bc   : > { %v9518_v46 = vadd.f32 %v686_v43, %v633_v40 }
 0x1bd   : > { %v718_v47 = vpop.f32.mrf.mxu1 }
 0x1be   : > { %16356 = vst [vmem:[#allocation5_spill] sm:$0xff] %v9518_v46  ;;  %751 = vrot.lane.b32.xlu2 %v9518_v46, %s9264_s16  ;;  %v9522_v48 = vadd.f32 %v718_v47, %v638_v45 }
 0x1c0   : > { %16357 = vst [vmem:[#allocation6_spill] sm:$0xff] %v9522_v48  ;;  %757 = vrot.lane.b32.xlu0 %v9522_v48, %s9264_s16 }
 0x1c3   : > { %v689_v49 = vpop.f32.mrf.mxu3 }
 0x1c4   : > { %v9526_v50 = vadd.f32 %v689_v49, %v638_v45 }
 0x1c5   : > { %v721_v51 = vpop.f32.mrf.mxu1 }
 0x1c6   : > { %16358 = vst [vmem:[#allocation7_spill] sm:$0xff] %v9526_v50  ;;  %755 = vrot.lane.b32.xlu2 %v9526_v50, %s9264_s16  ;;  %v9530_v53 = vadd.f32 %v721_v51, %v643_v52 }
 0x1c8   : > { %16359 = vst [vmem:[#allocation8_spill] sm:$0xff] %v9530_v53 }
 0x1cb   : > { %v692_v54 = vpop.f32.mrf.mxu3 }
 0x1cc   : > { %v9532_v55 = vadd.f32 %v692_v54, %v643_v52 }
 0x1cd   : > { %v724_v56 = vpop.f32.mrf.mxu1 }
 0x1ce   : > { %16360 = vst [vmem:[#allocation9_spill] sm:$0xff] %v9532_v55  ;;  %759 = vrot.lane.b32.xlu1 %v9532_v55, %s9264_s16  ;;  %761 = vrot.lane.b32.xlu2 %v9530_v53, %s9264_s16  ;;  %v9538_v60 = vadd.f32 %v724_v56, %v648_v57 }
 0x1d0   : > { %16361 = vst [vmem:[#allocation10_spill] sm:$0xff] %v9538_v60 }
 0x1d3   : > { %v695_v59 = vpop.f32.mrf.mxu3 }
 0x1d4   : > { %v9540_v61 = vadd.f32 %v695_v59, %v648_v57 }
 0x1d6   : > { %16362 = vst [vmem:[#allocation11_spill] sm:$0xff] %v9540_v61  ;;  %763 = vrot.lane.b32.xlu0 %v9540_v61, %s9264_s16  ;;  %765 = vrot.lane.b32.xlu1 %v9538_v60, %s9264_s16  ;;  %v740_v60 = vld [vmem:[%s16079_s4 + $0x8] sm:$0xff] }
 0x218   : > { %v752_v62 = vpop.permute.xlu2 %751 }
 0x219   : > { %v9547_v63 = vsel %vm489_vm0, 0.0, %v752_v62 }
 0x21a   : > { %807 = vrot.lane.b32.xlu2 %v9547_v63, %s16175_s19 }
 0x220   : > { %v756_v5 = vpop.permute.xlu2 %755 }
 0x221   : > { %v9591_v10 = vsel %vm489_vm0, 0.0, %v756_v5 }
 0x222   : > { %855 = vrot.lane.b32.xlu2 %v9547_v63, %s9266_s18 }
 0x228   : > { %v762_v12 = vpop.permute.xlu2 %761 }
 0x229   : > { %v9644_v22 = vsel %vm489_vm0, %v762_v12, 0.0 }
 0x22a   : > { %903 = vrot.lane.b32.xlu2 %v9547_v63, %s9265_s17  ;;  %v754_v0 = vpop.permute.xlu1 %753 }
 0x22b   : > { %v9556_v1 = vsel %vm489_vm0, %v752_v62, %v754_v0  ;;  %v787_v2 = vsel %vm489_vm0, %v754_v0, 0.0 }
 0x22c   : > { %811 = vrot.lane.b32.xlu1 %v787_v2, %s16175_s19  ;;  %809 = vrot.lane.b32.xlu0 %v9556_v1, %s16175_s19  ;;  %v7773_v3 = vpack.i.bf16 %v9556_v1, %v9547_v63  ;;  %v7788_v15 = vpack.i.bf16 %v9591_v10, %v787_v2 }
 0x232   : > { %951 = vrot.lane.b32.xlu2 %v9547_v63, %s9268_s20  ;;  %v758_v4 = vpop.permute.xlu0 %757 }
 0x233   : > { %v9584_v8 = vsel %vm489_vm0, %v756_v5, %v758_v4  ;;  %v788_v9 = vsel %vm489_vm0, %v758_v4, 0.0 }
 0x234   : > { %859 = vrot.lane.b32.xlu1 %v787_v2, %s9266_s18  ;;  %857 = vrot.lane.b32.xlu0 %v9556_v1, %s9266_s18  ;;  %v7793_v14 = vpack.i.bf16 %v788_v9, %v9584_v8 }
 0x23a   : > { %999 = vrot.lane.b32.xlu2 %v9547_v63, %s9269_s21 }
 0x23c   : > { %907 = vrot.lane.b32.xlu1 %v787_v2, %s9265_s17  ;;  %905 = vrot.lane.b32.xlu0 %v9556_v1, %s9265_s17 }
 0x240   : > { %v760_v17 = vpop.permute.xlu1 %759 }
 0x241   : > { %v9624_v18 = vsel %vm489_vm0, 0.0, %v760_v17  ;;  %v9641_v21 = vsel %vm489_vm0, %v760_v17, %v762_v12 }
 0x242   : > { %7774 = vrot.lane.b32.xlu2 %v7773_v3, %s16142_s24  ;;  %v7818_v34 = vpack.i.bf16 %v9641_v21, %v9624_v18 }
 0x244   : > { %955 = vrot.lane.b32.xlu1 %v787_v2, %s9268_s20  ;;  %953 = vrot.lane.b32.xlu0 %v9556_v1, %s9268_s20 }
 0x248   : > { %v764_v25 = vpop.permute.xlu0 %763  ;;  %v766_v26 = vpop.permute.xlu1 %765 }
 0x249   : > { %v9701_v7 = vsel %vm489_vm0, 0.0, %v764_v25  ;;  %v9706_v23 = vsel %vm489_vm0, %v764_v25, %v766_v26  ;;  %v790_v40 = vsel %vm489_vm0, %v766_v26, 0.0  ;;  %v742_v25 = vld [vmem:[%s16079_s4 + $0x18] sm:$0xff] }
 0x24a   : > { %7779 = vrot.lane.b32.xlu2 %v7773_v3, %s16139_s22  ;;  %v7838_v4 = vpack.i.bf16 %v790_v40, %v9706_v23  ;;  %v7833_v5 = vpack.i.bf16 %v9701_v7, %v9644_v22 }
 0x24c   : > { %1003 = vrot.lane.b32.xlu1 %v787_v2, %s9269_s21  ;;  %1001 = vrot.lane.b32.xlu0 %v9556_v1, %s9269_s21 }
 0x252   : > { %7784 = vrot.lane.b32.xlu2 %v7773_v3, %s16137_s23 }
 0x254   : > { %817 = vrot.lane.b32.xlu1 %v788_v9, %s16175_s19  ;;  %815 = vrot.lane.b32.xlu0 %v9584_v8, %s16175_s19 }
 0x25a   : > { %813 = vrot.lane.b32.xlu2 %v9591_v10, %s16175_s19 }
 0x25c   : > { %865 = vrot.lane.b32.xlu1 %v788_v9, %s9266_s18  ;;  %863 = vrot.lane.b32.xlu0 %v9584_v8, %s9266_s18 }
 0x262   : > { %861 = vrot.lane.b32.xlu2 %v9591_v10, %s9266_s18 }
 0x264   : > { %913 = vrot.lane.b32.xlu1 %v788_v9, %s9265_s17  ;;  %911 = vrot.lane.b32.xlu0 %v9584_v8, %s9265_s17 }
 0x26a   : > { %909 = vrot.lane.b32.xlu2 %v9591_v10, %s9265_s17 }
 0x26c   : > { %961 = vrot.lane.b32.xlu1 %v788_v9, %s9268_s20  ;;  %959 = vrot.lane.b32.xlu0 %v9584_v8, %s9268_s20 }
 0x272   : > { %957 = vrot.lane.b32.xlu2 %v9591_v10, %s9268_s20 }
 0x274   : > { %v9610_v13 = vpop.permute.xlu2 %807  ;;  %1009 = vrot.lane.b32.xlu1 %v788_v9, %s9269_s21  ;;  %1007 = vrot.lane.b32.xlu0 %v9584_v8, %s9269_s21 }
 0x27a   : > { %1005 = vrot.lane.b32.xlu2 %v9591_v10, %s9269_s21 }
 0x27c   : > { %v9619_v16 = vpop.permute.xlu2 %855  ;;  %7794 = vrot.lane.b32.xlu1 %v7793_v14, %s16142_s24  ;;  %7789 = vrot.lane.b32.xlu0 %v7788_v15, %s16142_s24 }
 0x282   : > { %819 = vrot.lane.b32.xlu2 %v9624_v18, %s16175_s19 }
 0x284   : > { %v9628_v19 = vpop.permute.xlu2 %903  ;;  %7804 = vrot.lane.b32.xlu1 %v7793_v14, %s16139_s22  ;;  %7799 = vrot.lane.b32.xlu0 %v7788_v15, %s16139_s22 }
 0x285   : > { %16363 = vst [vmem:[#allocation12_spill] sm:$0xff] %v9628_v19 }
 0x28a   : > { %867 = vrot.lane.b32.xlu2 %v9624_v18, %s9266_s18 }
 0x28c   : > { %v9634_v20 = vpop.permute.xlu2 %951  ;;  %7814 = vrot.lane.b32.xlu1 %v7793_v14, %s16137_s23  ;;  %7809 = vrot.lane.b32.xlu0 %v7788_v15, %s16137_s23  ;;  %v739_v14 = vld [vmem:[%s16079_s4] sm:$0xff] }
 0x292   : > { %915 = vrot.lane.b32.xlu2 %v9624_v18, %s9265_s17 }
 0x294   : > { %v9646_v24 = vpop.permute.xlu2 %999  ;;  %823 = vrot.lane.b32.xlu1 %v9644_v22, %s16175_s19  ;;  %821 = vrot.lane.b32.xlu0 %v9641_v21, %s16175_s19 }
 0x29a   : > { %963 = vrot.lane.b32.xlu2 %v9624_v18, %s9268_s20 }
 0x29c   : > { %871 = vrot.lane.b32.xlu1 %v9644_v22, %s9266_s18  ;;  %v9656_v27 = vpop.permute.xlu2 %7774  ;;  %869 = vrot.lane.b32.xlu0 %v9641_v21, %s9266_s18 }
 0x29e   : > { %v9660_v28 = vpop.permute.xlu0 %809  ;;  %v9662_v29 = vpop.permute.xlu1 %811 }
 0x2a2   : > { %1011 = vrot.lane.b32.xlu2 %v9624_v18, %s9269_s21 }
 0x2a4   : > { %919 = vrot.lane.b32.xlu1 %v9644_v22, %s9265_s17  ;;  %v9668_v31 = vpop.permute.xlu2 %7779  ;;  %917 = vrot.lane.b32.xlu0 %v9641_v21, %s9265_s17 }
 0x2a5   : > { %16364 = vst [vmem:[#allocation13_spill] sm:$0xff] %v9668_v31 }
 0x2a6   : > { %v9672_v32 = vpop.permute.xlu0 %857  ;;  %v9674_v33 = vpop.permute.xlu1 %859 }
 0x2aa   : > { %7819 = vrot.lane.b32.xlu2 %v7818_v34, %s16142_s24 }
 0x2ac   : > { %967 = vrot.lane.b32.xlu1 %v9644_v22, %s9268_s20  ;;  %v9681_v35 = vpop.permute.xlu2 %7784  ;;  %965 = vrot.lane.b32.xlu0 %v9641_v21, %s9268_s20 }
 0x2ae   : > { %v9685_v36 = vpop.permute.xlu0 %905  ;;  %v9687_v37 = vpop.permute.xlu1 %907 }
 0x2af   : > { %16365 = vst [vmem:[#allocation14_spill] sm:$0xff] %v9685_v36 }
 0x2b0   : > { %16366 = vst [vmem:[#allocation15_spill] sm:$0xff] %v9687_v37 }
 0x2b2   : > { %7824 = vrot.lane.b32.xlu2 %v7818_v34, %s16139_s22 }
 0x2b4   : > { %1015 = vrot.lane.b32.xlu1 %v9644_v22, %s9269_s21  ;;  %v9692_v38 = vpop.permute.xlu2 %813  ;;  %1013 = vrot.lane.b32.xlu0 %v9641_v21, %s9269_s21 }
 0x2b6   : > { %v9696_v39 = vpop.permute.xlu0 %953  ;;  %v9698_v6 = vpop.permute.xlu1 %955 }
 0x2ba   : > { %825 = vrot.lane.b32.xlu2 %v9701_v7, %s16175_s19 }
 0x2bc   : > { %v9709_v41 = vpop.permute.xlu2 %861  ;;  %829 = vrot.lane.b32.xlu1 %v790_v40, %s16175_s19  ;;  %827 = vrot.lane.b32.xlu0 %v9706_v23, %s16175_s19 }
 0x2be   : > { %v9714_v43 = vpop.permute.xlu0 %1001  ;;  %v9716_v45 = vpop.permute.xlu1 %1003 }
 0x2bf   : > { %16367 = vst [vmem:[#allocation16_spill] sm:$0xff] %v9716_v45 }
 0x2c2   : > { %873 = vrot.lane.b32.xlu2 %v9701_v7, %s9266_s18 }
 0x2c4   : > { %v9720_v47 = vpop.permute.xlu2 %909  ;;  %877 = vrot.lane.b32.xlu1 %v790_v40, %s9266_s18  ;;  %875 = vrot.lane.b32.xlu0 %v9706_v23, %s9266_s18 }
 0x2c5   : > { %16368 = vst [vmem:[#allocation17_spill] sm:$0xff] %v9720_v47 }
 0x2c6   : > { %v9725_v49 = vpop.permute.xlu0 %815  ;;  %v9727_v51 = vpop.permute.xlu1 %817 }
 0x2ca   : > { %921 = vrot.lane.b32.xlu2 %v9701_v7, %s9265_s17 }
 0x2cc   : > { %v9731_v52 = vpop.permute.xlu2 %957  ;;  %925 = vrot.lane.b32.xlu1 %v790_v40, %s9265_s17  ;;  %923 = vrot.lane.b32.xlu0 %v9706_v23, %s9265_s17 }
 0x2ce   : > { %v9736_v54 = vpop.permute.xlu0 %863  ;;  %v9738_v56 = vpop.permute.xlu1 %865 }
 0x2d2   : > { %969 = vrot.lane.b32.xlu2 %v9701_v7, %s9268_s20 }
 0x2d4   : > { %973 = vrot.lane.b32.xlu1 %v790_v40, %s9268_s20  ;;  %971 = vrot.lane.b32.xlu0 %v9706_v23, %s9268_s20  ;;  %v9745_v57 = vpop.permute.xlu2 %1005 }
 0x2d6   : > { %v9747_v59 = vpop.permute.xlu0 %911  ;;  %v9749_v62 = vpop.permute.xlu1 %913 }
 0x2d7   : > { %16369 = vst [vmem:[#allocation18_spill] sm:$0xff] %v9747_v59 }
 0x2d8   : > { %16370 = vst [vmem:[#allocation19_spill] sm:$0xff] %v9749_v62 }
 0x2da   : > { %1017 = vrot.lane.b32.xlu2 %v9701_v7, %s9269_s21 }
 0x2dc   : > { %1021 = vrot.lane.b32.xlu1 %v790_v40, %s9269_s21  ;;  %1019 = vrot.lane.b32.xlu0 %v9706_v23, %s9269_s21  ;;  %v9760_v3 = vpop.permute.xlu2 %819 }
 0x2de   : > { %v9756_v0 = vpop.permute.xlu0 %959  ;;  %v9758_v2 = vpop.permute.xlu1 %961 }
 0x2e2   : > { %7829 = vrot.lane.b32.xlu2 %v7818_v34, %s16137_s23 }
 0x2e4   : > { %7839 = vrot.lane.b32.xlu1 %v7838_v4, %s16142_s24  ;;  %7834 = vrot.lane.b32.xlu0 %v7833_v5, %s16142_s24  ;;  %v868_v15 = vpop.permute.xlu2 %867 }
 0x2e6   : > { %v9768_v9 = vpop.permute.xlu0 %1007  ;;  %v9770_v12 = vpop.permute.xlu1 %1009 }
 0x2e7   : > { %16371 = vst [vmem:[#allocation20_spill] sm:$0xff] %v9770_v12 }
 0x2ea   : > { %1169 = vperm.xlu2 %7771, %v739_v14   ;;  %v741_v14 = vld [vmem:[%s16079_s4 + $0x10] sm:$0xff] }
 0x2ec   : > { %7849 = vrot.lane.b32.xlu1 %v7838_v4, %s16139_s22  ;;  %7844 = vrot.lane.b32.xlu0 %v7833_v5, %s16139_s22  ;;  %v9784_v26 = vpop.permute.xlu2 %915 }
 0x2ed   : > { %16372 = vst [vmem:[#allocation21_spill] sm:$0xff] %v9784_v26 }
 0x2ee   : > { %v9777_v17 = vpop.permute.xlu0 %7789  ;;  %v9779_v22 = vpop.permute.xlu1 %7794 }
 0x2f2   : > { %1184 = vperm.xlu2 %7771, %v742_v25  }
 0x2f4   : > { %7859 = vrot.lane.b32.xlu1 %v7838_v4, %s16137_s23  ;;  %7854 = vrot.lane.b32.xlu0 %v7833_v5, %s16137_s23  ;;  %v9798_v25 = vpop.permute.xlu2 %963 }
 0x2f6   : > { %v9788_v34 = vpop.permute.xlu0 %7799  ;;  %v9790_v40 = vpop.permute.xlu1 %7804 }
 0x2f7   : > { %16373 = vst [vmem:[#allocation22_spill] sm:$0xff] %v9788_v34 }
 0x2f8   : > { %16374 = vst [vmem:[#allocation23_spill] sm:$0xff] %v9790_v40 }
 0x2fc   : > { %1179 = vperm.xlu1 %7770, %v741_v14   ;;  %1174 = vperm.xlu0 %7772, %v740_v60   ;;  %v1012_v42 = vpop.permute.xlu2 %1011 }
 0x2fe   : > { %v9800_v53 = vpop.permute.xlu0 %7809  ;;  %v9802_v4 = vpop.permute.xlu1 %7814 }
 0x304   : > { %v9804_v50 = vpop.permute.xlu2 %7819 }
 0x306   : > { %v822_v5 = vpop.permute.xlu0 %821  ;;  %v824_v48 = vpop.permute.xlu1 %823 }
 0x30c   : > { %v9810_v12 = vpop.permute.xlu2 %7824 }
 0x30d   : > { %16376 = vst [vmem:[#allocation25_spill] sm:$0xff] %v9810_v12 }
 0x30e   : > { %v870_v61 = vpop.permute.xlu0 %869  ;;  %v872_v55 = vpop.permute.xlu1 %871 }
 0x30f   : > { %v883_v26 = vsel %vm527_vm5, %v868_v15, %v870_v61  ;;  %v7822_v15 = vunpack.i.h.bf16 %v9804_v50 }
 0x314   : > { %v826_v31 = vpop.permute.xlu2 %825 }
 0x316   : > { %v9806_v46 = vpop.permute.xlu0 %917  ;;  %v9808_v45 = vpop.permute.xlu1 %919 }
 0x317   : > { %16375 = vst [vmem:[#allocation24_spill] sm:$0xff] %v9808_v45 }
 0x31c   : > { %v874_v36 = vpop.permute.xlu2 %873 }
 0x31e   : > { %v9812_v60 = vpop.permute.xlu0 %965  ;;  %v9814_v14 = vpop.permute.xlu1 %967 }
 0x324   : > { %v9826_v12 = vpop.permute.xlu2 %921 }
 0x326   : > { %v9816_v40 = vpop.permute.xlu0 %1013  ;;  %v9818_v34 = vpop.permute.xlu1 %1015 }
 0x327   : > { %16377 = vst [vmem:[#allocation26_spill] sm:$0xff] %v9818_v34  ;;  %v884_v34 = vsel %vm527_vm5, %v870_v61, %v872_v55  ;;  %v879_v55 = vsel %vm527_vm5, %v9619_v16, %v9672_v32  ;;  %v880_v61 = vsel %vm527_vm5, %v9672_v32, %v9674_v33  ;;  %v835_v16 = vsel %vm514_vm9, %v9760_v3, %v822_v5 }
 0x328   : > { %v836_v32 = vsel %vm514_vm9, %v822_v5, %v824_v48  ;;  %v834_v33 = vsel %vm514_vm9, %v9725_v49, %v9727_v51  ;;  %v831_v48 = vsel %vm514_vm9, %v9610_v13, %v9660_v28  ;;  %v1023_v3 = vsel %vm566_vm1, %v9646_v24, %v9714_v43 }
 0x32e   : > { %v828_v37 = vpop.permute.xlu0 %827  ;;  %v830_v19 = vpop.permute.xlu1 %829 }
 0x336   : > { %v876_v62 = vpop.permute.xlu0 %875  ;;  %v878_v47 = vpop.permute.xlu1 %877 }
 0x337   : > { %v885_v59 = vsel %vm527_vm5, %v874_v36, %v876_v62  ;;  %v886_v45 = vsel %vm527_vm5, %v876_v62, %v878_v47  ;;  %v881_v36 = vsel %vm527_vm5, %v9709_v41, %v9736_v54 }
 0x338   : > { %7263 = vmatpush.msk.msra.mxu2 %vm9443_vm11, %v885_v59  ;;  %7291 = vmatpush.msk.msrb.mxu1 %vm9467_vm12, %v886_v45  ;;  %v882_v45 = vsel %vm527_vm5, %v9736_v54, %v9738_v56  ;;  %v837_v54 = vsel %vm514_vm9, %v826_v31, %v828_v37  ;;  %v838_v56 = vsel %vm514_vm9, %v828_v37, %v830_v19  ;;  %v9871_v31 = vpop.permute.xlu2 %969 }
 0x339   : > { %v833_v19 = vsel %vm514_vm9, %v9692_v38, %v9725_v49  ;;  %v832_v37 = vsel %vm514_vm9, %v9660_v28, %v9662_v29  ;;  %v1027_v28 = vsel %vm566_vm1, %v1012_v42, %v9816_v40  ;;  %v1025_v29 = vsel %vm566_vm1, %v9745_v57, %v9768_v9 }
 0x33a   : > { %7264 = vmatpush.msk.msra.mxu2 %vm9443_vm11, %v883_v26  ;;  %7292 = vmatpush.msk.msrb.mxu1 %vm9467_vm12, %v884_v34  ;;  %v7821_v26 = vunpack.i.l.bf16 %v9804_v50  ;;  %v7777_v50 = vunpack.i.h.bf16 %v9656_v27 }
 0x33c   : > { %7265 = vmatpush.msk.msra.mxu2 %vm9443_vm11, %v881_v36  ;;  %7293 = vmatpush.msk.msrb.mxu1 %vm9467_vm12, %v882_v45 }
 0x33e   : > { %7266 = vmatpush.msk.msra.mxu2 %vm9443_vm11, %v879_v55  ;;  %v9852_v41 = vpop.permute.xlu0 %923  ;;  %7294 = vmatpush.msk.msrb.mxu1 %vm9467_vm12, %v880_v61  ;;  %v9856_v47 = vpop.permute.xlu1 %925  ;;  %v7792_v55 = vunpack.i.h.bf16 %v9777_v17  ;;  %v7797_v61 = vunpack.i.h.bf16 %v9779_v22 }
 0x340   : > { %7267 = vmatpush.msk.msra.mxu2 %vm9427_vm7, %v837_v54  ;;  %7295 = vmatpush.msk.msrb.mxu1 %vm9415_vm2, %v838_v56  ;;  %v1018_v51 = vpop.permute.xlu2 %1017  ;;  %v7796_v54 = vunpack.i.l.bf16 %v9779_v22 }
 0x342   : > { %7268 = vmatpush.msk.msra.mxu2 %vm9427_vm7, %v835_v16  ;;  %7296 = vmatpush.msk.msrb.mxu1 %vm9415_vm2, %v836_v32  ;;  %v7776_v16 = vunpack.i.l.bf16 %v9656_v27  ;;  %v7791_v32 = vunpack.i.l.bf16 %v9777_v17  ;;  %v1073_v22 = vsel %vm582_vm13, %v7792_v55, %v7796_v54 }
 0x344   : > { %7269 = vmatpush.msk.msra.mxu2 %vm9427_vm7, %v833_v19  ;;  %7297 = vmatpush.msk.msrb.mxu1 %vm9415_vm2, %v834_v33  ;;  %v1075_v19 = vsel %vm582_vm13, %v7821_v26, %v7822_v15  ;;  %v1071_v27 = vsel %vm582_vm13, %v7776_v16, %v7777_v50  ;;  %v1072_v17 = vsel %vm582_vm13, %v7777_v50, %v7791_v32 }
 0x346   : > { %7270 = vmatpush.msk.msra.mxu2 %vm9427_vm7, %v831_v48  ;;  %v9891_v38 = vpop.permute.xlu0 %971  ;;  %7298 = vmatpush.msk.msrb.mxu1 %vm9415_vm2, %v832_v37  ;;  %v9895_v49 = vpop.permute.xlu1 %973  ;;  %v1074_v48 = vsel %vm582_vm13, %v7796_v54, %v7797_v61  ;;  %v730_v61 = vld [vmem:[%s16078_s3 + $0x18] sm:$0xff] }
 0x347   : > { %v981_v54 = vsel %vm553_vm6, %v9871_v31, %v9891_v38  ;;  %v979_v31 = vsel %vm553_vm6, %v9798_v25, %v9812_v60  ;;  %v978_v25 = vsel %vm553_vm6, %v9756_v0, %v9758_v2 }
 0x34e   : > { %v9897_v59 = vpop.permute.xlu0 %1019  ;;  %v9899_v62 = vpop.permute.xlu1 %1021 }
 0x34f   : > { %v1029_v13 = vsel %vm566_vm1, %v1018_v51, %v9897_v59 }
 0x350   : > { %7283 = vmatpush.msk.msra.mxu0 %vm9427_vm7, %v1029_v13  ;;  %v7830_v13 = vpop.permute.xlu2 %7829 }
 0x352   : > { %7284 = vmatpush.msk.msra.mxu0 %vm9427_vm7, %v1027_v28  ;;  %v7832_v28 = vunpack.i.h.bf16 %v7830_v13 }
 0x354   : > { %7285 = vmatpush.msk.msra.mxu0 %vm9427_vm7, %v1025_v29  ;;  %v7831_v29 = vunpack.i.l.bf16 %v7830_v13  ;;  %v736_v13 = vld [vmem:[%s16078_s3 + $0x48] sm:$0xff] }
 0x356   : > { %7286 = vmatpush.msk.msra.mxu0 %vm9427_vm7, %v1023_v3  ;;  %v7835_v42 = vpop.permute.xlu0 %7834  ;;  %v7840_v34 = vpop.permute.xlu1 %7839 }
 0x357   : > { %v7837_v5 = vunpack.i.h.bf16 %v7835_v42  ;;  %v7836_v36 = vunpack.i.l.bf16 %v7835_v42  ;;  %v7842_v45 = vunpack.i.h.bf16 %v7840_v34  ;;  %v7841_v57 = vunpack.i.l.bf16 %v7840_v34 }
 0x358   : > { %v7812_v42 = vunpack.i.h.bf16 %v9800_v53 }
 0x359   : > { %v1077_v24 = vsel %vm582_vm13, %v7837_v5, %v7841_v57  ;;  %v1078_v56 = vsel %vm582_vm13, %v7841_v57, %v7842_v45  ;;  %v1076_v33 = vsel %vm582_vm13, %v7822_v15, %v7836_v36  ;;  %v7787_v36 = vunpack.i.h.bf16 %v9681_v35 }
 0x35a   : > { %1208 = vmatpush.msra.mxu2 %v1077_v24  ;;  %1295 = vmatpush.msrb.mxu1 %v1078_v56  ;;  %v7811_v45 = vunpack.i.l.bf16 %v9800_v53  ;;  %v982_v24 = vsel %vm553_vm6, %v9891_v38, %v9895_v49  ;;  %v9992_v56 = vld [vmem:[%s16078_s3 + $0x10] sm:$0xff]  ;;  %v980_v38 = vsel %vm553_vm6, %v9812_v60, %v9814_v14  ;;  %v977_v49 = vsel %vm553_vm6, %v9731_v52, %v9756_v0 }
 0x35b   : > { %7287 = vmatmul.msk.f32.vlgmr.msra.gmra.mxu0 %vm1187_vm15, %v9992_v56  ;;  %v733_v60 = vld [vmem:[%s16078_s3 + $0x30] sm:$0xff]  ;;  %v975_v14 = vsel %vm553_vm6, %v9634_v20, %v9696_v39  ;;  %v976_v52 = vsel %vm553_vm6, %v9696_v39, %v9698_v6  ;;  %v933_v0 = vsel %vm540_vm4, %v9826_v12, %v9852_v41  ;;  %v934_v20 = vsel %vm540_vm4, %v9852_v41, %v9856_v47  ;;  %v10042_v39 = vld [vmem:[%s16078_s3 + $0x28] sm:$0xff]  ;;  %v16378_v6 = vld [vmem:[#allocation21_spill] sm:$0xff] }
 0x35c   : > { %1209 = vmatpush.msra.mxu2 %v1075_v19  ;;  %1296 = vmatpush.msrb.mxu1 %v1076_v33  ;;  %v1152_v53 = vsel %vm616_vm8, %v7787_v36, %v7811_v45  ;;  %v931_v2 = vsel %vm540_vm4, %v16378_v6, %v9806_v46  ;;  %v16379_v12 = vld [vmem:[#allocation24_spill] sm:$0xff]  ;;  %v16380_v41 = vld [vmem:[#allocation18_spill] sm:$0xff]  ;;  %v16381_v47 = vld [vmem:[#allocation17_spill] sm:$0xff] }
 0x35d   : > { %v932_v50 = vsel %vm540_vm4, %v9806_v46, %v16379_v12  ;;  %v929_v16 = vsel %vm540_vm4, %v16381_v47, %v16380_v41  ;;  %v16382_v46 = vld [vmem:[#allocation19_spill] sm:$0xff] }
 0x35e   : > { %v9933_v37 = vpop.permute.xlu0 %7844  ;;  %v9935_v51 = vpop.permute.xlu1 %7849  ;;  %1210 = vmatpush.msra.mxu2 %v1073_v22  ;;  %1297 = vmatpush.msrb.mxu1 %v1074_v48  ;;  %v930_v22 = vsel %vm540_vm4, %v16380_v41, %v16382_v46  ;;  %v16383_v48 = vld [vmem:[#allocation14_spill] sm:$0xff] }
 0x35f   : > { %v7847_v32 = vunpack.i.h.bf16 %v9933_v37  ;;  %v7852_v19 = vunpack.i.h.bf16 %v9935_v51  ;;  %v7851_v33 = vunpack.i.l.bf16 %v9935_v51 }
 0x360   : > { %1211 = vmatpush.msra.mxu2 %v1071_v27  ;;  %1298 = vmatpush.msrb.mxu1 %v1072_v17  ;;  %v16384_v27 = vld [vmem:[#allocation12_spill] sm:$0xff] }
 0x361   : > { %v927_v17 = vsel %vm540_vm4, %v16384_v27, %v16383_v48 }
 0x362   : > { %7271 = vmatpush.msk.msra.mxu2 %vm9443_vm11, %v9701_v7  ;;  %7299 = vmatpush.msk.msrb.mxu1 %vm9467_vm12, %v9706_v23 }
 0x363   : > { %7288 = vmatmul.msk.f32.gmra.mxu0 %vm1187_vm15, %v10042_v39 }
 0x364   : > { %7272 = vmatpush.msk.msra.mxu2 %vm9443_vm11, %v9624_v18  ;;  %7300 = vmatpush.msk.msrb.mxu1 %vm9467_vm12, %v9641_v21  ;;  %v727_v18 = vld [vmem:[%s16078_s3] sm:$0xff] }
 0x366   : > { %v7855_v3 = vpop.permute.xlu0 %7854  ;;  %v7860_v15 = vpop.permute.xlu1 %7859  ;;  %7273 = vmatpush.msk.msra.mxu2 %vm9443_vm11, %v9591_v10  ;;  %7301 = vmatpush.msk.msrb.mxu1 %vm9467_vm12, %v9584_v8  ;;  %v7817_v8 = vunpack.i.h.bf16 %v9802_v4  ;;  %v7816_v10 = vunpack.i.l.bf16 %v9802_v4 }
 0x367   : > { %v7857_v7 = vunpack.i.h.bf16 %v7855_v3  ;;  %v7856_v23 = vunpack.i.l.bf16 %v7855_v3  ;;  %v7862_v26 = vunpack.i.h.bf16 %v7860_v15  ;;  %v7861_v21 = vunpack.i.l.bf16 %v7860_v15  ;;  %v16386_v15 = vld [vmem:[#allocation15_spill] sm:$0xff] }
 0x368   : > { %7274 = vmatpush.msk.msra.mxu2 %vm9443_vm11, %v9547_v63  ;;  %7302 = vmatpush.msk.msrb.mxu1 %vm9467_vm12, %v9556_v1  ;;  %v7786_v63 = vunpack.i.l.bf16 %v9681_v35  ;;  %v1155_v1 = vsel %vm616_vm8, %v7831_v29, %v7832_v28  ;;  %v1153_v4 = vsel %vm616_vm8, %v7812_v42, %v7816_v10  ;;  %v1154_v55 = vsel %vm616_vm8, %v7816_v10, %v7817_v8  ;;  %v735_v10 = vld [vmem:[%s16078_s3 + $0x40] sm:$0xff] }
 0x369   : > { %1216 = vmatmul.f32.vlgmr.msra.gmra.mxu2 %v727_v18  ;;  %1303 = vmatmul.f32.vlgmr.msrb.gmra.mxu1 %v727_v18  ;;  %v1157_v34 = vsel %vm616_vm8, %v7857_v7, %v7861_v21  ;;  %v1158_v5 = vsel %vm616_vm8, %v7861_v21, %v7862_v26  ;;  %v1156_v57 = vsel %vm616_vm8, %v7832_v28, %v7856_v23  ;;  %v16385_v28 = vld [vmem:[#allocation25_spill] sm:$0xff]  ;;  %v7846_v3 = vunpack.i.l.bf16 %v9933_v37  ;;  %v16387_v7 = vld [vmem:[#allocation22_spill] sm:$0xff]  ;;  %v16388_v26 = vld [vmem:[#allocation23_spill] sm:$0xff] }
 0x36a   : > { %1229 = vmatpush.msrb.mxu3 %v1157_v34  ;;  %1316 = vmatpush.msrb.mxu2 %v1158_v5  ;;  %v1151_v35 = vsel %vm616_vm8, %v7786_v63, %v7787_v36  ;;  %v7827_v51 = vunpack.i.h.bf16 %v16385_v28  ;;  %v7826_v29 = vunpack.i.l.bf16 %v16385_v28  ;;  %v928_v18 = vsel %vm540_vm4, %v16383_v48, %v16386_v15  ;;  %v16389_v34 = vld [vmem:[#allocation13_spill] sm:$0xff] }
 0x36b   : > { %v7802_v23 = vunpack.i.h.bf16 %v16387_v7  ;;  %v7807_v21 = vunpack.i.h.bf16 %v16388_v26  ;;  %v7806_v42 = vunpack.i.l.bf16 %v16388_v26  ;;  %v1117_v37 = vsel %vm599_vm10, %v7847_v32, %v7851_v33  ;;  %7289 = vmatmul.msk.f32.gmra.mxu0 %vm1187_vm15, %v735_v10 }
 0x36c   : > { %1230 = vmatpush.msrb.mxu3 %v1155_v1  ;;  %1317 = vmatpush.msrb.mxu2 %v1156_v57  ;;  %v1118_v8 = vsel %vm599_vm10, %v7851_v33, %v7852_v19  ;;  %v7782_v5 = vunpack.i.h.bf16 %v16389_v34  ;;  %v7781_v36 = vunpack.i.l.bf16 %v16389_v34  ;;  %v7801_v63 = vunpack.i.l.bf16 %v16387_v7 }
 0x36d   : > { %v1115_v45 = vsel %vm599_vm10, %v7826_v29, %v7827_v51  ;;  %v1116_v1 = vsel %vm599_vm10, %v7827_v51, %v7846_v3  ;;  %v1113_v57 = vsel %vm599_vm10, %v7802_v23, %v7806_v42 }
 0x36e   : > { %1231 = vmatpush.msrb.mxu3 %v1153_v4  ;;  %1318 = vmatpush.msrb.mxu2 %v1154_v55  ;;  %v1114_v4 = vsel %vm599_vm10, %v7806_v42, %v7807_v21  ;;  %v728_v55 = vld [vmem:[%s16078_s3 + $0x8] sm:$0xff]  ;;  %v1175_v47 = vpop.permute.xlu0 %1174  ;;  %v1180_v46 = vpop.permute.xlu1 %1179 }
 0x370   : > { %1232 = vmatpush.msrb.mxu3 %v1151_v35  ;;  %1319 = vmatpush.msrb.mxu2 %v1152_v53  ;;  %v1112_v35 = vsel %vm599_vm10, %v7782_v5, %v7801_v63  ;;  %v738_v53 = vld [vmem:[%s16078_s3 + $0x58] sm:$0xff] }
 0x371   : > { %1219 = vmatmul.f32.gmra.mxu2 %v730_v61  ;;  %1306 = vmatmul.f32.gmra.mxu1 %v730_v61  ;;  %v1111_v61 = vsel %vm599_vm10, %v7781_v36, %v7782_v5 }
 0x372   : > { %7275 = vmatpush.msk.msrb.mxu3 %vm9443_vm11, %v981_v54  ;;  %7303 = vmatpush.msk.msrb.mxu2 %vm9467_vm12, %v982_v24  ;;  %v1030_v54 = vsel %vm566_vm1, %v9897_v59, %v9899_v62  ;;  %v16390_v24 = vld [vmem:[#allocation26_spill] sm:$0xff]  ;;  %v731_v59 = vld [vmem:[%s16078_s3 + $0x20] sm:$0xff]  ;;  %v16392_v62 = vld [vmem:[#allocation16_spill] sm:$0xff] }
 0x373   : > { %7290 = vmatmul.msk.f32.gmra.mxu0 %vm1187_vm15, %v738_v53 }
 0x374   : > { %7276 = vmatpush.msk.msrb.mxu3 %vm9443_vm11, %v979_v31  ;;  %7304 = vmatpush.msk.msrb.mxu2 %vm9467_vm12, %v980_v38  ;;  %v1028_v31 = vsel %vm566_vm1, %v9816_v40, %v16390_v24  ;;  %v16391_v38 = vld [vmem:[#allocation20_spill] sm:$0xff]  ;;  %v1024_v40 = vsel %vm566_vm1, %v9714_v43, %v16392_v62 }
 0x376   : > { %7277 = vmatpush.msk.msrb.mxu3 %vm9443_vm11, %v977_v49  ;;  %7305 = vmatpush.msk.msrb.mxu2 %vm9467_vm12, %v978_v25  ;;  %v1026_v49 = vsel %vm566_vm1, %v9768_v9, %v16391_v38  ;;  %v734_v9 = vld [vmem:[%s16078_s3 + $0x38] sm:$0xff]  ;;  %v737_v25 = vld [vmem:[%s16078_s3 + $0x50] sm:$0xff] }
 0x378   : > { %7278 = vmatpush.msk.msrb.mxu3 %vm9443_vm11, %v975_v14  ;;  %7306 = vmatpush.msk.msrb.mxu2 %vm9467_vm12, %v976_v52  ;;  %v1170_v52 = vpop.permute.xlu2 %1169 }
 0x379   : > { %1222 = vmatmul.f32.gmra.mxu2 %v733_v60  ;;  %1309 = vmatmul.f32.gmra.mxu1 %v733_v60 }
 0x37a   : > { %7279 = vmatpush.msk.msrb.mxu3 %vm9427_vm7, %v933_v0  ;;  %7307 = vmatpush.msk.msrb.mxu2 %vm9415_vm2, %v934_v20 }
 0x37c   : > { %7280 = vmatpush.msk.msrb.mxu3 %vm9427_vm7, %v931_v2  ;;  %7308 = vmatpush.msk.msrb.mxu2 %vm9415_vm2, %v932_v50 }
 0x37e   : > { %7281 = vmatpush.msk.msrb.mxu3 %vm9427_vm7, %v929_v16  ;;  %7309 = vmatpush.msk.msrb.mxu2 %vm9415_vm2, %v930_v22 }
 0x380   : > { %7282 = vmatpush.msk.msrb.mxu3 %vm9427_vm7, %v927_v17  ;;  %7310 = vmatpush.msk.msrb.mxu2 %vm9415_vm2, %v928_v18  ;;  %v1185_v29 = vpop.permute.xlu2 %1184 }
 0x381   : > { %1225 = vmatmul.f32.gmra.mxu2 %v736_v13  ;;  %1312 = vmatmul.f32.gmra.mxu1 %v736_v13 }
 0x382   : > { %1241 = vmatpush.msrb.mxu3 %v1117_v37  ;;  %1328 = vmatpush.msrb.mxu2 %v1118_v8 }
 0x384   : > { %1242 = vmatpush.msrb.mxu3 %v1115_v45  ;;  %1329 = vmatpush.msrb.mxu2 %v1116_v1 }
 0x386   : > { %1243 = vmatpush.msrb.mxu3 %v1113_v57  ;;  %1330 = vmatpush.msrb.mxu2 %v1114_v4 }
 0x388   : > { %1244 = vmatpush.msrb.mxu3 %v1111_v61  ;;  %1331 = vmatpush.msrb.mxu2 %v1112_v35 }
 0x389   : > { %1245 = vmatmul.f32.vlgmr.msrb.gmra.mxu3 %v728_v55  ;;  %1332 = vmatmul.f32.vlgmr.msrb.gmra.mxu2 %v728_v55 }
 0x38a   : > { %7311 = vmatpush.msk.msra.mxu3 %vm9415_vm2, %v1030_v54 }
 0x38c   : > { %7312 = vmatpush.msk.msra.mxu3 %vm9415_vm2, %v1028_v31 }
 0x38e   : > { %7313 = vmatpush.msk.msra.mxu3 %vm9415_vm2, %v1026_v49 }
 0x390   : > { %7314 = vmatpush.msk.msra.mxu3 %vm9415_vm2, %v1024_v40 }
 0x391   : > { %1248 = vmatmul.f32.gmra.mxu3 %v731_v59  ;;  %1335 = vmatmul.f32.gmra.mxu2 %v731_v59 }
 0x399   : > { %1251 = vmatmul.f32.gmra.mxu3 %v734_v9  ;;  %1338 = vmatmul.f32.gmra.mxu2 %v734_v9 }
 0x3a1   : > { %1254 = vmatmul.f32.gmra.mxu3 %v737_v25  ;;  %1341 = vmatmul.f32.gmra.mxu2 %v737_v25 }
 0x3a9   : > { %7315 = vmatmul.msk.f32.vlgmr.msra.gmra.mxu3 %vm1187_vm15, %v9992_v56 }
 0x3b1   : > { %7316 = vmatmul.msk.f32.gmra.mxu3 %vm1187_vm15, %v10042_v39 }
 0x3b9   : > { %7317 = vmatmul.msk.f32.gmra.mxu3 %vm1187_vm15, %v735_v10 }
 0x3c1   : > { %7318 = vmatmul.msk.f32.gmra.mxu3 %vm1187_vm15, %v738_v53 }
 0x3d8   : > { %v1275_v14 = vpop.f32.mrf.mxu0 }
 0x3e0   : > { %v1278_v50 = vpop.f32.mrf.mxu0 }
 0x3e6   : > { %v1304_v28 = vpop.f32.mrf.mxu1 }
 0x3e7   : > { %v1305_v21 = vadd.f32 %v1304_v28, %v1170_v52 }
 0x3e8   : > { %v1281_v22 = vpop.f32.mrf.mxu0 }
 0x3ec   : > { %v1217_v43 = vpop.f32.mrf.mxu2 }
 0x3ed   : > { %v1218_v0 = vadd.f32 %v1217_v43, %v1170_v52 }
 0x3ee   : > { %v1307_v37 = vpop.f32.mrf.mxu1 }
 0x3ef   : > { %v1308_v63 = vadd.f32 %v1307_v37, %v1175_v47 }
 0x3f0   : > { %v1284_v7 = vpop.f32.mrf.mxu0 }
 0x3f4   : > { %v1220_v60 = vpop.f32.mrf.mxu2 }
 0x3f5   : > { %v1221_v56 = vadd.f32 %v1220_v60, %v1175_v47 }
 0x3f6   : > { %v1310_v1 = vpop.f32.mrf.mxu1 }
 0x3f7   : > { %v1311_v35 = vadd.f32 %v1310_v1, %v1180_v46 }
 0x3fc   : > { %v1223_v2 = vpop.f32.mrf.mxu2 }
 0x3fd   : > { %v1224_v48 = vadd.f32 %v1223_v2, %v1180_v46 }
 0x3fe   : > { %v1313_v31 = vpop.f32.mrf.mxu1 }
 0x3ff   : > { %v1314_v59 = vadd.f32 %v1313_v31, %v1185_v29 }
 0x404   : > { %v1226_v19 = vpop.f32.mrf.mxu2 }
 0x405   : > { %v1227_v15 = vadd.f32 %v1226_v19, %v1185_v29 }
 0x40c   : > { %v1246_v20 = vpop.f32.mrf.mxu3  ;;  %v1333_v3 = vpop.f32.mrf.mxu2 }
 0x40d   : > { %v1247_v6 = vadd.f32 %v1246_v20, %v1218_v0  ;;  %v1334_v8 = vadd.f32 %v1333_v3, %v1305_v21 }
 0x40f   : > { %v1276_v12 = vadd.f32 %v1275_v14, %v1247_v6 }
 0x411   : > { %v1374_v41 = vmax.f32 %v1276_v12, 0.0 }
 0x413   : > { %1406 = vrot.lane.b32.xlu0 %v1374_v41, %s9264_s16 }
 0x414   : > { %v1249_v39 = vpop.f32.mrf.mxu3  ;;  %v1336_v10 = vpop.f32.mrf.mxu2 }
 0x415   : > { %v1250_v16 = vadd.f32 %v1249_v39, %v1221_v56  ;;  %v1337_v45 = vadd.f32 %v1336_v10, %v1308_v63 }
 0x417   : > { %v1279_v32 = vadd.f32 %v1278_v50, %v1250_v16 }
 0x419   : > { %v1376_v33 = vmax.f32 %v1279_v32, 0.0 }
 0x41b   : > { %1410 = vrot.lane.b32.xlu2 %v1376_v33, %s9264_s16 }
 0x41c   : > { %v1252_v27 = vpop.f32.mrf.mxu3  ;;  %v1339_v55 = vpop.f32.mrf.mxu2 }
 0x41d   : > { %v1253_v17 = vadd.f32 %v1252_v27, %v1224_v48  ;;  %v1340_v53 = vadd.f32 %v1339_v55, %v1311_v35 }
 0x41f   : > { %v1282_v13 = vadd.f32 %v1281_v22, %v1253_v17 }
 0x421   : > { %v1378_v51 = vmax.f32 %v1282_v13, 0.0 }
 0x423   : > { %1414 = vrot.lane.b32.xlu1 %v1378_v51, %s9264_s16 }
 0x424   : > { %v1255_v18 = vpop.f32.mrf.mxu3  ;;  %v1342_v49 = vpop.f32.mrf.mxu2 }
 0x425   : > { %v1256_v23 = vadd.f32 %v1255_v18, %v1227_v15  ;;  %v1343_v62 = vadd.f32 %v1342_v49, %v1314_v59 }
 0x427   : > { %v1285_v26 = vadd.f32 %v1284_v7, %v1256_v23 }
 0x429   : > { %v1380_v42 = vmax.f32 %v1285_v26, 0.0 }
 0x42b   : > { %1418 = vrot.lane.b32.xlu0 %v1380_v42, %s9264_s16 }
 0x42c   : > { %v1362_v34 = vpop.f32.mrf.mxu3 }
 0x42d   : > { %v1363_v5 = vadd.f32 %v1362_v34, %v1334_v8 }
 0x42f   : > { %v1375_v36 = vmax.f32 %v1363_v5, 0.0 }
 0x431   : > { %1408 = vrot.lane.b32.xlu1 %v1375_v36, %s9264_s16 }
 0x434   : > { %v1365_v57 = vpop.f32.mrf.mxu3 }
 0x435   : > { %v1366_v4 = vadd.f32 %v1365_v57, %v1337_v45 }
 0x437   : > { %v1377_v61 = vmax.f32 %v1366_v4, 0.0 }
 0x439   : > { %1412 = vrot.lane.b32.xlu0 %v1377_v61, %s9264_s16 }
 0x43c   : > { %v1368_v54 = vpop.f32.mrf.mxu3 }
 0x43d   : > { %v1369_v24 = vadd.f32 %v1368_v54, %v1340_v53 }
 0x43f   : > { %v1379_v38 = vmax.f32 %v1369_v24, 0.0 }
 0x441   : > { %1416 = vrot.lane.b32.xlu2 %v1379_v38, %s9264_s16  ;;  %v1394_v38 = vld [vmem:[%s16081_s6] sm:$0xff] }
 0x444   : > { %v1371_v40 = vpop.f32.mrf.mxu3 }
 0x445   : > { %v1372_v9 = vadd.f32 %v1371_v40, %v1343_v62 }
 0x447   : > { %v1381_v25 = vmax.f32 %v1372_v9, 0.0  ;;  %v1397_v9 = vld [vmem:[%s16081_s6 + $0x18] sm:$0xff] }
 0x449   : > { %1420 = vrot.lane.b32.xlu1 %v1381_v25, %s9264_s16 }
 0x475   : > { %v1411_v6 = vpop.permute.xlu2 %1410 }
 0x476   : > { %v10181_v2 = vsel %vm489_vm0, 0.0, %v1411_v6 }
 0x485   : > { %v1407_v43 = vpop.permute.xlu0 %1406 }
 0x486   : > { %v10158_v60 = vsel %vm489_vm0, 0.0, %v1407_v43 }
 0x487   : > { %1462 = vrot.lane.b32.xlu2 %v10158_v60, %s16175_s19 }
 0x48f   : > { %1510 = vrot.lane.b32.xlu2 %v10158_v60, %s9266_s18 }
 0x495   : > { %v1415_v14 = vpop.permute.xlu1 %1414 }
 0x496   : > { %v10215_v56 = vsel %vm489_vm0, 0.0, %v1415_v14 }
 0x497   : > { %1558 = vrot.lane.b32.xlu2 %v10158_v60, %s9265_s17 }
 0x49b   : > { %v1417_v39 = vpop.permute.xlu2 %1416 }
 0x49c   : > { %v10261_v27 = vsel %vm489_vm0, %v1415_v14, %v1417_v39  ;;  %v1444_v17 = vsel %vm489_vm0, %v1417_v39, 0.0 }
 0x49d   : > { %v10195_v12 = vpop.permute.xlu0 %1418  ;;  %v7898_v57 = vpack.i.bf16 %v10261_v27, %v10215_v56 }
 0x49e   : > { %v10254_v22 = vsel %vm489_vm0, 0.0, %v10195_v12 }
 0x49f   : > { %1606 = vrot.lane.b32.xlu2 %v10158_v60, %s9268_s20  ;;  %v7903_v37 = vpack.i.bf16 %v10254_v22, %v1444_v17 }
 0x4a3   : > { %v1409_v52 = vpop.permute.xlu1 %1408 }
 0x4a4   : > { %v10169_v0 = vsel %vm489_vm0, %v1407_v43, %v1409_v52  ;;  %v1442_v20 = vsel %vm489_vm0, %v1409_v52, 0.0 }
 0x4a5   : > { %1466 = vrot.lane.b32.xlu1 %v1442_v20, %s16175_s19  ;;  %1464 = vrot.lane.b32.xlu0 %v10169_v0, %s16175_s19  ;;  %v10203_v41 = vpack.i.bf16 %v10181_v2, %v1442_v20  ;;  %v7863_v23 = vpack.i.bf16 %v10169_v0, %v10158_v60 }
 0x4a7   : > { %1654 = vrot.lane.b32.xlu2 %v10158_v60, %s9269_s21 }
 0x4ab   : > { %v1413_v50 = vpop.permute.xlu0 %1412 }
 0x4ac   : > { %v1443_v47 = vsel %vm489_vm0, %v1413_v50, 0.0  ;;  %v10220_v16 = vsel %vm489_vm0, %v1411_v6, %v1413_v50 }
 0x4ad   : > { %1514 = vrot.lane.b32.xlu1 %v1442_v20, %s9266_s18  ;;  %1512 = vrot.lane.b32.xlu0 %v10169_v0, %s9266_s18  ;;  %v7888_v33 = vpack.i.bf16 %v1443_v47, %v10220_v16 }
 0x4af   : > { %1468 = vrot.lane.b32.xlu2 %v10181_v2, %s16175_s19 }
 0x4b5   : > { %1562 = vrot.lane.b32.xlu1 %v1442_v20, %s9265_s17  ;;  %1560 = vrot.lane.b32.xlu0 %v10169_v0, %s9265_s17 }
 0x4b7   : > { %1516 = vrot.lane.b32.xlu2 %v10181_v2, %s9266_s18 }
 0x4bb   : > { %v1421_v28 = vpop.permute.xlu1 %1420 }
 0x4bc   : > { %v1445_v8 = vsel %vm489_vm0, %v1421_v28, 0.0  ;;  %v10330_v45 = vsel %vm489_vm0, %v10195_v12, %v1421_v28 }
 0x4bd   : > { %1610 = vrot.lane.b32.xlu1 %v1442_v20, %s9268_s20  ;;  %1608 = vrot.lane.b32.xlu0 %v10169_v0, %s9268_s20  ;;  %v7938_v40 = vpack.i.bf16 %v1445_v8, %v10330_v45 }
 0x4bf   : > { %1564 = vrot.lane.b32.xlu2 %v10181_v2, %s9265_s17 }
 0x4c5   : > { %1658 = vrot.lane.b32.xlu1 %v1442_v20, %s9269_s21  ;;  %1656 = vrot.lane.b32.xlu0 %v10169_v0, %s9269_s21 }
 0x4c7   : > { %1612 = vrot.lane.b32.xlu2 %v10181_v2, %s9268_s20 }
 0x4cd   : > { %7869 = vrot.lane.b32.xlu0 %v10203_v41, %s16142_s24  ;;  %1472 = vrot.lane.b32.xlu1 %v1443_v47, %s16175_s19 }
 0x4cf   : > { %1660 = vrot.lane.b32.xlu2 %v10181_v2, %s9269_s21 }
 0x4d5   : > { %7879 = vrot.lane.b32.xlu0 %v10203_v41, %s16139_s22  ;;  %1520 = vrot.lane.b32.xlu1 %v1443_v47, %s9266_s18 }
 0x4d7   : > { %1474 = vrot.lane.b32.xlu2 %v10215_v56, %s16175_s19 }
 0x4dd   : > { %1568 = vrot.lane.b32.xlu1 %v1443_v47, %s9265_s17  ;;  %1470 = vrot.lane.b32.xlu0 %v10220_v16, %s16175_s19 }
 0x4df   : > { %1522 = vrot.lane.b32.xlu2 %v10215_v56, %s9266_s18 }
 0x4e1   : > { %v10227_v32 = vpop.permute.xlu2 %1462 }
 0x4e5   : > { %1616 = vrot.lane.b32.xlu1 %v1443_v47, %s9268_s20  ;;  %1518 = vrot.lane.b32.xlu0 %v10220_v16, %s9266_s18 }
 0x4e7   : > { %1570 = vrot.lane.b32.xlu2 %v10215_v56, %s9265_s17 }
 0x4e9   : > { %v10234_v19 = vpop.permute.xlu2 %1510 }
 0x4ed   : > { %1664 = vrot.lane.b32.xlu1 %v1443_v47, %s9269_s21  ;;  %1566 = vrot.lane.b32.xlu0 %v10220_v16, %s9265_s17  ;;  %v1395_v47 = vld [vmem:[%s16081_s6 + $0x8] sm:$0xff] }
 0x4ef   : > { %1618 = vrot.lane.b32.xlu2 %v10215_v56, %s9268_s20 }
 0x4f1   : > { %v10245_v46 = vpop.permute.xlu2 %1558 }
 0x4f2   : > { %16393 = vst [vmem:[#allocation21_spill] sm:$0xff] %v10245_v46 }
 0x4f5   : > { %7889 = vrot.lane.b32.xlu1 %v7888_v33, %s16142_s24  ;;  %1614 = vrot.lane.b32.xlu0 %v10220_v16, %s9268_s20 }
 0x4f7   : > { %1666 = vrot.lane.b32.xlu2 %v10215_v56, %s9269_s21 }
 0x4f9   : > { %v10258_v48 = vpop.permute.xlu2 %1606 }
 0x4fd   : > { %7894 = vrot.lane.b32.xlu1 %v7888_v33, %s16139_s22  ;;  %1662 = vrot.lane.b32.xlu0 %v10220_v16, %s9269_s21 }
 0x4ff   : > { %1480 = vrot.lane.b32.xlu2 %v10254_v22, %s16175_s19 }
 0x501   : > { %v10269_v13 = vpop.permute.xlu2 %1654 }
 0x505   : > { %1478 = vrot.lane.b32.xlu1 %v1444_v17, %s16175_s19  ;;  %1476 = vrot.lane.b32.xlu0 %v10261_v27, %s16175_s19 }
 0x507   : > { %1528 = vrot.lane.b32.xlu2 %v10254_v22, %s9266_s18 }
 0x509   : > { %v10276_v51 = vpop.permute.xlu2 %1468 }
 0x50d   : > { %1526 = vrot.lane.b32.xlu1 %v1444_v17, %s9266_s18  ;;  %1524 = vrot.lane.b32.xlu0 %v10261_v27, %s9266_s18 }
 0x50f   : > { %1576 = vrot.lane.b32.xlu2 %v10254_v22, %s9265_s17 }
 0x511   : > { %v10290_v15 = vpop.permute.xlu2 %1516 }
 0x515   : > { %1574 = vrot.lane.b32.xlu1 %v1444_v17, %s9265_s17  ;;  %1572 = vrot.lane.b32.xlu0 %v10261_v27, %s9265_s17 }
 0x517   : > { %v10281_v29 = vpop.permute.xlu1 %1466  ;;  %1624 = vrot.lane.b32.xlu2 %v10254_v22, %s9268_s20  ;;  %v10285_v3 = vpop.permute.xlu0 %1464 }
 0x519   : > { %v10308_v42 = vpop.permute.xlu2 %1564 }
 0x51a   : > { %16396 = vst [vmem:[#allocation17_spill] sm:$0xff] %v10308_v42 }
 0x51d   : > { %1622 = vrot.lane.b32.xlu1 %v1444_v17, %s9268_s20  ;;  %1620 = vrot.lane.b32.xlu0 %v10261_v27, %s9268_s20 }
 0x51f   : > { %v10292_v18 = vpop.permute.xlu1 %1514  ;;  %1672 = vrot.lane.b32.xlu2 %v10254_v22, %s9269_s21  ;;  %v10296_v7 = vpop.permute.xlu0 %1512 }
 0x521   : > { %v10319_v5 = vpop.permute.xlu2 %1612 }
 0x525   : > { %1670 = vrot.lane.b32.xlu1 %v1444_v17, %s9269_s21  ;;  %1668 = vrot.lane.b32.xlu0 %v10261_v27, %s9269_s21 }
 0x527   : > { %v10303_v26 = vpop.permute.xlu1 %1562  ;;  %7864 = vrot.lane.b32.xlu2 %v7863_v23, %s16142_s24  ;;  %v10306_v21 = vpop.permute.xlu0 %1560 }
 0x528   : > { %16394 = vst [vmem:[#allocation24_spill] sm:$0xff] %v10303_v26 }
 0x529   : > { %16395 = vst [vmem:[#allocation18_spill] sm:$0xff] %v10306_v21  ;;  %v10332_v1 = vpop.permute.xlu2 %1660 }
 0x52d   : > { %1484 = vrot.lane.b32.xlu1 %v1445_v8, %s16175_s19  ;;  %7904 = vrot.lane.b32.xlu0 %v7903_v37, %s16142_s24 }
 0x52f   : > { %v10314_v10 = vpop.permute.xlu1 %1610  ;;  %7874 = vrot.lane.b32.xlu2 %v7863_v23, %s16139_s22  ;;  %v10317_v34 = vpop.permute.xlu0 %1608 }
 0x531   : > { %v10347_v61 = vpop.permute.xlu2 %1474 }
 0x535   : > { %1532 = vrot.lane.b32.xlu1 %v1445_v8, %s9266_s18  ;;  %7914 = vrot.lane.b32.xlu0 %v7903_v37, %s16139_s22 }
 0x537   : > { %v10323_v36 = vpop.permute.xlu1 %1658  ;;  %7884 = vrot.lane.b32.xlu2 %v7863_v23, %s16137_s23  ;;  %v10326_v63 = vpop.permute.xlu0 %1656 }
 0x538   : > { %16397 = vst [vmem:[#allocation19_spill] sm:$0xff] %v10323_v36 }
 0x539   : > { %v1523_v31 = vpop.permute.xlu2 %1522 }
 0x53d   : > { %1580 = vrot.lane.b32.xlu1 %v1445_v8, %s9265_s17  ;;  %1482 = vrot.lane.b32.xlu0 %v10330_v45, %s16175_s19 }
 0x53f   : > { %7899 = vrot.lane.b32.xlu2 %v7898_v57, %s16142_s24  ;;  %v10340_v4 = vpop.permute.xlu1 %1472  ;;  %v10342_v55 = vpop.permute.xlu0 %7869 }
 0x541   : > { %v10370_v62 = vpop.permute.xlu2 %1570 }
 0x542   : > { %16400 = vst [vmem:[#allocation25_spill] sm:$0xff] %v10370_v62 }
 0x545   : > { %7924 = vrot.lane.b32.xlu1 %v7888_v33, %s16137_s23  ;;  %1530 = vrot.lane.b32.xlu0 %v10330_v45, %s9266_s18 }
 0x547   : > { %7909 = vrot.lane.b32.xlu2 %v7898_v57, %s16139_s22  ;;  %v10350_v35 = vpop.permute.xlu1 %1520  ;;  %v10352_v53 = vpop.permute.xlu0 %7879 }
 0x548   : > { %16398 = vst [vmem:[#allocation14_spill] sm:$0xff] %v10352_v53 }
 0x549   : > { %v10383_v14 = vpop.permute.xlu2 %1618 }
 0x54d   : > { %1628 = vrot.lane.b32.xlu1 %v1445_v8, %s9268_s20  ;;  %1578 = vrot.lane.b32.xlu0 %v10330_v45, %s9265_s17 }
 0x54f   : > { %7929 = vrot.lane.b32.xlu2 %v7898_v57, %s16137_s23  ;;  %v10358_v54 = vpop.permute.xlu1 %1568  ;;  %v10360_v24 = vpop.permute.xlu0 %1470 }
 0x550   : > { %16399 = vst [vmem:[#allocation12_spill] sm:$0xff] %v10358_v54 }
 0x551   : > { %v10394_v6 = vpop.permute.xlu2 %1666 }
 0x555   : > { %1676 = vrot.lane.b32.xlu1 %v1445_v8, %s9269_s21  ;;  %1626 = vrot.lane.b32.xlu0 %v10330_v45, %s9268_s20 }
 0x557   : > { %1824 = vperm.xlu2 %7771, %v1394_v38   ;;  %v10368_v49 = vpop.permute.xlu1 %1616  ;;  %v1519_v59 = vpop.permute.xlu0 %1518 }
 0x559   : > { %v1481_v17 = vpop.permute.xlu2 %1480 }
 0x55d   : > { %7939 = vrot.lane.b32.xlu1 %v7938_v40, %s16142_s24  ;;  %7919 = vrot.lane.b32.xlu0 %v10203_v41, %s16137_s23  ;;  %v1396_v41 = vld [vmem:[%s16081_s6 + $0x10] sm:$0xff] }
 0x55f   : > { %1839 = vperm.xlu2 %7771, %v1397_v9   ;;  %v10379_v25 = vpop.permute.xlu1 %1664  ;;  %v10381_v43 = vpop.permute.xlu0 %1566 }
 0x560   : > { %16401 = vst [vmem:[#allocation15_spill] sm:$0xff] %v10379_v25 }
 0x561   : > { %16402 = vst [vmem:[#allocation22_spill] sm:$0xff] %v10381_v43 }
 0x565   : > { %7944 = vrot.lane.b32.xlu1 %v7938_v40, %s16139_s22  ;;  %1674 = vrot.lane.b32.xlu0 %v10330_v45, %s9269_s21 }
 0x567   : > { %v10388_v52 = vpop.permute.xlu1 %7889  ;;  %v10390_v20 = vpop.permute.xlu0 %1614 }
 0x56d   : > { %7949 = vrot.lane.b32.xlu1 %v7938_v40, %s16137_s23  ;;  %7934 = vrot.lane.b32.xlu0 %v7903_v37, %s16137_s23  ;;  %v1529_v37 = vpop.permute.xlu2 %1528 }
 0x56f   : > { %v10396_v12 = vpop.permute.xlu1 %7894  ;;  %v10398_v50 = vpop.permute.xlu0 %1662 }
 0x570   : > { %16403 = vst [vmem:[#allocation23_spill] sm:$0xff] %v10396_v12 }
 0x575   : > { %1834 = vperm.xlu1 %7770, %v1396_v41   ;;  %1829 = vperm.xlu0 %7772, %v1395_v47   ;;  %v10410_v38 = vpop.permute.xlu2 %1576 }
 0x577   : > { %v1479_v39 = vpop.permute.xlu1 %1478  ;;  %v1477_v33 = vpop.permute.xlu0 %1476 }
 0x57d   : > { %v10416_v36 = vpop.permute.xlu2 %1624 }
 0x57f   : > { %v1527_v28 = vpop.permute.xlu1 %1526  ;;  %v1525_v23 = vpop.permute.xlu0 %1524 }
 0x585   : > { %v10424_v12 = vpop.permute.xlu2 %1672 }
 0x587   : > { %v10406_v8 = vpop.permute.xlu1 %1574  ;;  %v10408_v57 = vpop.permute.xlu0 %1572 }
 0x588   : > { %16404 = vst [vmem:[#allocation13_spill] sm:$0xff] %v10406_v8 }
 0x589   : > { %16405 = vst [vmem:[#allocation26_spill] sm:$0xff] %v10408_v57 }
 0x58d   : > { %v10428_v21 = vpop.permute.xlu2 %7864 }
 0x58f   : > { %v10412_v40 = vpop.permute.xlu1 %1622  ;;  %v10414_v9 = vpop.permute.xlu0 %1620 }
 0x595   : > { %v10432_v43 = vpop.permute.xlu2 %7874 }
 0x597   : > { %v10418_v41 = vpop.permute.xlu1 %1670  ;;  %v10420_v47 = vpop.permute.xlu0 %1668 }
 0x598   : > { %16406 = vst [vmem:[#allocation20_spill] sm:$0xff] %v10418_v41 }
 0x59f   : > { %v1485_v25 = vpop.permute.xlu1 %1484  ;;  %v10422_v53 = vpop.permute.xlu0 %7904 }
 0x5a7   : > { %v1533_v26 = vpop.permute.xlu1 %1532  ;;  %v10426_v46 = vpop.permute.xlu0 %7914 }
 0x5a8   : > { %16407 = vst [vmem:[#allocation16_spill] sm:$0xff] %v10426_v46  ;;  %v1538_v46 = vsel %vm527_vm5, %v1523_v31, %v1525_v23  ;;  %v10456_v31 = vpop.permute.xlu2 %7884 }
 0x5af   : > { %v10430_v54 = vpop.permute.xlu1 %1580  ;;  %v1483_v42 = vpop.permute.xlu0 %1482 }
 0x5b0   : > { %16408 = vst [vmem:[#allocation27_spill] sm:$0xff] %v10430_v54  ;;  %v1539_v54 = vsel %vm527_vm5, %v1525_v23, %v1527_v28 }
 0x5b7   : > { %v10434_v8 = vpop.permute.xlu1 %7924  ;;  %v1531_v41 = vpop.permute.xlu0 %1530 }
 0x5b8   : > { %v1541_v62 = vsel %vm527_vm5, %v1531_v41, %v1533_v26  ;;  %v1540_v57 = vsel %vm527_vm5, %v1529_v37, %v1531_v41  ;;  %v1536_v26 = vsel %vm527_vm5, %v10290_v15, %v1519_v59  ;;  %v1537_v37 = vsel %vm527_vm5, %v1519_v59, %v10350_v35 }
 0x5b9   : > { %7319 = vmatpush.msk.msrb.mxu0 %vm9443_vm11, %v1540_v57  ;;  %7347 = vmatpush.msk.msrb.mxu3 %vm9467_vm12, %v1541_v62  ;;  %v1492_v59 = vsel %vm514_vm9, %v1481_v17, %v1483_v42  ;;  %v1493_v62 = vsel %vm514_vm9, %v1483_v42, %v1485_v25  ;;  %v1489_v42 = vsel %vm514_vm9, %v10360_v24, %v10340_v4  ;;  %v7900_v4 = vpop.permute.xlu2 %7899  ;;  %v7892_v57 = vunpack.i.h.bf16 %v10388_v52 }
 0x5ba   : > { %v1487_v25 = vsel %vm514_vm9, %v10285_v3, %v10281_v29  ;;  %v7906_v29 = vunpack.i.l.bf16 %v10422_v53  ;;  %v7891_v41 = vunpack.i.l.bf16 %v10388_v52 }
 0x5bb   : > { %7320 = vmatpush.msk.msrb.mxu0 %vm9443_vm11, %v1538_v46  ;;  %7348 = vmatpush.msk.msrb.mxu3 %vm9467_vm12, %v1539_v54  ;;  %v1534_v46 = vsel %vm527_vm5, %v10234_v19, %v10296_v7  ;;  %v1535_v54 = vsel %vm527_vm5, %v10296_v7, %v10292_v18  ;;  %v1490_v19 = vsel %vm514_vm9, %v10347_v61, %v1477_v33 }
 0x5bc   : > { %v1491_v18 = vsel %vm514_vm9, %v1477_v33, %v1479_v39  ;;  %v1488_v7 = vsel %vm514_vm9, %v10276_v51, %v10360_v24  ;;  %v1486_v61 = vsel %vm514_vm9, %v10227_v32, %v10285_v3  ;;  %v7902_v24 = vunpack.i.h.bf16 %v7900_v4 }
 0x5bd   : > { %7321 = vmatpush.msk.msrb.mxu0 %vm9443_vm11, %v1536_v26  ;;  %7349 = vmatpush.msk.msrb.mxu3 %vm9467_vm12, %v1537_v37  ;;  %v7901_v33 = vunpack.i.l.bf16 %v7900_v4  ;;  %v7907_v32 = vunpack.i.h.bf16 %v10422_v53  ;;  %v7866_v53 = vunpack.i.l.bf16 %v10428_v21 }
 0x5bf   : > { %v10464_v15 = vpop.permute.xlu1 %1628  ;;  %7322 = vmatpush.msk.msrb.mxu0 %vm9443_vm11, %v1534_v46  ;;  %7350 = vmatpush.msk.msrb.mxu3 %vm9467_vm12, %v1535_v54  ;;  %v10470_v35 = vpop.permute.xlu0 %1578  ;;  %v7872_v54 = vunpack.i.h.bf16 %v10342_v55 }
 0x5c1   : > { %7323 = vmatpush.msk.msrb.mxu0 %vm9427_vm7, %v1492_v59  ;;  %7351 = vmatpush.msk.msrb.mxu3 %vm9415_vm2, %v1493_v62  ;;  %v10515_v26 = vpop.permute.xlu2 %7909  ;;  %v7867_v59 = vunpack.i.h.bf16 %v10428_v21  ;;  %v1730_v62 = vsel %vm582_vm13, %v7901_v33, %v7902_v24  ;;  %v1728_v52 = vsel %vm582_vm13, %v7872_v54, %v7891_v41 }
 0x5c3   : > { %7324 = vmatpush.msk.msrb.mxu0 %vm9427_vm7, %v1490_v19  ;;  %7352 = vmatpush.msk.msrb.mxu3 %vm9415_vm2, %v1491_v18  ;;  %v1731_v19 = vsel %vm582_vm13, %v7902_v24, %v7906_v29  ;;  %v1729_v18 = vsel %vm582_vm13, %v7891_v41, %v7892_v57  ;;  %v1680_v24 = vsel %vm566_vm1, %v10332_v1, %v10398_v50  ;;  %v7926_v57 = vunpack.i.l.bf16 %v10434_v8 }
 0x5c4   : > { %v7887_v41 = vunpack.i.h.bf16 %v10456_v31 }
 0x5c5   : > { %7325 = vmatpush.msk.msrb.mxu0 %vm9427_vm7, %v1488_v7  ;;  %7353 = vmatpush.msk.msrb.mxu3 %vm9415_vm2, %v1489_v42  ;;  %v7871_v7 = vunpack.i.l.bf16 %v10342_v55  ;;  %v1682_v55 = vsel %vm566_vm1, %v10394_v6, %v10420_v47 }
 0x5c7   : > { %v10501_v39 = vpop.permute.xlu1 %1676  ;;  %7326 = vmatpush.msk.msrb.mxu0 %vm9427_vm7, %v1486_v61  ;;  %7354 = vmatpush.msk.msrb.mxu3 %vm9415_vm2, %v1487_v25  ;;  %v10507_v51 = vpop.permute.xlu0 %1626  ;;  %v1726_v25 = vsel %vm582_vm13, %v7866_v53, %v7867_v59  ;;  %v1727_v4 = vsel %vm582_vm13, %v7867_v59, %v7871_v7  ;;  %v16412_v7 = vld [vmem:[#allocation13_spill] sm:$0xff] }
 0x5cf   : > { %v7940_v17 = vpop.permute.xlu1 %7939  ;;  %v10509_v28 = vpop.permute.xlu0 %7919 }
 0x5d0   : > { %v7942_v3 = vunpack.i.h.bf16 %v7940_v17  ;;  %v7941_v23 = vunpack.i.l.bf16 %v7940_v17 }
 0x5d2   : > { %v1732_v37 = vsel %vm582_vm13, %v7907_v32, %v7941_v23  ;;  %v1733_v46 = vsel %vm582_vm13, %v7941_v23, %v7942_v3 }
 0x5d3   : > { %1862 = vmatpush.msrb.mxu0 %v1732_v37  ;;  %1949 = vmatpush.msrb.mxu3 %v1733_v46 }
 0x5d5   : > { %1863 = vmatpush.msrb.mxu0 %v1730_v62  ;;  %1950 = vmatpush.msrb.mxu3 %v1731_v19  ;;  %v1636_v62 = vsel %vm553_vm6, %v10416_v36, %v10507_v51  ;;  %v1637_v19 = vsel %vm553_vm6, %v10507_v51, %v10464_v15  ;;  %v10634_v36 = vld [vmem:[%s16080_s5 + $0x40] sm:$0xff]  ;;  %v1632_v15 = vsel %vm553_vm6, %v10319_v5, %v10390_v20 }
 0x5d6   : > { %v1631_v5 = vsel %vm553_vm6, %v10317_v34, %v10314_v10  ;;  %v16410_v10 = vld [vmem:[#allocation26_spill] sm:$0xff] }
 0x5d7   : > { %v10527_v42 = vpop.permute.xlu1 %7944  ;;  %v10529_v61 = vpop.permute.xlu0 %1674  ;;  %1864 = vmatpush.msrb.mxu0 %v1728_v52  ;;  %1951 = vmatpush.msrb.mxu3 %v1729_v18  ;;  %v1634_v52 = vsel %vm553_vm6, %v10383_v14, %v10414_v9  ;;  %v1635_v18 = vsel %vm553_vm6, %v10414_v9, %v10412_v40  ;;  %v1633_v14 = vsel %vm553_vm6, %v10390_v20, %v10368_v49  ;;  %v1388_v40 = vld [vmem:[%s16080_s5 + $0x30] sm:$0xff] }
 0x5d8   : > { %v1684_v21 = vsel %vm566_vm1, %v10424_v12, %v10529_v61  ;;  %v7930_v12 = vpop.permute.xlu2 %7929  ;;  %v1630_v9 = vsel %vm553_vm6, %v10258_v48, %v10317_v34  ;;  %v1588_v49 = vsel %vm540_vm4, %v10410_v38, %v10470_v35  ;;  %v16409_v48 = vld [vmem:[#allocation27_spill] sm:$0xff]  ;;  %v16411_v34 = vld [vmem:[#allocation25_spill] sm:$0xff]  ;;  %v10684_v38 = vld [vmem:[%s16080_s5 + $0x58] sm:$0xff] }
 0x5d9   : > { %1865 = vmatpush.msrb.mxu0 %v1726_v25  ;;  %7339 = vmatpush.msk.msra.mxu2 %vm9427_vm7, %v1684_v21  ;;  %v7932_v1 = vunpack.i.h.bf16 %v7930_v12  ;;  %v1589_v20 = vsel %vm540_vm4, %v10470_v35, %v16409_v48  ;;  %v1586_v51 = vsel %vm540_vm4, %v16411_v34, %v16410_v10  ;;  %v1587_v21 = vsel %vm540_vm4, %v16410_v10, %v16412_v7 }
 0x5da   : > { %1952 = vmatpush.msrb.mxu3 %v1727_v4  ;;  %v7947_v35 = vunpack.i.h.bf16 %v10527_v42  ;;  %v7946_v25 = vunpack.i.l.bf16 %v10527_v42  ;;  %v16413_v4 = vld [vmem:[#allocation22_spill] sm:$0xff] }
 0x5db   : > { %7327 = vmatpush.msk.msrb.mxu0 %vm9443_vm11, %v10254_v22  ;;  %7340 = vmatpush.msk.msra.mxu2 %vm9427_vm7, %v1682_v55  ;;  %v1678_v22 = vsel %vm566_vm1, %v10269_v13, %v10326_v63  ;;  %v7931_v13 = vunpack.i.l.bf16 %v7930_v12  ;;  %v16414_v55 = vld [vmem:[#allocation17_spill] sm:$0xff] }
 0x5dc   : > { %7355 = vmatpush.msk.msrb.mxu3 %vm9467_vm12, %v10330_v45  ;;  %v10566_v45 = vld [vmem:[%s16080_s5 + $0x10] sm:$0xff]  ;;  %v1584_v12 = vsel %vm540_vm4, %v16414_v55, %v16413_v4 }
 0x5dd   : > { %7328 = vmatpush.msk.msrb.mxu0 %vm9443_vm11, %v10215_v56  ;;  %7341 = vmatpush.msk.msra.mxu2 %vm9427_vm7, %v1680_v24  ;;  %v1810_v37 = vsel %vm616_vm8, %v7931_v13, %v7932_v1  ;;  %v16415_v24 = vld [vmem:[#allocation12_spill] sm:$0xff]  ;;  %v1391_v13 = vld [vmem:[%s16080_s5 + $0x48] sm:$0xff]  ;;  %v16427_v55 = vld [vmem:[#allocation7_spill] sm:$0xff] }
 0x5de   : > { %7356 = vmatpush.msk.msrb.mxu3 %vm9467_vm12, %v10261_v27  ;;  %v1382_v27 = vld [vmem:[%s16080_s5] sm:$0xff] }
 0x5df   : > { %v7950_v6 = vpop.permute.xlu1 %7949  ;;  %7342 = vmatpush.msk.msra.mxu2 %vm9427_vm7, %v1678_v22  ;;  %v7935_v56 = vpop.permute.xlu0 %7934  ;;  %7329 = vmatpush.msk.msrb.mxu0 %vm9443_vm11, %v10181_v2  ;;  %v7922_v2 = vunpack.i.h.bf16 %v10509_v28  ;;  %v1585_v22 = vsel %vm540_vm4, %v16413_v4, %v16415_v24 }
 0x5e0   : > { %v7952_v33 = vunpack.i.h.bf16 %v7950_v6  ;;  %v7951_v17 = vunpack.i.l.bf16 %v7950_v6  ;;  %v7937_v32 = vunpack.i.h.bf16 %v7935_v56  ;;  %7357 = vmatpush.msk.msrb.mxu3 %vm9467_vm12, %v10220_v16  ;;  %7343 = vmatmul.msk.f32.vlgmr.msra.gmra.mxu2 %vm1187_vm15, %v10566_v45  ;;  %v7936_v29 = vunpack.i.l.bf16 %v7935_v56  ;;  %v16417_v6 = vld [vmem:[#allocation21_spill] sm:$0xff] }
 0x5e1   : > { %7330 = vmatpush.msk.msrb.mxu0 %vm9443_vm11, %v10158_v60  ;;  %v7927_v16 = vunpack.i.h.bf16 %v10434_v8  ;;  %v7886_v60 = vunpack.i.l.bf16 %v10456_v31  ;;  %v1808_v54 = vsel %vm616_vm8, %v7922_v2, %v7926_v57  ;;  %v10601_v8 = vld [vmem:[%s16080_s5 + $0x28] sm:$0xff] }
 0x5e2   : > { %7358 = vmatpush.msk.msrb.mxu3 %vm9467_vm12, %v10169_v0  ;;  %1870 = vmatmul.f32.vlgmr.msrb.gmra.mxu0 %v1382_v27  ;;  %v1812_v3 = vsel %vm616_vm8, %v7937_v32, %v7951_v17  ;;  %v1813_v23 = vsel %vm616_vm8, %v7951_v17, %v7952_v33  ;;  %v7921_v0 = vunpack.i.l.bf16 %v10509_v28  ;;  %v1811_v46 = vsel %vm616_vm8, %v7932_v1, %v7936_v29  ;;  %v1385_v28 = vld [vmem:[%s16080_s5 + $0x18] sm:$0xff]  ;;  %v16416_v1 = vld [vmem:[#allocation18_spill] sm:$0xff] }
 0x5e3   : > { %1957 = vmatmul.f32.vlgmr.msrb.gmra.mxu3 %v1382_v27  ;;  %1883 = vmatpush.msra.mxu1 %v1812_v3  ;;  %v1809_v59 = vsel %vm616_vm8, %v7926_v57, %v7927_v16  ;;  %v1806_v31 = vsel %vm616_vm8, %v7886_v60, %v7887_v41  ;;  %v1582_v56 = vsel %vm540_vm4, %v16417_v6, %v16416_v1  ;;  %v16418_v27 = vld [vmem:[#allocation24_spill] sm:$0xff]  ;;  %v7912_v33 = vunpack.i.h.bf16 %v10515_v26  ;;  %v16420_v3 = vld [vmem:[#allocation23_spill] sm:$0xff] }
 0x5e4   : > { %1970 = vmatpush.msra.mxu0 %v1813_v23  ;;  %v1807_v53 = vsel %vm616_vm8, %v7887_v41, %v7921_v0  ;;  %v1583_v42 = vsel %vm540_vm4, %v16416_v1, %v16418_v27  ;;  %v7911_v17 = vunpack.i.l.bf16 %v10515_v26  ;;  %v16419_v32 = vld [vmem:[#allocation16_spill] sm:$0xff]  ;;  %v7897_v23 = vunpack.i.h.bf16 %v16420_v3  ;;  %v16421_v41 = vld [vmem:[#allocation14_spill] sm:$0xff] }
 0x5e5   : > { %1884 = vmatpush.msra.mxu1 %v1810_v37  ;;  %v7917_v29 = vunpack.i.h.bf16 %v16419_v32  ;;  %v7916_v2 = vunpack.i.l.bf16 %v16419_v32  ;;  %v7896_v16 = vunpack.i.l.bf16 %v16420_v3  ;;  %v1773_v57 = vsel %vm599_vm10, %v7946_v25, %v7947_v35 }
 0x5e6   : > { %1971 = vmatpush.msra.mxu0 %v1811_v46  ;;  %v7882_v60 = vunpack.i.h.bf16 %v16421_v41  ;;  %v7877_v37 = vunpack.i.h.bf16 %v10432_v43  ;;  %v7876_v0 = vunpack.i.l.bf16 %v10432_v43  ;;  %v1770_v46 = vsel %vm599_vm10, %v7911_v17, %v7912_v33 }
 0x5e7   : > { %1885 = vmatpush.msra.mxu1 %v1808_v54  ;;  %v1772_v26 = vsel %vm599_vm10, %v7917_v29, %v7946_v25  ;;  %v1771_v54 = vsel %vm599_vm10, %v7912_v33, %v7916_v2  ;;  %v1835_v24 = vpop.permute.xlu1 %1834 }
 0x5e8   : > { %1972 = vmatpush.msra.mxu0 %v1809_v59  ;;  %7344 = vmatmul.msk.f32.gmra.mxu2 %vm1187_vm15, %v10601_v8  ;;  %v7881_v59 = vunpack.i.l.bf16 %v16421_v41  ;;  %v1766_v43 = vsel %vm599_vm10, %v7876_v0, %v7877_v37 }
 0x5e9   : > { %1886 = vmatpush.msra.mxu1 %v1806_v31  ;;  %v1768_v31 = vsel %vm599_vm10, %v7882_v60, %v7896_v16 }
 0x5ea   : > { %1973 = vmatpush.msra.mxu0 %v1807_v53  ;;  %v1383_v53 = vld [vmem:[%s16080_s5 + $0x8] sm:$0xff] }
 0x5eb   : > { %1873 = vmatmul.f32.gmra.mxu0 %v1385_v28  ;;  %1960 = vmatmul.f32.gmra.mxu3 %v1385_v28  ;;  %v1769_v28 = vsel %vm599_vm10, %v7896_v16, %v7897_v23 }
 0x5ec   : > { %7331 = vmatpush.msk.msra.mxu1 %vm9443_vm11, %v1636_v62  ;;  %7359 = vmatpush.msk.msra.mxu0 %vm9467_vm12, %v1637_v19  ;;  %v1767_v62 = vsel %vm599_vm10, %v7877_v37, %v7881_v59  ;;  %v1685_v19 = vsel %vm566_vm1, %v10529_v61, %v10501_v39  ;;  %v1386_v39 = vld [vmem:[%s16080_s5 + $0x20] sm:$0xff]  ;;  %v16424_v61 = vld [vmem:[#allocation19_spill] sm:$0xff]  ;;  %v16433_v59 = vld [vmem:[#allocation4_spill] sm:$0xff] }
 0x5ee   : > { %7332 = vmatpush.msk.msra.mxu1 %vm9443_vm11, %v1634_v52  ;;  %7360 = vmatpush.msk.msra.mxu0 %vm9467_vm12, %v1635_v18  ;;  %v16422_v52 = vld [vmem:[#allocation20_spill] sm:$0xff] }
 0x5ef   : > { %v1683_v18 = vsel %vm566_vm1, %v10420_v47, %v16422_v52  ;;  %v1392_v47 = vld [vmem:[%s16080_s5 + $0x50] sm:$0xff] }
 0x5f0   : > { %7333 = vmatpush.msk.msra.mxu1 %vm9443_vm11, %v1632_v15  ;;  %7361 = vmatpush.msk.msra.mxu0 %vm9467_vm12, %v1633_v14  ;;  %v16423_v15 = vld [vmem:[#allocation15_spill] sm:$0xff] }
 0x5f1   : > { %7345 = vmatmul.msk.f32.gmra.mxu2 %vm1187_vm15, %v10634_v36  ;;  %v1681_v14 = vsel %vm566_vm1, %v10398_v50, %v16423_v15  ;;  %v1389_v50 = vld [vmem:[%s16080_s5 + $0x38] sm:$0xff] }
 0x5f2   : > { %7334 = vmatpush.msk.msra.mxu1 %vm9443_vm11, %v1630_v9  ;;  %7362 = vmatpush.msk.msra.mxu0 %vm9467_vm12, %v1631_v5 }
 0x5f3   : > { %1876 = vmatmul.f32.gmra.mxu0 %v1388_v40  ;;  %1963 = vmatmul.f32.gmra.mxu3 %v1388_v40  ;;  %v1679_v40 = vsel %vm566_vm1, %v10326_v63, %v16424_v61 }
 0x5f4   : > { %7335 = vmatpush.msk.msra.mxu1 %vm9427_vm7, %v1588_v49  ;;  %7363 = vmatpush.msk.msra.mxu0 %vm9415_vm2, %v1589_v20  ;;  %v1825_v49 = vpop.permute.xlu2 %1824 }
 0x5f6   : > { %7336 = vmatpush.msk.msra.mxu1 %vm9427_vm7, %v1586_v51  ;;  %7364 = vmatpush.msk.msra.mxu0 %vm9415_vm2, %v1587_v21 }
 0x5f8   : > { %7337 = vmatpush.msk.msra.mxu1 %vm9427_vm7, %v1584_v12  ;;  %7365 = vmatpush.msk.msra.mxu0 %vm9415_vm2, %v1585_v22 }
 0x5f9   : > { %7346 = vmatmul.msk.f32.gmra.mxu2 %vm1187_vm15, %v10684_v38 }
 0x5fa   : > { %7338 = vmatpush.msk.msra.mxu1 %vm9427_vm7, %v1582_v56  ;;  %7366 = vmatpush.msk.msra.mxu0 %vm9415_vm2, %v1583_v42 }
 0x5fb   : > { %1879 = vmatmul.f32.gmra.mxu0 %v1391_v13  ;;  %1966 = vmatmul.f32.gmra.mxu3 %v1391_v13  ;;  %v16429_v13 = vld [vmem:[#allocation9_spill] sm:$0xff] }
 0x5fc   : > { %1895 = vmatpush.msra.mxu1 %v1772_v26  ;;  %1982 = vmatpush.msra.mxu0 %v1773_v57  ;;  %v1840_v17 = vpop.permute.xlu2 %1839  ;;  %v16431_v57 = vld [vmem:[#allocation11_spill] sm:$0xff] }
 0x5fe   : > { %1896 = vmatpush.msra.mxu1 %v1770_v46  ;;  %1983 = vmatpush.msra.mxu0 %v1771_v54 }
 0x600   : > { %1897 = vmatpush.msra.mxu1 %v1768_v31  ;;  %1984 = vmatpush.msra.mxu0 %v1769_v28 }
 0x602   : > { %1898 = vmatpush.msra.mxu1 %v1766_v43  ;;  %1985 = vmatpush.msra.mxu0 %v1767_v62 }
 0x603   : > { %1899 = vmatmul.f32.vlgmr.msra.gmra.mxu1 %v1383_v53  ;;  %1986 = vmatmul.f32.vlgmr.msra.gmra.mxu0 %v1383_v53 }
 0x604   : > { %7367 = vmatpush.msk.msrb.mxu1 %vm9415_vm2, %v1685_v19 }
 0x606   : > { %7368 = vmatpush.msk.msrb.mxu1 %vm9415_vm2, %v1683_v18  ;;  %v16435_v18 = vld [vmem:[#allocation6_spill] sm:$0xff] }
 0x608   : > { %7369 = vmatpush.msk.msrb.mxu1 %vm9415_vm2, %v1681_v14 }
 0x60a   : > { %7370 = vmatpush.msk.msrb.mxu1 %vm9415_vm2, %v1679_v40 }
 0x60b   : > { %1902 = vmatmul.f32.gmra.mxu1 %v1386_v39  ;;  %1989 = vmatmul.f32.gmra.mxu0 %v1386_v39 }
 0x613   : > { %1905 = vmatmul.f32.gmra.mxu1 %v1389_v50  ;;  %1992 = vmatmul.f32.gmra.mxu0 %v1389_v50 }
 0x61b   : > { %1908 = vmatmul.f32.gmra.mxu1 %v1392_v47  ;;  %1995 = vmatmul.f32.gmra.mxu0 %v1392_v47  ;;  %v16437_v47 = vld [vmem:[#allocation8_spill] sm:$0xff] }
 0x623   : > { %7371 = vmatmul.msk.f32.vlgmr.msrb.gmra.mxu1 %vm1187_vm15, %v10566_v45  ;;  %v16425_v45 = vld [vmem:[#allocation5_spill] sm:$0xff] }
 0x62b   : > { %7372 = vmatmul.msk.f32.gmra.mxu1 %vm1187_vm15, %v10601_v8  ;;  %v1830_v8 = vpop.permute.xlu0 %1829 }
 0x633   : > { %7373 = vmatmul.msk.f32.gmra.mxu1 %vm1187_vm15, %v10634_v36 }
 0x63b   : > { %7374 = vmatmul.msk.f32.gmra.mxu1 %vm1187_vm15, %v10684_v38 }
 0x65f   : > { %v1871_v63 = vpop.f32.mrf.mxu0 }
 0x660   : > { %v1872_v48 = vadd.f32 %v1871_v63, %v1825_v49 }
 0x663   : > { %v1929_v5 = vpop.f32.mrf.mxu2 }
 0x666   : > { %v1958_v42 = vpop.f32.mrf.mxu3 }
 0x667   : > { %v1959_v26 = vadd.f32 %v1958_v42, %v1825_v49 }
 0x668   : > { %v1874_v9 = vpop.f32.mrf.mxu0 }
 0x669   : > { %v1875_v35 = vadd.f32 %v1874_v9, %v1830_v8 }
 0x66b   : > { %v1932_v7 = vpop.f32.mrf.mxu2 }
 0x66e   : > { %v1961_v60 = vpop.f32.mrf.mxu3 }
 0x66f   : > { %v1962_v28 = vadd.f32 %v1961_v60, %v1830_v8 }
 0x670   : > { %v1877_v34 = vpop.f32.mrf.mxu0 }
 0x671   : > { %v1878_v1 = vadd.f32 %v1877_v34, %v1835_v24 }
 0x674   : > { %v1935_v22 = vpop.f32.mrf.mxu2 }
 0x676   : > { %v1964_v43 = vpop.f32.mrf.mxu3 }
 0x677   : > { %v1965_v14 = vadd.f32 %v1964_v43, %v1835_v24 }
 0x678   : > { %v1880_v4 = vpop.f32.mrf.mxu0 }
 0x679   : > { %v1881_v29 = vadd.f32 %v1880_v4, %v1840_v17 }
 0x67c   : > { %v1938_v3 = vpop.f32.mrf.mxu2 }
 0x67e   : > { %v1967_v50 = vpop.f32.mrf.mxu3 }
 0x680   : > { %v1900_v20 = vpop.f32.mrf.mxu1  ;;  %v1987_v32 = vpop.f32.mrf.mxu0 }
 0x681   : > { %v1901_v10 = vadd.f32 %v1900_v20, %v1872_v48  ;;  %v1988_v37 = vadd.f32 %v1987_v32, %v1959_v26 }
 0x683   : > { %v1930_v51 = vadd.f32 %v1929_v5, %v1901_v10  ;;  %v1968_v5 = vadd.f32 %v1967_v50, %v1840_v17  ;;  %v16439_v10 = vld [vmem:[#allocation10_spill] sm:$0xff] }
 0x685   : > { %v10772_v21 = vadd.f32 %v1930_v51, %v16425_v45 }
 0x687   : > { %16426 = vst [vmem:[#allocation27_spill] sm:$0xff] %v10772_v21  ;;  %2062 = vrot.lane.b32.xlu0 %v10772_v21, %s9264_s16 }
 0x688   : > { %v1903_v36 = vpop.f32.mrf.mxu1  ;;  %v1990_v0 = vpop.f32.mrf.mxu0 }
 0x689   : > { %v1904_v38 = vadd.f32 %v1903_v36, %v1875_v35  ;;  %v1991_v53 = vadd.f32 %v1990_v0, %v1962_v28 }
 0x68b   : > { %v1933_v25 = vadd.f32 %v1932_v7, %v1904_v38 }
 0x68d   : > { %v10777_v12 = vadd.f32 %v1933_v25, %v16427_v55  ;;  %v7388_v55 = vld [vmem:[%s16079_s4 + $0x28] sm:$0xff] }
 0x68f   : > { %16428 = vst [vmem:[#allocation26_spill] sm:$0xff] %v10777_v12  ;;  %2066 = vrot.lane.b32.xlu2 %v10777_v12, %s9264_s16 }
 0x690   : > { %v1906_v6 = vpop.f32.mrf.mxu1  ;;  %v1993_v52 = vpop.f32.mrf.mxu0 }
 0x691   : > { %v1907_v56 = vadd.f32 %v1906_v6, %v1878_v1  ;;  %v1994_v39 = vadd.f32 %v1993_v52, %v1965_v14 }
 0x693   : > { %v1936_v27 = vadd.f32 %v1935_v22, %v1907_v56 }
 0x695   : > { %v10782_v33 = vadd.f32 %v1936_v27, %v16429_v13  ;;  %v7389_v13 = vld [vmem:[%s16079_s4 + $0x30] sm:$0xff] }
 0x697   : > { %16430 = vst [vmem:[#allocation25_spill] sm:$0xff] %v10782_v33  ;;  %2070 = vrot.lane.b32.xlu1 %v10782_v33, %s9264_s16 }
 0x698   : > { %v1909_v2 = vpop.f32.mrf.mxu1  ;;  %v1996_v9 = vpop.f32.mrf.mxu0 }
 0x699   : > { %v1910_v23 = vadd.f32 %v1909_v2, %v1881_v29  ;;  %v1997_v49 = vadd.f32 %v1996_v9, %v1968_v5 }
 0x69b   : > { %v1939_v16 = vadd.f32 %v1938_v3, %v1910_v23 }
 0x69d   : > { %v10787_v41 = vadd.f32 %v1939_v16, %v16431_v57 }
 0x69f   : > { %16432 = vst [vmem:[#allocation13_spill] sm:$0xff] %v10787_v41  ;;  %2074 = vrot.lane.b32.xlu0 %v10787_v41, %s9264_s16 }
 0x6a0   : > { %v2016_v46 = vpop.f32.mrf.mxu1 }
 0x6a1   : > { %v2017_v54 = vadd.f32 %v2016_v46, %v1988_v37 }
 0x6a3   : > { %v10792_v31 = vadd.f32 %v2017_v54, %v16433_v59 }
 0x6a5   : > { %16434 = vst [vmem:[#allocation22_spill] sm:$0xff] %v10792_v31  ;;  %2064 = vrot.lane.b32.xlu1 %v10792_v31, %s9264_s16 }
 0x6a8   : > { %v2019_v62 = vpop.f32.mrf.mxu1 }
 0x6a9   : > { %v2020_v19 = vadd.f32 %v2019_v62, %v1991_v53 }
 0x6ab   : > { %v10797_v15 = vadd.f32 %v2020_v19, %v16435_v18 }
 0x6ad   : > { %16436 = vst [vmem:[#allocation17_spill] sm:$0xff] %v10797_v15  ;;  %2068 = vrot.lane.b32.xlu0 %v10797_v15, %s9264_s16 }
 0x6b0   : > { %v2022_v61 = vpop.f32.mrf.mxu1 }
 0x6b1   : > { %v2023_v40 = vadd.f32 %v2022_v61, %v1994_v39 }
 0x6b3   : > { %v10802_v63 = vadd.f32 %v2023_v40, %v16437_v47 }
 0x6b5   : > { %16438 = vst [vmem:[#allocation12_spill] sm:$0xff] %v10802_v63  ;;  %2072 = vrot.lane.b32.xlu2 %v10802_v63, %s9264_s16 }
 0x6b8   : > { %v2025_v48 = vpop.f32.mrf.mxu1 }
 0x6b9   : > { %v2026_v20 = vadd.f32 %v2025_v48, %v1997_v49 }
 0x6bb   : > { %v10807_v34 = vadd.f32 %v2026_v20, %v16439_v10  ;;  %v7390_v10 = vld [vmem:[%s16079_s4 + $0x38] sm:$0xff] }
 0x6bd   : > { %16440 = vst [vmem:[#allocation18_spill] sm:$0xff] %v10807_v34  ;;  %2076 = vrot.lane.b32.xlu1 %v10807_v34, %s9264_s16 }
 0x6e9   : > { %v2067_v25 = vpop.permute.xlu2 %2066 }
 0x6ea   : > { %v10835_v4 = vsel %vm489_vm0, 0.0, %v2067_v25 }
 0x6f9   : > { %v2063_v51 = vpop.permute.xlu0 %2062 }
 0x6fa   : > { %v10812_v7 = vsel %vm489_vm0, 0.0, %v2063_v51 }
 0x6fb   : > { %2118 = vrot.lane.b32.xlu2 %v10812_v7, %s16175_s19 }
 0x703   : > { %2166 = vrot.lane.b32.xlu2 %v10812_v7, %s9266_s18 }
 0x709   : > { %v2071_v8 = vpop.permute.xlu1 %2070 }
 0x70a   : > { %v10869_v56 = vsel %vm489_vm0, 0.0, %v2071_v8 }
 0x70b   : > { %2214 = vrot.lane.b32.xlu2 %v10812_v7, %s9265_s17 }
 0x70f   : > { %v2073_v27 = vpop.permute.xlu2 %2072 }
 0x710   : > { %v10915_v16 = vsel %vm489_vm0, %v2071_v8, %v2073_v27  ;;  %v2100_v26 = vsel %vm489_vm0, %v2073_v27, 0.0 }
 0x711   : > { %v10849_v24 = vpop.permute.xlu0 %2074 }
 0x712   : > { %v10908_v3 = vsel %vm489_vm0, 0.0, %v10849_v24 }
 0x713   : > { %2262 = vrot.lane.b32.xlu2 %v10812_v7, %s9268_s20  ;;  %v7993_v39 = vpack.i.bf16 %v10908_v3, %v2100_v26 }
 0x717   : > { %v2065_v35 = vpop.permute.xlu1 %2064 }
 0x718   : > { %v10823_v36 = vsel %vm489_vm0, %v2063_v51, %v2065_v35  ;;  %v2098_v38 = vsel %vm489_vm0, %v2065_v35, 0.0  ;;  %v7988_v51 = vpack.i.bf16 %v10915_v16, %v10869_v56 }
 0x719   : > { %2122 = vrot.lane.b32.xlu1 %v2098_v38, %s16175_s19  ;;  %2120 = vrot.lane.b32.xlu0 %v10823_v36, %s16175_s19  ;;  %v10857_v1 = vpack.i.bf16 %v10835_v4, %v2098_v38  ;;  %v7953_v62 = vpack.i.bf16 %v10823_v36, %v10812_v7 }
 0x71b   : > { %2310 = vrot.lane.b32.xlu2 %v10812_v7, %s9269_s21 }
 0x71f   : > { %v2069_v22 = vpop.permute.xlu0 %2068 }
 0x720   : > { %v2099_v6 = vsel %vm489_vm0, %v2069_v22, 0.0  ;;  %v10874_v42 = vsel %vm489_vm0, %v2067_v25, %v2069_v22 }
 0x721   : > { %2170 = vrot.lane.b32.xlu1 %v2098_v38, %s9266_s18  ;;  %2168 = vrot.lane.b32.xlu0 %v10823_v36, %s9266_s18  ;;  %v7978_v29 = vpack.i.bf16 %v2099_v6, %v10874_v42 }
 0x723   : > { %2124 = vrot.lane.b32.xlu2 %v10835_v4, %s16175_s19 }
 0x729   : > { %2218 = vrot.lane.b32.xlu1 %v2098_v38, %s9265_s17  ;;  %2216 = vrot.lane.b32.xlu0 %v10823_v36, %s9265_s17 }
 0x72b   : > { %2172 = vrot.lane.b32.xlu2 %v10835_v4, %s9266_s18 }
 0x72f   : > { %v2077_v37 = vpop.permute.xlu1 %2076 }
 0x730   : > { %v2101_v61 = vsel %vm489_vm0, %v2077_v37, 0.0  ;;  %v10984_v48 = vsel %vm489_vm0, %v10849_v24, %v2077_v37 }
 0x731   : > { %2266 = vrot.lane.b32.xlu1 %v2098_v38, %s9268_s20  ;;  %2264 = vrot.lane.b32.xlu0 %v10823_v36, %s9268_s20 }
 0x733   : > { %2220 = vrot.lane.b32.xlu2 %v10835_v4, %s9265_s17 }
 0x739   : > { %2314 = vrot.lane.b32.xlu1 %v2098_v38, %s9269_s21  ;;  %2312 = vrot.lane.b32.xlu0 %v10823_v36, %s9269_s21 }
 0x73b   : > { %2268 = vrot.lane.b32.xlu2 %v10835_v4, %s9268_s20 }
 0x741   : > { %2128 = vrot.lane.b32.xlu1 %v2099_v6, %s16175_s19  ;;  %7959 = vrot.lane.b32.xlu0 %v10857_v1, %s16142_s24 }
 0x743   : > { %2316 = vrot.lane.b32.xlu2 %v10835_v4, %s9269_s21 }
 0x749   : > { %2176 = vrot.lane.b32.xlu1 %v2099_v6, %s9266_s18  ;;  %7969 = vrot.lane.b32.xlu0 %v10857_v1, %s16139_s22 }
 0x74b   : > { %2130 = vrot.lane.b32.xlu2 %v10869_v56, %s16175_s19 }
 0x751   : > { %2224 = vrot.lane.b32.xlu1 %v2099_v6, %s9265_s17  ;;  %2126 = vrot.lane.b32.xlu0 %v10874_v42, %s16175_s19 }
 0x753   : > { %2178 = vrot.lane.b32.xlu2 %v10869_v56, %s9266_s18 }
 0x755   : > { %v10881_v17 = vpop.permute.xlu2 %2118 }
 0x759   : > { %2272 = vrot.lane.b32.xlu1 %v2099_v6, %s9268_s20  ;;  %2174 = vrot.lane.b32.xlu0 %v10874_v42, %s9266_s18 }
 0x75b   : > { %2226 = vrot.lane.b32.xlu2 %v10869_v56, %s9265_s17 }
 0x75d   : > { %v10888_v32 = vpop.permute.xlu2 %2166 }
 0x761   : > { %2320 = vrot.lane.b32.xlu1 %v2099_v6, %s9269_s21  ;;  %2222 = vrot.lane.b32.xlu0 %v10874_v42, %s9265_s17 }
 0x763   : > { %2274 = vrot.lane.b32.xlu2 %v10869_v56, %s9268_s20 }
 0x765   : > { %v10899_v2 = vpop.permute.xlu2 %2214 }
 0x766   : > { %16441 = vst [vmem:[#allocation21_spill] sm:$0xff] %v10899_v2 }
 0x769   : > { %7979 = vrot.lane.b32.xlu1 %v7978_v29, %s16142_s24  ;;  %2270 = vrot.lane.b32.xlu0 %v10874_v42, %s9268_s20 }
 0x76b   : > { %2322 = vrot.lane.b32.xlu2 %v10869_v56, %s9269_s21 }
 0x76d   : > { %v10912_v23 = vpop.permute.xlu2 %2262 }
 0x771   : > { %7984 = vrot.lane.b32.xlu1 %v7978_v29, %s16139_s22  ;;  %2318 = vrot.lane.b32.xlu0 %v10874_v42, %s9269_s21 }
 0x773   : > { %2136 = vrot.lane.b32.xlu2 %v10908_v3, %s16175_s19 }
 0x775   : > { %v10923_v60 = vpop.permute.xlu2 %2310 }
 0x779   : > { %2134 = vrot.lane.b32.xlu1 %v2100_v26, %s16175_s19  ;;  %2132 = vrot.lane.b32.xlu0 %v10915_v16, %s16175_s19 }
 0x77b   : > { %2184 = vrot.lane.b32.xlu2 %v10908_v3, %s9266_s18 }
 0x77d   : > { %v10930_v0 = vpop.permute.xlu2 %2124 }
 0x781   : > { %2182 = vrot.lane.b32.xlu1 %v2100_v26, %s9266_s18  ;;  %2180 = vrot.lane.b32.xlu0 %v10915_v16, %s9266_s18 }
 0x783   : > { %2232 = vrot.lane.b32.xlu2 %v10908_v3, %s9265_s17 }
 0x785   : > { %v10944_v28 = vpop.permute.xlu2 %2172 }
 0x789   : > { %2230 = vrot.lane.b32.xlu1 %v2100_v26, %s9265_s17  ;;  %2228 = vrot.lane.b32.xlu0 %v10915_v16, %s9265_s17 }
 0x78b   : > { %2280 = vrot.lane.b32.xlu2 %v10908_v3, %s9268_s20  ;;  %v10937_v46 = vpop.permute.xlu0 %2120  ;;  %v10939_v54 = vpop.permute.xlu1 %2122 }
 0x78d   : > { %v10962_v14 = vpop.permute.xlu2 %2220 }
 0x78e   : > { %16444 = vst [vmem:[#allocation23_spill] sm:$0xff] %v10962_v14 }
 0x791   : > { %2278 = vrot.lane.b32.xlu1 %v2100_v26, %s9268_s20  ;;  %2276 = vrot.lane.b32.xlu0 %v10915_v16, %s9268_s20 }
 0x793   : > { %2328 = vrot.lane.b32.xlu2 %v10908_v3, %s9269_s21  ;;  %v10948_v53 = vpop.permute.xlu0 %2168  ;;  %v10950_v43 = vpop.permute.xlu1 %2170 }
 0x795   : > { %v10973_v9 = vpop.permute.xlu2 %2268 }
 0x799   : > { %2326 = vrot.lane.b32.xlu1 %v2100_v26, %s9269_s21  ;;  %2324 = vrot.lane.b32.xlu0 %v10915_v16, %s9269_s21 }
 0x79b   : > { %7954 = vrot.lane.b32.xlu2 %v7953_v62, %s16142_s24  ;;  %v10958_v19 = vpop.permute.xlu0 %2216  ;;  %v10960_v52 = vpop.permute.xlu1 %2218 }
 0x79c   : > { %16442 = vst [vmem:[#allocation24_spill] sm:$0xff] %v10958_v19 }
 0x79d   : > { %16443 = vst [vmem:[#allocation16_spill] sm:$0xff] %v10960_v52  ;;  %v10986_v20 = vpop.permute.xlu2 %2316 }
 0x7a1   : > { %7994 = vrot.lane.b32.xlu0 %v7993_v39, %s16142_s24  ;;  %2140 = vrot.lane.b32.xlu1 %v2101_v61, %s16175_s19 }
 0x7a3   : > { %7964 = vrot.lane.b32.xlu2 %v7953_v62, %s16139_s22  ;;  %v10969_v40 = vpop.permute.xlu0 %2264  ;;  %v10971_v50 = vpop.permute.xlu1 %2266 }
 0x7a5   : > { %v11001_v38 = vpop.permute.xlu2 %2130 }
 0x7a9   : > { %8004 = vrot.lane.b32.xlu0 %v7993_v39, %s16139_s22  ;;  %2188 = vrot.lane.b32.xlu1 %v2101_v61, %s9266_s18 }
 0x7ab   : > { %7974 = vrot.lane.b32.xlu2 %v7953_v62, %s16137_s23  ;;  %v10978_v5 = vpop.permute.xlu0 %2312  ;;  %v10980_v49 = vpop.permute.xlu1 %2314 }
 0x7ac   : > { %16445 = vst [vmem:[#allocation14_spill] sm:$0xff] %v10980_v49 }
 0x7ad   : > { %v2179_v27 = vpop.permute.xlu2 %2178 }
 0x7b1   : > { %2236 = vrot.lane.b32.xlu1 %v2101_v61, %s9265_s17  ;;  %2138 = vrot.lane.b32.xlu0 %v10984_v48, %s16175_s19 }
 0x7b3   : > { %7989 = vrot.lane.b32.xlu2 %v7988_v51, %s16142_s24  ;;  %v10994_v8 = vpop.permute.xlu0 %7959  ;;  %v10996_v35 = vpop.permute.xlu1 %2128 }
 0x7b5   : > { %v11024_v62 = vpop.permute.xlu2 %2226 }
 0x7b6   : > { %16448 = vst [vmem:[#allocation19_spill] sm:$0xff] %v11024_v62 }
 0x7b9   : > { %8014 = vrot.lane.b32.xlu1 %v7978_v29, %s16137_s23  ;;  %2186 = vrot.lane.b32.xlu0 %v10984_v48, %s9266_s18  ;;  %v7387_v29 = vld [vmem:[%s16079_s4 + $0x20] sm:$0xff] }
 0x7bb   : > { %7999 = vrot.lane.b32.xlu2 %v7988_v51, %s16139_s22  ;;  %v11004_v25 = vpop.permute.xlu0 %7969  ;;  %v11006_v24 = vpop.permute.xlu1 %2176 }
 0x7bc   : > { %16446 = vst [vmem:[#allocation20_spill] sm:$0xff] %v11004_v25 }
 0x7bd   : > { %v11037_v18 = vpop.permute.xlu2 %2274 }
 0x7c1   : > { %2284 = vrot.lane.b32.xlu1 %v2101_v61, %s9268_s20  ;;  %2234 = vrot.lane.b32.xlu0 %v10984_v48, %s9265_s17 }
 0x7c3   : > { %8019 = vrot.lane.b32.xlu2 %v7988_v51, %s16137_s23  ;;  %v11012_v22 = vpop.permute.xlu0 %2126  ;;  %v11014_v6 = vpop.permute.xlu1 %2224  ;;  %v8028_v51 = vpack.i.bf16 %v2101_v61, %v10984_v48 }
 0x7c4   : > { %16447 = vst [vmem:[#allocation15_spill] sm:$0xff] %v11014_v6 }
 0x7c9   : > { %2332 = vrot.lane.b32.xlu1 %v2101_v61, %s9269_s21  ;;  %2282 = vrot.lane.b32.xlu0 %v10984_v48, %s9268_s20 }
 0x7cb   : > { %2480 = vperm.xlu2 %7771, %v7387_v29   ;;  %v2175_v26 = vpop.permute.xlu0 %2174  ;;  %v11022_v37 = vpop.permute.xlu1 %2272 }
 0x7d1   : > { %8029 = vrot.lane.b32.xlu1 %v8028_v51, %s16142_s24  ;;  %8009 = vrot.lane.b32.xlu0 %v10857_v1, %s16137_s23 }
 0x7d3   : > { %2495 = vperm.xlu2 %7771, %v7390_v10   ;;  %v11033_v47 = vpop.permute.xlu0 %2222  ;;  %v11035_v29 = vpop.permute.xlu1 %2320 }
 0x7d4   : > { %16449 = vst [vmem:[#allocation28_spill] sm:$0xff] %v11033_v47  ;;  %v11048_v10 = vpop.permute.xlu2 %2322 }
 0x7d5   : > { %16450 = vst [vmem:[#allocation29_spill] sm:$0xff] %v11035_v29 }
 0x7d9   : > { %8034 = vrot.lane.b32.xlu1 %v8028_v51, %s16139_s22  ;;  %2330 = vrot.lane.b32.xlu0 %v10984_v48, %s9269_s21 }
 0x7db   : > { %v11042_v61 = vpop.permute.xlu0 %2270  ;;  %v11044_v59 = vpop.permute.xlu1 %7979 }
 0x7dc   : > { %v2137_v34 = vpop.permute.xlu2 %2136 }
 0x7e1   : > { %8039 = vrot.lane.b32.xlu1 %v8028_v51, %s16137_s23  ;;  %8024 = vrot.lane.b32.xlu0 %v7993_v39, %s16137_s23 }
 0x7e3   : > { %v11050_v1 = vpop.permute.xlu0 %2318  ;;  %v11052_v57 = vpop.permute.xlu1 %7984 }
 0x7e4   : > { %16451 = vst [vmem:[#allocation30_spill] sm:$0xff] %v11052_v57  ;;  %v2185_v15 = vpop.permute.xlu2 %2184 }
 0x7e9   : > { %2490 = vperm.xlu1 %7770, %v7389_v13   ;;  %2485 = vperm.xlu0 %7772, %v7388_v55  }
 0x7eb   : > { %v2133_v45 = vpop.permute.xlu0 %2132  ;;  %v2135_v51 = vpop.permute.xlu1 %2134 }
 0x7ec   : > { %v11064_v33 = vpop.permute.xlu2 %2232 }
 0x7ed   : > { %16454 = vst [vmem:[#allocation33_spill] sm:$0xff] %v11064_v33 }
 0x7f3   : > { %v2181_v39 = vpop.permute.xlu0 %2180  ;;  %v2183_v63 = vpop.permute.xlu1 %2182 }
 0x7f4   : > { %v11070_v49 = vpop.permute.xlu2 %2280  ;;  %v2194_v33 = vsel %vm527_vm5, %v2179_v27, %v2181_v39 }
 0x7fb   : > { %v11060_v31 = vpop.permute.xlu0 %2228  ;;  %v11062_v41 = vpop.permute.xlu1 %2230 }
 0x7fc   : > { %16452 = vst [vmem:[#allocation31_spill] sm:$0xff] %v11060_v31  ;;  %v11078_v57 = vpop.permute.xlu2 %2328 }
 0x7fd   : > { %16453 = vst [vmem:[#allocation32_spill] sm:$0xff] %v11062_v41 }
 0x803   : > { %v11066_v12 = vpop.permute.xlu0 %2276  ;;  %v11068_v21 = vpop.permute.xlu1 %2278 }
 0x804   : > { %v11082_v52 = vpop.permute.xlu2 %7954 }
 0x80b   : > { %v11072_v13 = vpop.permute.xlu0 %2324  ;;  %v11074_v55 = vpop.permute.xlu1 %2326 }
 0x80c   : > { %16455 = vst [vmem:[#allocation34_spill] sm:$0xff] %v11074_v55  ;;  %v11086_v47 = vpop.permute.xlu2 %7964 }
 0x813   : > { %v11076_v29 = vpop.permute.xlu0 %7994  ;;  %v2141_v25 = vpop.permute.xlu1 %2140 }
 0x81b   : > { %v11080_v2 = vpop.permute.xlu0 %8004  ;;  %v2189_v19 = vpop.permute.xlu1 %2188 }
 0x81c   : > { %16456 = vst [vmem:[#allocation35_spill] sm:$0xff] %v11080_v2  ;;  %v2195_v2 = vsel %vm527_vm5, %v2181_v39, %v2183_v63  ;;  %v2190_v63 = vsel %vm527_vm5, %v10888_v32, %v10948_v53  ;;  %v2147_v32 = vsel %vm514_vm9, %v2133_v45, %v2135_v51  ;;  %v7982_v39 = vunpack.i.h.bf16 %v11044_v59 }
 0x823   : > { %v2139_v6 = vpop.permute.xlu0 %2138  ;;  %v11084_v14 = vpop.permute.xlu1 %2236 }
 0x82b   : > { %v2187_v62 = vpop.permute.xlu0 %2186  ;;  %v11088_v31 = vpop.permute.xlu1 %8014 }
 0x82c   : > { %v2196_v55 = vsel %vm527_vm5, %v2185_v15, %v2187_v62  ;;  %v2197_v41 = vsel %vm527_vm5, %v2187_v62, %v2189_v19  ;;  %v2192_v15 = vsel %vm527_vm5, %v10944_v28, %v2175_v26  ;;  %v2193_v19 = vsel %vm527_vm5, %v2175_v26, %v11006_v24 }
 0x82d   : > { %7391 = vmatpush.msk.msrb.mxu2 %vm9443_vm11, %v2196_v55  ;;  %7419 = vmatpush.msk.msra.mxu1 %vm9467_vm12, %v2197_v41  ;;  %v2191_v41 = vsel %vm527_vm5, %v10948_v53, %v10950_v43  ;;  %v2148_v24 = vsel %vm514_vm9, %v2137_v34, %v2139_v6  ;;  %v2149_v43 = vsel %vm514_vm9, %v2139_v6, %v2141_v25  ;;  %v7997_v62 = vunpack.i.h.bf16 %v11076_v29 }
 0x82e   : > { %v2146_v53 = vsel %vm514_vm9, %v11001_v38, %v2133_v45  ;;  %v2144_v34 = vsel %vm514_vm9, %v10930_v0, %v11012_v22  ;;  %v2145_v25 = vsel %vm514_vm9, %v11012_v22, %v10996_v35  ;;  %v2143_v45 = vsel %vm514_vm9, %v10937_v46, %v10939_v54 }
 0x82f   : > { %7392 = vmatpush.msk.msrb.mxu2 %vm9443_vm11, %v2194_v33  ;;  %7420 = vmatpush.msk.msra.mxu1 %vm9467_vm12, %v2195_v2  ;;  %v11113_v33 = vpop.permute.xlu2 %7974  ;;  %v2142_v38 = vsel %vm514_vm9, %v10881_v17, %v10937_v46  ;;  %v7996_v17 = vunpack.i.l.bf16 %v11076_v29  ;;  %v7981_v55 = vunpack.i.l.bf16 %v11044_v59  ;;  %v7956_v29 = vunpack.i.l.bf16 %v11082_v52 }
 0x831   : > { %7393 = vmatpush.msk.msrb.mxu2 %vm9443_vm11, %v2192_v15  ;;  %7421 = vmatpush.msk.msra.mxu1 %vm9467_vm12, %v2193_v19 }
 0x833   : > { %7394 = vmatpush.msk.msrb.mxu2 %vm9443_vm11, %v2190_v63  ;;  %v11120_v2 = vpop.permute.xlu0 %2234  ;;  %7422 = vmatpush.msk.msra.mxu1 %vm9467_vm12, %v2191_v41  ;;  %v11124_v28 = vpop.permute.xlu1 %2284  ;;  %v7962_v63 = vunpack.i.h.bf16 %v10994_v8 }
 0x835   : > { %7395 = vmatpush.msk.msrb.mxu2 %vm9427_vm7, %v2148_v24  ;;  %7423 = vmatpush.msk.msra.mxu1 %vm9415_vm2, %v2149_v43  ;;  %v7957_v24 = vunpack.i.h.bf16 %v11082_v52  ;;  %v2384_v59 = vsel %vm582_vm13, %v7962_v63, %v7981_v55 }
 0x837   : > { %7396 = vmatpush.msk.msrb.mxu2 %vm9427_vm7, %v2146_v53  ;;  %7424 = vmatpush.msk.msra.mxu1 %vm9415_vm2, %v2147_v32  ;;  %v7990_v22 = vpop.permute.xlu2 %7989  ;;  %v2385_v53 = vsel %vm582_vm13, %v7981_v55, %v7982_v39  ;;  %v7977_v39 = vunpack.i.h.bf16 %v11113_v33 }
 0x838   : > { %v7992_v6 = vunpack.i.h.bf16 %v7990_v22  ;;  %v7991_v27 = vunpack.i.l.bf16 %v7990_v22 }
 0x839   : > { %7397 = vmatpush.msk.msrb.mxu2 %vm9427_vm7, %v2144_v34  ;;  %7425 = vmatpush.msk.msra.mxu1 %vm9415_vm2, %v2145_v25  ;;  %v7961_v34 = vunpack.i.l.bf16 %v10994_v8  ;;  %v2338_v8 = vsel %vm566_vm1, %v11048_v10, %v11072_v13 }
 0x83a   : > { %v2386_v43 = vsel %vm582_vm13, %v7991_v27, %v7992_v6  ;;  %v2387_v32 = vsel %vm582_vm13, %v7992_v6, %v7996_v17  ;;  %v2336_v6 = vsel %vm566_vm1, %v10986_v20, %v11050_v1 }
 0x83b   : > { %7398 = vmatpush.msk.msrb.mxu2 %vm9427_vm7, %v2142_v38  ;;  %v11157_v0 = vpop.permute.xlu0 %2282  ;;  %7426 = vmatpush.msk.msra.mxu1 %vm9415_vm2, %v2143_v45  ;;  %v11161_v35 = vpop.permute.xlu1 %2332  ;;  %v2382_v38 = vsel %vm582_vm13, %v7956_v29, %v7957_v24  ;;  %v2383_v22 = vsel %vm582_vm13, %v7957_v24, %v7961_v34 }
 0x83c   : > { %v2293_v29 = vsel %vm553_vm6, %v11157_v0, %v11124_v28  ;;  %v2288_v28 = vsel %vm553_vm6, %v10973_v9, %v11042_v61  ;;  %v2286_v9 = vsel %vm553_vm6, %v10912_v23, %v10969_v40  ;;  %v11310_v23 = vld [vmem:[%s16078_s3 + $0x88] sm:$0xff] }
 0x83f   : > { %v11169_v15 = vpop.permute.xlu2 %7999 }
 0x843   : > { %v11163_v26 = vpop.permute.xlu0 %8009  ;;  %v8030_v54 = vpop.permute.xlu1 %8029 }
 0x844   : > { %v8032_v46 = vunpack.i.h.bf16 %v8030_v54  ;;  %v8031_v51 = vunpack.i.l.bf16 %v8030_v54  ;;  %v8012_v17 = vunpack.i.h.bf16 %v11163_v26 }
 0x846   : > { %v2388_v19 = vsel %vm582_vm13, %v7997_v62, %v8031_v51  ;;  %v2389_v41 = vsel %vm582_vm13, %v8031_v51, %v8032_v46  ;;  %v8017_v51 = vunpack.i.h.bf16 %v11088_v31 }
 0x847   : > { %2518 = vmatpush.msrb.mxu2 %v2388_v19  ;;  %2605 = vmatpush.msra.mxu1 %v2389_v41 }
 0x849   : > { %2519 = vmatpush.msrb.mxu2 %v2386_v43  ;;  %2606 = vmatpush.msra.mxu1 %v2387_v32  ;;  %v11260_v43 = vld [vmem:[%s16078_s3 + $0x70] sm:$0xff]  ;;  %v2291_v32 = vsel %vm553_vm6, %v11066_v12, %v11068_v21  ;;  %v2289_v21 = vsel %vm553_vm6, %v11042_v61, %v11022_v37  ;;  %v16457_v37 = vld [vmem:[#allocation33_spill] sm:$0xff] }
 0x84a   : > { %v2244_v61 = vsel %vm540_vm4, %v16457_v37, %v11120_v2 }
 0x84b   : > { %v11181_v25 = vpop.permute.xlu0 %2330  ;;  %v11183_v45 = vpop.permute.xlu1 %8034  ;;  %2520 = vmatpush.msrb.mxu2 %v2384_v59  ;;  %2607 = vmatpush.msra.mxu1 %v2385_v53  ;;  %v16460_v53 = vld [vmem:[#allocation19_spill] sm:$0xff] }
 0x84c   : > { %v2340_v52 = vsel %vm566_vm1, %v11078_v57, %v11181_v25  ;;  %v8020_v57 = vpop.permute.xlu2 %8019 }
 0x84d   : > { %2521 = vmatpush.msrb.mxu2 %v2382_v38  ;;  %7411 = vmatpush.msk.msrb.mxu0 %vm9427_vm7, %v2340_v52  ;;  %v8021_v27 = vunpack.i.l.bf16 %v8020_v57  ;;  %v16461_v52 = vld [vmem:[#allocation28_spill] sm:$0xff]  ;;  %v16462_v38 = vld [vmem:[#allocation23_spill] sm:$0xff] }
 0x84e   : > { %2608 = vmatpush.msra.mxu1 %v2383_v22  ;;  %v2240_v22 = vsel %vm540_vm4, %v16462_v38, %v16461_v52 }
 0x84f   : > { %7399 = vmatpush.msk.msrb.mxu2 %vm9443_vm11, %v10908_v3  ;;  %7412 = vmatpush.msk.msrb.mxu0 %vm9427_vm7, %v2338_v8  ;;  %v2334_v3 = vsel %vm566_vm1, %v10923_v60, %v10978_v5  ;;  %v16463_v8 = vld [vmem:[#allocation15_spill] sm:$0xff] }
 0x850   : > { %7427 = vmatpush.msk.msra.mxu1 %vm9467_vm12, %v10984_v48  ;;  %v8022_v48 = vunpack.i.h.bf16 %v8020_v57  ;;  %v2241_v57 = vsel %vm540_vm4, %v16461_v52, %v16463_v8 }
 0x851   : > { %7400 = vmatpush.msk.msrb.mxu2 %vm9443_vm11, %v10869_v56  ;;  %7413 = vmatpush.msk.msrb.mxu0 %vm9427_vm7, %v2336_v6  ;;  %v7375_v56 = vld [vmem:[%s16078_s3 + $0x60] sm:$0xff]  ;;  %v16464_v6 = vld [vmem:[#allocation16_spill] sm:$0xff] }
 0x852   : > { %7428 = vmatpush.msk.msra.mxu1 %vm9467_vm12, %v10915_v16  ;;  %v2466_v55 = vsel %vm616_vm8, %v8021_v27, %v8022_v48  ;;  %v8001_v27 = vunpack.i.l.bf16 %v11169_v15 }
 0x853   : > { %7414 = vmatpush.msk.msrb.mxu0 %vm9427_vm7, %v2334_v3  ;;  %v8025_v20 = vpop.permute.xlu0 %8024  ;;  %v8040_v10 = vpop.permute.xlu1 %8039  ;;  %7401 = vmatpush.msk.msrb.mxu2 %vm9443_vm11, %v10835_v4  ;;  %v16465_v3 = vld [vmem:[#allocation24_spill] sm:$0xff] }
 0x854   : > { %v8027_v16 = vunpack.i.h.bf16 %v8025_v20  ;;  %v8042_v54 = vunpack.i.h.bf16 %v8040_v10  ;;  %v8041_v62 = vunpack.i.l.bf16 %v8040_v10  ;;  %7429 = vmatpush.msk.msra.mxu1 %vm9467_vm12, %v10874_v42  ;;  %v8026_v60 = vunpack.i.l.bf16 %v8025_v20  ;;  %7415 = vmatmul.msk.f32.vlgmr.msrb.gmra.mxu0 %vm1187_vm15, %v11260_v43  ;;  %v7384_v10 = vld [vmem:[%s16078_s3 + $0xa8] sm:$0xff]  ;;  %v2481_v37 = vpop.permute.xlu2 %2480 }
 0x855   : > { %7402 = vmatpush.msk.msrb.mxu2 %vm9443_vm11, %v10812_v7  ;;  %v8016_v42 = vunpack.i.l.bf16 %v11088_v31  ;;  %v7976_v7 = vunpack.i.l.bf16 %v11113_v33  ;;  %v7378_v33 = vld [vmem:[%s16078_s3 + $0x78] sm:$0xff] }
 0x856   : > { %7430 = vmatpush.msk.msra.mxu1 %vm9467_vm12, %v10823_v36  ;;  %2526 = vmatmul.f32.vlgmr.msrb.gmra.mxu2 %v7375_v56  ;;  %v2468_v4 = vsel %vm616_vm8, %v8027_v16, %v8041_v62  ;;  %v2469_v46 = vsel %vm616_vm8, %v8041_v62, %v8042_v54  ;;  %v8011_v36 = vunpack.i.l.bf16 %v11163_v26  ;;  %v2467_v19 = vsel %vm616_vm8, %v8022_v48, %v8026_v60  ;;  %v16467_v16 = vld [vmem:[#allocation35_spill] sm:$0xff]  ;;  %v16468_v60 = vld [vmem:[#allocation30_spill] sm:$0xff] }
 0x857   : > { %2613 = vmatmul.f32.vlgmr.msra.gmra.mxu1 %v7375_v56  ;;  %2539 = vmatpush.msra.mxu3 %v2468_v4  ;;  %v2464_v41 = vsel %vm616_vm8, %v8012_v17, %v8016_v42  ;;  %v2465_v31 = vsel %vm616_vm8, %v8016_v42, %v8017_v51  ;;  %v2462_v63 = vsel %vm616_vm8, %v7976_v7, %v7977_v39  ;;  %v8002_v56 = vunpack.i.h.bf16 %v11169_v15  ;;  %v7383_v51 = vld [vmem:[%s16078_s3 + $0xa0] sm:$0xff]  ;;  %v16469_v42 = vld [vmem:[#allocation20_spill] sm:$0xff] }
 0x858   : > { %2626 = vmatpush.msra.mxu2 %v2469_v46  ;;  %v2463_v24 = vsel %vm616_vm8, %v7977_v39, %v8011_v36  ;;  %v2292_v26 = vsel %vm553_vm6, %v11070_v49, %v11157_v0  ;;  %v2290_v49 = vsel %vm553_vm6, %v11037_v18, %v11066_v12  ;;  %v7381_v12 = vld [vmem:[%s16078_s3 + $0x90] sm:$0xff]  ;;  %v2287_v18 = vsel %vm553_vm6, %v10969_v40, %v10971_v50  ;;  %v16458_v40 = vld [vmem:[#allocation32_spill] sm:$0xff] }
 0x859   : > { %2540 = vmatpush.msra.mxu3 %v2466_v55  ;;  %v2245_v50 = vsel %vm540_vm4, %v11120_v2, %v11084_v14  ;;  %v16459_v0 = vld [vmem:[#allocation31_spill] sm:$0xff]  ;;  %v8037_v14 = vunpack.i.h.bf16 %v11183_v45  ;;  %v8036_v2 = vunpack.i.l.bf16 %v11183_v45  ;;  %v2239_v48 = vsel %vm540_vm4, %v16465_v3, %v16464_v6  ;;  %v16466_v45 = vld [vmem:[#allocation21_spill] sm:$0xff] }
 0x85a   : > { %2627 = vmatpush.msra.mxu2 %v2467_v19  ;;  %v2243_v59 = vsel %vm540_vm4, %v16459_v0, %v16458_v40  ;;  %v2242_v34 = vsel %vm540_vm4, %v16460_v53, %v16459_v0  ;;  %v2238_v20 = vsel %vm540_vm4, %v16466_v45, %v16465_v3  ;;  %v8007_v54 = vunpack.i.h.bf16 %v16467_v16 }
 0x85b   : > { %2541 = vmatpush.msra.mxu3 %v2464_v41  ;;  %v8006_v62 = vunpack.i.l.bf16 %v16467_v16  ;;  %v7987_v17 = vunpack.i.h.bf16 %v16468_v60  ;;  %v7986_v4 = vunpack.i.l.bf16 %v16468_v60  ;;  %v2429_v15 = vsel %vm599_vm10, %v8036_v2, %v8037_v14  ;;  %v2486_v14 = vpop.permute.xlu0 %2485  ;;  %v2491_v8 = vpop.permute.xlu1 %2490 }
 0x85c   : > { %2628 = vmatpush.msra.mxu2 %v2465_v31  ;;  %7416 = vmatmul.msk.f32.gmra.mxu0 %vm1187_vm15, %v11310_v23  ;;  %v2428_v46 = vsel %vm599_vm10, %v8007_v54, %v8036_v2  ;;  %v7972_v39 = vunpack.i.h.bf16 %v16469_v42  ;;  %v7967_v7 = vunpack.i.h.bf16 %v11086_v47  ;;  %v7966_v55 = vunpack.i.l.bf16 %v11086_v47  ;;  %v7376_v47 = vld [vmem:[%s16078_s3 + $0x68] sm:$0xff] }
 0x85d   : > { %2542 = vmatpush.msra.mxu3 %v2462_v63  ;;  %v2426_v36 = vsel %vm599_vm10, %v8001_v27, %v8002_v56  ;;  %v2427_v19 = vsel %vm599_vm10, %v8002_v56, %v8006_v62  ;;  %v7971_v41 = vunpack.i.l.bf16 %v16469_v42  ;;  %v2425_v63 = vsel %vm599_vm10, %v7986_v4, %v7987_v17  ;;  %v2496_v56 = vpop.permute.xlu2 %2495 }
 0x85e   : > { %2629 = vmatpush.msra.mxu2 %v2463_v24  ;;  %v2424_v31 = vsel %vm599_vm10, %v7972_v39, %v7986_v4 }
 0x85f   : > { %2529 = vmatmul.f32.gmra.mxu2 %v7378_v33  ;;  %2616 = vmatmul.f32.gmra.mxu1 %v7378_v33  ;;  %v2422_v33 = vsel %vm599_vm10, %v7966_v55, %v7967_v7  ;;  %v2423_v24 = vsel %vm599_vm10, %v7967_v7, %v7971_v41 }
 0x860   : > { %7403 = vmatpush.msk.msra.mxu3 %vm9443_vm11, %v2292_v26  ;;  %7431 = vmatpush.msk.msra.mxu2 %vm9467_vm12, %v2293_v29  ;;  %v7386_v26 = vld [vmem:[%s16078_s3 + $0xb8] sm:$0xff]  ;;  %v2341_v29 = vsel %vm566_vm1, %v11181_v25, %v11161_v35  ;;  %v7379_v35 = vld [vmem:[%s16078_s3 + $0x80] sm:$0xff]  ;;  %v16472_v25 = vld [vmem:[#allocation14_spill] sm:$0xff] }
 0x862   : > { %7404 = vmatpush.msk.msra.mxu3 %vm9443_vm11, %v2290_v49  ;;  %7432 = vmatpush.msk.msra.mxu2 %vm9467_vm12, %v2291_v32  ;;  %v16470_v32 = vld [vmem:[#allocation34_spill] sm:$0xff] }
 0x863   : > { %v2339_v49 = vsel %vm566_vm1, %v11072_v13, %v16470_v32  ;;  %v2335_v13 = vsel %vm566_vm1, %v10978_v5, %v16472_v25 }
 0x864   : > { %7405 = vmatpush.msk.msra.mxu3 %vm9443_vm11, %v2288_v28  ;;  %7433 = vmatpush.msk.msra.mxu2 %vm9467_vm12, %v2289_v21  ;;  %v16471_v28 = vld [vmem:[#allocation29_spill] sm:$0xff] }
 0x865   : > { %7417 = vmatmul.msk.f32.gmra.mxu0 %vm1187_vm15, %v7383_v51  ;;  %v2337_v21 = vsel %vm566_vm1, %v11050_v1, %v16471_v28  ;;  %v7382_v1 = vld [vmem:[%s16078_s3 + $0x98] sm:$0xff] }
 0x866   : > { %7406 = vmatpush.msk.msra.mxu3 %vm9443_vm11, %v2286_v9  ;;  %7434 = vmatpush.msk.msra.mxu2 %vm9467_vm12, %v2287_v18 }
 0x867   : > { %2532 = vmatmul.f32.gmra.mxu2 %v7381_v12  ;;  %2619 = vmatmul.f32.gmra.mxu1 %v7381_v12  ;;  %v7385_v12 = vld [vmem:[%s16078_s3 + $0xb0] sm:$0xff] }
 0x868   : > { %7407 = vmatpush.msk.msra.mxu3 %vm9427_vm7, %v2244_v61  ;;  %7435 = vmatpush.msk.msra.mxu2 %vm9415_vm2, %v2245_v50 }
 0x86a   : > { %7408 = vmatpush.msk.msra.mxu3 %vm9427_vm7, %v2242_v34  ;;  %7436 = vmatpush.msk.msra.mxu2 %vm9415_vm2, %v2243_v59 }
 0x86c   : > { %7409 = vmatpush.msk.msra.mxu3 %vm9427_vm7, %v2240_v22  ;;  %7437 = vmatpush.msk.msra.mxu2 %vm9415_vm2, %v2241_v57 }
 0x86d   : > { %7418 = vmatmul.msk.f32.gmra.mxu0 %vm1187_vm15, %v7386_v26 }
 0x86e   : > { %7410 = vmatpush.msk.msra.mxu3 %vm9427_vm7, %v2238_v20  ;;  %7438 = vmatpush.msk.msra.mxu2 %vm9415_vm2, %v2239_v48 }
 0x86f   : > { %2535 = vmatmul.f32.gmra.mxu2 %v7384_v10  ;;  %2622 = vmatmul.f32.gmra.mxu1 %v7384_v10 }
 0x870   : > { %2551 = vmatpush.msra.mxu3 %v2428_v46  ;;  %2638 = vmatpush.msra.mxu2 %v2429_v15 }
 0x872   : > { %2552 = vmatpush.msra.mxu3 %v2426_v36  ;;  %2639 = vmatpush.msra.mxu2 %v2427_v19 }
 0x874   : > { %2553 = vmatpush.msra.mxu3 %v2424_v31  ;;  %2640 = vmatpush.msra.mxu2 %v2425_v63 }
 0x876   : > { %2554 = vmatpush.msra.mxu3 %v2422_v33  ;;  %2641 = vmatpush.msra.mxu2 %v2423_v24 }
 0x877   : > { %2555 = vmatmul.f32.vlgmr.msra.gmra.mxu3 %v7376_v47  ;;  %2642 = vmatmul.f32.vlgmr.msra.gmra.mxu2 %v7376_v47 }
 0x878   : > { %7439 = vmatpush.msk.msrb.mxu3 %vm9415_vm2, %v2341_v29 }
 0x87a   : > { %7440 = vmatpush.msk.msrb.mxu3 %vm9415_vm2, %v2339_v49 }
 0x87c   : > { %7441 = vmatpush.msk.msrb.mxu3 %vm9415_vm2, %v2337_v21 }
 0x87e   : > { %7442 = vmatpush.msk.msrb.mxu3 %vm9415_vm2, %v2335_v13 }
 0x87f   : > { %2558 = vmatmul.f32.gmra.mxu3 %v7379_v35  ;;  %2645 = vmatmul.f32.gmra.mxu2 %v7379_v35 }
 0x887   : > { %2561 = vmatmul.f32.gmra.mxu3 %v7382_v1  ;;  %2648 = vmatmul.f32.gmra.mxu2 %v7382_v1 }
 0x88f   : > { %2564 = vmatmul.f32.gmra.mxu3 %v7385_v12  ;;  %2651 = vmatmul.f32.gmra.mxu2 %v7385_v12 }
 0x897   : > { %7443 = vmatmul.msk.f32.vlgmr.msrb.gmra.mxu3 %vm1187_vm15, %v11260_v43 }
 0x89f   : > { %7444 = vmatmul.msk.f32.gmra.mxu3 %vm1187_vm15, %v11310_v23 }
 0x8a7   : > { %7445 = vmatmul.msk.f32.gmra.mxu3 %vm1187_vm15, %v7383_v51 }
 0x8af   : > { %7446 = vmatmul.msk.f32.gmra.mxu3 %vm1187_vm15, %v7386_v26 }
 0x8d1   : > { %v2585_v9 = vpop.f32.mrf.mxu0 }
 0x8d4   : > { %v2614_v20 = vpop.f32.mrf.mxu1 }
 0x8d5   : > { %v2615_v4 = vadd.f32 %v2614_v20, %v2481_v37 }
 0x8d9   : > { %v2527_v5 = vpop.f32.mrf.mxu2  ;;  %v2588_v53 = vpop.f32.mrf.mxu0 }
 0x8da   : > { %v2528_v61 = vadd.f32 %v2527_v5, %v2481_v37 }
 0x8dc   : > { %v2617_v15 = vpop.f32.mrf.mxu1 }
 0x8dd   : > { %v2618_v36 = vadd.f32 %v2617_v15, %v2486_v14 }
 0x8e2   : > { %v2530_v18 = vpop.f32.mrf.mxu2  ;;  %v2591_v57 = vpop.f32.mrf.mxu0 }
 0x8e3   : > { %v2531_v43 = vadd.f32 %v2530_v18, %v2486_v14 }
 0x8e4   : > { %v2620_v41 = vpop.f32.mrf.mxu1 }
 0x8e5   : > { %v2621_v24 = vadd.f32 %v2620_v41, %v2491_v8 }
 0x8ea   : > { %v2533_v0 = vpop.f32.mrf.mxu2  ;;  %v2594_v62 = vpop.f32.mrf.mxu0 }
 0x8eb   : > { %v2534_v6 = vadd.f32 %v2533_v0, %v2491_v8 }
 0x8ec   : > { %v2623_v49 = vpop.f32.mrf.mxu1 }
 0x8ed   : > { %v2624_v35 = vadd.f32 %v2623_v49, %v2496_v56 }
 0x8f2   : > { %v2536_v38 = vpop.f32.mrf.mxu2 }
 0x8f3   : > { %v2537_v16 = vadd.f32 %v2536_v38, %v2496_v56 }
 0x8fa   : > { %v2556_v50 = vpop.f32.mrf.mxu3  ;;  %v2643_v27 = vpop.f32.mrf.mxu2 }
 0x8fb   : > { %v2557_v40 = vadd.f32 %v2556_v50, %v2528_v61  ;;  %v2644_v51 = vadd.f32 %v2643_v27, %v2615_v4 }
 0x8fd   : > { %v2586_v59 = vadd.f32 %v2585_v9, %v2557_v40 }
 0x8ff   : > { %v2684_v34 = vmax.f32 %v2586_v59, 0.0 }
 0x901   : > { %2718 = vrot.lane.b32.xlu0 %v2684_v34, %s9264_s16 }
 0x902   : > { %v2559_v23 = vpop.f32.mrf.mxu3  ;;  %v2646_v42 = vpop.f32.mrf.mxu2 }
 0x903   : > { %v2560_v2 = vadd.f32 %v2559_v23, %v2531_v43  ;;  %v2647_v19 = vadd.f32 %v2646_v42, %v2618_v36 }
 0x905   : > { %v2589_v52 = vadd.f32 %v2588_v53, %v2560_v2 }
 0x907   : > { %v2686_v22 = vmax.f32 %v2589_v52, 0.0 }
 0x909   : > { %2722 = vrot.lane.b32.xlu2 %v2686_v22, %s9264_s16 }
 0x90a   : > { %v2562_v3 = vpop.f32.mrf.mxu3  ;;  %v2649_v47 = vpop.f32.mrf.mxu2 }
 0x90b   : > { %v2563_v48 = vadd.f32 %v2562_v3, %v2534_v6  ;;  %v2650_v26 = vadd.f32 %v2649_v47, %v2621_v24 }
 0x90d   : > { %v2592_v45 = vadd.f32 %v2591_v57, %v2563_v48 }
 0x90f   : > { %v2688_v10 = vmax.f32 %v2592_v45, 0.0 }
 0x911   : > { %2726 = vrot.lane.b32.xlu1 %v2688_v10, %s9264_s16 }
 0x912   : > { %v2565_v54 = vpop.f32.mrf.mxu3  ;;  %v2652_v21 = vpop.f32.mrf.mxu2 }
 0x913   : > { %v2566_v60 = vadd.f32 %v2565_v54, %v2537_v16  ;;  %v2653_v25 = vadd.f32 %v2652_v21, %v2624_v35 }
 0x915   : > { %v2595_v17 = vadd.f32 %v2594_v62, %v2566_v60 }
 0x917   : > { %v2690_v46 = vmax.f32 %v2595_v17, 0.0 }
 0x919   : > { %2730 = vrot.lane.b32.xlu0 %v2690_v46, %s9264_s16 }
 0x91a   : > { %v2672_v39 = vpop.f32.mrf.mxu3 }
 0x91b   : > { %v2673_v7 = vadd.f32 %v2672_v39, %v2644_v51 }
 0x91d   : > { %v2685_v55 = vmax.f32 %v2673_v7, 0.0 }
 0x91f   : > { %2720 = vrot.lane.b32.xlu1 %v2685_v55, %s9264_s16 }
 0x922   : > { %v2675_v31 = vpop.f32.mrf.mxu3 }
 0x923   : > { %v2676_v63 = vadd.f32 %v2675_v31, %v2647_v19 }
 0x925   : > { %v2687_v33 = vmax.f32 %v2676_v63, 0.0 }
 0x927   : > { %2724 = vrot.lane.b32.xlu0 %v2687_v33, %s9264_s16 }
 0x92a   : > { %v2678_v29 = vpop.f32.mrf.mxu3 }
 0x92b   : > { %v2679_v32 = vadd.f32 %v2678_v29, %v2650_v26 }
 0x92d   : > { %v2689_v28 = vmax.f32 %v2679_v32, 0.0 }
 0x92f   : > { %2728 = vrot.lane.b32.xlu2 %v2689_v28, %s9264_s16  ;;  %v7459_v28 = vld [vmem:[%s16081_s6 + $0x20] sm:$0xff] }
 0x932   : > { %v2681_v13 = vpop.f32.mrf.mxu3 }
 0x933   : > { %v2682_v1 = vadd.f32 %v2681_v13, %v2653_v25 }
 0x935   : > { %v2691_v12 = vmax.f32 %v2682_v1, 0.0  ;;  %v7462_v1 = vld [vmem:[%s16081_s6 + $0x38] sm:$0xff] }
 0x937   : > { %2732 = vrot.lane.b32.xlu1 %v2691_v12, %s9264_s16 }
 0x963   : > { %v2723_v40 = vpop.permute.xlu2 %2722 }
 0x964   : > { %v11449_v0 = vsel %vm489_vm0, 0.0, %v2723_v40 }
 0x973   : > { %v2719_v5 = vpop.permute.xlu0 %2718 }
 0x974   : > { %v11426_v18 = vsel %vm489_vm0, 0.0, %v2719_v5 }
 0x975   : > { %2774 = vrot.lane.b32.xlu2 %v11426_v18, %s16175_s19 }
 0x97d   : > { %2822 = vrot.lane.b32.xlu2 %v11426_v18, %s9266_s18 }
 0x983   : > { %v2727_v9 = vpop.permute.xlu1 %2726 }
 0x984   : > { %v11483_v43 = vsel %vm489_vm0, 0.0, %v2727_v9 }
 0x985   : > { %2870 = vrot.lane.b32.xlu2 %v11426_v18, %s9265_s17 }
 0x989   : > { %v2729_v23 = vpop.permute.xlu2 %2728 }
 0x98a   : > { %v11529_v3 = vsel %vm489_vm0, %v2727_v9, %v2729_v23  ;;  %v2756_v48 = vsel %vm489_vm0, %v2729_v23, 0.0  ;;  %v7460_v23 = vld [vmem:[%s16081_s6 + $0x28] sm:$0xff] }
 0x98b   : > { %v11463_v59 = vpop.permute.xlu0 %2730  ;;  %v8078_v31 = vpack.i.bf16 %v11529_v3, %v11483_v43 }
 0x98c   : > { %v11522_v57 = vsel %vm489_vm0, 0.0, %v11463_v59 }
 0x98d   : > { %2918 = vrot.lane.b32.xlu2 %v11426_v18, %s9268_s20  ;;  %v8083_v15 = vpack.i.bf16 %v11522_v57, %v2756_v48 }
 0x991   : > { %v2721_v37 = vpop.permute.xlu1 %2720 }
 0x992   : > { %v11437_v61 = vsel %vm489_vm0, %v2719_v5, %v2721_v37  ;;  %v2754_v50 = vsel %vm489_vm0, %v2721_v37, 0.0  ;;  %v3360_v37 = vld [vmem:[%s16083_s8] sm:$0xff] }
 0x993   : > { %2778 = vrot.lane.b32.xlu1 %v2754_v50, %s16175_s19  ;;  %2776 = vrot.lane.b32.xlu0 %v11437_v61, %s16175_s19  ;;  %v11471_v34 = vpack.i.bf16 %v11449_v0, %v2754_v50  ;;  %v8043_v60 = vpack.i.bf16 %v11437_v61, %v11426_v18 }
 0x995   : > { %2966 = vrot.lane.b32.xlu2 %v11426_v18, %s9269_s21 }
 0x999   : > { %v2725_v53 = vpop.permute.xlu0 %2724 }
 0x99a   : > { %v2755_v14 = vsel %vm489_vm0, %v2725_v53, 0.0  ;;  %v11488_v2 = vsel %vm489_vm0, %v2723_v40, %v2725_v53 }
 0x99b   : > { %2826 = vrot.lane.b32.xlu1 %v2754_v50, %s9266_s18  ;;  %2824 = vrot.lane.b32.xlu0 %v11437_v61, %s9266_s18  ;;  %v8068_v22 = vpack.i.bf16 %v2755_v14, %v11488_v2 }
 0x99d   : > { %2780 = vrot.lane.b32.xlu2 %v11449_v0, %s16175_s19 }
 0x9a3   : > { %2874 = vrot.lane.b32.xlu1 %v2754_v50, %s9265_s17  ;;  %2872 = vrot.lane.b32.xlu0 %v11437_v61, %s9265_s17 }
 0x9a5   : > { %2828 = vrot.lane.b32.xlu2 %v11449_v0, %s9266_s18 }
 0x9a9   : > { %v2733_v20 = vpop.permute.xlu1 %2732 }
 0x9aa   : > { %v2757_v51 = vsel %vm489_vm0, %v2733_v20, 0.0  ;;  %v11598_v19 = vsel %vm489_vm0, %v11463_v59, %v2733_v20 }
 0x9ab   : > { %2922 = vrot.lane.b32.xlu1 %v2754_v50, %s9268_s20  ;;  %2920 = vrot.lane.b32.xlu0 %v11437_v61, %s9268_s20  ;;  %v8118_v13 = vpack.i.bf16 %v2757_v51, %v11598_v19 }
 0x9ad   : > { %2876 = vrot.lane.b32.xlu2 %v11449_v0, %s9265_s17 }
 0x9b3   : > { %2970 = vrot.lane.b32.xlu1 %v2754_v50, %s9269_s21  ;;  %2968 = vrot.lane.b32.xlu0 %v11437_v61, %s9269_s21 }
 0x9b5   : > { %2924 = vrot.lane.b32.xlu2 %v11449_v0, %s9268_s20 }
 0x9bb   : > { %8049 = vrot.lane.b32.xlu0 %v11471_v34, %s16142_s24  ;;  %2784 = vrot.lane.b32.xlu1 %v2755_v14, %s16175_s19 }
 0x9bd   : > { %2972 = vrot.lane.b32.xlu2 %v11449_v0, %s9269_s21 }
 0x9c3   : > { %8059 = vrot.lane.b32.xlu0 %v11471_v34, %s16139_s22  ;;  %2832 = vrot.lane.b32.xlu1 %v2755_v14, %s9266_s18 }
 0x9c5   : > { %2786 = vrot.lane.b32.xlu2 %v11483_v43, %s16175_s19 }
 0x9cb   : > { %2880 = vrot.lane.b32.xlu1 %v2755_v14, %s9265_s17  ;;  %2782 = vrot.lane.b32.xlu0 %v11488_v2, %s16175_s19 }
 0x9cd   : > { %2834 = vrot.lane.b32.xlu2 %v11483_v43, %s9266_s18 }
 0x9cf   : > { %v11495_v52 = vpop.permute.xlu2 %2774 }
 0x9d3   : > { %2928 = vrot.lane.b32.xlu1 %v2755_v14, %s9268_s20  ;;  %2830 = vrot.lane.b32.xlu0 %v11488_v2, %s9266_s18 }
 0x9d5   : > { %2882 = vrot.lane.b32.xlu2 %v11483_v43, %s9265_s17 }
 0x9d7   : > { %v11502_v38 = vpop.permute.xlu2 %2822 }
 0x9db   : > { %2976 = vrot.lane.b32.xlu1 %v2755_v14, %s9269_s21  ;;  %2878 = vrot.lane.b32.xlu0 %v11488_v2, %s9265_s17  ;;  %v7461_v14 = vld [vmem:[%s16081_s6 + $0x30] sm:$0xff] }
 0x9dd   : > { %2930 = vrot.lane.b32.xlu2 %v11483_v43, %s9268_s20 }
 0x9df   : > { %v11513_v8 = vpop.permute.xlu2 %2870 }
 0x9e0   : > { %16473 = vst [vmem:[#allocation33_spill] sm:$0xff] %v11513_v8 }
 0x9e3   : > { %8069 = vrot.lane.b32.xlu1 %v8068_v22, %s16142_s24  ;;  %2926 = vrot.lane.b32.xlu0 %v11488_v2, %s9268_s20 }
 0x9e5   : > { %2978 = vrot.lane.b32.xlu2 %v11483_v43, %s9269_s21 }
 0x9e7   : > { %v11526_v6 = vpop.permute.xlu2 %2918 }
 0x9eb   : > { %8074 = vrot.lane.b32.xlu1 %v8068_v22, %s16139_s22  ;;  %2974 = vrot.lane.b32.xlu0 %v11488_v2, %s9269_s21 }
 0x9ed   : > { %2792 = vrot.lane.b32.xlu2 %v11522_v57, %s16175_s19 }
 0x9ef   : > { %v11537_v45 = vpop.permute.xlu2 %2966 }
 0x9f3   : > { %2790 = vrot.lane.b32.xlu1 %v2756_v48, %s16175_s19  ;;  %2788 = vrot.lane.b32.xlu0 %v11529_v3, %s16175_s19 }
 0x9f5   : > { %2840 = vrot.lane.b32.xlu2 %v11522_v57, %s9266_s18 }
 0x9f7   : > { %v11544_v10 = vpop.permute.xlu2 %2780 }
 0x9fb   : > { %2838 = vrot.lane.b32.xlu1 %v2756_v48, %s9266_s18  ;;  %2836 = vrot.lane.b32.xlu0 %v11529_v3, %s9266_s18 }
 0x9fd   : > { %2888 = vrot.lane.b32.xlu2 %v11522_v57, %s9265_s17 }
 0x9ff   : > { %v11558_v16 = vpop.permute.xlu2 %2828 }
 0xa03   : > { %2886 = vrot.lane.b32.xlu1 %v2756_v48, %s9265_s17  ;;  %2884 = vrot.lane.b32.xlu0 %v11529_v3, %s9265_s17 }
 0xa05   : > { %v11549_v56 = vpop.permute.xlu1 %2778  ;;  %2936 = vrot.lane.b32.xlu2 %v11522_v57, %s9268_s20  ;;  %v11553_v27 = vpop.permute.xlu0 %2776 }
 0xa07   : > { %v11576_v46 = vpop.permute.xlu2 %2876 }
 0xa08   : > { %16476 = vst [vmem:[#allocation19_spill] sm:$0xff] %v11576_v46 }
 0xa0b   : > { %2934 = vrot.lane.b32.xlu1 %v2756_v48, %s9268_s20  ;;  %2932 = vrot.lane.b32.xlu0 %v11529_v3, %s9268_s20 }
 0xa0d   : > { %v11560_v54 = vpop.permute.xlu1 %2826  ;;  %2984 = vrot.lane.b32.xlu2 %v11522_v57, %s9269_s21  ;;  %v11564_v62 = vpop.permute.xlu0 %2824 }
 0xa0f   : > { %v11587_v7 = vpop.permute.xlu2 %2924 }
 0xa13   : > { %2982 = vrot.lane.b32.xlu1 %v2756_v48, %s9269_s21  ;;  %2980 = vrot.lane.b32.xlu0 %v11529_v3, %s9269_s21 }
 0xa15   : > { %v11571_v17 = vpop.permute.xlu1 %2874  ;;  %8044 = vrot.lane.b32.xlu2 %v8043_v60, %s16142_s24  ;;  %v11574_v4 = vpop.permute.xlu0 %2872 }
 0xa16   : > { %16474 = vst [vmem:[#allocation32_spill] sm:$0xff] %v11571_v17 }
 0xa17   : > { %16475 = vst [vmem:[#allocation31_spill] sm:$0xff] %v11574_v4  ;;  %v11600_v41 = vpop.permute.xlu2 %2972 }
 0xa1b   : > { %2796 = vrot.lane.b32.xlu1 %v2757_v51, %s16175_s19  ;;  %8084 = vrot.lane.b32.xlu0 %v8083_v15, %s16142_s24 }
 0xa1d   : > { %v11582_v42 = vpop.permute.xlu1 %2922  ;;  %8054 = vrot.lane.b32.xlu2 %v8043_v60, %s16139_s22  ;;  %v11585_v39 = vpop.permute.xlu0 %2920 }
 0xa1f   : > { %v11615_v33 = vpop.permute.xlu2 %2786 }
 0xa23   : > { %2844 = vrot.lane.b32.xlu1 %v2757_v51, %s9266_s18  ;;  %8094 = vrot.lane.b32.xlu0 %v8083_v15, %s16139_s22 }
 0xa25   : > { %v11591_v55 = vpop.permute.xlu1 %2970  ;;  %8064 = vrot.lane.b32.xlu2 %v8043_v60, %s16137_s23  ;;  %v11594_v36 = vpop.permute.xlu0 %2968  ;;  %v3361_v60 = vld [vmem:[%s16083_s8 + $0x8] sm:$0xff] }
 0xa26   : > { %16477 = vst [vmem:[#allocation28_spill] sm:$0xff] %v11591_v55 }
 0xa27   : > { %v11630_v49 = vpop.permute.xlu2 %2834 }
 0xa2b   : > { %2892 = vrot.lane.b32.xlu1 %v2757_v51, %s9265_s17  ;;  %2794 = vrot.lane.b32.xlu0 %v11598_v19, %s16175_s19 }
 0xa2d   : > { %8079 = vrot.lane.b32.xlu2 %v8078_v31, %s16142_s24  ;;  %v11608_v63 = vpop.permute.xlu1 %2784  ;;  %v11610_v47 = vpop.permute.xlu0 %8049 }
 0xa2f   : > { %v11640_v25 = vpop.permute.xlu2 %2882 }
 0xa30   : > { %16480 = vst [vmem:[#allocation16_spill] sm:$0xff] %v11640_v25 }
 0xa33   : > { %8104 = vrot.lane.b32.xlu1 %v8068_v22, %s16137_s23  ;;  %2842 = vrot.lane.b32.xlu0 %v11598_v19, %s9266_s18 }
 0xa35   : > { %8089 = vrot.lane.b32.xlu2 %v8078_v31, %s16139_s22  ;;  %v11618_v24 = vpop.permute.xlu1 %2832  ;;  %v11620_v26 = vpop.permute.xlu0 %8059 }
 0xa36   : > { %16478 = vst [vmem:[#allocation23_spill] sm:$0xff] %v11620_v26 }
 0xa37   : > { %v11653_v9 = vpop.permute.xlu2 %2930 }
 0xa3b   : > { %2940 = vrot.lane.b32.xlu1 %v2757_v51, %s9268_s20  ;;  %2890 = vrot.lane.b32.xlu0 %v11598_v19, %s9265_s17 }
 0xa3d   : > { %8109 = vrot.lane.b32.xlu2 %v8078_v31, %s16137_s23  ;;  %v11626_v29 = vpop.permute.xlu1 %2880  ;;  %v11628_v32 = vpop.permute.xlu0 %2782 }
 0xa3e   : > { %16479 = vst [vmem:[#allocation15_spill] sm:$0xff] %v11626_v29 }
 0xa3f   : > { %v11667_v59 = vpop.permute.xlu2 %2978 }
 0xa43   : > { %2988 = vrot.lane.b32.xlu1 %v2757_v51, %s9269_s21  ;;  %2938 = vrot.lane.b32.xlu0 %v11598_v19, %s9268_s20 }
 0xa45   : > { %3136 = vperm.xlu2 %7771, %v7459_v28   ;;  %v11638_v21 = vpop.permute.xlu1 %2928  ;;  %v2831_v35 = vpop.permute.xlu0 %2830 }
 0xa47   : > { %v2793_v20 = vpop.permute.xlu2 %2792 }
 0xa4b   : > { %8119 = vrot.lane.b32.xlu1 %v8118_v13, %s16142_s24  ;;  %8099 = vrot.lane.b32.xlu0 %v11471_v34, %s16137_s23 }
 0xa4d   : > { %3151 = vperm.xlu2 %7771, %v7462_v1   ;;  %v11649_v12 = vpop.permute.xlu1 %2976  ;;  %v11651_v5 = vpop.permute.xlu0 %2878 }
 0xa4e   : > { %16481 = vst [vmem:[#allocation24_spill] sm:$0xff] %v11649_v12 }
 0xa4f   : > { %16482 = vst [vmem:[#allocation21_spill] sm:$0xff] %v11651_v5  ;;  %v2841_v31 = vpop.permute.xlu2 %2840 }
 0xa53   : > { %8124 = vrot.lane.b32.xlu1 %v8118_v13, %s16139_s22  ;;  %2986 = vrot.lane.b32.xlu0 %v11598_v19, %s9269_s21 }
 0xa55   : > { %3790 = vperm.xlu2 %7771, %v3360_v37   ;;  %v11661_v50 = vpop.permute.xlu1 %8069  ;;  %v11663_v40 = vpop.permute.xlu0 %2926 }
 0xa57   : > { %v11686_v1 = vpop.permute.xlu2 %2888 }
 0xa5b   : > { %8129 = vrot.lane.b32.xlu1 %v8118_v13, %s16137_s23  ;;  %8114 = vrot.lane.b32.xlu0 %v8083_v15, %s16137_s23 }
 0xa5d   : > { %v11669_v53 = vpop.permute.xlu1 %8074  ;;  %v11671_v34 = vpop.permute.xlu0 %2974 }
 0xa5e   : > { %16483 = vst [vmem:[#allocation35_spill] sm:$0xff] %v11669_v53 }
 0xa63   : > { %3146 = vperm.xlu1 %7770, %v7461_v14   ;;  %3141 = vperm.xlu0 %7772, %v7460_v23   ;;  %v11692_v23 = vpop.permute.xlu2 %2936 }
 0xa65   : > { %v2791_v22 = vpop.permute.xlu1 %2790  ;;  %v2789_v48 = vpop.permute.xlu0 %2788 }
 0xa6b   : > { %3795 = vperm.xlu0 %7772, %v3361_v60   ;;  %v11700_v53 = vpop.permute.xlu2 %2984 }
 0xa6d   : > { %v2839_v15 = vpop.permute.xlu1 %2838  ;;  %v2837_v51 = vpop.permute.xlu0 %2836 }
 0xa73   : > { %v11704_v4 = vpop.permute.xlu2 %8044 }
 0xa75   : > { %v11682_v28 = vpop.permute.xlu1 %2886  ;;  %v11684_v13 = vpop.permute.xlu0 %2884 }
 0xa76   : > { %16484 = vst [vmem:[#allocation30_spill] sm:$0xff] %v11682_v28 }
 0xa77   : > { %16485 = vst [vmem:[#allocation20_spill] sm:$0xff] %v11684_v13 }
 0xa7b   : > { %v11708_v5 = vpop.permute.xlu2 %8054 }
 0xa7d   : > { %v11688_v37 = vpop.permute.xlu1 %2934  ;;  %v11690_v14 = vpop.permute.xlu0 %2932 }
 0xa85   : > { %v11694_v55 = vpop.permute.xlu1 %2982  ;;  %v11696_v12 = vpop.permute.xlu0 %2980 }
 0xa86   : > { %16486 = vst [vmem:[#allocation34_spill] sm:$0xff] %v11694_v55 }
 0xa8d   : > { %v2797_v60 = vpop.permute.xlu1 %2796  ;;  %v11698_v26 = vpop.permute.xlu0 %8084 }
 0xa95   : > { %v2845_v17 = vpop.permute.xlu1 %2844  ;;  %v11702_v8 = vpop.permute.xlu0 %8094 }
 0xa96   : > { %16487 = vst [vmem:[#allocation29_spill] sm:$0xff] %v11702_v8  ;;  %v2850_v8 = vsel %vm527_vm5, %v11630_v49, %v2837_v51  ;;  %v11733_v49 = vpop.permute.xlu2 %8064 }
 0xa9d   : > { %v11706_v29 = vpop.permute.xlu1 %2892  ;;  %v2795_v46 = vpop.permute.xlu0 %2794 }
 0xa9e   : > { %16488 = vst [vmem:[#allocation14_spill] sm:$0xff] %v11706_v29  ;;  %v2851_v29 = vsel %vm527_vm5, %v2837_v51, %v2839_v15 }
 0xaa5   : > { %v11710_v28 = vpop.permute.xlu1 %8104  ;;  %v2843_v55 = vpop.permute.xlu0 %2842 }
 0xaa6   : > { %v2852_v25 = vsel %vm527_vm5, %v2841_v31, %v2843_v55  ;;  %v2853_v13 = vsel %vm527_vm5, %v2843_v55, %v2845_v17  ;;  %v2848_v17 = vsel %vm527_vm5, %v11558_v16, %v2831_v35  ;;  %v2849_v55 = vsel %vm527_vm5, %v2831_v35, %v11618_v24 }
 0xaa7   : > { %7463 = vmatpush.msk.msra.mxu0 %vm9443_vm11, %v2852_v25  ;;  %7491 = vmatpush.msk.msra.mxu3 %vm9467_vm12, %v2853_v13  ;;  %v2804_v35 = vsel %vm514_vm9, %v2793_v20, %v2795_v46  ;;  %v2805_v25 = vsel %vm514_vm9, %v2795_v46, %v2797_v60  ;;  %v2801_v46 = vsel %vm514_vm9, %v11628_v32, %v11608_v63  ;;  %v8080_v63 = vpop.permute.xlu2 %8079  ;;  %v8072_v13 = vunpack.i.h.bf16 %v11661_v50 }
 0xaa8   : > { %v8081_v20 = vunpack.i.l.bf16 %v8080_v63  ;;  %v8071_v60 = vunpack.i.l.bf16 %v11661_v50 }
 0xaa9   : > { %7464 = vmatpush.msk.msra.mxu0 %vm9443_vm11, %v2850_v8  ;;  %7492 = vmatpush.msk.msra.mxu3 %vm9467_vm12, %v2851_v29  ;;  %v2846_v8 = vsel %vm527_vm5, %v11502_v38, %v11564_v62  ;;  %v2847_v29 = vsel %vm527_vm5, %v11564_v62, %v11560_v54  ;;  %v2802_v38 = vsel %vm514_vm9, %v11615_v33, %v2789_v48 }
 0xaaa   : > { %v2803_v54 = vsel %vm514_vm9, %v2789_v48, %v2791_v22  ;;  %v2800_v62 = vsel %vm514_vm9, %v11544_v10, %v11628_v32  ;;  %v2798_v33 = vsel %vm514_vm9, %v11495_v52, %v11553_v27  ;;  %v2799_v22 = vsel %vm514_vm9, %v11553_v27, %v11549_v56 }
 0xaab   : > { %7465 = vmatpush.msk.msra.mxu0 %vm9443_vm11, %v2848_v17  ;;  %7493 = vmatpush.msk.msra.mxu3 %vm9467_vm12, %v2849_v55  ;;  %v8082_v32 = vunpack.i.h.bf16 %v8080_v63  ;;  %v8087_v52 = vunpack.i.h.bf16 %v11698_v26  ;;  %v8086_v56 = vunpack.i.l.bf16 %v11698_v26  ;;  %v8046_v26 = vunpack.i.l.bf16 %v11704_v4 }
 0xaad   : > { %v11741_v16 = vpop.permute.xlu1 %2940  ;;  %7466 = vmatpush.msk.msra.mxu0 %vm9443_vm11, %v2846_v8  ;;  %7494 = vmatpush.msk.msra.mxu3 %vm9467_vm12, %v2847_v29  ;;  %v11747_v24 = vpop.permute.xlu0 %2890  ;;  %v8052_v29 = vunpack.i.h.bf16 %v11610_v47 }
 0xaaf   : > { %7467 = vmatpush.msk.msra.mxu0 %vm9427_vm7, %v2804_v35  ;;  %7495 = vmatpush.msk.msra.mxu3 %vm9415_vm2, %v2805_v25  ;;  %v11792_v17 = vpop.permute.xlu2 %8089  ;;  %v8047_v35 = vunpack.i.h.bf16 %v11704_v4  ;;  %v3042_v25 = vsel %vm582_vm13, %v8081_v20, %v8082_v32  ;;  %v3040_v50 = vsel %vm582_vm13, %v8052_v29, %v8071_v60 }
 0xab1   : > { %7468 = vmatpush.msk.msra.mxu0 %vm9427_vm7, %v2802_v38  ;;  %7496 = vmatpush.msk.msra.mxu3 %vm9415_vm2, %v2803_v54  ;;  %v3043_v38 = vsel %vm582_vm13, %v8082_v32, %v8086_v56  ;;  %v3041_v54 = vsel %vm582_vm13, %v8071_v60, %v8072_v13  ;;  %v2992_v32 = vsel %vm566_vm1, %v11600_v41, %v11671_v34  ;;  %v8106_v13 = vunpack.i.l.bf16 %v11710_v28 }
 0xab2   : > { %v8067_v60 = vunpack.i.h.bf16 %v11733_v49 }
 0xab3   : > { %7469 = vmatpush.msk.msra.mxu0 %vm9427_vm7, %v2800_v62  ;;  %7497 = vmatpush.msk.msra.mxu3 %vm9415_vm2, %v2801_v46  ;;  %v8051_v62 = vunpack.i.l.bf16 %v11610_v47  ;;  %v2994_v47 = vsel %vm566_vm1, %v11667_v59, %v11696_v12 }
 0xab5   : > { %v11778_v48 = vpop.permute.xlu1 %2988  ;;  %7470 = vmatpush.msk.msra.mxu0 %vm9427_vm7, %v2798_v33  ;;  %7498 = vmatpush.msk.msra.mxu3 %vm9415_vm2, %v2799_v22  ;;  %v11784_v10 = vpop.permute.xlu0 %2938  ;;  %v3038_v22 = vsel %vm582_vm13, %v8046_v26, %v8047_v35  ;;  %v3039_v63 = vsel %vm582_vm13, %v8047_v35, %v8051_v62  ;;  %v16492_v62 = vld [vmem:[#allocation30_spill] sm:$0xff] }
 0xabd   : > { %v8120_v15 = vpop.permute.xlu1 %8119  ;;  %v11786_v51 = vpop.permute.xlu0 %8099 }
 0xabe   : > { %v8122_v27 = vunpack.i.h.bf16 %v8120_v15  ;;  %v8121_v31 = vunpack.i.l.bf16 %v8120_v15 }
 0xac0   : > { %v3044_v55 = vsel %vm582_vm13, %v8087_v52, %v8121_v31  ;;  %v3045_v8 = vsel %vm582_vm13, %v8121_v31, %v8122_v27 }
 0xac1   : > { %3174 = vmatpush.msra.mxu0 %v3044_v55  ;;  %3261 = vmatpush.msra.mxu3 %v3045_v8 }
 0xac3   : > { %3175 = vmatpush.msra.mxu0 %v3042_v25  ;;  %3262 = vmatpush.msra.mxu3 %v3043_v38  ;;  %v2948_v25 = vsel %vm553_vm6, %v11692_v23, %v11784_v10  ;;  %v2949_v38 = vsel %vm553_vm6, %v11784_v10, %v11741_v16  ;;  %v11911_v23 = vld [vmem:[%s16080_s5 + $0xa0] sm:$0xff]  ;;  %v2944_v16 = vsel %vm553_vm6, %v11587_v7, %v11663_v40 }
 0xac4   : > { %v2943_v7 = vsel %vm553_vm6, %v11585_v39, %v11582_v42  ;;  %v16490_v42 = vld [vmem:[#allocation20_spill] sm:$0xff] }
 0xac5   : > { %v11804_v46 = vpop.permute.xlu1 %8124  ;;  %v11806_v33 = vpop.permute.xlu0 %2986  ;;  %3176 = vmatpush.msra.mxu0 %v3040_v50  ;;  %3263 = vmatpush.msra.mxu3 %v3041_v54  ;;  %v2946_v50 = vsel %vm553_vm6, %v11653_v9, %v11690_v14  ;;  %v2947_v54 = vsel %vm553_vm6, %v11690_v14, %v11688_v37  ;;  %v2945_v9 = vsel %vm553_vm6, %v11663_v40, %v11638_v21  ;;  %v7453_v37 = vld [vmem:[%s16080_s5 + $0x90] sm:$0xff] }
 0xac6   : > { %v2996_v4 = vsel %vm566_vm1, %v11700_v53, %v11806_v33  ;;  %v8110_v53 = vpop.permute.xlu2 %8109  ;;  %v2942_v14 = vsel %vm553_vm6, %v11526_v6, %v11585_v39  ;;  %v2900_v21 = vsel %vm540_vm4, %v11686_v1, %v11747_v24  ;;  %v16489_v6 = vld [vmem:[#allocation14_spill] sm:$0xff]  ;;  %v16491_v39 = vld [vmem:[#allocation16_spill] sm:$0xff] }
 0xac7   : > { %3177 = vmatpush.msra.mxu0 %v3038_v22  ;;  %7483 = vmatpush.msk.msrb.mxu2 %vm9427_vm7, %v2996_v4  ;;  %v8112_v41 = vunpack.i.h.bf16 %v8110_v53  ;;  %v2901_v40 = vsel %vm540_vm4, %v11747_v24, %v16489_v6  ;;  %v2898_v10 = vsel %vm540_vm4, %v16491_v39, %v16490_v42  ;;  %v2899_v4 = vsel %vm540_vm4, %v16490_v42, %v16492_v62  ;;  %v11961_v1 = vld [vmem:[%s16080_s5 + $0xb8] sm:$0xff] }
 0xac8   : > { %3264 = vmatpush.msra.mxu3 %v3039_v63  ;;  %v8127_v24 = vunpack.i.h.bf16 %v11804_v46  ;;  %v8126_v22 = vunpack.i.l.bf16 %v11804_v46  ;;  %v16493_v63 = vld [vmem:[#allocation21_spill] sm:$0xff] }
 0xac9   : > { %7471 = vmatpush.msk.msra.mxu0 %vm9443_vm11, %v11522_v57  ;;  %7484 = vmatpush.msk.msrb.mxu2 %vm9427_vm7, %v2994_v47  ;;  %v2990_v57 = vsel %vm566_vm1, %v11537_v45, %v11594_v36  ;;  %v8111_v45 = vunpack.i.l.bf16 %v8110_v53  ;;  %v16494_v47 = vld [vmem:[#allocation19_spill] sm:$0xff] }
 0xaca   : > { %7499 = vmatpush.msk.msra.mxu3 %vm9467_vm12, %v11598_v19  ;;  %v11843_v19 = vld [vmem:[%s16080_s5 + $0x70] sm:$0xff]  ;;  %v2896_v53 = vsel %vm540_vm4, %v16494_v47, %v16493_v63  ;;  %v16506_v47 = vld [vmem:[#allocation26_spill] sm:$0xff] }
 0xacb   : > { %7472 = vmatpush.msk.msra.mxu0 %vm9443_vm11, %v11483_v43  ;;  %7485 = vmatpush.msk.msrb.mxu2 %vm9427_vm7, %v2992_v32  ;;  %v3122_v55 = vsel %vm616_vm8, %v8111_v45, %v8112_v41  ;;  %v16495_v32 = vld [vmem:[#allocation15_spill] sm:$0xff]  ;;  %v7456_v45 = vld [vmem:[%s16080_s5 + $0xa8] sm:$0xff] }
 0xacc   : > { %7500 = vmatpush.msk.msra.mxu3 %vm9467_vm12, %v11529_v3  ;;  %v7447_v3 = vld [vmem:[%s16080_s5 + $0x60] sm:$0xff] }
 0xacd   : > { %v8130_v59 = vpop.permute.xlu1 %8129  ;;  %7486 = vmatpush.msk.msrb.mxu2 %vm9427_vm7, %v2990_v57  ;;  %v8115_v43 = vpop.permute.xlu0 %8114  ;;  %7473 = vmatpush.msk.msra.mxu0 %vm9443_vm11, %v11449_v0  ;;  %v8102_v0 = vunpack.i.h.bf16 %v11786_v51  ;;  %v2897_v57 = vsel %vm540_vm4, %v16493_v63, %v16495_v32 }
 0xace   : > { %v8132_v20 = vunpack.i.h.bf16 %v8130_v59  ;;  %v8131_v15 = vunpack.i.l.bf16 %v8130_v59  ;;  %v8117_v52 = vunpack.i.h.bf16 %v8115_v43  ;;  %7501 = vmatpush.msk.msra.mxu3 %vm9467_vm12, %v11488_v2  ;;  %7487 = vmatmul.msk.f32.vlgmr.msrb.gmra.mxu2 %vm1187_vm15, %v11843_v19  ;;  %v8116_v56 = vunpack.i.l.bf16 %v8115_v43  ;;  %v16497_v59 = vld [vmem:[#allocation33_spill] sm:$0xff] }
 0xacf   : > { %7474 = vmatpush.msk.msra.mxu0 %vm9443_vm11, %v11426_v18  ;;  %v8107_v2 = vunpack.i.h.bf16 %v11710_v28  ;;  %v8066_v18 = vunpack.i.l.bf16 %v11733_v49  ;;  %v3120_v29 = vsel %vm616_vm8, %v8102_v0, %v8106_v13  ;;  %v11878_v28 = vld [vmem:[%s16080_s5 + $0x88] sm:$0xff] }
 0xad0   : > { %7502 = vmatpush.msk.msra.mxu3 %vm9467_vm12, %v11437_v61  ;;  %3182 = vmatmul.f32.vlgmr.msra.gmra.mxu0 %v7447_v3  ;;  %v3124_v27 = vsel %vm616_vm8, %v8117_v52, %v8131_v15  ;;  %v3125_v31 = vsel %vm616_vm8, %v8131_v15, %v8132_v20  ;;  %v8101_v61 = vunpack.i.l.bf16 %v11786_v51  ;;  %v3123_v8 = vsel %vm616_vm8, %v8112_v41, %v8116_v56  ;;  %v7450_v51 = vld [vmem:[%s16080_s5 + $0x78] sm:$0xff]  ;;  %v16496_v41 = vld [vmem:[#allocation31_spill] sm:$0xff]  ;;  %v16499_v52 = vld [vmem:[#allocation29_spill] sm:$0xff] }
 0xad1   : > { %3269 = vmatmul.f32.vlgmr.msra.gmra.mxu3 %v7447_v3  ;;  %3195 = vmatpush.msrb.mxu1 %v3124_v27  ;;  %v3121_v35 = vsel %vm616_vm8, %v8106_v13, %v8107_v2  ;;  %v3118_v49 = vsel %vm616_vm8, %v8066_v18, %v8067_v60  ;;  %v2894_v43 = vsel %vm540_vm4, %v16497_v59, %v16496_v41  ;;  %v16498_v3 = vld [vmem:[#allocation32_spill] sm:$0xff]  ;;  %v8092_v20 = vunpack.i.h.bf16 %v11792_v17  ;;  %v16500_v27 = vld [vmem:[#allocation35_spill] sm:$0xff] }
 0xad2   : > { %3282 = vmatpush.msrb.mxu0 %v3125_v31  ;;  %v3119_v26 = vsel %vm616_vm8, %v8067_v60, %v8101_v61  ;;  %v2895_v46 = vsel %vm540_vm4, %v16496_v41, %v16498_v3  ;;  %v8091_v15 = vunpack.i.l.bf16 %v11792_v17  ;;  %v8097_v56 = vunpack.i.h.bf16 %v16499_v52  ;;  %v16501_v60 = vld [vmem:[#allocation23_spill] sm:$0xff] }
 0xad3   : > { %3196 = vmatpush.msrb.mxu1 %v3122_v55  ;;  %v8096_v0 = vunpack.i.l.bf16 %v16499_v52  ;;  %v8077_v31 = vunpack.i.h.bf16 %v16500_v27  ;;  %v8076_v2 = vunpack.i.l.bf16 %v16500_v27  ;;  %v3085_v13 = vsel %vm599_vm10, %v8126_v22, %v8127_v24 }
 0xad4   : > { %3283 = vmatpush.msrb.mxu0 %v3123_v8  ;;  %v3084_v17 = vsel %vm599_vm10, %v8097_v56, %v8126_v22  ;;  %v8062_v18 = vunpack.i.h.bf16 %v16501_v60  ;;  %v8057_v55 = vunpack.i.h.bf16 %v11708_v5  ;;  %v8056_v61 = vunpack.i.l.bf16 %v11708_v5 }
 0xad5   : > { %3197 = vmatpush.msrb.mxu1 %v3120_v29  ;;  %v3082_v8 = vsel %vm599_vm10, %v8091_v15, %v8092_v20  ;;  %v3083_v29 = vsel %vm599_vm10, %v8092_v20, %v8096_v0  ;;  %v3142_v24 = vpop.permute.xlu0 %3141  ;;  %v3147_v32 = vpop.permute.xlu1 %3146 }
 0xad6   : > { %3284 = vmatpush.msrb.mxu0 %v3121_v35  ;;  %7488 = vmatmul.msk.f32.gmra.mxu2 %vm1187_vm15, %v11878_v28  ;;  %v8061_v35 = vunpack.i.l.bf16 %v16501_v60  ;;  %v3078_v5 = vsel %vm599_vm10, %v8056_v61, %v8057_v55 }
 0xad7   : > { %3198 = vmatpush.msrb.mxu1 %v3118_v49  ;;  %v3080_v49 = vsel %vm599_vm10, %v8062_v18, %v8076_v2 }
 0xad8   : > { %3285 = vmatpush.msrb.mxu0 %v3119_v26  ;;  %v7448_v26 = vld [vmem:[%s16080_s5 + $0x68] sm:$0xff] }
 0xad9   : > { %3185 = vmatmul.f32.gmra.mxu0 %v7450_v51  ;;  %3272 = vmatmul.f32.gmra.mxu3 %v7450_v51  ;;  %v3081_v51 = vsel %vm599_vm10, %v8076_v2, %v8077_v31 }
 0xada   : > { %7475 = vmatpush.msk.msrb.mxu1 %vm9443_vm11, %v2948_v25  ;;  %7503 = vmatpush.msk.msrb.mxu0 %vm9467_vm12, %v2949_v38  ;;  %v3079_v25 = vsel %vm599_vm10, %v8057_v55, %v8061_v35  ;;  %v2997_v38 = vsel %vm566_vm1, %v11806_v33, %v11778_v48  ;;  %v7451_v48 = vld [vmem:[%s16080_s5 + $0x80] sm:$0xff]  ;;  %v16504_v33 = vld [vmem:[#allocation28_spill] sm:$0xff]  ;;  %v16509_v35 = vld [vmem:[#allocation22_spill] sm:$0xff] }
 0xadc   : > { %7476 = vmatpush.msk.msrb.mxu1 %vm9443_vm11, %v2946_v50  ;;  %7504 = vmatpush.msk.msrb.mxu0 %vm9467_vm12, %v2947_v54  ;;  %v16502_v50 = vld [vmem:[#allocation34_spill] sm:$0xff] }
 0xadd   : > { %v2995_v54 = vsel %vm566_vm1, %v11696_v12, %v16502_v50  ;;  %v7454_v12 = vld [vmem:[%s16080_s5 + $0x98] sm:$0xff] }
 0xade   : > { %7477 = vmatpush.msk.msrb.mxu1 %vm9443_vm11, %v2944_v16  ;;  %7505 = vmatpush.msk.msrb.mxu0 %vm9467_vm12, %v2945_v9  ;;  %v16503_v16 = vld [vmem:[#allocation24_spill] sm:$0xff] }
 0xadf   : > { %7489 = vmatmul.msk.f32.gmra.mxu2 %vm1187_vm15, %v11911_v23  ;;  %v2993_v9 = vsel %vm566_vm1, %v11671_v34, %v16503_v16  ;;  %v7457_v34 = vld [vmem:[%s16080_s5 + $0xb0] sm:$0xff] }
 0xae0   : > { %7478 = vmatpush.msk.msrb.mxu1 %vm9443_vm11, %v2942_v14  ;;  %7506 = vmatpush.msk.msrb.mxu0 %vm9467_vm12, %v2943_v7 }
 0xae1   : > { %3188 = vmatmul.f32.gmra.mxu0 %v7453_v37  ;;  %3275 = vmatmul.f32.gmra.mxu3 %v7453_v37  ;;  %v2991_v37 = vsel %vm566_vm1, %v11594_v36, %v16504_v33 }
 0xae2   : > { %7479 = vmatpush.msk.msrb.mxu1 %vm9427_vm7, %v2900_v21  ;;  %7507 = vmatpush.msk.msrb.mxu0 %vm9415_vm2, %v2901_v40  ;;  %v3137_v21 = vpop.permute.xlu2 %3136 }
 0xae4   : > { %7480 = vmatpush.msk.msrb.mxu1 %vm9427_vm7, %v2898_v10  ;;  %7508 = vmatpush.msk.msrb.mxu0 %vm9415_vm2, %v2899_v4 }
 0xae6   : > { %7481 = vmatpush.msk.msrb.mxu1 %vm9427_vm7, %v2896_v53  ;;  %7509 = vmatpush.msk.msrb.mxu0 %vm9415_vm2, %v2897_v57 }
 0xae7   : > { %7490 = vmatmul.msk.f32.gmra.mxu2 %vm1187_vm15, %v11961_v1 }
 0xae8   : > { %7482 = vmatpush.msk.msrb.mxu1 %vm9427_vm7, %v2894_v43  ;;  %7510 = vmatpush.msk.msrb.mxu0 %vm9415_vm2, %v2895_v46 }
 0xae9   : > { %3191 = vmatmul.f32.gmra.mxu0 %v7456_v45  ;;  %3278 = vmatmul.f32.gmra.mxu3 %v7456_v45  ;;  %v16507_v45 = vld [vmem:[#allocation25_spill] sm:$0xff] }
 0xaea   : > { %3207 = vmatpush.msrb.mxu1 %v3084_v17  ;;  %3294 = vmatpush.msrb.mxu0 %v3085_v13  ;;  %v3152_v15 = vpop.permute.xlu2 %3151  ;;  %v16508_v13 = vld [vmem:[#allocation13_spill] sm:$0xff] }
 0xaec   : > { %3208 = vmatpush.msrb.mxu1 %v3082_v8  ;;  %3295 = vmatpush.msrb.mxu0 %v3083_v29 }
 0xaee   : > { %3209 = vmatpush.msrb.mxu1 %v3080_v49  ;;  %3296 = vmatpush.msrb.mxu0 %v3081_v51 }
 0xaf0   : > { %3210 = vmatpush.msrb.mxu1 %v3078_v5  ;;  %3297 = vmatpush.msrb.mxu0 %v3079_v25 }
 0xaf1   : > { %3211 = vmatmul.f32.vlgmr.msrb.gmra.mxu1 %v7448_v26  ;;  %3298 = vmatmul.f32.vlgmr.msrb.gmra.mxu0 %v7448_v26 }
 0xaf2   : > { %7511 = vmatpush.msk.msra.mxu1 %vm9415_vm2, %v2997_v38 }
 0xaf4   : > { %7512 = vmatpush.msk.msra.mxu1 %vm9415_vm2, %v2995_v54  ;;  %v16510_v54 = vld [vmem:[#allocation17_spill] sm:$0xff] }
 0xaf6   : > { %7513 = vmatpush.msk.msra.mxu1 %vm9415_vm2, %v2993_v9 }
 0xaf8   : > { %7514 = vmatpush.msk.msra.mxu1 %vm9415_vm2, %v2991_v37 }
 0xaf9   : > { %3214 = vmatmul.f32.gmra.mxu1 %v7451_v48  ;;  %3301 = vmatmul.f32.gmra.mxu0 %v7451_v48 }
 0xb01   : > { %3217 = vmatmul.f32.gmra.mxu1 %v7454_v12  ;;  %3304 = vmatmul.f32.gmra.mxu0 %v7454_v12 }
 0xb09   : > { %3220 = vmatmul.f32.gmra.mxu1 %v7457_v34  ;;  %3307 = vmatmul.f32.gmra.mxu0 %v7457_v34  ;;  %v16511_v34 = vld [vmem:[#allocation12_spill] sm:$0xff] }
 0xb11   : > { %7515 = vmatmul.msk.f32.vlgmr.msra.gmra.mxu1 %vm1187_vm15, %v11843_v19  ;;  %v16505_v19 = vld [vmem:[#allocation27_spill] sm:$0xff] }
 0xb19   : > { %7516 = vmatmul.msk.f32.gmra.mxu1 %vm1187_vm15, %v11878_v28 }
 0xb21   : > { %7517 = vmatmul.msk.f32.gmra.mxu1 %vm1187_vm15, %v11911_v23 }
 0xb29   : > { %7518 = vmatmul.msk.f32.gmra.mxu1 %vm1187_vm15, %v11961_v1 }
 0xb4d   : > { %v3183_v36 = vpop.f32.mrf.mxu0 }
 0xb4e   : > { %v3184_v6 = vadd.f32 %v3183_v36, %v3137_v21 }
 0xb51   : > { %v3241_v7 = vpop.f32.mrf.mxu2 }
 0xb54   : > { %v3270_v46 = vpop.f32.mrf.mxu3 }
 0xb55   : > { %v3271_v17 = vadd.f32 %v3270_v46, %v3137_v21 }
 0xb56   : > { %v3186_v14 = vpop.f32.mrf.mxu0 }
 0xb57   : > { %v3187_v28 = vadd.f32 %v3186_v14, %v3142_v24 }
 0xb59   : > { %v3244_v62 = vpop.f32.mrf.mxu2 }
 0xb5c   : > { %v3273_v18 = vpop.f32.mrf.mxu3 }
 0xb5d   : > { %v3274_v51 = vadd.f32 %v3273_v18, %v3142_v24  ;;  %v12077_v24 = vpop.permute.xlu2 %3790 }
 0xb5e   : > { %v3189_v39 = vpop.f32.mrf.mxu0  ;;  %16514 = vst [vmem:[#allocation20_spill] sm:$0xff] %v12077_v24  ;;  %v4484_v24 = vld [vmem:[%s16085_s10 + $0x50] sm:$0xff] }
 0xb5f   : > { %v3190_v41 = vadd.f32 %v3189_v39, %v3147_v32 }
 0xb62   : > { %v3247_v57 = vpop.f32.mrf.mxu2 }
 0xb64   : > { %v3276_v5 = vpop.f32.mrf.mxu3 }
 0xb65   : > { %v3277_v9 = vadd.f32 %v3276_v5, %v3147_v32 }
 0xb66   : > { %v3192_v1 = vpop.f32.mrf.mxu0 }
 0xb67   : > { %v3193_v56 = vadd.f32 %v3192_v1, %v3152_v15 }
 0xb6a   : > { %v3250_v27 = vpop.f32.mrf.mxu2 }
 0xb6c   : > { %v3279_v12 = vpop.f32.mrf.mxu3 }
 0xb6e   : > { %v3212_v40 = vpop.f32.mrf.mxu1  ;;  %v3299_v52 = vpop.f32.mrf.mxu0 }
 0xb6f   : > { %v3213_v42 = vadd.f32 %v3212_v40, %v3184_v6  ;;  %v3300_v55 = vadd.f32 %v3299_v52, %v3271_v17 }
 0xb71   : > { %v3242_v10 = vadd.f32 %v3241_v7, %v3213_v42  ;;  %v3280_v7 = vadd.f32 %v3279_v12, %v3152_v15  ;;  %v16512_v42 = vld [vmem:[#allocation18_spill] sm:$0xff] }
 0xb73   : > { %v3340_v4 = vadd.f32 %v3242_v10, %v16505_v19  ;;  %v12064_v10 = vpop.permute.xlu0 %3795 }
 0xb74   : > { %16513 = vst [vmem:[#allocation14_spill] sm:$0xff] %v12064_v10  ;;  %v4489_v10 = vld [vmem:[%s16085_s10 + $0x78] sm:$0xff] }
 0xb75   : > { %3372 = vrot.lane.b32.xlu0 %v3340_v4, %s9264_s16 }
 0xb76   : > { %v3215_v23 = vpop.f32.mrf.mxu1  ;;  %v3302_v61 = vpop.f32.mrf.mxu0 }
 0xb77   : > { %v3216_v22 = vadd.f32 %v3215_v23, %v3187_v28  ;;  %v3303_v26 = vadd.f32 %v3302_v61, %v3274_v51 }
 0xb79   : > { %v3245_v63 = vadd.f32 %v3244_v62, %v3216_v22 }
 0xb7b   : > { %v3342_v53 = vadd.f32 %v3245_v63, %v16506_v47 }
 0xb7d   : > { %3376 = vrot.lane.b32.xlu2 %v3342_v53, %s9264_s16 }
 0xb7e   : > { %v3218_v59 = vpop.f32.mrf.mxu1  ;;  %v3305_v50 = vpop.f32.mrf.mxu0 }
 0xb7f   : > { %v3219_v43 = vadd.f32 %v3218_v59, %v3190_v41  ;;  %v3306_v48 = vadd.f32 %v3305_v50, %v3277_v9 }
 0xb81   : > { %v3248_v3 = vadd.f32 %v3247_v57, %v3219_v43 }
 0xb83   : > { %v3344_v20 = vadd.f32 %v3248_v3, %v16507_v45 }
 0xb85   : > { %3380 = vrot.lane.b32.xlu1 %v3344_v20, %s9264_s16 }
 0xb86   : > { %v3221_v0 = vpop.f32.mrf.mxu1  ;;  %v3308_v14 = vpop.f32.mrf.mxu0 }
 0xb87   : > { %v3222_v31 = vadd.f32 %v3221_v0, %v3193_v56  ;;  %v3309_v21 = vadd.f32 %v3308_v14, %v3280_v7 }
 0xb89   : > { %v3251_v2 = vadd.f32 %v3250_v27, %v3222_v31 }
 0xb8b   : > { %v3346_v60 = vadd.f32 %v3251_v2, %v16508_v13 }
 0xb8d   : > { %3384 = vrot.lane.b32.xlu0 %v3346_v60, %s9264_s16 }
 0xb8e   : > { %v3328_v8 = vpop.f32.mrf.mxu1 }
 0xb8f   : > { %v3329_v29 = vadd.f32 %v3328_v8, %v3300_v55 }
 0xb91   : > { %v3341_v49 = vadd.f32 %v3329_v29, %v16509_v35 }
 0xb93   : > { %3374 = vrot.lane.b32.xlu1 %v3341_v49, %s9264_s16 }
 0xb96   : > { %v3331_v25 = vpop.f32.mrf.mxu1 }
 0xb97   : > { %v3332_v38 = vadd.f32 %v3331_v25, %v3303_v26 }
 0xb99   : > { %v3343_v16 = vadd.f32 %v3332_v38, %v16510_v54 }
 0xb9b   : > { %3378 = vrot.lane.b32.xlu0 %v3343_v16, %s9264_s16 }
 0xb9e   : > { %v3334_v33 = vpop.f32.mrf.mxu1 }
 0xb9f   : > { %v3335_v37 = vadd.f32 %v3334_v33, %v3306_v48 }
 0xba1   : > { %v3345_v36 = vadd.f32 %v3335_v37, %v16511_v34 }
 0xba3   : > { %3382 = vrot.lane.b32.xlu2 %v3345_v36, %s9264_s16 }
 0xba6   : > { %v3337_v6 = vpop.f32.mrf.mxu1 }
 0xba7   : > { %v3338_v40 = vadd.f32 %v3337_v6, %v3309_v21  ;;  %v3363_v21 = vld [vmem:[%s16083_s8 + $0x18] sm:$0xff] }
 0xba9   : > { %v3347_v39 = vadd.f32 %v3338_v40, %v16512_v42 }
 0xbab   : > { %3386 = vrot.lane.b32.xlu1 %v3347_v39, %s9264_s16 }
 0xbd7   : > { %v3377_v63 = vpop.permute.xlu2 %3376 }
 0xbd8   : > { %v12092_v1 = vsel %vm489_vm0, 0.0, %v3377_v63 }
 0xbe7   : > { %v3373_v62 = vpop.permute.xlu0 %3372 }
 0xbe8   : > { %v12067_v19 = vsel %vm489_vm0, 0.0, %v3373_v62 }
 0xbe9   : > { %3428 = vrot.lane.b32.xlu2 %v12067_v19, %s16175_s19 }
 0xbf1   : > { %3476 = vrot.lane.b32.xlu2 %v12067_v19, %s9266_s18 }
 0xbf7   : > { %v3381_v4 = vpop.permute.xlu1 %3380 }
 0xbf8   : > { %v12122_v41 = vsel %vm489_vm0, 0.0, %v3381_v4 }
 0xbf9   : > { %3524 = vrot.lane.b32.xlu2 %v12067_v19, %s9265_s17 }
 0xbfd   : > { %v3383_v59 = vpop.permute.xlu2 %3382 }
 0xbfe   : > { %v12174_v0 = vsel %vm489_vm0, %v3381_v4, %v3383_v59  ;;  %v3410_v27 = vsel %vm489_vm0, %v3383_v59, 0.0 }
 0xbff   : > { %v12106_v47 = vpop.permute.xlu0 %3384  ;;  %v8178_v16 = vpack.i.bf16 %v12174_v0, %v12122_v41 }
 0xc00   : > { %v12160_v15 = vsel %vm489_vm0, 0.0, %v12106_v47 }
 0xc01   : > { %3572 = vrot.lane.b32.xlu2 %v12067_v19, %s9268_s20  ;;  %v8183_v5 = vpack.i.bf16 %v12160_v15, %v3410_v27 }
 0xc05   : > { %v3375_v28 = vpop.permute.xlu1 %3374 }
 0xc06   : > { %v12080_v23 = vsel %vm489_vm0, %v3373_v62, %v3375_v28  ;;  %v3408_v22 = vsel %vm489_vm0, %v3375_v28, 0.0  ;;  %v4474_v62 = vld [vmem:[%s16085_s10] sm:$0xff] }
 0xc07   : > { %3432 = vrot.lane.b32.xlu1 %v3408_v22, %s16175_s19  ;;  %3430 = vrot.lane.b32.xlu0 %v12080_v23, %s16175_s19  ;;  %v8138_v32 = vpack.i.bf16 %v12092_v1, %v3408_v22  ;;  %v8133_v61 = vpack.i.bf16 %v12080_v23, %v12067_v19 }
 0xc09   : > { %3620 = vrot.lane.b32.xlu2 %v12067_v19, %s9269_s21 }
 0xc0d   : > { %v3379_v53 = vpop.permute.xlu0 %3378 }
 0xc0e   : > { %v3409_v57 = vsel %vm489_vm0, %v3379_v53, 0.0  ;;  %v12133_v3 = vsel %vm489_vm0, %v3377_v63, %v3379_v53  ;;  %v4477_v63 = vld [vmem:[%s16085_s10 + $0x18] sm:$0xff] }
 0xc0f   : > { %3480 = vrot.lane.b32.xlu1 %v3408_v22, %s9266_s18  ;;  %3478 = vrot.lane.b32.xlu0 %v12080_v23, %s9266_s18  ;;  %v8163_v45 = vpack.i.bf16 %v3409_v57, %v12133_v3 }
 0xc11   : > { %3434 = vrot.lane.b32.xlu2 %v12092_v1, %s16175_s19 }
 0xc17   : > { %3528 = vrot.lane.b32.xlu1 %v3408_v22, %s9265_s17  ;;  %3526 = vrot.lane.b32.xlu0 %v12080_v23, %s9265_s17 }
 0xc19   : > { %3482 = vrot.lane.b32.xlu2 %v12092_v1, %s9266_s18 }
 0xc1d   : > { %v3387_v31 = vpop.permute.xlu1 %3386 }
 0xc1e   : > { %v3411_v25 = vsel %vm489_vm0, %v3387_v31, 0.0  ;;  %v12257_v34 = vsel %vm489_vm0, %v12106_v47, %v3387_v31  ;;  %v4475_v31 = vld [vmem:[%s16085_s10 + $0x8] sm:$0xff] }
 0xc1f   : > { %3576 = vrot.lane.b32.xlu1 %v3408_v22, %s9268_s20  ;;  %3574 = vrot.lane.b32.xlu0 %v12080_v23, %s9268_s20  ;;  %v8208_v39 = vpack.i.bf16 %v3411_v25, %v12257_v34 }
 0xc21   : > { %3530 = vrot.lane.b32.xlu2 %v12092_v1, %s9265_s17 }
 0xc27   : > { %3624 = vrot.lane.b32.xlu1 %v3408_v22, %s9269_s21  ;;  %3622 = vrot.lane.b32.xlu0 %v12080_v23, %s9269_s21 }
 0xc29   : > { %3578 = vrot.lane.b32.xlu2 %v12092_v1, %s9268_s20 }
 0xc2f   : > { %3438 = vrot.lane.b32.xlu1 %v3409_v57, %s16175_s19  ;;  %8139 = vrot.lane.b32.xlu0 %v8138_v32, %s16142_s24 }
 0xc31   : > { %3626 = vrot.lane.b32.xlu2 %v12092_v1, %s9269_s21 }
 0xc37   : > { %3486 = vrot.lane.b32.xlu1 %v3409_v57, %s9266_s18  ;;  %8149 = vrot.lane.b32.xlu0 %v8138_v32, %s16139_s22 }
 0xc39   : > { %3440 = vrot.lane.b32.xlu2 %v12122_v41, %s16175_s19 }
 0xc3f   : > { %3534 = vrot.lane.b32.xlu1 %v3409_v57, %s9265_s17  ;;  %8159 = vrot.lane.b32.xlu0 %v8138_v32, %s16137_s23  ;;  %v4480_v32 = vld [vmem:[%s16085_s10 + $0x30] sm:$0xff] }
 0xc41   : > { %3488 = vrot.lane.b32.xlu2 %v12122_v41, %s9266_s18 }
 0xc43   : > { %v12130_v43 = vpop.permute.xlu2 %3428 }
 0xc47   : > { %3582 = vrot.lane.b32.xlu1 %v3409_v57, %s9268_s20  ;;  %3436 = vrot.lane.b32.xlu0 %v12133_v3, %s16175_s19 }
 0xc49   : > { %3536 = vrot.lane.b32.xlu2 %v12122_v41, %s9265_s17 }
 0xc4b   : > { %v12140_v46 = vpop.permute.xlu2 %3476 }
 0xc4f   : > { %3630 = vrot.lane.b32.xlu1 %v3409_v57, %s9269_s21  ;;  %3484 = vrot.lane.b32.xlu0 %v12133_v3, %s9266_s18 }
 0xc51   : > { %3584 = vrot.lane.b32.xlu2 %v12122_v41, %s9268_s20 }
 0xc53   : > { %v12151_v20 = vpop.permute.xlu2 %3524 }
 0xc54   : > { %16515 = vst [vmem:[#allocation16_spill] sm:$0xff] %v12151_v20 }
 0xc57   : > { %8164 = vrot.lane.b32.xlu1 %v8163_v45, %s16142_s24  ;;  %3532 = vrot.lane.b32.xlu0 %v12133_v3, %s9265_s17 }
 0xc59   : > { %3632 = vrot.lane.b32.xlu2 %v12122_v41, %s9269_s21 }
 0xc5b   : > { %v12164_v52 = vpop.permute.xlu2 %3572 }
 0xc5c   : > { %16516 = vst [vmem:[#allocation30_spill] sm:$0xff] %v12164_v52 }
 0xc5f   : > { %8169 = vrot.lane.b32.xlu1 %v8163_v45, %s16139_s22  ;;  %3580 = vrot.lane.b32.xlu0 %v12133_v3, %s9268_s20 }
 0xc61   : > { %3446 = vrot.lane.b32.xlu2 %v12160_v15, %s16175_s19 }
 0xc63   : > { %v12171_v56 = vpop.permute.xlu2 %3620 }
 0xc67   : > { %8174 = vrot.lane.b32.xlu1 %v8163_v45, %s16137_s23  ;;  %3628 = vrot.lane.b32.xlu0 %v12133_v3, %s9269_s21 }
 0xc69   : > { %3494 = vrot.lane.b32.xlu2 %v12160_v15, %s9266_s18 }
 0xc6b   : > { %v12182_v2 = vpop.permute.xlu2 %3434 }
 0xc6f   : > { %3444 = vrot.lane.b32.xlu1 %v3410_v27, %s16175_s19  ;;  %3442 = vrot.lane.b32.xlu0 %v12174_v0, %s16175_s19 }
 0xc71   : > { %3542 = vrot.lane.b32.xlu2 %v12160_v15, %s9265_s17 }
 0xc73   : > { %v12196_v60 = vpop.permute.xlu2 %3482 }
 0xc77   : > { %3492 = vrot.lane.b32.xlu1 %v3410_v27, %s9266_s18  ;;  %3490 = vrot.lane.b32.xlu0 %v12174_v0, %s9266_s18 }
 0xc79   : > { %3590 = vrot.lane.b32.xlu2 %v12160_v15, %s9268_s20  ;;  %v12189_v17 = vpop.permute.xlu0 %3430  ;;  %v12191_v13 = vpop.permute.xlu1 %3432 }
 0xc7b   : > { %v12214_v35 = vpop.permute.xlu2 %3530 }
 0xc7c   : > { %16519 = vst [vmem:[#allocation15_spill] sm:$0xff] %v12214_v35 }
 0xc7f   : > { %3540 = vrot.lane.b32.xlu1 %v3410_v27, %s9265_s17  ;;  %3538 = vrot.lane.b32.xlu0 %v12174_v0, %s9265_s17 }
 0xc81   : > { %3638 = vrot.lane.b32.xlu2 %v12160_v15, %s9269_s21  ;;  %v12200_v18 = vpop.permute.xlu0 %3478  ;;  %v12202_v55 = vpop.permute.xlu1 %3480 }
 0xc83   : > { %v12224_v26 = vpop.permute.xlu2 %3578 }
 0xc87   : > { %3588 = vrot.lane.b32.xlu1 %v3410_v27, %s9268_s20  ;;  %3586 = vrot.lane.b32.xlu0 %v12174_v0, %s9268_s20 }
 0xc89   : > { %8134 = vrot.lane.b32.xlu2 %v8133_v61, %s16142_s24  ;;  %v12210_v8 = vpop.permute.xlu0 %3526  ;;  %v12212_v29 = vpop.permute.xlu1 %3528 }
 0xc8a   : > { %16517 = vst [vmem:[#allocation21_spill] sm:$0xff] %v12210_v8 }
 0xc8b   : > { %16518 = vst [vmem:[#allocation19_spill] sm:$0xff] %v12212_v29  ;;  %v12235_v54 = vpop.permute.xlu2 %3626 }
 0xc8f   : > { %3636 = vrot.lane.b32.xlu1 %v3410_v27, %s9269_s21  ;;  %3634 = vrot.lane.b32.xlu0 %v12174_v0, %s9269_s21  ;;  %v3362_v27 = vld [vmem:[%s16083_s8 + $0x10] sm:$0xff] }
 0xc91   : > { %8144 = vrot.lane.b32.xlu2 %v8133_v61, %s16139_s22  ;;  %v12220_v49 = vpop.permute.xlu0 %3574  ;;  %v12222_v51 = vpop.permute.xlu1 %3576 }
 0xc92   : > { %16520 = vst [vmem:[#allocation31_spill] sm:$0xff] %v12222_v51 }
 0xc93   : > { %v12248_v33 = vpop.permute.xlu2 %3440 }
 0xc97   : > { %8184 = vrot.lane.b32.xlu0 %v8183_v5, %s16142_s24  ;;  %3450 = vrot.lane.b32.xlu1 %v3411_v25, %s16175_s19 }
 0xc99   : > { %8154 = vrot.lane.b32.xlu2 %v8133_v61, %s16137_s23  ;;  %v12231_v38 = vpop.permute.xlu0 %3622  ;;  %v12233_v50 = vpop.permute.xlu1 %3624  ;;  %v4483_v61 = vld [vmem:[%s16085_s10 + $0x48] sm:$0xff] }
 0xc9a   : > { %16521 = vst [vmem:[#allocation33_spill] sm:$0xff] %v12233_v50 }
 0xc9b   : > { %v12267_v7 = vpop.permute.xlu2 %3488 }
 0xc9f   : > { %8194 = vrot.lane.b32.xlu0 %v8183_v5, %s16139_s22  ;;  %3498 = vrot.lane.b32.xlu1 %v3411_v25, %s9266_s18 }
 0xca1   : > { %8179 = vrot.lane.b32.xlu2 %v8178_v16, %s16142_s24  ;;  %v12242_v9 = vpop.permute.xlu0 %8139  ;;  %v12244_v48 = vpop.permute.xlu1 %3438 }
 0xca3   : > { %v12279_v42 = vpop.permute.xlu2 %3536 }
 0xca4   : > { %16525 = vst [vmem:[#allocation23_spill] sm:$0xff] %v12279_v42 }
 0xca7   : > { %8204 = vrot.lane.b32.xlu0 %v8183_v5, %s16137_s23  ;;  %3546 = vrot.lane.b32.xlu1 %v3411_v25, %s9265_s17 }
 0xca9   : > { %8189 = vrot.lane.b32.xlu2 %v8178_v16, %s16139_s22  ;;  %v12251_v37 = vpop.permute.xlu0 %8149  ;;  %v12253_v12 = vpop.permute.xlu1 %3486 }
 0xcaa   : > { %16522 = vst [vmem:[#allocation32_spill] sm:$0xff] %v12251_v37 }
 0xcab   : > { %v12292_v22 = vpop.permute.xlu2 %3584 }
 0xcaf   : > { %3594 = vrot.lane.b32.xlu1 %v3411_v25, %s9268_s20  ;;  %3448 = vrot.lane.b32.xlu0 %v12257_v34, %s16175_s19 }
 0xcb1   : > { %8199 = vrot.lane.b32.xlu2 %v8178_v16, %s16137_s23  ;;  %v12263_v36 = vpop.permute.xlu0 %8159  ;;  %v12265_v14 = vpop.permute.xlu1 %3534 }
 0xcb2   : > { %16523 = vst [vmem:[#allocation29_spill] sm:$0xff] %v12265_v14 }
 0xcb3   : > { %v12310_v57 = vpop.permute.xlu2 %3632 }
 0xcb7   : > { %3642 = vrot.lane.b32.xlu1 %v3411_v25, %s9269_s21  ;;  %3496 = vrot.lane.b32.xlu0 %v12257_v34, %s9266_s18 }
 0xcb9   : > { %3805 = vperm.xlu2 %7771, %v3363_v21   ;;  %v12275_v6 = vpop.permute.xlu0 %3436  ;;  %v12277_v40 = vpop.permute.xlu1 %3582  ;;  %v4476_v21 = vld [vmem:[%s16085_s10 + $0x10] sm:$0xff] }
 0xcba   : > { %16524 = vst [vmem:[#allocation35_spill] sm:$0xff] %v12277_v40 }
 0xcbb   : > { %v12329_v16 = vpop.permute.xlu2 %3446 }
 0xcbf   : > { %8209 = vrot.lane.b32.xlu1 %v8208_v39, %s16142_s24  ;;  %3544 = vrot.lane.b32.xlu0 %v12257_v34, %s9265_s17  ;;  %s16586_s24 = smov 111  }
 0xcc1   : > { %4492 = vperm.xlu2 %7771, %v4474_v62   ;;  %v12288_v4 = vpop.permute.xlu0 %3484  ;;  %v12290_v28 = vpop.permute.xlu1 %3630  ;;  %v4486_v62 = vld [vmem:[%s16085_s10 + $0x60] sm:$0xff] }
 0xcc2   : > { %16526 = vst [vmem:[#allocation34_spill] sm:$0xff] %v12290_v28 }
 0xcc7   : > { %8214 = vrot.lane.b32.xlu1 %v8208_v39, %s16139_s22  ;;  %3592 = vrot.lane.b32.xlu0 %v12257_v34, %s9268_s20 }
 0xcc9   : > { %4507 = vperm.xlu2 %7771, %v4477_v63   ;;  %v12300_v47 = vpop.permute.xlu0 %3532  ;;  %v12302_v53 = vpop.permute.xlu1 %8164 }
 0xcca   : > { %16527 = vst [vmem:[#allocation24_spill] sm:$0xff] %v12300_v47 }
 0xccf   : > { %8219 = vrot.lane.b32.xlu1 %v8208_v39, %s16137_s23  ;;  %3640 = vrot.lane.b32.xlu0 %v12257_v34, %s9269_s21  ;;  %v4478_v39 = vld [vmem:[%s16085_s10 + $0x20] sm:$0xff] }
 0xcd1   : > { %4522 = vperm.xlu2 %7771, %v4480_v32   ;;  %v12312_v59 = vpop.permute.xlu0 %3580  ;;  %v12314_v45 = vpop.permute.xlu1 %8169 }
 0xcd2   : > { %16528 = vst [vmem:[#allocation28_spill] sm:$0xff] %v12314_v45 }
 0xcd7   : > { %3800 = vperm.xlu1 %7770, %v3362_v27   ;;  %4497 = vperm.xlu0 %7772, %v4475_v31   ;;  %v3495_v27 = vpop.permute.xlu2 %3494  ;;  %v4479_v31 = vld [vmem:[%s16085_s10 + $0x28] sm:$0xff] }
 0xcd9   : > { %4537 = vperm.xlu2 %7771, %v4483_v61   ;;  %v12325_v5 = vpop.permute.xlu0 %3628  ;;  %v12327_v25 = vpop.permute.xlu1 %8174  ;;  %v4481_v61 = vld [vmem:[%s16085_s10 + $0x38] sm:$0xff] }
 0xcdf   : > { %4502 = vperm.xlu1 %7770, %v4476_v21   ;;  %4512 = vperm.xlu0 %7772, %v4478_v39   ;;  %v12359_v50 = vpop.permute.xlu2 %3542 }
 0xce0   : > { %16529 = vst [vmem:[#allocation27_spill] sm:$0xff] %v12359_v50 }
 0xce1   : > { %4552 = vperm.xlu2 %7771, %v4486_v62   ;;  %v12340_v63 = vpop.permute.xlu0 %3442  ;;  %v12342_v32 = vpop.permute.xlu1 %3444  ;;  %v4482_v62 = vld [vmem:[%s16085_s10 + $0x40] sm:$0xff] }
 0xce7   : > { %4517 = vperm.xlu1 %7770, %v4479_v31   ;;  %4527 = vperm.xlu0 %7772, %v4481_v61   ;;  %v4487_v31 = vld [vmem:[%s16085_s10 + $0x68] sm:$0xff]  ;;  %v12371_v61 = vpop.permute.xlu2 %3590 }
 0xce9   : > { %4567 = vperm.xlu2 %7771, %v4489_v10   ;;  %v3491_v21 = vpop.permute.xlu0 %3490  ;;  %v3493_v39 = vpop.permute.xlu1 %3492  ;;  %v4485_v10 = vld [vmem:[%s16085_s10 + $0x58] sm:$0xff] }
 0xcef   : > { %4532 = vperm.xlu1 %7770, %v4482_v62   ;;  %4542 = vperm.xlu0 %7772, %v4484_v24   ;;  %v4488_v24 = vld [vmem:[%s16085_s10 + $0x70] sm:$0xff]  ;;  %v12384_v45 = vpop.permute.xlu2 %3638 }
 0xcf1   : > { %v12361_v28 = vpop.permute.xlu0 %3538  ;;  %v12363_v29 = vpop.permute.xlu1 %3540 }
 0xcf2   : > { %16530 = vst [vmem:[#allocation26_spill] sm:$0xff] %v12361_v28 }
 0xcf3   : > { %16531 = vst [vmem:[#allocation25_spill] sm:$0xff] %v12363_v29 }
 0xcf7   : > { %4547 = vperm.xlu1 %7770, %v4485_v10   ;;  %4557 = vperm.xlu0 %7772, %v4487_v31   ;;  %v12388_v31 = vpop.permute.xlu2 %8134 }
 0xcf9   : > { %v12373_v14 = vpop.permute.xlu0 %3586  ;;  %v12375_v62 = vpop.permute.xlu1 %3588 }
 0xcfa   : > { %16532 = vst [vmem:[#allocation13_spill] sm:$0xff] %v12375_v62 }
 0xcff   : > { %4562 = vperm.xlu1 %7770, %v4488_v24   ;;  %v12392_v47 = vpop.permute.xlu2 %8144 }
 0xd00   : > { %16535 = vst [vmem:[#allocation12_spill] sm:$0xff] %v12392_v47  ;;  %v3505_v47 = vsel %vm527_vm5, %v3491_v21, %v3493_v39 }
 0xd01   : > { %v12380_v37 = vpop.permute.xlu0 %3634  ;;  %v12382_v29 = vpop.permute.xlu1 %3636 }
 0xd02   : > { %16533 = vst [vmem:[#allocation22_spill] sm:$0xff] %v12382_v29 }
 0xd07   : > { %v12398_v24 = vpop.permute.xlu2 %8154 }
 0xd09   : > { %v12386_v20 = vpop.permute.xlu0 %8184  ;;  %v3451_v10 = vpop.permute.xlu1 %3450 }
 0xd0f   : > { %v8180_v62 = vpop.permute.xlu2 %8179 }
 0xd11   : > { %v12390_v8 = vpop.permute.xlu0 %8194  ;;  %v3499_v35 = vpop.permute.xlu1 %3498 }
 0xd12   : > { %16534 = vst [vmem:[#allocation17_spill] sm:$0xff] %v12390_v8 }
 0xd19   : > { %v12394_v51 = vpop.permute.xlu0 %8204  ;;  %v12396_v42 = vpop.permute.xlu1 %3546 }
 0xd1a   : > { %16536 = vst [vmem:[#allocation18_spill] sm:$0xff] %v12396_v42  ;;  %v3504_v42 = vsel %vm527_vm5, %v12267_v7, %v3491_v21  ;;  %v3500_v7 = vsel %vm527_vm5, %v12140_v46, %v12200_v18  ;;  %v3457_v46 = vsel %vm514_vm9, %v12340_v63, %v12342_v32  ;;  %v8182_v32 = vunpack.i.h.bf16 %v8180_v62 }
 0xd1b   : > { %v8167_v21 = vunpack.i.h.bf16 %v12302_v53 }
 0xd21   : > { %v3449_v28 = vpop.permute.xlu0 %3448  ;;  %v12400_v29 = vpop.permute.xlu1 %3594 }
 0xd29   : > { %v3497_v40 = vpop.permute.xlu0 %3496  ;;  %v12402_v50 = vpop.permute.xlu1 %3642 }
 0xd2a   : > { %v3506_v52 = vsel %vm527_vm5, %v3495_v27, %v3497_v40  ;;  %v3507_v8 = vsel %vm527_vm5, %v3497_v40, %v3499_v35  ;;  %v3502_v35 = vsel %vm527_vm5, %v12196_v60, %v12288_v4  ;;  %v3458_v40 = vsel %vm514_vm9, %v12329_v16, %v3449_v28 }
 0xd2b   : > { %7519 = vmatpush.msk.msra.mxu2 %vm9443_vm11, %v3506_v52  ;;  %7547 = vmatpush.msk.msrb.mxu1 %vm9467_vm12, %v3507_v8  ;;  %v3503_v52 = vsel %vm527_vm5, %v12288_v4, %v12253_v12  ;;  %v3501_v8 = vsel %vm527_vm5, %v12200_v18, %v12202_v55  ;;  %v12449_v18 = vpop.permute.xlu2 %8189  ;;  %v3456_v55 = vsel %vm514_vm9, %v12248_v33, %v12340_v63  ;;  %v8187_v27 = vunpack.i.h.bf16 %v12386_v20 }
 0xd2c   : > { %v3455_v16 = vsel %vm514_vm9, %v12275_v6, %v12244_v48  ;;  %v3453_v33 = vsel %vm514_vm9, %v12189_v17, %v12191_v13  ;;  %v3452_v63 = vsel %vm514_vm9, %v12130_v43, %v12189_v17  ;;  %v8186_v48 = vunpack.i.l.bf16 %v12386_v20 }
 0xd2d   : > { %7520 = vmatpush.msk.msra.mxu2 %vm9443_vm11, %v3504_v42  ;;  %7548 = vmatpush.msk.msrb.mxu1 %vm9467_vm12, %v3505_v47  ;;  %v3459_v42 = vsel %vm514_vm9, %v3449_v28, %v3451_v10  ;;  %v3454_v47 = vsel %vm514_vm9, %v12182_v2, %v12275_v6  ;;  %v8181_v2 = vunpack.i.l.bf16 %v8180_v62  ;;  %v8166_v43 = vunpack.i.l.bf16 %v12302_v53 }
 0xd2e   : > { %v8142_v20 = vunpack.i.h.bf16 %v12242_v9  ;;  %v8137_v62 = vunpack.i.h.bf16 %v12388_v31  ;;  %v8136_v10 = vunpack.i.l.bf16 %v12388_v31  ;;  %v8141_v53 = vunpack.i.l.bf16 %v12242_v9 }
 0xd2f   : > { %7521 = vmatpush.msk.msra.mxu2 %vm9443_vm11, %v3502_v35  ;;  %7549 = vmatpush.msk.msrb.mxu1 %vm9467_vm12, %v3503_v52  ;;  %v3696_v35 = vsel %vm582_vm13, %v8181_v2, %v8182_v32  ;;  %v3697_v52 = vsel %vm582_vm13, %v8182_v32, %v8186_v48  ;;  %v8207_v9 = vunpack.i.h.bf16 %v12394_v51  ;;  %v3644_v2 = vsel %vm566_vm1, %v12171_v56, %v12231_v38 }
 0xd30   : > { %v3600_v48 = vsel %vm553_vm6, %v12292_v22, %v12373_v14 }
 0xd31   : > { %7522 = vmatpush.msk.msra.mxu2 %vm9443_vm11, %v3500_v7  ;;  %v12435_v60 = vpop.permute.xlu0 %3544  ;;  %7550 = vmatpush.msk.msrb.mxu1 %vm9467_vm12, %v3501_v8  ;;  %v8210_v12 = vpop.permute.xlu1 %8209  ;;  %v3694_v7 = vsel %vm582_vm13, %v8142_v20, %v8166_v43  ;;  %v16539_v20 = vld [vmem:[#allocation27_spill] sm:$0xff] }
 0xd32   : > { %v8212_v4 = vunpack.i.h.bf16 %v8210_v12  ;;  %v8211_v28 = vunpack.i.l.bf16 %v8210_v12  ;;  %v3695_v12 = vsel %vm582_vm13, %v8166_v43, %v8167_v21  ;;  %v16537_v43 = vld [vmem:[#allocation30_spill] sm:$0xff] }
 0xd33   : > { %7523 = vmatpush.msk.msra.mxu2 %vm9427_vm7, %v3458_v40  ;;  %7551 = vmatpush.msk.msrb.mxu1 %vm9415_vm2, %v3459_v42  ;;  %v8200_v8 = vpop.permute.xlu2 %8199  ;;  %v3692_v40 = vsel %vm582_vm13, %v8136_v10, %v8137_v62  ;;  %v3693_v42 = vsel %vm582_vm13, %v8137_v62, %v8141_v53  ;;  %v3554_v62 = vsel %vm540_vm4, %v16539_v20, %v12435_v60  ;;  %v3354_v53 = vld [vmem:[%s16082_s7 + $0x30] sm:$0xff] }
 0xd34   : > { %v3698_v17 = vsel %vm582_vm13, %v8187_v27, %v8211_v28  ;;  %v3699_v39 = vsel %vm582_vm13, %v8211_v28, %v8212_v4  ;;  %v8202_v31 = vunpack.i.h.bf16 %v8200_v8  ;;  %v8201_v4 = vunpack.i.l.bf16 %v8200_v8  ;;  %v16543_v8 = vld [vmem:[#allocation31_spill] sm:$0xff] }
 0xd35   : > { %7524 = vmatpush.msk.msra.mxu2 %vm9427_vm7, %v3456_v55  ;;  %7552 = vmatpush.msk.msrb.mxu1 %vm9415_vm2, %v3457_v46 }
 0xd37   : > { %7525 = vmatpush.msk.msra.mxu2 %vm9427_vm7, %v3454_v47  ;;  %7553 = vmatpush.msk.msrb.mxu1 %vm9415_vm2, %v3455_v16  ;;  %v8176_v16 = vunpack.i.l.bf16 %v12327_v25 }
 0xd39   : > { %7526 = vmatpush.msk.msra.mxu2 %vm9427_vm7, %v3452_v63  ;;  %v12478_v13 = vpop.permute.xlu0 %3592  ;;  %7554 = vmatpush.msk.msrb.mxu1 %vm9415_vm2, %v3453_v33  ;;  %v12482_v6 = vpop.permute.xlu1 %8214  ;;  %v8157_v63 = vunpack.i.h.bf16 %v12398_v24 }
 0xd3a   : > { %v3603_v22 = vsel %vm553_vm6, %v12478_v13, %v12400_v29  ;;  %v12607_v29 = vld [vmem:[%s16082_s7 + $0x28] sm:$0xff] }
 0xd3b   : > { %3828 = vmatpush.msra.mxu2 %v3698_v17  ;;  %3915 = vmatpush.msrb.mxu1 %v3699_v39  ;;  %v3596_v17 = vsel %vm553_vm6, %v16537_v43, %v12220_v49 }
 0xd3d   : > { %3829 = vmatpush.msra.mxu2 %v3696_v35  ;;  %3916 = vmatpush.msrb.mxu1 %v3697_v52  ;;  %v16542_v35 = vld [vmem:[#allocation23_spill] sm:$0xff] }
 0xd3f   : > { %3830 = vmatpush.msra.mxu2 %v3694_v7  ;;  %3917 = vmatpush.msrb.mxu1 %v3695_v12  ;;  %v8216_v7 = vunpack.i.l.bf16 %v12482_v6  ;;  %v16544_v12 = vld [vmem:[#allocation24_spill] sm:$0xff] }
 0xd41   : > { %v12498_v46 = vpop.permute.xlu0 %3640  ;;  %v8220_v55 = vpop.permute.xlu1 %8219  ;;  %3831 = vmatpush.msra.mxu2 %v3692_v40  ;;  %3918 = vmatpush.msrb.mxu1 %v3693_v42  ;;  %v16545_v40 = vld [vmem:[#allocation15_spill] sm:$0xff] }
 0xd42   : > { %v3650_v28 = vsel %vm566_vm1, %v12384_v45, %v12498_v46  ;;  %v8221_v47 = vunpack.i.l.bf16 %v8220_v55  ;;  %v8162_v45 = vunpack.i.h.bf16 %v12263_v36  ;;  %v8222_v32 = vunpack.i.h.bf16 %v8220_v55  ;;  %v16547_v55 = vld [vmem:[#allocation16_spill] sm:$0xff] }
 0xd43   : > { %7527 = vmatpush.msk.msra.mxu2 %vm9443_vm11, %v12160_v15  ;;  %7539 = vmatpush.msk.msra.mxu0 %vm9427_vm7, %v3650_v28  ;;  %v3648_v15 = vsel %vm566_vm1, %v12310_v57, %v12380_v37  ;;  %v3646_v57 = vsel %vm566_vm1, %v12235_v54, %v12325_v5  ;;  %v3602_v54 = vsel %vm553_vm6, %v12371_v61, %v12478_v13  ;;  %v3351_v61 = vld [vmem:[%s16082_s7 + $0x18] sm:$0xff]  ;;  %v16540_v13 = vld [vmem:[#allocation35_spill] sm:$0xff]  ;;  %v16548_v28 = vld [vmem:[#allocation17_spill] sm:$0xff] }
 0xd44   : > { %7555 = vmatpush.msk.msrb.mxu1 %vm9467_vm12, %v12257_v34  ;;  %v3778_v33 = vsel %vm616_vm8, %v8207_v9, %v8221_v47  ;;  %v3776_v34 = vsel %vm616_vm8, %v8201_v4, %v8202_v31  ;;  %v3599_v10 = vsel %vm553_vm6, %v12312_v59, %v16540_v13  ;;  %v3550_v42 = vsel %vm540_vm4, %v16545_v40, %v16544_v12  ;;  %v16558_v13 = vld [vmem:[#allocation33_spill] sm:$0xff] }
 0xd45   : > { %7528 = vmatpush.msk.msra.mxu2 %vm9443_vm11, %v12122_v41  ;;  %3849 = vmatpush.msrb.mxu3 %v3778_v33  ;;  %v8156_v41 = vunpack.i.l.bf16 %v12398_v24  ;;  %v3348_v24 = vld [vmem:[%s16082_s7] sm:$0xff]  ;;  %v8192_v9 = vunpack.i.h.bf16 %v12449_v18 }
 0xd46   : > { %7540 = vmatpush.msk.msra.mxu0 %vm9427_vm7, %v3648_v15  ;;  %7556 = vmatpush.msk.msrb.mxu1 %vm9467_vm12, %v12174_v0  ;;  %v3774_v0 = vsel %vm616_vm8, %v8162_v45, %v8176_v16  ;;  %v16550_v15 = vld [vmem:[#allocation28_spill] sm:$0xff] }
 0xd47   : > { %7529 = vmatpush.msk.msra.mxu2 %vm9443_vm11, %v12092_v1  ;;  %3850 = vmatpush.msrb.mxu3 %v3776_v34  ;;  %v8206_v1 = vunpack.i.l.bf16 %v12394_v51  ;;  %v3779_v51 = vsel %vm616_vm8, %v8221_v47, %v8222_v32  ;;  %v3772_v56 = vsel %vm616_vm8, %v8156_v41, %v8157_v63  ;;  %v8197_v47 = vunpack.i.h.bf16 %v16548_v28  ;;  %v16551_v34 = vld [vmem:[#allocation25_spill] sm:$0xff]  ;;  %v16552_v32 = vld [vmem:[#allocation32_spill] sm:$0xff] }
 0xd48   : > { %7541 = vmatpush.msk.msra.mxu0 %vm9427_vm7, %v3646_v57  ;;  %7557 = vmatpush.msk.msrb.mxu1 %vm9467_vm12, %v12133_v3  ;;  %v8177_v3 = vunpack.i.h.bf16 %v12327_v25  ;;  %v8161_v25 = vunpack.i.l.bf16 %v12263_v36  ;;  %v3598_v36 = vsel %vm553_vm6, %v12224_v26, %v12312_v59  ;;  %v16538_v26 = vld [vmem:[#allocation13_spill] sm:$0xff]  ;;  %v3597_v59 = vsel %vm553_vm6, %v12220_v49, %v16543_v8 }
 0xd49   : > { %7530 = vmatpush.msk.msra.mxu2 %vm9443_vm11, %v12067_v19  ;;  %3851 = vmatpush.msrb.mxu3 %v3774_v0  ;;  %v3777_v19 = vsel %vm616_vm8, %v8202_v31, %v8206_v1  ;;  %v3601_v39 = vsel %vm553_vm6, %v12373_v14, %v16538_v26  ;;  %v16541_v14 = vld [vmem:[#allocation26_spill] sm:$0xff]  ;;  %v16546_v31 = vld [vmem:[#allocation21_spill] sm:$0xff]  ;;  %v8191_v49 = vunpack.i.l.bf16 %v12449_v18  ;;  %v8171_v45 = vunpack.i.l.bf16 %v16550_v15 }
 0xd4a   : > { %7542 = vmatpush.msk.msra.mxu0 %vm9427_vm7, %v3644_v2  ;;  %7558 = vmatpush.msk.msrb.mxu1 %vm9467_vm12, %v12080_v23  ;;  %v12566_v23 = vld [vmem:[%s16082_s7 + $0x10] sm:$0xff]  ;;  %v3775_v27 = vsel %vm616_vm8, %v8176_v16, %v8177_v3  ;;  %v3773_v21 = vsel %vm616_vm8, %v8157_v63, %v8161_v25  ;;  %v3552_v52 = vsel %vm540_vm4, %v16542_v35, %v16541_v14  ;;  %v16549_v16 = vld [vmem:[#allocation18_spill] sm:$0xff]  ;;  %v3356_v41 = vld [vmem:[%s16082_s7 + $0x40] sm:$0xff]  ;;  %v8217_v3 = vunpack.i.h.bf16 %v12482_v6 }
 0xd4b   : > { %3836 = vmatmul.f32.vlgmr.msra.gmra.mxu2 %v3348_v24  ;;  %3923 = vmatmul.f32.vlgmr.msrb.gmra.mxu1 %v3348_v24  ;;  %v3548_v4 = vsel %vm540_vm4, %v16547_v55, %v16546_v31  ;;  %v3555_v33 = vsel %vm540_vm4, %v12435_v60, %v16549_v16  ;;  %v3553_v18 = vsel %vm540_vm4, %v16541_v14, %v16551_v34  ;;  %v8152_v60 = vunpack.i.h.bf16 %v16552_v32  ;;  %v16553_v57 = vld [vmem:[#allocation29_spill] sm:$0xff]  ;;  %v16554_v24 = vld [vmem:[#allocation12_spill] sm:$0xff]  ;;  %v16556_v26 = vld [vmem:[#allocation22_spill] sm:$0xff] }
 0xd4c   : > { %3936 = vmatpush.msrb.mxu2 %v3779_v51  ;;  %3852 = vmatpush.msrb.mxu3 %v3772_v56  ;;  %v3738_v63 = vsel %vm599_vm10, %v8197_v47, %v8216_v7  ;;  %v3551_v0 = vsel %vm540_vm4, %v16544_v12, %v16553_v57  ;;  %v8147_v1 = vunpack.i.h.bf16 %v16554_v24  ;;  %v8146_v2 = vunpack.i.l.bf16 %v16554_v24  ;;  %v3357_v56 = vld [vmem:[%s16082_s7 + $0x48] sm:$0xff]  ;;  %v3358_v14 = vld [vmem:[%s16082_s7 + $0x50] sm:$0xff]  ;;  %v3806_v57 = vpop.permute.xlu2 %3805 }
 0xd4d   : > { %7543 = vmatmul.msk.f32.vlgmr.msra.gmra.mxu0 %vm1187_vm15, %v12566_v23  ;;  %v3736_v51 = vsel %vm599_vm10, %v8191_v49, %v8192_v9  ;;  %v8196_v25 = vunpack.i.l.bf16 %v16548_v28  ;;  %v3734_v6 = vsel %vm599_vm10, %v8152_v60, %v8171_v45  ;;  %v16562_v47 = vld [vmem:[#allocation7_spill] sm:$0xff] }
 0xd4e   : > { %3937 = vmatpush.msrb.mxu2 %v3777_v19  ;;  %7531 = vmatpush.msk.msrb.mxu3 %vm9443_vm11, %v3602_v54  ;;  %v16555_v19 = vld [vmem:[#allocation19_spill] sm:$0xff] }
 0xd4f   : > { %v3549_v54 = vsel %vm540_vm4, %v16546_v31, %v16555_v19  ;;  %v3737_v43 = vsel %vm599_vm10, %v8192_v9, %v8196_v25  ;;  %v16560_v31 = vld [vmem:[#allocation5_spill] sm:$0xff]  ;;  %v16564_v19 = vld [vmem:[#allocation11_spill] sm:$0xff] }
 0xd50   : > { %3938 = vmatpush.msrb.mxu2 %v3775_v27  ;;  %7532 = vmatpush.msk.msrb.mxu3 %vm9443_vm11, %v3600_v48  ;;  %v3349_v27 = vld [vmem:[%s16082_s7 + $0x8] sm:$0xff]  ;;  %v8172_v48 = vunpack.i.h.bf16 %v16550_v15 }
 0xd52   : > { %3939 = vmatpush.msrb.mxu2 %v3773_v21  ;;  %7533 = vmatpush.msk.msrb.mxu3 %vm9443_vm11, %v3598_v36  ;;  %v3732_v21 = vsel %vm599_vm10, %v8146_v2, %v8147_v1  ;;  %v3359_v36 = vld [vmem:[%s16082_s7 + $0x58] sm:$0xff]  ;;  %v3735_v20 = vsel %vm599_vm10, %v8171_v45, %v8172_v48 }
 0xd53   : > { %3839 = vmatmul.f32.gmra.mxu2 %v3351_v61  ;;  %3926 = vmatmul.f32.gmra.mxu1 %v3351_v61  ;;  %v3739_v61 = vsel %vm599_vm10, %v8216_v7, %v8217_v3 }
 0xd54   : > { %7559 = vmatpush.msk.msrb.mxu2 %vm9467_vm12, %v3603_v22  ;;  %7534 = vmatpush.msk.msrb.mxu3 %vm9443_vm11, %v3596_v17  ;;  %v3651_v22 = vsel %vm566_vm1, %v12498_v46, %v12402_v50  ;;  %v8151_v17 = vunpack.i.l.bf16 %v16552_v32  ;;  %v16557_v46 = vld [vmem:[#allocation34_spill] sm:$0xff]  ;;  %v16563_v32 = vld [vmem:[#allocation9_spill] sm:$0xff] }
 0xd55   : > { %7544 = vmatmul.msk.f32.gmra.mxu0 %vm1187_vm15, %v12607_v29 }
 0xd56   : > { %7560 = vmatpush.msk.msrb.mxu2 %vm9467_vm12, %v3601_v39  ;;  %7535 = vmatpush.msk.msrb.mxu3 %vm9427_vm7, %v3554_v62  ;;  %v3649_v39 = vsel %vm566_vm1, %v12380_v37, %v16556_v26  ;;  %v3733_v50 = vsel %vm599_vm10, %v8147_v1, %v8151_v17  ;;  %v3647_v62 = vsel %vm566_vm1, %v12325_v5, %v16557_v46  ;;  %v3352_v37 = vld [vmem:[%s16082_s7 + $0x20] sm:$0xff]  ;;  %v3355_v5 = vld [vmem:[%s16082_s7 + $0x38] sm:$0xff] }
 0xd58   : > { %7561 = vmatpush.msk.msrb.mxu2 %vm9467_vm12, %v3599_v10  ;;  %7536 = vmatpush.msk.msrb.mxu3 %vm9427_vm7, %v3552_v52  ;;  %v3645_v10 = vsel %vm566_vm1, %v12231_v38, %v16558_v13 }
 0xd5a   : > { %7562 = vmatpush.msk.msrb.mxu2 %vm9467_vm12, %v3597_v59  ;;  %7537 = vmatpush.msk.msrb.mxu3 %vm9427_vm7, %v3550_v42 }
 0xd5b   : > { %3842 = vmatmul.f32.gmra.mxu2 %v3354_v53  ;;  %3929 = vmatmul.f32.gmra.mxu1 %v3354_v53  ;;  %v16559_v53 = vld [vmem:[#allocation20_spill] sm:$0xff] }
 0xd5c   : > { %7563 = vmatpush.msk.msrb.mxu2 %vm9415_vm2, %v3555_v33  ;;  %7538 = vmatpush.msk.msrb.mxu3 %vm9427_vm7, %v3548_v4  ;;  %v3801_v33 = vpop.permute.xlu1 %3800 }
 0xd5d   : > { %7545 = vmatmul.msk.f32.gmra.mxu0 %vm1187_vm15, %v3356_v41 }
 0xd5e   : > { %7564 = vmatpush.msk.msrb.mxu2 %vm9415_vm2, %v3553_v18  ;;  %3861 = vmatpush.msrb.mxu3 %v3738_v63 }
 0xd60   : > { %7565 = vmatpush.msk.msrb.mxu2 %vm9415_vm2, %v3551_v0  ;;  %3862 = vmatpush.msrb.mxu3 %v3736_v51 }
 0xd62   : > { %7566 = vmatpush.msk.msrb.mxu2 %vm9415_vm2, %v3549_v54  ;;  %3863 = vmatpush.msrb.mxu3 %v3734_v6 }
 0xd63   : > { %3845 = vmatmul.f32.gmra.mxu2 %v3357_v56  ;;  %3932 = vmatmul.f32.gmra.mxu1 %v3357_v56 }
 0xd64   : > { %3948 = vmatpush.msrb.mxu2 %v3739_v61  ;;  %3864 = vmatpush.msrb.mxu3 %v3732_v21  ;;  %v16565_v21 = vld [vmem:[#allocation4_spill] sm:$0xff] }
 0xd65   : > { %3865 = vmatmul.f32.vlgmr.msrb.gmra.mxu3 %v3349_v27  ;;  %7546 = vmatmul.msk.f32.gmra.mxu0 %vm1187_vm15, %v3359_v36 }
 0xd66   : > { %3949 = vmatpush.msrb.mxu2 %v3737_v43  ;;  %7567 = vmatpush.msk.msra.mxu3 %vm9415_vm2, %v3651_v22 }
 0xd68   : > { %3950 = vmatpush.msrb.mxu2 %v3735_v20  ;;  %7568 = vmatpush.msk.msra.mxu3 %vm9415_vm2, %v3649_v39 }
 0xd6a   : > { %3951 = vmatpush.msrb.mxu2 %v3733_v50  ;;  %7569 = vmatpush.msk.msra.mxu3 %vm9415_vm2, %v3647_v62  ;;  %v16566_v50 = vld [vmem:[#allocation6_spill] sm:$0xff] }
 0xd6b   : > { %3952 = vmatmul.f32.vlgmr.msrb.gmra.mxu2 %v3349_v27 }
 0xd6c   : > { %7570 = vmatpush.msk.msra.mxu3 %vm9415_vm2, %v3645_v10 }
 0xd6d   : > { %3868 = vmatmul.f32.gmra.mxu3 %v3352_v37 }
 0xd73   : > { %3955 = vmatmul.f32.gmra.mxu2 %v3352_v37 }
 0xd75   : > { %3871 = vmatmul.f32.gmra.mxu3 %v3355_v5 }
 0xd7b   : > { %3958 = vmatmul.f32.gmra.mxu2 %v3355_v5 }
 0xd7d   : > { %3874 = vmatmul.f32.gmra.mxu3 %v3358_v14 }
 0xd83   : > { %3961 = vmatmul.f32.gmra.mxu2 %v3358_v14  ;;  %v16567_v14 = vld [vmem:[#allocation8_spill] sm:$0xff] }
 0xd85   : > { %7571 = vmatmul.msk.f32.vlgmr.msra.gmra.mxu3 %vm1187_vm15, %v12566_v23  ;;  %v16561_v23 = vld [vmem:[#allocation14_spill] sm:$0xff] }
 0xd8d   : > { %7572 = vmatmul.msk.f32.gmra.mxu3 %vm1187_vm15, %v12607_v29 }
 0xd95   : > { %7573 = vmatmul.msk.f32.gmra.mxu3 %vm1187_vm15, %v3356_v41 }
 0xd9d   : > { %7574 = vmatmul.msk.f32.gmra.mxu3 %vm1187_vm15, %v3359_v36 }
 0xdc8   : > { %v3924_v41 = vpop.f32.mrf.mxu1 }
 0xdc9   : > { %v3925_v56 = vadd.f32 %v3924_v41, %v16559_v53 }
 0xdca   : > { %v3895_v52 = vpop.f32.mrf.mxu0 }
 0xdce   : > { %v3837_v38 = vpop.f32.mrf.mxu2 }
 0xdcf   : > { %v3838_v8 = vadd.f32 %v3837_v38, %v16559_v53 }
 0xdd0   : > { %v3927_v25 = vpop.f32.mrf.mxu1 }
 0xdd1   : > { %v3928_v22 = vadd.f32 %v3927_v25, %v16561_v23 }
 0xdd2   : > { %v3898_v42 = vpop.f32.mrf.mxu0 }
 0xdd6   : > { %v3840_v35 = vpop.f32.mrf.mxu2 }
 0xdd7   : > { %v3841_v4 = vadd.f32 %v3840_v35, %v16561_v23  ;;  %v12760_v23 = vpop.permute.xlu2 %4492 }
 0xdd8   : > { %v3930_v17 = vpop.f32.mrf.mxu1  ;;  %16573 = vst [vmem:[#allocation26_spill] sm:$0xff] %v12760_v23 }
 0xdd9   : > { %v3931_v62 = vadd.f32 %v3930_v17, %v3801_v33 }
 0xdda   : > { %v3901_v15 = vpop.f32.mrf.mxu0 }
 0xdde   : > { %v3843_v12 = vpop.f32.mrf.mxu2 }
 0xddf   : > { %v3844_v45 = vadd.f32 %v3843_v12, %v3801_v33 }
 0xde0   : > { %v3933_v5 = vpop.f32.mrf.mxu1 }
 0xde2   : > { %v3904_v2 = vpop.f32.mrf.mxu0 }
 0xde6   : > { %v3846_v28 = vpop.f32.mrf.mxu2 }
 0xde7   : > { %v3847_v24 = vadd.f32 %v3846_v28, %v3806_v57 }
 0xde8   : > { %v3866_v59 = vpop.f32.mrf.mxu3 }
 0xde9   : > { %v3867_v7 = vadd.f32 %v3866_v59, %v3838_v8 }
 0xdeb   : > { %v3896_v40 = vadd.f32 %v3895_v52, %v3867_v7  ;;  %v3934_v52 = vadd.f32 %v3933_v5, %v3806_v57  ;;  %v16568_v7 = vld [vmem:[#allocation10_spill] sm:$0xff] }
 0xded   : > { %v3994_v55 = vadd.f32 %v3896_v40, %v16560_v31  ;;  %v12752_v40 = vpop.permute.xlu0 %4497 }
 0xdee   : > { %v3953_v0 = vpop.f32.mrf.mxu2  ;;  %16569 = vst [vmem:[#allocation30_spill] sm:$0xff] %v12752_v40 }
 0xdef   : > { %4010 = vrot.lane.b32.xlu0 %v3994_v55, %s9264_s16  ;;  %v3954_v6 = vadd.f32 %v3953_v0, %v3925_v56  ;;  %v12758_v55 = vpop.permute.xlu1 %4502 }
 0xdf0   : > { %v3869_v29 = vpop.f32.mrf.mxu3  ;;  %16572 = vst [vmem:[#allocation35_spill] sm:$0xff] %v12758_v55 }
 0xdf1   : > { %v3870_v9 = vadd.f32 %v3869_v29, %v3841_v4 }
 0xdf3   : > { %v3899_v49 = vadd.f32 %v3898_v42, %v3870_v9  ;;  %v12766_v9 = vpop.permute.xlu2 %4507 }
 0xdf4   : > { %16576 = vst [vmem:[#allocation24_spill] sm:$0xff] %v12766_v9 }
 0xdf5   : > { %v3996_v16 = vadd.f32 %v3899_v49, %v16562_v47  ;;  %v12754_v42 = vpop.permute.xlu0 %4512 }
 0xdf6   : > { %v3956_v27 = vpop.f32.mrf.mxu2  ;;  %16570 = vst [vmem:[#allocation13_spill] sm:$0xff] %v12754_v42 }
 0xdf7   : > { %4014 = vrot.lane.b32.xlu2 %v3996_v16, %s9264_s16  ;;  %v3957_v43 = vadd.f32 %v3956_v27, %v3928_v22  ;;  %v12764_v29 = vpop.permute.xlu1 %4517 }
 0xdf8   : > { %v3872_v34 = vpop.f32.mrf.mxu3  ;;  %16575 = vst [vmem:[#allocation31_spill] sm:$0xff] %v12764_v29 }
 0xdf9   : > { %v3873_v18 = vadd.f32 %v3872_v34, %v3844_v45 }
 0xdfb   : > { %v3902_v63 = vadd.f32 %v3901_v15, %v3873_v18  ;;  %v12772_v47 = vpop.permute.xlu2 %4522 }
 0xdfc   : > { %16579 = vst [vmem:[#allocation16_spill] sm:$0xff] %v12772_v47 }
 0xdfd   : > { %v3998_v60 = vadd.f32 %v3902_v63, %v16563_v32  ;;  %v12756_v31 = vpop.permute.xlu0 %4527 }
 0xdfe   : > { %v3959_v20 = vpop.f32.mrf.mxu2  ;;  %16571 = vst [vmem:[#allocation27_spill] sm:$0xff] %v12756_v31 }
 0xdff   : > { %4018 = vrot.lane.b32.xlu1 %v3998_v60, %s9264_s16  ;;  %v3960_v37 = vadd.f32 %v3959_v20, %v3931_v62  ;;  %v12770_v28 = vpop.permute.xlu1 %4532 }
 0xe00   : > { %v3875_v1 = vpop.f32.mrf.mxu3  ;;  %16578 = vst [vmem:[#allocation21_spill] sm:$0xff] %v12770_v28 }
 0xe01   : > { %v3876_v3 = vadd.f32 %v3875_v1, %v3847_v24 }
 0xe03   : > { %v3905_v51 = vadd.f32 %v3904_v2, %v3876_v3  ;;  %v12781_v45 = vpop.permute.xlu2 %4537 }
 0xe04   : > { %16581 = vst [vmem:[#allocation18_spill] sm:$0xff] %v12781_v45 }
 0xe05   : > { %v4000_v54 = vadd.f32 %v3905_v51, %v16564_v19  ;;  %v12762_v4 = vpop.permute.xlu0 %4542 }
 0xe06   : > { %v3962_v35 = vpop.f32.mrf.mxu2  ;;  %16574 = vst [vmem:[#allocation23_spill] sm:$0xff] %v12762_v4 }
 0xe07   : > { %4022 = vrot.lane.b32.xlu0 %v4000_v54, %s9264_s16  ;;  %v3963_v53 = vadd.f32 %v3962_v35, %v3934_v52  ;;  %v12779_v15 = vpop.permute.xlu1 %4547 }
 0xe08   : > { %v3982_v48 = vpop.f32.mrf.mxu3  ;;  %16580 = vst [vmem:[#allocation17_spill] sm:$0xff] %v12779_v15 }
 0xe09   : > { %v3983_v61 = vadd.f32 %v3982_v48, %v3954_v6 }
 0xe0b   : > { %v3995_v36 = vadd.f32 %v3983_v61, %v16565_v21  ;;  %v12789_v18 = vpop.permute.xlu2 %4552 }
 0xe0c   : > { %16583 = vst [vmem:[#allocation25_spill] sm:$0xff] %v12789_v18 }
 0xe0d   : > { %4012 = vrot.lane.b32.xlu1 %v3995_v36, %s9264_s16  ;;  %v12768_v49 = vpop.permute.xlu0 %4557 }
 0xe0e   : > { %16577 = vst [vmem:[#allocation15_spill] sm:$0xff] %v12768_v49 }
 0xe0f   : > { %v12785_v34 = vpop.permute.xlu1 %4562 }
 0xe10   : > { %v3985_v26 = vpop.f32.mrf.mxu3  ;;  %16582 = vst [vmem:[#allocation28_spill] sm:$0xff] %v12785_v34 }
 0xe11   : > { %v3986_v39 = vadd.f32 %v3985_v26, %v3957_v43 }
 0xe13   : > { %v3997_v46 = vadd.f32 %v3986_v39, %v16566_v50  ;;  %v12793_v41 = vpop.permute.xlu2 %4567 }
 0xe14   : > { %16584 = vst [vmem:[#allocation32_spill] sm:$0xff] %v12793_v41 }
 0xe15   : > { %4016 = vrot.lane.b32.xlu0 %v3997_v46, %s9264_s16 }
 0xe18   : > { %v3988_v13 = vpop.f32.mrf.mxu3 }
 0xe19   : > { %v3989_v10 = vadd.f32 %v3988_v13, %v3960_v37 }
 0xe1b   : > { %v3999_v38 = vadd.f32 %v3989_v10, %v16567_v14 }
 0xe1d   : > { %4020 = vrot.lane.b32.xlu2 %v3999_v38, %s9264_s16 }
 0xe20   : > { %v3991_v8 = vpop.f32.mrf.mxu3 }
 0xe21   : > { %v3992_v59 = vadd.f32 %v3991_v8, %v3963_v53 }
 0xe23   : > { %v4001_v12 = vadd.f32 %v3992_v59, %v16568_v7 }
 0xe25   : > { %4024 = vrot.lane.b32.xlu1 %v4001_v12, %s9264_s16 }
 0xe51   : > { %v4015_v0 = vpop.permute.xlu2 %4014 }
 0xe52   : > { %v12808_v24 = vsel %vm489_vm0, 0.0, %v4015_v0 }
 0xe61   : > { %v4011_v16 = vpop.permute.xlu0 %4010 }
 0xe62   : > { %v12775_v33 = vsel %vm489_vm0, 0.0, %v4011_v16 }
 0xe63   : > { %4066 = vrot.lane.b32.xlu2 %v12775_v33, %s16175_s19 }
 0xe6b   : > { %4114 = vrot.lane.b32.xlu2 %v12775_v33, %s9266_s18 }
 0xe71   : > { %v4019_v63 = vpop.permute.xlu1 %4018 }
 0xe72   : > { %v12838_v56 = vsel %vm489_vm0, 0.0, %v4019_v63 }
 0xe73   : > { %4162 = vrot.lane.b32.xlu2 %v12775_v33, %s9265_s17 }
 0xe77   : > { %v4021_v19 = vpop.permute.xlu2 %4020 }
 0xe78   : > { %v12890_v22 = vsel %vm489_vm0, %v4019_v63, %v4021_v19  ;;  %v4048_v43 = vsel %vm489_vm0, %v4021_v19, 0.0 }
 0xe79   : > { %v12822_v1 = vpop.permute.xlu0 %4022  ;;  %v8268_v12 = vpack.i.bf16 %v12890_v22, %v12838_v56 }
 0xe7a   : > { %v12876_v61 = vsel %vm489_vm0, 0.0, %v12822_v1 }
 0xe7b   : > { %4210 = vrot.lane.b32.xlu2 %v12775_v33, %s9268_s20  ;;  %v8273_v52 = vpack.i.bf16 %v12876_v61, %v4048_v43 }
 0xe7f   : > { %v4013_v32 = vpop.permute.xlu1 %4012 }
 0xe80   : > { %v12796_v60 = vsel %vm489_vm0, %v4011_v16, %v4013_v32  ;;  %v4046_v57 = vsel %vm489_vm0, %v4013_v32, 0.0 }
 0xe81   : > { %4070 = vrot.lane.b32.xlu1 %v4046_v57, %s16175_s19  ;;  %4068 = vrot.lane.b32.xlu0 %v12796_v60, %s16175_s19  ;;  %v8228_v3 = vpack.i.bf16 %v12808_v24, %v4046_v57  ;;  %v8223_v37 = vpack.i.bf16 %v12796_v60, %v12775_v33 }
 0xe83   : > { %4258 = vrot.lane.b32.xlu2 %v12775_v33, %s9269_s21 }
 0xe87   : > { %v4017_v2 = vpop.permute.xlu0 %4016 }
 0xe88   : > { %v4047_v51 = vsel %vm489_vm0, %v4017_v2, 0.0  ;;  %v12849_v25 = vsel %vm489_vm0, %v4015_v0, %v4017_v2 }
 0xe89   : > { %4118 = vrot.lane.b32.xlu1 %v4046_v57, %s9266_s18  ;;  %4116 = vrot.lane.b32.xlu0 %v12796_v60, %s9266_s18  ;;  %v8253_v27 = vpack.i.bf16 %v4047_v51, %v12849_v25 }
 0xe8b   : > { %4072 = vrot.lane.b32.xlu2 %v12808_v24, %s16175_s19 }
 0xe91   : > { %4166 = vrot.lane.b32.xlu1 %v4046_v57, %s9265_s17  ;;  %4164 = vrot.lane.b32.xlu0 %v12796_v60, %s9265_s17 }
 0xe93   : > { %4120 = vrot.lane.b32.xlu2 %v12808_v24, %s9266_s18 }
 0xe97   : > { %v4025_v17 = vpop.permute.xlu1 %4024 }
 0xe98   : > { %v4049_v53 = vsel %vm489_vm0, %v4025_v17, 0.0  ;;  %v12973_v2 = vsel %vm489_vm0, %v12822_v1, %v4025_v17 }
 0xe99   : > { %4214 = vrot.lane.b32.xlu1 %v4046_v57, %s9268_s20  ;;  %4212 = vrot.lane.b32.xlu0 %v12796_v60, %s9268_s20  ;;  %v8298_v17 = vpack.i.bf16 %v4049_v53, %v12973_v2 }
 0xe9b   : > { %4168 = vrot.lane.b32.xlu2 %v12808_v24, %s9265_s17 }
 0xea1   : > { %4262 = vrot.lane.b32.xlu1 %v4046_v57, %s9269_s21  ;;  %4260 = vrot.lane.b32.xlu0 %v12796_v60, %s9269_s21 }
 0xea3   : > { %4216 = vrot.lane.b32.xlu2 %v12808_v24, %s9268_s20 }
 0xea9   : > { %8229 = vrot.lane.b32.xlu0 %v8228_v3, %s16585_s28  ;;  %4076 = vrot.lane.b32.xlu1 %v4047_v51, %s16175_s19 }
 0xeab   : > { %4264 = vrot.lane.b32.xlu2 %v12808_v24, %s9269_s21 }
 0xeb1   : > { %8239 = vrot.lane.b32.xlu0 %v8228_v3, %s16586_s24  ;;  %4124 = vrot.lane.b32.xlu1 %v4047_v51, %s9266_s18 }
 0xeb3   : > { %4078 = vrot.lane.b32.xlu2 %v12838_v56, %s16175_s19 }
 0xeb9   : > { %8249 = vrot.lane.b32.xlu0 %v8228_v3, %s16587_s29  ;;  %4172 = vrot.lane.b32.xlu1 %v4047_v51, %s9265_s17 }
 0xebb   : > { %4126 = vrot.lane.b32.xlu2 %v12838_v56, %s9266_s18 }
 0xebd   : > { %v12846_v54 = vpop.permute.xlu2 %4066 }
 0xec1   : > { %4220 = vrot.lane.b32.xlu1 %v4047_v51, %s9268_s20  ;;  %4074 = vrot.lane.b32.xlu0 %v12849_v25, %s16175_s19 }
 0xec3   : > { %4174 = vrot.lane.b32.xlu2 %v12838_v56, %s9265_s17 }
 0xec5   : > { %v12856_v6 = vpop.permute.xlu2 %4114 }
 0xec9   : > { %4268 = vrot.lane.b32.xlu1 %v4047_v51, %s9269_s21  ;;  %4122 = vrot.lane.b32.xlu0 %v12849_v25, %s9266_s18 }
 0xecb   : > { %4222 = vrot.lane.b32.xlu2 %v12838_v56, %s9268_s20 }
 0xecd   : > { %v12867_v48 = vpop.permute.xlu2 %4162 }
 0xece   : > { %16588 = vst [vmem:[#allocation29_spill] sm:$0xff] %v12867_v48 }
 0xed1   : > { %8254 = vrot.lane.b32.xlu1 %v8253_v27, %s16585_s28  ;;  %4170 = vrot.lane.b32.xlu0 %v12849_v25, %s9265_s17 }
 0xed3   : > { %4270 = vrot.lane.b32.xlu2 %v12838_v56, %s9269_s21 }
 0xed5   : > { %v12880_v21 = vpop.permute.xlu2 %4210 }
 0xed6   : > { %16589 = vst [vmem:[#allocation12_spill] sm:$0xff] %v12880_v21 }
 0xed9   : > { %8259 = vrot.lane.b32.xlu1 %v8253_v27, %s16586_s24  ;;  %4218 = vrot.lane.b32.xlu0 %v12849_v25, %s9268_s20 }
 0xedb   : > { %4084 = vrot.lane.b32.xlu2 %v12876_v61, %s16175_s19 }
 0xedd   : > { %v12887_v36 = vpop.permute.xlu2 %4258 }
 0xee1   : > { %8264 = vrot.lane.b32.xlu1 %v8253_v27, %s16587_s29  ;;  %4266 = vrot.lane.b32.xlu0 %v12849_v25, %s9269_s21 }
 0xee3   : > { %4132 = vrot.lane.b32.xlu2 %v12876_v61, %s9266_s18 }
 0xee5   : > { %v12898_v26 = vpop.permute.xlu2 %4072 }
 0xee9   : > { %4082 = vrot.lane.b32.xlu1 %v4048_v43, %s16175_s19  ;;  %4080 = vrot.lane.b32.xlu0 %v12890_v22, %s16175_s19 }
 0xeeb   : > { %4180 = vrot.lane.b32.xlu2 %v12876_v61, %s9265_s17 }
 0xeed   : > { %v12912_v50 = vpop.permute.xlu2 %4120 }
 0xef1   : > { %4130 = vrot.lane.b32.xlu1 %v4048_v43, %s9266_s18  ;;  %4128 = vrot.lane.b32.xlu0 %v12890_v22, %s9266_s18 }
 0xef3   : > { %v12903_v39 = vpop.permute.xlu1 %4070  ;;  %4228 = vrot.lane.b32.xlu2 %v12876_v61, %s9268_s20  ;;  %v12907_v20 = vpop.permute.xlu0 %4068 }
 0xef5   : > { %v12930_v5 = vpop.permute.xlu2 %4168 }
 0xef6   : > { %16592 = vst [vmem:[#allocation34_spill] sm:$0xff] %v12930_v5 }
 0xef9   : > { %4178 = vrot.lane.b32.xlu1 %v4048_v43, %s9265_s17  ;;  %4176 = vrot.lane.b32.xlu0 %v12890_v22, %s9265_s17 }
 0xefb   : > { %v12914_v46 = vpop.permute.xlu1 %4118  ;;  %4276 = vrot.lane.b32.xlu2 %v12876_v61, %s9269_s21  ;;  %v12918_v62 = vpop.permute.xlu0 %4116 }
 0xefd   : > { %v12940_v35 = vpop.permute.xlu2 %4216 }
 0xf01   : > { %4226 = vrot.lane.b32.xlu1 %v4048_v43, %s9268_s20  ;;  %4224 = vrot.lane.b32.xlu0 %v12890_v22, %s9268_s20 }
 0xf03   : > { %v12925_v13 = vpop.permute.xlu1 %4166  ;;  %8224 = vrot.lane.b32.xlu2 %v8223_v37, %s16585_s28  ;;  %v12928_v10 = vpop.permute.xlu0 %4164 }
 0xf04   : > { %16590 = vst [vmem:[#allocation19_spill] sm:$0xff] %v12925_v13 }
 0xf05   : > { %16591 = vst [vmem:[#allocation22_spill] sm:$0xff] %v12928_v10  ;;  %v12951_v7 = vpop.permute.xlu2 %4264 }
 0xf09   : > { %4274 = vrot.lane.b32.xlu1 %v4048_v43, %s9269_s21  ;;  %4272 = vrot.lane.b32.xlu0 %v12890_v22, %s9269_s21 }
 0xf0b   : > { %v12935_v14 = vpop.permute.xlu1 %4214  ;;  %8234 = vrot.lane.b32.xlu2 %v8223_v37, %s16586_s24  ;;  %v12938_v38 = vpop.permute.xlu0 %4212 }
 0xf0c   : > { %16593 = vst [vmem:[#allocation33_spill] sm:$0xff] %v12935_v14 }
 0xf0d   : > { %16594 = vst [vmem:[#allocation20_spill] sm:$0xff] %v12938_v38  ;;  %v12964_v32 = vpop.permute.xlu2 %4078 }
 0xf11   : > { %4088 = vrot.lane.b32.xlu1 %v4049_v53, %s16175_s19  ;;  %8274 = vrot.lane.b32.xlu0 %v8273_v52, %s16585_s28 }
 0xf13   : > { %v12946_v8 = vpop.permute.xlu1 %4262  ;;  %8244 = vrot.lane.b32.xlu2 %v8223_v37, %s16587_s29  ;;  %v12949_v59 = vpop.permute.xlu0 %4260 }
 0xf14   : > { %16595 = vst [vmem:[#allocation5_spill] sm:$0xff] %v12946_v8 }
 0xf15   : > { %v4127_v19 = vpop.permute.xlu2 %4126 }
 0xf19   : > { %4136 = vrot.lane.b32.xlu1 %v4049_v53, %s9266_s18  ;;  %8284 = vrot.lane.b32.xlu0 %v8273_v52, %s16586_s24 }
 0xf1b   : > { %8269 = vrot.lane.b32.xlu2 %v8268_v12, %s16585_s28  ;;  %v12958_v16 = vpop.permute.xlu1 %4076  ;;  %v12960_v63 = vpop.permute.xlu0 %8229 }
 0xf1d   : > { %v12990_v43 = vpop.permute.xlu2 %4174 }
 0xf1e   : > { %16599 = vst [vmem:[#allocation11_spill] sm:$0xff] %v12990_v43 }
 0xf21   : > { %4184 = vrot.lane.b32.xlu1 %v4049_v53, %s9265_s17  ;;  %8294 = vrot.lane.b32.xlu0 %v8273_v52, %s16587_s29 }
 0xf23   : > { %8279 = vrot.lane.b32.xlu2 %v8268_v12, %s16586_s24  ;;  %v12967_v57 = vpop.permute.xlu1 %4124  ;;  %v12969_v0 = vpop.permute.xlu0 %8239 }
 0xf24   : > { %16596 = vst [vmem:[#allocation14_spill] sm:$0xff] %v12969_v0 }
 0xf29   : > { %4232 = vrot.lane.b32.xlu1 %v4049_v53, %s9268_s20  ;;  %4086 = vrot.lane.b32.xlu0 %v12973_v2, %s16175_s19 }
 0xf2b   : > { %8289 = vrot.lane.b32.xlu2 %v8268_v12, %s16587_s29  ;;  %v12979_v3 = vpop.permute.xlu1 %4172  ;;  %v12981_v51 = vpop.permute.xlu0 %8249 }
 0xf2c   : > { %16597 = vst [vmem:[#allocation7_spill] sm:$0xff] %v12979_v3  ;;  %v12998_v12 = vpop.permute.xlu2 %4222 }
 0xf31   : > { %4280 = vrot.lane.b32.xlu1 %v4049_v53, %s9269_s21  ;;  %4134 = vrot.lane.b32.xlu0 %v12973_v2, %s9266_s18 }
 0xf33   : > { %v12986_v27 = vpop.permute.xlu1 %4220  ;;  %v12988_v1 = vpop.permute.xlu0 %4074 }
 0xf34   : > { %16598 = vst [vmem:[#allocation9_spill] sm:$0xff] %v12986_v27  ;;  %v13010_v53 = vpop.permute.xlu2 %4270 }
 0xf39   : > { %8299 = vrot.lane.b32.xlu1 %v8298_v17, %s16585_s28  ;;  %4182 = vrot.lane.b32.xlu0 %v12973_v2, %s9265_s17 }
 0xf3b   : > { %v12996_v37 = vpop.permute.xlu1 %4268  ;;  %v4123_v52 = vpop.permute.xlu0 %4122 }
 0xf3c   : > { %16600 = vst [vmem:[#allocation4_spill] sm:$0xff] %v12996_v37  ;;  %v4085_v23 = vpop.permute.xlu2 %4084 }
 0xf41   : > { %8304 = vrot.lane.b32.xlu1 %v8298_v17, %s16586_s24  ;;  %4230 = vrot.lane.b32.xlu0 %v12973_v2, %s9268_s20 }
 0xf43   : > { %v13003_v28 = vpop.permute.xlu1 %8254  ;;  %v13005_v4 = vpop.permute.xlu0 %4170 }
 0xf44   : > { %16601 = vst [vmem:[#allocation6_spill] sm:$0xff] %v13005_v4  ;;  %v4133_v49 = vpop.permute.xlu2 %4132 }
 0xf49   : > { %8309 = vrot.lane.b32.xlu1 %v8298_v17, %s16587_s29  ;;  %4278 = vrot.lane.b32.xlu0 %v12973_v2, %s9269_s21 }
 0xf4b   : > { %v13012_v45 = vpop.permute.xlu1 %8259  ;;  %v13014_v9 = vpop.permute.xlu0 %4218 }
 0xf4c   : > { %16602 = vst [vmem:[#allocation8_spill] sm:$0xff] %v13012_v45  ;;  %v13020_v17 = vpop.permute.xlu2 %4180 }
 0xf4d   : > { %16603 = vst [vmem:[#allocation10_spill] sm:$0xff] %v13020_v17 }
 0xf53   : > { %v13016_v55 = vpop.permute.xlu1 %8264  ;;  %v13018_v40 = vpop.permute.xlu0 %4266 }
 0xf54   : > { %v13026_v29 = vpop.permute.xlu2 %4228 }
 0xf5b   : > { %v4083_v41 = vpop.permute.xlu1 %4082  ;;  %v4081_v34 = vpop.permute.xlu0 %4080 }
 0xf5c   : > { %v13036_v3 = vpop.permute.xlu2 %4276 }
 0xf63   : > { %v4131_v18 = vpop.permute.xlu1 %4130  ;;  %v4129_v15 = vpop.permute.xlu0 %4128 }
 0xf64   : > { %v13040_v48 = vpop.permute.xlu2 %8224 }
 0xf6b   : > { %v13022_v31 = vpop.permute.xlu1 %4178  ;;  %v13024_v47 = vpop.permute.xlu0 %4176 }
 0xf6c   : > { %16604 = vst [vmem:[#allocation36_spill] sm:$0xff] %v13022_v31  ;;  %v13044_v5 = vpop.permute.xlu2 %8234 }
 0xf6d   : > { %16605 = vst [vmem:[#allocation37_spill] sm:$0xff] %v13024_v47 }
 0xf6e   : > { %16608 = vst [vmem:[#allocation40_spill] sm:$0xff] %v13044_v5  ;;  %v4142_v5 = vsel %vm527_vm5, %v4127_v19, %v4129_v15 }
 0xf73   : > { %v13028_v42 = vpop.permute.xlu1 %4226  ;;  %v13030_v8 = vpop.permute.xlu0 %4224 }
 0xf74   : > { %16606 = vst [vmem:[#allocation38_spill] sm:$0xff] %v13028_v42  ;;  %v13050_v43 = vpop.permute.xlu2 %8244 }
 0xf7b   : > { %v13032_v37 = vpop.permute.xlu1 %4274  ;;  %v13034_v13 = vpop.permute.xlu0 %4272 }
 0xf7c   : > { %16607 = vst [vmem:[#allocation39_spill] sm:$0xff] %v13032_v37  ;;  %v8270_v42 = vpop.permute.xlu2 %8269 }
 0xf83   : > { %v4089_v0 = vpop.permute.xlu1 %4088  ;;  %v13038_v45 = vpop.permute.xlu0 %8274 }
 0xf8b   : > { %v4137_v31 = vpop.permute.xlu1 %4136  ;;  %v13042_v10 = vpop.permute.xlu0 %8284 }
 0xf93   : > { %v13046_v4 = vpop.permute.xlu1 %4184  ;;  %v13048_v14 = vpop.permute.xlu0 %8294 }
 0xf94   : > { %16609 = vst [vmem:[#allocation41_spill] sm:$0xff] %v13046_v4  ;;  %v4143_v4 = vsel %vm527_vm5, %v4129_v15, %v4131_v18  ;;  %v4138_v15 = vsel %vm527_vm5, %v12856_v6, %v12918_v62  ;;  %v13094_v6 = vpop.permute.xlu2 %8279 }
 0xf9b   : > { %v13052_v37 = vpop.permute.xlu1 %4232  ;;  %v4087_v47 = vpop.permute.xlu0 %4086 }
 0xfa3   : > { %v13054_v27 = vpop.permute.xlu1 %4280  ;;  %v4135_v17 = vpop.permute.xlu0 %4134 }
 0xfa4   : > { %v4144_v21 = vsel %vm527_vm5, %v4133_v49, %v4135_v17  ;;  %v4145_v38 = vsel %vm527_vm5, %v4135_v17, %v4137_v31  ;;  %v4140_v49 = vsel %vm527_vm5, %v12912_v50, %v4123_v52  ;;  %v4141_v31 = vsel %vm527_vm5, %v4123_v52, %v12967_v57 }
 0xfa5   : > { %7575 = vmatpush.msk.msrb.mxu0 %vm9443_vm11, %v4144_v21  ;;  %7615 = vmatpush.msk.msrb.mxu3 %vm9467_vm12, %v4145_v38  ;;  %v4096_v50 = vsel %vm514_vm9, %v4085_v23, %v4087_v47  ;;  %v4092_v38 = vsel %vm514_vm9, %v12898_v26, %v12988_v1  ;;  %v4093_v57 = vsel %vm514_vm9, %v12988_v1, %v12958_v16  ;;  %v8271_v26 = vunpack.i.l.bf16 %v8270_v42 }
 0xfa6   : > { %v8276_v16 = vunpack.i.l.bf16 %v13038_v45  ;;  %v8227_v52 = vunpack.i.h.bf16 %v13040_v48  ;;  %v8226_v17 = vunpack.i.l.bf16 %v13040_v48 }
 0xfa7   : > { %7576 = vmatpush.msk.msrb.mxu0 %vm9443_vm11, %v4142_v5  ;;  %7616 = vmatpush.msk.msrb.mxu3 %vm9467_vm12, %v4143_v4  ;;  %v4139_v4 = vsel %vm527_vm5, %v12918_v62, %v12914_v46  ;;  %v4097_v5 = vsel %vm514_vm9, %v4087_v47, %v4089_v0  ;;  %v4094_v46 = vsel %vm514_vm9, %v12964_v32, %v4081_v34  ;;  %v8272_v32 = vunpack.i.h.bf16 %v8270_v42 }
 0xfa8   : > { %v4095_v62 = vsel %vm514_vm9, %v4081_v34, %v4083_v41  ;;  %v4090_v34 = vsel %vm514_vm9, %v12846_v54, %v12907_v20  ;;  %v4091_v41 = vsel %vm514_vm9, %v12907_v20, %v12903_v39  ;;  %v8277_v0 = vunpack.i.h.bf16 %v13038_v45 }
 0xfa9   : > { %7577 = vmatpush.msk.msrb.mxu0 %vm9443_vm11, %v4140_v49  ;;  %7617 = vmatpush.msk.msrb.mxu3 %vm9467_vm12, %v4141_v31  ;;  %v8257_v54 = vunpack.i.h.bf16 %v13003_v28  ;;  %v8256_v39 = vunpack.i.l.bf16 %v13003_v28  ;;  %v8232_v45 = vunpack.i.h.bf16 %v12960_v63  ;;  %v4334_v49 = vsel %vm582_vm13, %v8271_v26, %v8272_v32 }
 0xfaa   : > { %v4335_v31 = vsel %vm582_vm13, %v8272_v32, %v8276_v16  ;;  %v8231_v28 = vunpack.i.l.bf16 %v12960_v63  ;;  %v8297_v63 = vunpack.i.h.bf16 %v13048_v14  ;;  %v4238_v16 = vsel %vm553_vm6, %v12998_v12, %v13030_v8  ;;  %v13236_v12 = vld [vmem:[%s16084_s9 + $0x28] sm:$0xff] }
 0xfab   : > { %v8300_v18 = vpop.permute.xlu1 %8299  ;;  %7578 = vmatpush.msk.msrb.mxu0 %vm9443_vm11, %v4138_v15  ;;  %7618 = vmatpush.msk.msrb.mxu3 %vm9467_vm12, %v4139_v4  ;;  %v13086_v21 = vpop.permute.xlu0 %4182  ;;  %v4332_v4 = vsel %vm582_vm13, %v8232_v45, %v8256_v39 }
 0xfac   : > { %v8302_v23 = vunpack.i.h.bf16 %v8300_v18  ;;  %v8301_v47 = vunpack.i.l.bf16 %v8300_v18  ;;  %v8290_v15 = vpop.permute.xlu2 %8289  ;;  %v4333_v18 = vsel %vm582_vm13, %v8256_v39, %v8257_v54 }
 0xfad   : > { %7579 = vmatpush.msk.msrb.mxu0 %vm9427_vm7, %v4096_v50  ;;  %7619 = vmatpush.msk.msrb.mxu3 %vm9415_vm2, %v4097_v5  ;;  %v4330_v50 = vsel %vm582_vm13, %v8226_v17, %v8227_v52  ;;  %v4331_v5 = vsel %vm582_vm13, %v8227_v52, %v8231_v28  ;;  %v8292_v48 = vunpack.i.h.bf16 %v8290_v15  ;;  %v16613_v17 = vld [vmem:[#allocation10_spill] sm:$0xff]  ;;  %v16616_v28 = vld [vmem:[#allocation11_spill] sm:$0xff] }
 0xfae   : > { %v4336_v42 = vsel %vm582_vm13, %v8277_v0, %v8301_v47  ;;  %v4337_v20 = vsel %vm582_vm13, %v8301_v47, %v8302_v23  ;;  %v8291_v23 = vunpack.i.l.bf16 %v8290_v15  ;;  %v4432_v15 = vld [vmem:[%s16084_s9 + $0x30] sm:$0xff] }
 0xfaf   : > { %7580 = vmatpush.msk.msrb.mxu0 %vm9427_vm7, %v4094_v46  ;;  %7620 = vmatpush.msk.msrb.mxu3 %vm9415_vm2, %v4095_v62 }
 0xfb1   : > { %7581 = vmatpush.msk.msrb.mxu0 %vm9427_vm7, %v4092_v38  ;;  %7621 = vmatpush.msk.msrb.mxu3 %vm9415_vm2, %v4093_v57  ;;  %v8266_v57 = vunpack.i.l.bf16 %v13016_v55 }
 0xfb3   : > { %v13121_v19 = vpop.permute.xlu1 %8304  ;;  %7582 = vmatpush.msk.msrb.mxu0 %vm9427_vm7, %v4090_v34  ;;  %7622 = vmatpush.msk.msrb.mxu3 %vm9415_vm2, %v4091_v41  ;;  %v13127_v1 = vpop.permute.xlu0 %4230  ;;  %v8247_v41 = vunpack.i.h.bf16 %v13050_v43 }
 0xfb4   : > { %v4241_v39 = vsel %vm553_vm6, %v13127_v1, %v13052_v37  ;;  %v16614_v37 = vld [vmem:[#allocation9_spill] sm:$0xff] }
 0xfb5   : > { %4626 = vmatpush.msrb.mxu0 %v4336_v42  ;;  %4821 = vmatpush.msrb.mxu3 %v4337_v20  ;;  %v16610_v42 = vld [vmem:[#allocation20_spill] sm:$0xff] }
 0xfb6   : > { %v16611_v20 = vld [vmem:[#allocation12_spill] sm:$0xff] }
 0xfb7   : > { %4627 = vmatpush.msrb.mxu0 %v4334_v49  ;;  %4822 = vmatpush.msrb.mxu3 %v4335_v31  ;;  %v4234_v45 = vsel %vm553_vm6, %v16611_v20, %v16610_v42  ;;  %v4192_v49 = vsel %vm540_vm4, %v16613_v17, %v13086_v21  ;;  %v16615_v31 = vld [vmem:[#allocation37_spill] sm:$0xff]  ;;  %v16630_v17 = vld [vmem:[#allocation4_spill] sm:$0xff] }
 0xfb9   : > { %4628 = vmatpush.msrb.mxu0 %v4332_v4  ;;  %4823 = vmatpush.msrb.mxu3 %v4333_v18  ;;  %v8306_v4 = vunpack.i.l.bf16 %v13121_v19  ;;  %v16617_v18 = vld [vmem:[#allocation33_spill] sm:$0xff] }
 0xfbb   : > { %v8310_v46 = vpop.permute.xlu1 %8309  ;;  %v13143_v62 = vpop.permute.xlu0 %4278  ;;  %4629 = vmatpush.msrb.mxu0 %v4330_v50  ;;  %4824 = vmatpush.msrb.mxu3 %v4331_v5  ;;  %v16618_v50 = vld [vmem:[#allocation6_spill] sm:$0xff] }
 0xfbc   : > { %v8311_v47 = vunpack.i.l.bf16 %v8310_v46  ;;  %v4288_v38 = vsel %vm566_vm1, %v13036_v3, %v13143_v62  ;;  %v8252_v3 = vunpack.i.h.bf16 %v12981_v51  ;;  %v8312_v32 = vunpack.i.h.bf16 %v8310_v46  ;;  %v16619_v5 = vld [vmem:[#allocation34_spill] sm:$0xff] }
 0xfbd   : > { %7583 = vmatpush.msk.msrb.mxu0 %vm9443_vm11, %v12876_v61  ;;  %7595 = vmatpush.msk.msra.mxu2 %vm9427_vm7, %v4288_v38  ;;  %v4286_v61 = vsel %vm566_vm1, %v13010_v53, %v13034_v13  ;;  %v4284_v53 = vsel %vm566_vm1, %v12951_v7, %v13018_v40  ;;  %v4282_v7 = vsel %vm566_vm1, %v12887_v36, %v12949_v59  ;;  %v16620_v46 = vld [vmem:[#allocation22_spill] sm:$0xff]  ;;  %v8282_v38 = vunpack.i.h.bf16 %v13094_v6 }
 0xfbe   : > { %7623 = vmatpush.msk.msrb.mxu3 %vm9467_vm12, %v12973_v2  ;;  %v4416_v34 = vsel %vm616_vm8, %v8297_v63, %v8311_v47  ;;  %v4414_v2 = vsel %vm616_vm8, %v8291_v23, %v8292_v48  ;;  %v16621_v23 = vld [vmem:[#allocation29_spill] sm:$0xff] }
 0xfbf   : > { %7584 = vmatpush.msk.msrb.mxu0 %vm9443_vm11, %v12838_v56  ;;  %4683 = vmatpush.msra.mxu1 %v4416_v34  ;;  %v8246_v56 = vunpack.i.l.bf16 %v13050_v43  ;;  %v4426_v43 = vld [vmem:[%s16084_s9] sm:$0xff]  ;;  %v4186_v63 = vsel %vm540_vm4, %v16621_v23, %v16620_v46  ;;  %v8287_v34 = vunpack.i.h.bf16 %v13042_v10  ;;  %v4453_v23 = vld [vmem:[%s16084_s9 + $0xd8] sm:$0xff] }
 0xfc0   : > { %7596 = vmatpush.msk.msra.mxu2 %vm9427_vm7, %v4286_v61  ;;  %7624 = vmatpush.msk.msrb.mxu3 %vm9467_vm12, %v12890_v22  ;;  %v4412_v22 = vsel %vm616_vm8, %v8252_v3, %v8266_v57  ;;  %v16622_v61 = vld [vmem:[#allocation41_spill] sm:$0xff] }
 0xfc1   : > { %7585 = vmatpush.msk.msrb.mxu0 %vm9443_vm11, %v12808_v24  ;;  %4684 = vmatpush.msra.mxu1 %v4414_v2  ;;  %v8296_v24 = vunpack.i.l.bf16 %v13048_v14  ;;  %v8267_v14 = vunpack.i.h.bf16 %v13016_v55  ;;  %v4410_v36 = vsel %vm616_vm8, %v8246_v56, %v8247_v41  ;;  %v8251_v55 = vunpack.i.l.bf16 %v12981_v51  ;;  %v16623_v2 = vld [vmem:[#allocation8_spill] sm:$0xff] }
 0xfc2   : > { %7597 = vmatpush.msk.msra.mxu2 %vm9427_vm7, %v4284_v53  ;;  %7625 = vmatpush.msk.msrb.mxu3 %vm9467_vm12, %v12849_v25  ;;  %v13204_v25 = vld [vmem:[%s16084_s9 + $0x10] sm:$0xff]  ;;  %v4236_v51 = vsel %vm553_vm6, %v12940_v35, %v13014_v9  ;;  %v16612_v35 = vld [vmem:[#allocation38_spill] sm:$0xff]  ;;  %v4193_v3 = vsel %vm540_vm4, %v13086_v21, %v16622_v61  ;;  %v16624_v56 = vld [vmem:[#allocation36_spill] sm:$0xff] }
 0xfc3   : > { %7586 = vmatpush.msk.msrb.mxu0 %vm9443_vm11, %v12775_v33  ;;  %4685 = vmatpush.msra.mxu1 %v4412_v22  ;;  %v4417_v33 = vsel %vm616_vm8, %v8311_v47, %v8312_v32  ;;  %v4415_v26 = vsel %vm616_vm8, %v8292_v48, %v8296_v24  ;;  %v4413_v0 = vsel %vm616_vm8, %v8266_v57, %v8267_v14  ;;  %v13290_v47 = vld [vmem:[%s16084_s9 + $0x40] sm:$0xff]  ;;  %v8281_v57 = vunpack.i.l.bf16 %v13094_v6  ;;  %v16625_v53 = vld [vmem:[#allocation14_spill] sm:$0xff]  ;;  %v16626_v21 = vld [vmem:[#allocation7_spill] sm:$0xff] }
 0xfc4   : > { %7598 = vmatpush.msk.msra.mxu2 %vm9427_vm7, %v4282_v7  ;;  %7626 = vmatpush.msk.msrb.mxu3 %vm9467_vm12, %v12796_v60  ;;  %v4240_v60 = vsel %vm553_vm6, %v13026_v29, %v13127_v1  ;;  %v4429_v29 = vld [vmem:[%s16084_s9 + $0x18] sm:$0xff]  ;;  %v4411_v54 = vsel %vm616_vm8, %v8247_v41, %v8251_v55  ;;  %v4239_v52 = vsel %vm553_vm6, %v13030_v8, %v16612_v35  ;;  %v8261_v41 = vunpack.i.l.bf16 %v16623_v2  ;;  %v16628_v55 = vld [vmem:[#allocation19_spill] sm:$0xff]  ;;  %v13478_v61 = vld [vmem:[%s16084_s9 + $0x100] sm:$0xff] }
 0xfc5   : > { %4634 = vmatmul.f32.vlgmr.msrb.gmra.mxu0 %v4426_v43  ;;  %4829 = vmatmul.f32.vlgmr.msrb.gmra.mxu3 %v4426_v43  ;;  %v4237_v1 = vsel %vm553_vm6, %v13014_v9, %v16614_v37  ;;  %v4190_v8 = vsel %vm540_vm4, %v16616_v28, %v16615_v31  ;;  %v4235_v9 = vsel %vm553_vm6, %v16610_v42, %v16617_v18  ;;  %v8242_v22 = vunpack.i.h.bf16 %v16625_v53  ;;  %v16627_v24 = vld [vmem:[#allocation40_spill] sm:$0xff]  ;;  %v16629_v35 = vld [vmem:[#allocation39_spill] sm:$0xff]  ;;  %v4447_v18 = vld [vmem:[%s16084_s9 + $0xa8] sm:$0xff] }
 0xfc6   : > { %4878 = vmatpush.msra.mxu0 %v4417_v33  ;;  %4686 = vmatpush.msra.mxu1 %v4410_v36  ;;  %v4188_v48 = vsel %vm540_vm4, %v16619_v5, %v16618_v50  ;;  %v4191_v6 = vsel %vm540_vm4, %v16615_v31, %v16624_v56  ;;  %v4376_v32 = vsel %vm599_vm10, %v8287_v34, %v8306_v4  ;;  %v8237_v7 = vunpack.i.h.bf16 %v16627_v24  ;;  %v13377_v37 = vld [vmem:[%s16084_s9 + $0x70] sm:$0xff]  ;;  %v4441_v31 = vld [vmem:[%s16084_s9 + $0x78] sm:$0xff]  ;;  %v4450_v5 = vld [vmem:[%s16084_s9 + $0xc0] sm:$0xff] }
 0xfc7   : > { %7599 = vmatmul.msk.f32.vlgmr.msra.gmra.mxu2 %vm1187_vm15, %v13204_v25  ;;  %v4189_v43 = vsel %vm540_vm4, %v16618_v50, %v16626_v21  ;;  %v8236_v14 = vunpack.i.l.bf16 %v16627_v24  ;;  %v8307_v33 = vunpack.i.h.bf16 %v13121_v19  ;;  %v4374_v36 = vsel %vm599_vm10, %v8281_v57, %v8282_v38  ;;  %v13334_v19 = vld [vmem:[%s16084_s9 + $0x8] sm:$0xff]  ;;  %v13393_v28 = vld [vmem:[%s16084_s9 + $0x38] sm:$0xff]  ;;  %v4456_v57 = vld [vmem:[%s16084_s9 + $0xf0] sm:$0xff] }
 0xfc8   : > { %4879 = vmatpush.msra.mxu0 %v4415_v26  ;;  %7587 = vmatpush.msk.msra.mxu1 %vm9443_vm11, %v4240_v60  ;;  %v4435_v26 = vld [vmem:[%s16084_s9 + $0x48] sm:$0xff]  ;;  %v8286_v60 = vunpack.i.l.bf16 %v13042_v10  ;;  %v8262_v10 = vunpack.i.h.bf16 %v16623_v2  ;;  %v8241_v20 = vunpack.i.l.bf16 %v16625_v53  ;;  %v13430_v50 = vld [vmem:[%s16084_s9 + $0xb8] sm:$0xff]  ;;  %v13473_v34 = vld [vmem:[%s16084_s9 + $0xb0] sm:$0xff] }
 0xfc9   : > { %v13489_v2 = vld [vmem:[%s16084_s9 + $0xc8] sm:$0xff]  ;;  %v4462_v56 = vld [vmem:[%s16084_s9 + $0x120] sm:$0xff]  ;;  %v4465_v53 = vld [vmem:[%s16084_s9 + $0x138] sm:$0xff] }
 0xfca   : > { %4880 = vmatpush.msra.mxu0 %v4413_v0  ;;  %7588 = vmatpush.msk.msra.mxu1 %vm9443_vm11, %v4238_v16  ;;  %v4187_v0 = vsel %vm540_vm4, %v16620_v46, %v16628_v55  ;;  %v4372_v16 = vsel %vm599_vm10, %v8242_v22, %v8261_v41  ;;  %v4375_v42 = vsel %vm599_vm10, %v8282_v38, %v8286_v60  ;;  %v13446_v46 = vld [vmem:[%s16084_s9 + $0xd0] sm:$0xff]  ;;  %v13462_v38 = vld [vmem:[%s16084_s9 + $0xe8] sm:$0xff]  ;;  %v13521_v22 = vld [vmem:[%s16084_s9 + $0xf8] sm:$0xff] }
 0xfcb   : > { %v13526_v21 = vld [vmem:[%s16084_s9 + $0x148] sm:$0xff]  ;;  %v13537_v24 = vld [vmem:[%s16084_s9 + $0x110] sm:$0xff]  ;;  %v13568_v60 = vld [vmem:[%s16084_s9 + $0x140] sm:$0xff] }
 0xfcc   : > { %4881 = vmatpush.msra.mxu0 %v4411_v54  ;;  %7589 = vmatpush.msk.msra.mxu1 %vm9443_vm11, %v4236_v51  ;;  %v4377_v54 = vsel %vm599_vm10, %v8306_v4, %v8307_v33  ;;  %v4370_v51 = vsel %vm599_vm10, %v8236_v14, %v8237_v7  ;;  %v13414_v4 = vld [vmem:[%s16084_s9 + $0xa0] sm:$0xff]  ;;  %v4471_v14 = vld [vmem:[%s16084_s9 + $0x168] sm:$0xff] }
 0xfcd   : > { %4637 = vmatmul.f32.gmra.mxu0 %v4429_v29  ;;  %4832 = vmatmul.f32.gmra.mxu3 %v4429_v29  ;;  %v13339_v29 = vld [vmem:[%s16084_s9 + $0x58] sm:$0xff]  ;;  %v13553_v33 = vld [vmem:[%s16084_s9 + $0x128] sm:$0xff] }
 0xfce   : > { %7627 = vmatpush.msk.msra.mxu0 %vm9467_vm12, %v4241_v39  ;;  %7590 = vmatpush.msk.msra.mxu1 %vm9443_vm11, %v4234_v45  ;;  %v4289_v39 = vsel %vm566_vm1, %v13143_v62, %v13054_v27  ;;  %v4373_v45 = vsel %vm599_vm10, %v8261_v41, %v8262_v10  ;;  %v4438_v27 = vld [vmem:[%s16084_s9 + $0x60] sm:$0xff]  ;;  %v4371_v62 = vsel %vm599_vm10, %v8237_v7, %v8241_v20  ;;  %v13494_v41 = vld [vmem:[%s16084_s9 + $0x118] sm:$0xff] }
 0xfcf   : > { %7600 = vmatmul.msk.f32.gmra.mxu2 %vm1187_vm15, %v13236_v12  ;;  %v13542_v7 = vld [vmem:[%s16084_s9 + $0x160] sm:$0xff] }
 0xfd0   : > { %7628 = vmatpush.msk.msra.mxu0 %vm9467_vm12, %v4239_v52  ;;  %7591 = vmatpush.msk.msra.mxu1 %vm9427_vm7, %v4192_v49  ;;  %v4287_v52 = vsel %vm566_vm1, %v13034_v13, %v16629_v35  ;;  %v4285_v49 = vsel %vm566_vm1, %v13018_v40, %v16630_v17  ;;  %v13372_v13 = vld [vmem:[%s16084_s9 + $0x20] sm:$0xff] }
 0xfd2   : > { %7629 = vmatpush.msk.msra.mxu0 %vm9467_vm12, %v4237_v1  ;;  %7592 = vmatpush.msk.msra.mxu1 %vm9427_vm7, %v4190_v8  ;;  %v16631_v1 = vld [vmem:[#allocation5_spill] sm:$0xff]  ;;  %v4444_v8 = vld [vmem:[%s16084_s9 + $0x90] sm:$0xff] }
 0xfd3   : > { %v4283_v40 = vsel %vm566_vm1, %v12949_v59, %v16631_v1  ;;  %v13398_v59 = vld [vmem:[%s16084_s9 + $0x88] sm:$0xff]  ;;  %v16632_v1 = vld [vmem:[#allocation13_spill] sm:$0xff] }
 0xfd4   : > { %7630 = vmatpush.msk.msra.mxu0 %vm9467_vm12, %v4235_v9  ;;  %7593 = vmatpush.msk.msra.mxu1 %vm9427_vm7, %v4188_v48  ;;  %v13425_v9 = vld [vmem:[%s16084_s9 + $0x68] sm:$0xff]  ;;  %v13441_v48 = vld [vmem:[%s16084_s9 + $0x80] sm:$0xff] }
 0xfd5   : > { %4640 = vmatmul.f32.gmra.mxu0 %v4432_v15  ;;  %4835 = vmatmul.f32.gmra.mxu3 %v4432_v15  ;;  %v13409_v15 = vld [vmem:[%s16084_s9 + $0x50] sm:$0xff] }
 0xfd6   : > { %7631 = vmatpush.msk.msra.mxu0 %vm9415_vm2, %v4193_v3  ;;  %7594 = vmatpush.msk.msra.mxu1 %vm9427_vm7, %v4186_v63  ;;  %v13457_v63 = vld [vmem:[%s16084_s9 + $0x98] sm:$0xff]  ;;  %v4459_v3 = vld [vmem:[%s16084_s9 + $0x108] sm:$0xff] }
 0xfd7   : > { %7601 = vmatmul.msk.f32.gmra.mxu2 %vm1187_vm15, %v13290_v47 }
 0xfd8   : > { %7632 = vmatpush.msk.msra.mxu0 %vm9415_vm2, %v4191_v6  ;;  %4695 = vmatpush.msra.mxu1 %v4376_v32  ;;  %v13505_v6 = vld [vmem:[%s16084_s9 + $0xe0] sm:$0xff]  ;;  %v13510_v32 = vld [vmem:[%s16084_s9 + $0x130] sm:$0xff] }
 0xfda   : > { %7633 = vmatpush.msk.msra.mxu0 %vm9415_vm2, %v4189_v43  ;;  %4696 = vmatpush.msra.mxu1 %v4374_v36  ;;  %v4468_v43 = vld [vmem:[%s16084_s9 + $0x150] sm:$0xff]  ;;  %v13558_v36 = vld [vmem:[%s16084_s9 + $0x178] sm:$0xff] }
 0xfdc   : > { %7634 = vmatpush.msk.msra.mxu0 %vm9415_vm2, %v4187_v0  ;;  %4697 = vmatpush.msra.mxu1 %v4372_v16  ;;  %v13579_v16 = vld [vmem:[%s16084_s9 + $0x158] sm:$0xff] }
 0xfdd   : > { %4643 = vmatmul.f32.gmra.mxu0 %v4435_v26  ;;  %4838 = vmatmul.f32.gmra.mxu3 %v4435_v26 }
 0xfde   : > { %4890 = vmatpush.msra.mxu0 %v4377_v54  ;;  %4698 = vmatpush.msra.mxu1 %v4370_v51 }
 0xfdf   : > { %4699 = vmatmul.f32.vlgmr.msra.gmra.mxu1 %v13334_v19  ;;  %7602 = vmatmul.msk.f32.gmra.mxu2 %vm1187_vm15, %v13339_v29 }
 0xfe0   : > { %4891 = vmatpush.msra.mxu0 %v4375_v42  ;;  %7635 = vmatpush.msk.msrb.mxu1 %vm9415_vm2, %v4289_v39 }
 0xfe2   : > { %4892 = vmatpush.msra.mxu0 %v4373_v45  ;;  %7636 = vmatpush.msk.msrb.mxu1 %vm9415_vm2, %v4287_v52 }
 0xfe4   : > { %4893 = vmatpush.msra.mxu0 %v4371_v62  ;;  %7637 = vmatpush.msk.msrb.mxu1 %vm9415_vm2, %v4285_v49 }
 0xfe5   : > { %4646 = vmatmul.f32.gmra.mxu0 %v4438_v27  ;;  %4841 = vmatmul.f32.gmra.mxu3 %v4438_v27 }
 0xfe6   : > { %7638 = vmatpush.msk.msrb.mxu1 %vm9415_vm2, %v4283_v40 }
 0xfe7   : > { %4702 = vmatmul.f32.gmra.mxu1 %v13372_v13  ;;  %7603 = vmatmul.msk.f32.gmra.mxu2 %vm1187_vm15, %v13377_v37 }
 0xfed   : > { %4649 = vmatmul.f32.gmra.mxu0 %v4441_v31  ;;  %4844 = vmatmul.f32.gmra.mxu3 %v4441_v31 }
 0xfef   : > { %4705 = vmatmul.f32.gmra.mxu1 %v13393_v28  ;;  %7604 = vmatmul.msk.f32.gmra.mxu2 %vm1187_vm15, %v13398_v59 }
 0xff5   : > { %4652 = vmatmul.f32.gmra.mxu0 %v4444_v8  ;;  %4847 = vmatmul.f32.gmra.mxu3 %v4444_v8 }
 0xff7   : > { %4708 = vmatmul.f32.gmra.mxu1 %v13409_v15  ;;  %7605 = vmatmul.msk.f32.gmra.mxu2 %vm1187_vm15, %v13414_v4 }
 0xffd   : > { %4655 = vmatmul.f32.gmra.mxu0 %v4447_v18  ;;  %4850 = vmatmul.f32.gmra.mxu3 %v4447_v18 }
 0xfff   : > { %4711 = vmatmul.f32.gmra.mxu1 %v13425_v9  ;;  %7606 = vmatmul.msk.f32.gmra.mxu2 %vm1187_vm15, %v13430_v50 }
0x1005   : > { %4658 = vmatmul.f32.gmra.mxu0 %v4450_v5  ;;  %4853 = vmatmul.f32.gmra.mxu3 %v4450_v5 }
0x1007   : > { %4714 = vmatmul.f32.gmra.mxu1 %v13441_v48  ;;  %7607 = vmatmul.msk.f32.gmra.mxu2 %vm1187_vm15, %v13446_v46 }
0x100d   : > { %4661 = vmatmul.f32.gmra.mxu0 %v4453_v23  ;;  %4856 = vmatmul.f32.gmra.mxu3 %v4453_v23 }
0x100f   : > { %4717 = vmatmul.f32.gmra.mxu1 %v13457_v63  ;;  %7608 = vmatmul.msk.f32.gmra.mxu2 %vm1187_vm15, %v13462_v38 }
0x1015   : > { %4664 = vmatmul.f32.gmra.mxu0 %v4456_v57  ;;  %4859 = vmatmul.f32.gmra.mxu3 %v4456_v57 }
0x1017   : > { %4720 = vmatmul.f32.gmra.mxu1 %v13473_v34  ;;  %7609 = vmatmul.msk.f32.gmra.mxu2 %vm1187_vm15, %v13478_v61 }
0x101d   : > { %4667 = vmatmul.f32.gmra.mxu0 %v4459_v3  ;;  %4862 = vmatmul.f32.gmra.mxu3 %v4459_v3 }
0x101f   : > { %4723 = vmatmul.f32.gmra.mxu1 %v13489_v2  ;;  %7610 = vmatmul.msk.f32.gmra.mxu2 %vm1187_vm15, %v13494_v41 }
0x1025   : > { %4670 = vmatmul.f32.gmra.mxu0 %v4462_v56  ;;  %4865 = vmatmul.f32.gmra.mxu3 %v4462_v56 }
0x1027   : > { %4726 = vmatmul.f32.gmra.mxu1 %v13505_v6  ;;  %7611 = vmatmul.msk.f32.gmra.mxu2 %vm1187_vm15, %v13510_v32 }
0x102d   : > { %4673 = vmatmul.f32.gmra.mxu0 %v4465_v53  ;;  %4868 = vmatmul.f32.gmra.mxu3 %v4465_v53 }
0x102f   : > { %4729 = vmatmul.f32.gmra.mxu1 %v13521_v22  ;;  %7612 = vmatmul.msk.f32.gmra.mxu2 %vm1187_vm15, %v13526_v21 }
0x1035   : > { %4676 = vmatmul.f32.gmra.mxu0 %v4468_v43  ;;  %4871 = vmatmul.f32.gmra.mxu3 %v4468_v43 }
0x1037   : > { %4732 = vmatmul.f32.gmra.mxu1 %v13537_v24  ;;  %7613 = vmatmul.msk.f32.gmra.mxu2 %vm1187_vm15, %v13542_v7 }
0x103d   : > { %4679 = vmatmul.f32.gmra.mxu0 %v4471_v14  ;;  %4874 = vmatmul.f32.gmra.mxu3 %v4471_v14 }
0x103f   : > { %4735 = vmatmul.f32.gmra.mxu1 %v13553_v33  ;;  %7614 = vmatmul.msk.f32.gmra.mxu2 %vm1187_vm15, %v13558_v36 }
0x1042   : > { %v13563_v26 = vpop.f32.mrf.mxu0 }
0x1045   : > { %4894 = vmatmul.f32.vlgmr.msra.gmra.mxu0 %v13334_v19  ;;  %v13590_v19 = vld [vmem:[%s16084_s9 + $0x170] sm:$0xff] }
0x1047   : > { %4738 = vmatmul.f32.gmra.mxu1 %v13568_v60 }
0x104a   : > { %v13572_v55 = vpop.f32.mrf.mxu0  ;;  %v13574_v0 = vpop.f32.mrf.mxu2 }
0x104d   : > { %4897 = vmatmul.f32.gmra.mxu0 %v13372_v13 }
0x104f   : > { %4741 = vmatmul.f32.gmra.mxu1 %v13579_v16 }
0x1052   : > { %v13583_v10 = vpop.f32.mrf.mxu0  ;;  %v13585_v54 = vpop.f32.mrf.mxu2 }
0x1055   : > { %4900 = vmatmul.f32.gmra.mxu0 %v13393_v28 }
0x1057   : > { %4744 = vmatmul.f32.gmra.mxu1 %v13590_v19 }
0x105a   : > { %v13594_v51 = vpop.f32.mrf.mxu0  ;;  %v13596_v39 = vpop.f32.mrf.mxu2 }
0x105c   : > { %v13598_v42 = vpop.f32.mrf.mxu1 }
0x105d   : > { %4903 = vmatmul.f32.gmra.mxu0 %v13409_v15  ;;  %v16633_v15 = vld [vmem:[#allocation31_spill] sm:$0xff] }
0x105f   : > { %7639 = vmatmul.msk.f32.vlgmr.msrb.gmra.mxu1 %vm1187_vm15, %v13204_v25 }
0x1062   : > { %v4647_v20 = vpop.f32.mrf.mxu0  ;;  %v13603_v45 = vpop.f32.mrf.mxu2 }
0x1063   : > { %v4648_v40 = vadd.f32 %v4647_v20, %v16632_v1 }
0x1064   : > { %v13605_v35 = vpop.f32.mrf.mxu1 }
0x1065   : > { %4906 = vmatmul.f32.gmra.mxu0 %v13425_v9 }
0x1067   : > { %7640 = vmatmul.msk.f32.gmra.mxu1 %vm1187_vm15, %v13236_v12 }
0x106a   : > { %v4650_v52 = vpop.f32.mrf.mxu0  ;;  %v4777_v27 = vpop.f32.mrf.mxu2 }
0x106b   : > { %v4651_v18 = vadd.f32 %v4650_v52, %v16633_v15 }
0x106c   : > { %v13610_v62 = vpop.f32.mrf.mxu1 }
0x106d   : > { %4909 = vmatmul.f32.gmra.mxu0 %v13441_v48 }
0x106f   : > { %7641 = vmatmul.msk.f32.gmra.mxu1 %vm1187_vm15, %v13290_v47 }
0x1072   : > { %v4653_v25 = vpop.f32.mrf.mxu0  ;;  %v4780_v17 = vpop.f32.mrf.mxu2 }
0x1074   : > { %v13615_v49 = vpop.f32.mrf.mxu1 }
0x1075   : > { %4912 = vmatmul.f32.gmra.mxu0 %v13457_v63 }
0x1077   : > { %7642 = vmatmul.msk.f32.gmra.mxu1 %vm1187_vm15, %v13339_v29 }
0x107a   : > { %v4656_v13 = vpop.f32.mrf.mxu0  ;;  %v4783_v12 = vpop.f32.mrf.mxu2 }
0x107c   : > { %v4712_v31 = vpop.f32.mrf.mxu1 }
0x107d   : > { %v4713_v28 = vadd.f32 %v4712_v31, %v4648_v40  ;;  %4915 = vmatmul.f32.gmra.mxu0 %v13473_v34 }
0x107f   : > { %v4778_v8 = vadd.f32 %v4777_v27, %v4713_v28  ;;  %7643 = vmatmul.msk.f32.gmra.mxu1 %vm1187_vm15, %v13377_v37  ;;  %v16634_v37 = vld [vmem:[#allocation16_spill] sm:$0xff] }
0x1080   : > { %v4654_v63 = vadd.f32 %v4653_v25, %v16634_v37 }
0x1081   : > { %5060 = vrot.lane.b32.xlu1 %v4778_v8, %s9264_s16  ;;  %v16637_v8 = vld [vmem:[#allocation25_spill] sm:$0xff] }
0x1082   : > { %v13625_v47 = vpop.f32.mrf.mxu0  ;;  %v4786_v29 = vpop.f32.mrf.mxu2 }
0x1084   : > { %v4715_v9 = vpop.f32.mrf.mxu1 }
0x1085   : > { %v4716_v5 = vadd.f32 %v4715_v9, %v4651_v18  ;;  %4918 = vmatmul.f32.gmra.mxu0 %v13489_v2 }
0x1087   : > { %v4781_v48 = vadd.f32 %v4780_v17, %v4716_v5  ;;  %7644 = vmatmul.msk.f32.gmra.mxu1 %vm1187_vm15, %v13398_v59  ;;  %v16635_v59 = vld [vmem:[#allocation27_spill] sm:$0xff] }
0x1088   : > { %v4657_v53 = vadd.f32 %v4656_v13, %v16635_v59 }
0x1089   : > { %5064 = vrot.lane.b32.xlu0 %v4781_v48, %s9264_s16  ;;  %v16638_v48 = vld [vmem:[#allocation15_spill] sm:$0xff] }
0x108a   : > { %v13632_v23 = vpop.f32.mrf.mxu0  ;;  %v13636_v3 = vpop.f32.mrf.mxu2 }
0x108c   : > { %v4718_v57 = vpop.f32.mrf.mxu1 }
0x108d   : > { %v4719_v34 = vadd.f32 %v4718_v57, %v4654_v63  ;;  %4921 = vmatmul.f32.gmra.mxu0 %v13505_v6 }
0x108f   : > { %v4784_v56 = vadd.f32 %v4783_v12, %v4719_v34  ;;  %7645 = vmatmul.msk.f32.gmra.mxu1 %vm1187_vm15, %v13414_v4 }
0x1091   : > { %5068 = vrot.lane.b32.xlu2 %v4784_v56, %s9264_s16 }
0x1092   : > { %v13641_v2 = vpop.f32.mrf.mxu0  ;;  %v13647_v6 = vpop.f32.mrf.mxu2 }
0x1094   : > { %v4721_v43 = vpop.f32.mrf.mxu1 }
0x1095   : > { %v4722_v14 = vadd.f32 %v4721_v43, %v4657_v53  ;;  %4924 = vmatmul.f32.gmra.mxu0 %v13521_v22  ;;  %v16639_v43 = vld [vmem:[#allocation28_spill] sm:$0xff] }
0x1097   : > { %v4787_v20 = vadd.f32 %v4786_v29, %v4722_v14  ;;  %7646 = vmatmul.msk.f32.gmra.mxu1 %vm1187_vm15, %v13430_v50 }
0x1099   : > { %5072 = vrot.lane.b32.xlu1 %v4787_v20, %s9264_s16 }
0x109a   : > { %v4668_v52 = vpop.f32.mrf.mxu0  ;;  %v13655_v25 = vpop.f32.mrf.mxu2 }
0x109c   : > { %v13650_v4 = vpop.f32.mrf.mxu1 }
0x109d   : > { %4927 = vmatmul.f32.gmra.mxu0 %v13537_v24  ;;  %v16636_v24 = vld [vmem:[#allocation17_spill] sm:$0xff] }
0x109e   : > { %v4669_v12 = vadd.f32 %v4668_v52, %v16636_v24 }
0x109f   : > { %7647 = vmatmul.msk.f32.gmra.mxu1 %vm1187_vm15, %v13446_v46 }
0x10a2   : > { %v4671_v27 = vpop.f32.mrf.mxu0  ;;  %v4798_v13 = vpop.f32.mrf.mxu2 }
0x10a3   : > { %v4672_v18 = vadd.f32 %v4671_v27, %v16637_v8 }
0x10a4   : > { %v13657_v22 = vpop.f32.mrf.mxu1 }
0x10a5   : > { %4930 = vmatmul.f32.gmra.mxu0 %v13553_v33 }
0x10a7   : > { %7648 = vmatmul.msk.f32.gmra.mxu1 %vm1187_vm15, %v13462_v38 }
0x10aa   : > { %v4674_v50 = vpop.f32.mrf.mxu0  ;;  %v4801_v33 = vpop.f32.mrf.mxu2 }
0x10ab   : > { %v4675_v63 = vadd.f32 %v4674_v50, %v16638_v48 }
0x10ac   : > { %v13662_v17 = vpop.f32.mrf.mxu1 }
0x10ad   : > { %4933 = vmatmul.f32.gmra.mxu0 %v13568_v60  ;;  %v4830_v60 = vpop.f32.mrf.mxu3 }
0x10af   : > { %7649 = vmatmul.msk.f32.gmra.mxu1 %vm1187_vm15, %v13478_v61 }
0x10b2   : > { %v4677_v46 = vpop.f32.mrf.mxu0  ;;  %v4804_v5 = vpop.f32.mrf.mxu2 }
0x10b3   : > { %v4678_v14 = vadd.f32 %v4677_v46, %v16639_v43 }
0x10b4   : > { %v4733_v40 = vpop.f32.mrf.mxu1 }
0x10b5   : > { %v4734_v31 = vadd.f32 %v4733_v40, %v4669_v12  ;;  %4936 = vmatmul.f32.gmra.mxu0 %v13579_v16  ;;  %v4833_v34 = vpop.f32.mrf.mxu3 }
0x10b7   : > { %v13669_v28 = vadd.f32 %v4798_v13, %v4734_v31  ;;  %7650 = vmatmul.msk.f32.gmra.mxu1 %vm1187_vm15, %v13494_v41  ;;  %v16640_v13 = vld [vmem:[#allocation32_spill] sm:$0xff] }
0x10ba   : > { %v4680_v38 = vpop.f32.mrf.mxu0  ;;  %v4807_v53 = vpop.f32.mrf.mxu2 }
0x10bb   : > { %v4681_v12 = vadd.f32 %v4680_v38, %v16640_v13 }
0x10bc   : > { %v4736_v9 = vpop.f32.mrf.mxu1 }
0x10bd   : > { %v4737_v29 = vadd.f32 %v4736_v9, %v4672_v18  ;;  %4939 = vmatmul.f32.gmra.mxu0 %v13590_v19  ;;  %v4836_v27 = vpop.f32.mrf.mxu3 }
0x10bf   : > { %v4802_v61 = vadd.f32 %v4801_v33, %v4737_v29  ;;  %7651 = vmatmul.msk.f32.gmra.mxu1 %vm1187_vm15, %v13510_v32  ;;  %v16641_v33 = vld [vmem:[#allocation26_spill] sm:$0xff] }
0x10c0   : > { %v4636_v18 = vadd.f32 %v13563_v26, %v16641_v33  ;;  %v4831_v46 = vadd.f32 %v4830_v60, %v16641_v33 }
0x10c1   : > { %5148 = vrot.lane.b32.xlu1 %v4802_v61, %s9264_s16 }
0x10c2   : > { %v4895_v16 = vpop.f32.mrf.mxu0 }
0x10c3   : > { %v4896_v61 = vadd.f32 %v4895_v16, %v4831_v46 }
0x10c4   : > { %v4739_v57 = vpop.f32.mrf.mxu1 }
0x10c5   : > { %v4740_v41 = vadd.f32 %v4739_v57, %v4675_v63  ;;  %v4839_v29 = vpop.f32.mrf.mxu3 }
0x10c7   : > { %v4805_v56 = vadd.f32 %v4804_v5, %v4740_v41  ;;  %7652 = vmatmul.msk.f32.gmra.mxu1 %vm1187_vm15, %v13526_v21  ;;  %v4810_v21 = vpop.f32.mrf.mxu2  ;;  %v16642_v41 = vld [vmem:[#allocation30_spill] sm:$0xff] }
0x10c8   : > { %v4639_v26 = vadd.f32 %v13572_v55, %v16642_v41 }
0x10c9   : > { %5152 = vrot.lane.b32.xlu0 %v4805_v56, %s9264_s16 }
0x10ca   : > { %v4898_v19 = vpop.f32.mrf.mxu0 }
0x10cc   : > { %v4742_v32 = vpop.f32.mrf.mxu1 }
0x10cd   : > { %v4743_v20 = vadd.f32 %v4742_v32, %v4678_v14  ;;  %v4842_v60 = vpop.f32.mrf.mxu3 }
0x10cf   : > { %v4808_v52 = vadd.f32 %v4807_v53, %v4743_v20  ;;  %7653 = vmatmul.msk.f32.gmra.mxu1 %vm1187_vm15, %v13542_v7  ;;  %v4701_v7 = vadd.f32 %v13598_v42, %v4636_v18  ;;  %v4834_v53 = vadd.f32 %v4833_v34, %v16642_v41 }
0x10d1   : > { %5156 = vrot.lane.b32.xlu2 %v4808_v52, %s9264_s16  ;;  %v4766_v63 = vadd.f32 %v13574_v0, %v4701_v7  ;;  %v4899_v42 = vadd.f32 %v4898_v19, %v4834_v53  ;;  %v16643_v52 = vld [vmem:[#allocation35_spill] sm:$0xff] }
0x10d2   : > { %v4901_v50 = vpop.f32.mrf.mxu0  ;;  %v4642_v0 = vadd.f32 %v13583_v10, %v16643_v52  ;;  %v4837_v55 = vadd.f32 %v4836_v27, %v16643_v52 }
0x10d4   : > { %v4745_v40 = vpop.f32.mrf.mxu1 }
0x10d5   : > { %v4746_v31 = vadd.f32 %v4745_v40, %v4681_v12  ;;  %v4707_v40 = vadd.f32 %v13610_v62, %v4642_v0 }
0x10d7   : > { %v4811_v9 = vadd.f32 %v4810_v21, %v4746_v31  ;;  %7654 = vmatmul.msk.f32.gmra.mxu1 %vm1187_vm15, %v13558_v36  ;;  %v4704_v36 = vadd.f32 %v13605_v35, %v4639_v26  ;;  %v4902_v35 = vadd.f32 %v4901_v50, %v4837_v55  ;;  %v4772_v19 = vadd.f32 %v13596_v39, %v4707_v40  ;;  %v4845_v31 = vpop.f32.mrf.mxu3 }
0x10d8   : > { %v4843_v39 = vadd.f32 %v4842_v60, %v16632_v1  ;;  %v4846_v1 = vadd.f32 %v4845_v31, %v16633_v15 }
0x10d9   : > { %5160 = vrot.lane.b32.xlu1 %v4811_v9, %s9264_s16  ;;  %v4769_v16 = vadd.f32 %v13585_v54, %v4704_v36  ;;  %v16644_v9 = vld [vmem:[#allocation24_spill] sm:$0xff] }
0x10da   : > { %v4904_v5 = vpop.f32.mrf.mxu0  ;;  %v4645_v46 = vadd.f32 %v13594_v51, %v16644_v9  ;;  %v4840_v7 = vadd.f32 %v4839_v29, %v16644_v9 }
0x10dc   : > { %v4960_v38 = vpop.f32.mrf.mxu1 }
0x10dd   : > { %v4961_v57 = vadd.f32 %v4960_v38, %v4896_v61 }
0x10df   : > { %v8313_v56 = vpack.i.bf16 %v4961_v57, %v4766_v63  ;;  %v13716_v62 = vpop.f32.mrf.mxu3  ;;  %v4710_v63 = vadd.f32 %v13615_v49, %v4645_v46  ;;  %v4905_v57 = vadd.f32 %v4904_v5, %v4840_v7  ;;  %v16646_v46 = vld [vmem:[#allocation23_spill] sm:$0xff] }
0x10e0   : > { %v4666_v7 = vadd.f32 %v13641_v2, %v16646_v46 }
0x10e1   : > { %8314 = vrot.lane.b32.xlu0 %v8313_v56, %s9264_s16  ;;  %v4775_v56 = vadd.f32 %v13603_v45, %v4710_v63 }
0x10e2   : > { %v4907_v20 = vpop.f32.mrf.mxu0 }
0x10e3   : > { %v4908_v61 = vadd.f32 %v4907_v20, %v4843_v39 }
0x10e4   : > { %v4963_v14 = vpop.f32.mrf.mxu1 }
0x10e5   : > { %v4964_v32 = vadd.f32 %v4963_v14, %v4899_v42 }
0x10e7   : > { %v8318_v12 = vpack.i.bf16 %v4964_v32, %v4769_v16  ;;  %v4851_v53 = vpop.f32.mrf.mxu3 }
0x10e8   : > { %v4852_v15 = vadd.f32 %v4851_v53, %v16635_v59  ;;  %v16645_v59 = vld [vmem:[#allocation18_spill] sm:$0xff] }
0x10e9   : > { %8319 = vrot.lane.b32.xlu1 %v8318_v12, %s9264_s16 }
0x10ea   : > { %v4910_v54 = vpop.f32.mrf.mxu0 }
0x10eb   : > { %v4911_v51 = vadd.f32 %v4910_v54, %v4846_v1  ;;  %v13744_v55 = vpop.permute.xlu2 %5068 }
0x10ec   : > { %v4966_v34 = vpop.f32.mrf.mxu1 }
0x10ed   : > { %v4967_v21 = vadd.f32 %v4966_v34, %v4902_v35  ;;  %v13748_v35 = vsel %vm489_vm0, 0.0, %v13744_v55  ;;  %v4663_v34 = vadd.f32 %v13632_v23, %v16645_v59 }
0x10ef   : > { %v8323_v33 = vpack.i.bf16 %v4967_v21, %v4772_v19  ;;  %v4854_v5 = vpop.f32.mrf.mxu3  ;;  %v4728_v31 = vadd.f32 %v13657_v22, %v4663_v34 }
0x10f1   : > { %8324 = vrot.lane.b32.xlu2 %v8323_v33, %s9264_s16  ;;  %v4793_v39 = vadd.f32 %v13647_v6, %v4728_v31 }
0x10f2   : > { %v13719_v50 = vpop.f32.mrf.mxu0 }
0x10f3   : > { %v13708_v18 = vpop.permute.xlu1 %5060 }
0x10f4   : > { %v4969_v10 = vpop.f32.mrf.mxu1  ;;  %v13712_v27 = vsel %vm489_vm0, 0.0, %v13708_v18 }
0x10f5   : > { %5204 = vrot.lane.b32.xlu0 %v13712_v27, %s9266_s18  ;;  %v4970_v26 = vadd.f32 %v4969_v10, %v4905_v57 }
0x10f7   : > { %v8328_v36 = vpack.i.bf16 %v4970_v26, %v4775_v56  ;;  %v4857_v0 = vpop.f32.mrf.mxu3 }
0x10f8   : > { %v4858_v21 = vadd.f32 %v4857_v0, %v16645_v59 }
0x10fa   : > { %v4916_v29 = vpop.f32.mrf.mxu0 }
0x10fb   : > { %v13732_v49 = vpop.permute.xlu0 %5064  ;;  %v4917_v32 = vadd.f32 %v4916_v29, %v4852_v15 }
0x10fc   : > { %v4972_v38 = vpop.f32.mrf.mxu1  ;;  %v13736_v16 = vsel %vm489_vm0, 0.0, %v13732_v49 }
0x10fd   : > { %v4973_v41 = vadd.f32 %v4972_v38, %v4908_v61  ;;  %5857 = vrot.lane.b32.xlu0 %v13712_v27, %s9268_s20  ;;  %v4731_v38 = vadd.f32 %v13662_v17, %v4666_v7 }
0x10ff   : > { %5062 = vrot.lane.b32.xlu2 %v4973_v41, %s9264_s16  ;;  %v4860_v19 = vpop.f32.mrf.mxu3  ;;  %v4796_v1 = vadd.f32 %v13655_v25, %v4731_v38 }
0x1100   : > { %v4861_v23 = vadd.f32 %v4860_v19, %v16646_v46 }
0x1102   : > { %v4919_v45 = vpop.f32.mrf.mxu0 }
0x1104   : > { %v4975_v42 = vpop.f32.mrf.mxu1 }
0x1105   : > { %v4976_v60 = vadd.f32 %v4975_v42, %v4911_v51  ;;  %8329 = vrot.lane.b32.xlu0 %v8328_v36, %s9264_s16  ;;  %v4849_v36 = vadd.f32 %v13716_v62, %v16634_v37  ;;  %v16647_v42 = vld [vmem:[#allocation21_spill] sm:$0xff] }
0x1106   : > { %v4855_v15 = vadd.f32 %v4854_v5, %v16647_v42 }
0x1107   : > { %5066 = vrot.lane.b32.xlu1 %v4976_v60, %s9264_s16  ;;  %v4863_v22 = vpop.f32.mrf.mxu3  ;;  %v4914_v25 = vadd.f32 %v13719_v50, %v4849_v36  ;;  %v4660_v60 = vadd.f32 %v13625_v47, %v16647_v42 }
0x1109   : > { %v4725_v0 = vadd.f32 %v13650_v4, %v4660_v60 }
0x110a   : > { %v4922_v12 = vpop.f32.mrf.mxu0 }
0x110b   : > { %v4923_v54 = vadd.f32 %v4922_v12, %v4858_v21  ;;  %v13763_v63 = vpop.permute.xlu1 %5072  ;;  %v4920_v12 = vadd.f32 %v4919_v45, %v4855_v15  ;;  %v4790_v62 = vadd.f32 %v13636_v3, %v4725_v0  ;;  %v4864_v45 = vadd.f32 %v4863_v22, %v16636_v24 }
0x110c   : > { %v4978_v14 = vpop.f32.mrf.mxu1  ;;  %v13768_v26 = vsel %vm489_vm0, 0.0, %v13763_v63 }
0x110d   : > { %5210 = vrot.lane.b32.xlu0 %v13736_v16, %s9266_s18 }
0x110f   : > { %v4866_v17 = vpop.f32.mrf.mxu3 }
0x1110   : > { %v4867_v29 = vadd.f32 %v4866_v17, %v16637_v8 }
0x1112   : > { %v4925_v33 = vpop.f32.mrf.mxu0 }
0x1113   : > { %v4926_v57 = vadd.f32 %v4925_v33, %v4861_v23 }
0x1114   : > { %v4981_v20 = vpop.f32.mrf.mxu1 }
0x1115   : > { %v4982_v52 = vadd.f32 %v4981_v20, %v4917_v32  ;;  %5863 = vrot.lane.b32.xlu0 %v13736_v16, %s9268_s20  ;;  %v4979_v32 = vadd.f32 %v4978_v14, %v4914_v25 }
0x1117   : > { %5074 = vrot.lane.b32.xlu2 %v4982_v52, %s9264_s16  ;;  %v4869_v34 = vpop.f32.mrf.mxu3 }
0x1118   : > { %v4870_v47 = vadd.f32 %v4869_v34, %v16638_v48 }
0x111a   : > { %v4928_v41 = vpop.f32.mrf.mxu0 }
0x111b   : > { %v4929_v21 = vadd.f32 %v4928_v41, %v4864_v45 }
0x111c   : > { %v4984_v40 = vpop.f32.mrf.mxu1 }
0x111d   : > { %5216 = vrot.lane.b32.xlu0 %v13748_v35, %s9266_s18  ;;  %v4985_v37 = vadd.f32 %v4984_v40, %v4920_v12 }
0x111f   : > { %v8333_v50 = vpack.i.bf16 %v4985_v37, %v4790_v62 }
0x1122   : > { %v4931_v51 = vpop.f32.mrf.mxu0 }
0x1123   : > { %v4932_v20 = vadd.f32 %v4931_v51, %v4867_v29 }
0x1124   : > { %v4987_v10 = vpop.f32.mrf.mxu1 }
0x1125   : > { %v4988_v9 = vadd.f32 %v4987_v10, %v4923_v54  ;;  %5869 = vrot.lane.b32.xlu0 %v13748_v35, %s9268_s20  ;;  %v4872_v54 = vpop.f32.mrf.mxu3 }
0x1126   : > { %v4873_v15 = vadd.f32 %v4872_v54, %v16639_v43 }
0x1127   : > { %v8338_v61 = vpack.i.bf16 %v4988_v9, %v4793_v39 }
0x1129   : > { %8339 = vrot.lane.b32.xlu1 %v8338_v61, %s9264_s16 }
0x112a   : > { %v4934_v8 = vpop.f32.mrf.mxu0 }
0x112b   : > { %v4935_v5 = vadd.f32 %v4934_v8, %v4870_v47 }
0x112c   : > { %v4990_v6 = vpop.f32.mrf.mxu1 }
0x112d   : > { %v4991_v2 = vadd.f32 %v4990_v6, %v4926_v57  ;;  %5222 = vrot.lane.b32.xlu0 %v13768_v26, %s9266_s18  ;;  %v4875_v22 = vpop.f32.mrf.mxu3  ;;  %v13813_v57 = vpop.permute.xlu2 %5156 }
0x112e   : > { %v4876_v6 = vadd.f32 %v4875_v22, %v16640_v13 }
0x112f   : > { %v8343_v56 = vpack.i.bf16 %v4991_v2, %v4796_v1  ;;  %v13820_v2 = vsel %vm489_vm0, 0.0, %v13813_v57 }
0x1131   : > { %8344 = vrot.lane.b32.xlu2 %v8343_v56, %s9264_s16 }
0x1132   : > { %v4937_v24 = vpop.f32.mrf.mxu0 }
0x1133   : > { %v13790_v4 = vpop.permute.xlu1 %5148  ;;  %v4938_v0 = vadd.f32 %v4937_v24, %v4873_v15 }
0x1134   : > { %v4993_v53 = vpop.f32.mrf.mxu1  ;;  %v13795_v40 = vsel %vm489_vm0, 0.0, %v13790_v4 }
0x1135   : > { %5875 = vrot.lane.b32.xlu0 %v13768_v26, %s9268_s20  ;;  %16648 = vst [vmem:[#allocation20_spill] sm:$0xff] %v13795_v40  ;;  %v4994_v3 = vadd.f32 %v4993_v53, %v4929_v21 }
0x1137   : > { %v8348_v31 = vpack.i.bf16 %v4994_v3, %v13669_v28 }
0x113a   : > { %v4940_v41 = vpop.f32.mrf.mxu0 }
0x113b   : > { %v13799_v48 = vpop.permute.xlu0 %5152  ;;  %v4941_v56 = vadd.f32 %v4940_v41, %v4876_v6 }
0x113c   : > { %v4996_v52 = vpop.f32.mrf.mxu1  ;;  %v13807_v61 = vsel %vm489_vm0, 0.0, %v13799_v48 }
0x113d   : > { %v4997_v59 = vadd.f32 %v4996_v52, %v4932_v20  ;;  %5070 = vrot.lane.b32.xlu0 %v4979_v32, %s9264_s16 }
0x113f   : > { %5150 = vrot.lane.b32.xlu2 %v4997_v59, %s9264_s16 }
0x1144   : > { %v4999_v14 = vpop.f32.mrf.mxu1 }
0x1145   : > { %v5000_v19 = vadd.f32 %v4999_v14, %v4935_v5  ;;  %8334 = vrot.lane.b32.xlu0 %v8333_v50, %s9264_s16 }
0x1147   : > { %5154 = vrot.lane.b32.xlu1 %v5000_v19, %s9264_s16 }
0x114b   : > { %v13802_v33 = vpop.permute.xlu1 %5160  ;;  %v8325_v43 = vpop.permute.xlu2 %8324 }
0x114c   : > { %v5002_v39 = vpop.f32.mrf.mxu1  ;;  %v13830_v13 = vsel %vm489_vm0, 0.0, %v13802_v33  ;;  %v8327_v8 = vunpack.i.h.bf16 %v8325_v43  ;;  %v8326_v19 = vunpack.i.l.bf16 %v8325_v43 }
0x114d   : > { %5260 = vrot.lane.b32.xlu0 %v13795_v40, %s9266_s18  ;;  %v5003_v12 = vadd.f32 %v5002_v39, %v4938_v0 }
0x114e   : > { %v5050_v47 = vsel %vm489_vm0, %v8327_v8, 0.0  ;;  %v5034_v21 = vsel %vm489_vm0, %v8326_v19, %v8327_v8  ;;  %v5046_v3 = vsel %vm489_vm0, 0.0, %v8326_v19 }
0x114f   : > { %v8448_v39 = vpack.i.bf16 %v5034_v21, %v5046_v3 }
0x1153   : > { %v8315_v10 = vpop.permute.xlu0 %8314 }
0x1154   : > { %v8317_v9 = vunpack.i.h.bf16 %v8315_v10  ;;  %v5005_v1 = vpop.f32.mrf.mxu1  ;;  %v8316_v51 = vunpack.i.l.bf16 %v8315_v10 }
0x1155   : > { %8349 = vrot.lane.b32.xlu0 %v8348_v31, %s9264_s16  ;;  %v5006_v17 = vadd.f32 %v5005_v1, %v4941_v56 }
0x1156   : > { %v5048_v28 = vsel %vm489_vm0, %v8317_v9, 0.0  ;;  %v5032_v29 = vsel %vm489_vm0, %v8316_v51, %v8317_v9  ;;  %v5044_v25 = vsel %vm489_vm0, 0.0, %v8316_v51 }
0x1157   : > { %v8373_v52 = vpack.i.bf16 %v5032_v29, %v5044_v25 }
0x1159   : > { %v5063_v9 = vpop.permute.xlu2 %5062 }
0x115a   : > { %v5076_v22 = vsel %vm489_vm0, %v13708_v18, %v5063_v9  ;;  %v5092_v6 = vsel %vm489_vm0, %v5063_v9, 0.0 }
0x115b   : > { %v8320_v46 = vpop.permute.xlu1 %8319  ;;  %v8508_v56 = vpack.i.bf16 %v13736_v16, %v5092_v6  ;;  %v8503_v15 = vpack.i.bf16 %v5076_v22, %v13712_v27 }
0x115c   : > { %v8321_v7 = vunpack.i.l.bf16 %v8320_v46  ;;  %v8322_v36 = vunpack.i.h.bf16 %v8320_v46 }
0x115d   : > { %5266 = vrot.lane.b32.xlu0 %v13807_v61, %s9266_s18 }
0x115e   : > { %v5045_v23 = vsel %vm489_vm0, 0.0, %v8321_v7  ;;  %v5049_v42 = vsel %vm489_vm0, %v8322_v36, 0.0  ;;  %v5033_v60 = vsel %vm489_vm0, %v8321_v7, %v8322_v36 }
0x115f   : > { %v8378_v38 = vpack.i.bf16 %v5045_v23, %v5048_v28  ;;  %v8403_v20 = vpack.i.bf16 %v5049_v42, %v5033_v60 }
0x1161   : > { %8379 = vrot.lane.b32.xlu2 %v8378_v38, %s9266_s18  ;;  %8359 = vrot.lane.b32.xlu1 %v8378_v38, %s16586_s24 }
0x1165   : > { %5272 = vrot.lane.b32.xlu0 %v13820_v2, %s9266_s18 }
0x1167   : > { %v13824_v53 = vpop.permute.xlu0 %5204 }
0x1169   : > { %5162 = vrot.lane.b32.xlu2 %v5006_v17, %s9264_s16  ;;  %8369 = vrot.lane.b32.xlu1 %v8378_v38, %s9265_s17 }
0x116d   : > { %5278 = vrot.lane.b32.xlu0 %v13830_v13, %s9266_s18 }
0x116f   : > { %v13839_v32 = vpop.permute.xlu0 %5857 }
0x1170   : > { %16649 = vst [vmem:[#allocation12_spill] sm:$0xff] %v13839_v32 }
0x1171   : > { %8404 = vrot.lane.b32.xlu2 %v8403_v20, %s16586_s24  ;;  %8374 = vrot.lane.b32.xlu1 %v8373_v52, %s9266_s18  ;;  %v13877_v7 = vpop.permute.xlu2 %5074 }
0x1175   : > { %5158 = vrot.lane.b32.xlu0 %v5003_v12, %s9264_s16 }
0x1177   : > { %v8330_v59 = vpop.permute.xlu0 %8329 }
0x1178   : > { %v8331_v37 = vunpack.i.l.bf16 %v8330_v59  ;;  %v8332_v45 = vunpack.i.h.bf16 %v8330_v59 }
0x1179   : > { %8409 = vrot.lane.b32.xlu2 %v8403_v20, %s9265_s17  ;;  %8389 = vrot.lane.b32.xlu1 %v8378_v38, %s16587_s29  ;;  %v5067_v17 = vpop.permute.xlu1 %5066 }
0x117a   : > { %v5047_v62 = vsel %vm489_vm0, 0.0, %v8331_v37  ;;  %v5051_v31 = vsel %vm489_vm0, %v8332_v45, 0.0  ;;  %v5035_v54 = vsel %vm489_vm0, %v8331_v37, %v8332_v45  ;;  %v5093_v25 = vsel %vm489_vm0, %v5067_v17, 0.0 }
0x117b   : > { %v8433_v5 = vpack.i.bf16 %v5047_v62, %v5050_v47  ;;  %v8478_v24 = vpack.i.bf16 %v5051_v31, %v5035_v54 }
0x117d   : > { %8354 = vrot.lane.b32.xlu0 %v8373_v52, %s16586_s24 }
0x117f   : > { %v13847_v34 = vpop.permute.xlu0 %5210 }
0x1181   : > { %8419 = vrot.lane.b32.xlu2 %v8403_v20, %s16587_s29  ;;  %8399 = vrot.lane.b32.xlu1 %v8378_v38, %s9269_s21 }
0x1185   : > { %8364 = vrot.lane.b32.xlu0 %v8373_v52, %s9265_s17 }
0x1187   : > { %v13854_v50 = vpop.permute.xlu0 %5863 }
0x1188   : > { %16650 = vst [vmem:[#allocation38_spill] sm:$0xff] %v13854_v50 }
0x1189   : > { %8424 = vrot.lane.b32.xlu2 %v8403_v20, %s9269_s21  ;;  %8434 = vrot.lane.b32.xlu1 %v8433_v5, %s16586_s24 }
0x118b   : > { %v13884_v23 = vpop.permute.xlu2 %8344 }
0x118d   : > { %8384 = vrot.lane.b32.xlu0 %v8373_v52, %s16587_s29 }
0x118f   : > { %v13859_v14 = vpop.permute.xlu0 %5216 }
0x1191   : > { %8454 = vrot.lane.b32.xlu2 %v8433_v5, %s9266_s18  ;;  %8444 = vrot.lane.b32.xlu1 %v8433_v5, %s9265_s17 }
0x1195   : > { %8394 = vrot.lane.b32.xlu0 %v8373_v52, %s9269_s21 }
0x1197   : > { %v13868_v10 = vpop.permute.xlu0 %5869 }
0x1198   : > { %16651 = vst [vmem:[#allocation10_spill] sm:$0xff] %v13868_v10 }
0x1199   : > { %8479 = vrot.lane.b32.xlu2 %v8478_v24, %s16586_s24  ;;  %8449 = vrot.lane.b32.xlu1 %v8448_v39, %s9266_s18  ;;  %v13891_v41 = vpop.permute.xlu2 %5150 }
0x119b   : > { %v13907_v36 = vpop.permute.xlu1 %8339 }
0x119d   : > { %8414 = vrot.lane.b32.xlu0 %v8403_v20, %s9266_s18  ;;  %v5077_v20 = vsel %vm489_vm0, %v13732_v49, %v5067_v17 }
0x119e   : > { %v8523_v0 = vpack.i.bf16 %v5093_v25, %v5077_v20 }
0x119f   : > { %v13873_v46 = vpop.permute.xlu0 %5222 }
0x11a1   : > { %8484 = vrot.lane.b32.xlu2 %v8478_v24, %s9265_s17  ;;  %8464 = vrot.lane.b32.xlu1 %v8433_v5, %s16587_s29 }
0x11a5   : > { %8429 = vrot.lane.b32.xlu0 %v8448_v39, %s16586_s24 }
0x11a7   : > { %v13880_v28 = vpop.permute.xlu0 %5875 }
0x11a8   : > { %16652 = vst [vmem:[#allocation9_spill] sm:$0xff] %v13880_v28 }
0x11a9   : > { %8494 = vrot.lane.b32.xlu2 %v8478_v24, %s16587_s29  ;;  %8474 = vrot.lane.b32.xlu1 %v8433_v5, %s9269_s21 }
0x11ad   : > { %8439 = vrot.lane.b32.xlu0 %v8448_v39, %s9265_s17 }
0x11af   : > { %v5071_v38 = vpop.permute.xlu0 %5070 }
0x11b0   : > { %v5078_v27 = vsel %vm489_vm0, %v13744_v55, %v5071_v38  ;;  %v5094_v19 = vsel %vm489_vm0, %v5071_v38, 0.0 }
0x11b1   : > { %8499 = vrot.lane.b32.xlu2 %v8478_v24, %s9269_s21  ;;  %5206 = vrot.lane.b32.xlu1 %v5076_v22, %s9266_s18  ;;  %v8533_v8 = vpack.i.bf16 %v5078_v27, %v13748_v35 }
0x11b5   : > { %8459 = vrot.lane.b32.xlu0 %v8448_v39, %s16587_s29 }
0x11b7   : > { %v13895_v1 = vpop.permute.xlu0 %8334 }
0x11b8   : > { %v8337_v55 = vunpack.i.h.bf16 %v13895_v1  ;;  %v8336_v45 = vunpack.i.l.bf16 %v13895_v1 }
0x11b9   : > { %5208 = vrot.lane.b32.xlu2 %v5092_v6, %s9266_s18  ;;  %8509 = vrot.lane.b32.xlu1 %v8508_v56, %s16586_s24  ;;  %v13917_v42 = vpop.permute.xlu1 %5154 }
0x11ba   : > { %v5120_v38 = vsel %vm489_vm0, %v8336_v45, %v8337_v55  ;;  %v5136_v32 = vsel %vm489_vm0, %v8337_v55, 0.0 }
0x11bb   : > { %v13900_v18 = vpop.permute.xlu2 %8379 }
0x11bc   : > { %v13956_v21 = vunpack.i.l.bf16 %v13900_v18 }
0x11bd   : > { %8469 = vrot.lane.b32.xlu0 %v8448_v39, %s9269_s21  ;;  %v8538_v39 = vpack.i.bf16 %v13768_v26, %v5094_v19  ;;  %s16664_s21 = smov 126  }
0x11be   : > { %16658 = vst [vmem:[#allocation22_spill] sm:$0xff] %v13956_v21 }
0x11bf   : > { %v13903_v51 = vpop.permute.xlu0 %5260 }
0x11c1   : > { %5861 = vrot.lane.b32.xlu2 %v5092_v6, %s9268_s20  ;;  %5859 = vrot.lane.b32.xlu1 %v5076_v22, %s9268_s20  ;;  %v5132_v22 = vsel %vm489_vm0, 0.0, %v8336_v45 }
0x11c3   : > { %v13909_v29 = vpop.permute.xlu2 %5162 }
0x11c5   : > { %8489 = vrot.lane.b32.xlu0 %v8478_v24, %s9266_s18 }
0x11c7   : > { %v13912_v16 = vpop.permute.xlu0 %8349 }
0x11c9   : > { %5214 = vrot.lane.b32.xlu2 %v5093_v25, %s9266_s18  ;;  %8519 = vrot.lane.b32.xlu1 %v8508_v56, %s16587_s29  ;;  %v13975_v56 = vpack.i.bf16 %v5120_v38, %v5132_v22 }
0x11cb   : > { %v13919_v60 = vpop.permute.xlu2 %8404 }
0x11cc   : > { %16653 = vst [vmem:[#allocation37_spill] sm:$0xff] %v13919_v60 }
0x11cd   : > { %8504 = vrot.lane.b32.xlu0 %v8503_v15, %s16586_s24 }
0x11cf   : > { %v13925_v52 = vpop.permute.xlu0 %5266 }
0x11d1   : > { %8524 = vrot.lane.b32.xlu2 %v8523_v0, %s16586_s24  ;;  %5212 = vrot.lane.b32.xlu1 %v5077_v20, %s9266_s18 }
0x11d3   : > { %v13929_v12 = vpop.permute.xlu2 %8409  ;;  %v13931_v59 = vpop.permute.xlu1 %8359 }
0x11d4   : > { %16654 = vst [vmem:[#allocation11_spill] sm:$0xff] %v13931_v59 }
0x11d5   : > { %8514 = vrot.lane.b32.xlu0 %v8503_v15, %s16587_s29 }
0x11d7   : > { %v13934_v43 = vpop.permute.xlu0 %5272 }
0x11d8   : > { %16655 = vst [vmem:[#allocation33_spill] sm:$0xff] %v13934_v43 }
0x11d9   : > { %5867 = vrot.lane.b32.xlu2 %v5093_v25, %s9268_s20  ;;  %5865 = vrot.lane.b32.xlu1 %v5077_v20, %s9268_s20  ;;  %v5095_v20 = vsel %vm489_vm0, %v13877_v7, 0.0 }
0x11db   : > { %v13940_v49 = vpop.permute.xlu2 %8419  ;;  %v13942_v37 = vpop.permute.xlu1 %8369 }
0x11dc   : > { %16656 = vst [vmem:[#allocation6_spill] sm:$0xff] %v13940_v49 }
0x11dd   : > { %8534 = vrot.lane.b32.xlu0 %v8533_v8, %s16586_s24 }
0x11df   : > { %v13946_v62 = vpop.permute.xlu0 %5278 }
0x11e0   : > { %16657 = vst [vmem:[#allocation34_spill] sm:$0xff] %v13946_v62 }
0x11e1   : > { %8529 = vrot.lane.b32.xlu2 %v8523_v0, %s16587_s29  ;;  %5218 = vrot.lane.b32.xlu1 %v5078_v27, %s9266_s18 }
0x11e3   : > { %v13951_v47 = vpop.permute.xlu2 %8424  ;;  %v8375_v5 = vpop.permute.xlu1 %8374 }
0x11e4   : > { %v8377_v35 = vunpack.i.h.bf16 %v8375_v5  ;;  %v8376_v3 = vunpack.i.l.bf16 %v8375_v5 }
0x11e5   : > { %8544 = vrot.lane.b32.xlu0 %v8533_v8, %s16587_s29 }
0x11e6   : > { %v5762_v31 = vsel %vm527_vm5, %v8377_v35, %v13956_v21  ;;  %v5761_v54 = vsel %vm527_vm5, %v8376_v3, %v8377_v35 }
0x11e7   : > { %v13962_v24 = vpop.permute.xlu0 %5158  ;;  %v13965_v9 = vpack.i.bf16 %v5762_v31, %v5761_v54 }
0x11e9   : > { %16659 = vst [vmem:[#allocation29_spill] sm:$0xff] %v13965_v9  ;;  %5220 = vrot.lane.b32.xlu2 %v5094_v19, %s9266_s18  ;;  %8539 = vrot.lane.b32.xlu1 %v8538_v39, %s16586_s24 }
0x11eb   : > { %v13971_v6 = vpop.permute.xlu2 %8454  ;;  %v13973_v1 = vpop.permute.xlu1 %8389 }
0x11ec   : > { %16660 = vst [vmem:[#allocation41_spill] sm:$0xff] %v13973_v1 }
0x11ed   : > { %8564 = vrot.lane.b32.xlu0 %v13975_v56, %s16585_s28 }
0x11ef   : > { %v13979_v26 = vpop.permute.xlu0 %8354 }
0x11f0   : > { %16661 = vst [vmem:[#allocation8_spill] sm:$0xff] %v13979_v26 }
0x11f1   : > { %5873 = vrot.lane.b32.xlu2 %v5094_v19, %s9268_s20  ;;  %5871 = vrot.lane.b32.xlu1 %v5078_v27, %s9268_s20  ;;  %v5079_v27 = vsel %vm489_vm0, %v13763_v63, %v13877_v7  ;;  %v8341_v63 = vunpack.i.l.bf16 %v13907_v36 }
0x11f2   : > { %v8553_v19 = vpack.i.bf16 %v5095_v20, %v5079_v27 }
0x11f3   : > { %v13983_v17 = vpop.permute.xlu2 %8479  ;;  %v13985_v25 = vpop.permute.xlu1 %8399 }
0x11f4   : > { %16662 = vst [vmem:[#allocation36_spill] sm:$0xff] %v13983_v17 }
0x11f5   : > { %8574 = vrot.lane.b32.xlu0 %v13975_v56, %s16586_s24 }
0x11f7   : > { %v13989_v15 = vpop.permute.xlu0 %8364 }
0x11f9   : > { %5226 = vrot.lane.b32.xlu2 %v5095_v20, %s9266_s18  ;;  %8549 = vrot.lane.b32.xlu1 %v8538_v39, %s16587_s29 }
0x11fb   : > { %v8485_v0 = vpop.permute.xlu2 %8484  ;;  %v13995_v8 = vpop.permute.xlu1 %8434 }
0x11fc   : > { %16663 = vst [vmem:[#allocation14_spill] sm:$0xff] %v13995_v8  ;;  %v8487_v45 = vunpack.i.h.bf16 %v8485_v0  ;;  %v8486_v35 = vunpack.i.l.bf16 %v8485_v0 }
0x11fd   : > { %8584 = vrot.lane.b32.xlu0 %v13975_v56, %s16664_s21 }
0x11fe   : > { %v5643_v54 = vsel %vm540_vm4, %v8486_v35, %v8487_v45  ;;  %v5133_v45 = vsel %vm489_vm0, 0.0, %v8341_v63 }
0x11ff   : > { %v14002_v5 = vpop.permute.xlu0 %8384  ;;  %v5659_v0 = vsel %vm9415_vm2, %v5643_v54, 0.0  ;;  %v8608_v28 = vpack.i.bf16 %v5133_v45, %v5136_v32  ;;  %v14030_v54 = vunpack.i.l.bf16 %v13971_v6  ;;  %v8382_v32 = vunpack.i.h.bf16 %v13900_v18 }
0x1200   : > { %16665 = vst [vmem:[#allocation7_spill] sm:$0xff] %v14002_v5 }
0x1201   : > { %8554 = vrot.lane.b32.xlu2 %v8553_v19, %s16586_s24  ;;  %5224 = vrot.lane.b32.xlu1 %v5079_v27, %s9266_s18  ;;  %16667 = vst [vmem:[#allocation19_spill] sm:$0xff] %v14030_v54 }
0x1203   : > { %v14006_v3 = vpop.permute.xlu2 %8494  ;;  %v8445_v31 = vpop.permute.xlu1 %8444 }
0x1204   : > { %16666 = vst [vmem:[#allocation40_spill] sm:$0xff] %v14006_v3  ;;  %v8447_v39 = vunpack.i.h.bf16 %v8445_v31 }
0x1205   : > { %8594 = vrot.lane.b32.xlu0 %v13975_v56, %s9265_s17 }
0x1206   : > { %v5642_v7 = vsel %vm540_vm4, %v8447_v39, %v8486_v35  ;;  %v8347_v35 = vunpack.i.h.bf16 %v13884_v23  ;;  %v8346_v39 = vunpack.i.l.bf16 %v13884_v23 }
0x1207   : > { %v14013_v38 = vpop.permute.xlu0 %8394  ;;  %v5658_v22 = vsel %vm9427_vm7, %v5642_v7, 0.0 }
0x1208   : > { %v14020_v50 = vpack.i.bf16 %v5659_v0, %v5658_v22  ;;  %v5122_v0 = vsel %vm489_vm0, %v8346_v39, %v8347_v35  ;;  %v5134_v5 = vsel %vm489_vm0, 0.0, %v8346_v39 }
0x1209   : > { %5879 = vrot.lane.b32.xlu2 %v5095_v20, %s9268_s20  ;;  %5877 = vrot.lane.b32.xlu1 %v5079_v27, %s9268_s20  ;;  %v8638_v39 = vpack.i.bf16 %v5122_v0, %v5134_v5 }
0x120b   : > { %v14027_v10 = vpop.permute.xlu2 %8499  ;;  %v8450_v7 = vpop.permute.xlu1 %8449 }
0x120c   : > { %v8452_v55 = vunpack.i.h.bf16 %v8450_v7  ;;  %v8451_v22 = vunpack.i.l.bf16 %v8450_v7 }
0x120d   : > { %8609 = vrot.lane.b32.xlu0 %v8608_v28, %s9266_s18 }
0x120e   : > { %v5766_v20 = vsel %vm527_vm5, %v8452_v55, %v14030_v54  ;;  %v5765_v27 = vsel %vm527_vm5, %v8451_v22, %v8452_v55 }
0x120f   : > { %v8415_v1 = vpop.permute.xlu0 %8414  ;;  %v14037_v23 = vpack.i.bf16 %v5766_v20, %v5765_v27 }
0x1210   : > { %v14041_v45 = vunpack.i.h.bf16 %v8415_v1  ;;  %v8416_v49 = vunpack.i.l.bf16 %v8415_v1 }
0x1211   : > { %16668 = vst [vmem:[#allocation39_spill] sm:$0xff] %v14037_v23  ;;  %8559 = vrot.lane.b32.xlu2 %v8553_v19, %s16587_s29  ;;  %8569 = vrot.lane.b32.xlu1 %v8608_v28, %s16585_s28  ;;  %v8342_v19 = vunpack.i.h.bf16 %v13907_v36 }
0x1212   : > { %16669 = vst [vmem:[#allocation4_spill] sm:$0xff] %v14041_v45  ;;  %v14046_v7 = vsel %vm527_vm5, %v8382_v32, %v8416_v49  ;;  %v14050_v55 = vsel %vm527_vm5, %v8416_v49, %v14041_v45 }
0x1213   : > { %16670 = vst [vmem:[#allocation5_spill] sm:$0xff] %v14046_v7  ;;  %v14052_v22 = vpop.permute.xlu2 %5208  ;;  %v14054_v20 = vpop.permute.xlu1 %8464  ;;  %v5137_v5 = vsel %vm489_vm0, %v8342_v19, 0.0  ;;  %v5121_v0 = vsel %vm489_vm0, %v8341_v63, %v8342_v19 }
0x1214   : > { %16671 = vst [vmem:[#allocation13_spill] sm:$0xff] %v14050_v55  ;;  %v8613_v18 = vpack.i.bf16 %v5137_v5, %v5121_v0  ;;  %v8351_v0 = vunpack.i.l.bf16 %v13912_v16 }
0x1215   : > { %16672 = vst [vmem:[#allocation31_spill] sm:$0xff] %v14052_v22  ;;  %8639 = vrot.lane.b32.xlu0 %v8638_v39, %s16585_s28 }
0x1216   : > { %16673 = vst [vmem:[#allocation16_spill] sm:$0xff] %v14054_v20  ;;  %v8446_v20 = vunpack.i.l.bf16 %v8445_v31 }
0x1217   : > { %v14059_v1 = vpop.permute.xlu0 %8429 }
0x1218   : > { %16674 = vst [vmem:[#allocation27_spill] sm:$0xff] %v14059_v1 }
0x1219   : > { %8604 = vrot.lane.b32.xlu2 %v13975_v56, %s9266_s18  ;;  %8579 = vrot.lane.b32.xlu1 %v8608_v28, %s16586_s24 }
0x121b   : > { %v14065_v49 = vpop.permute.xlu2 %5861  ;;  %v14067_v27 = vpop.permute.xlu1 %8474 }
0x121c   : > { %16675 = vst [vmem:[#allocation17_spill] sm:$0xff] %v14065_v49 }
0x121d   : > { %8649 = vrot.lane.b32.xlu0 %v8638_v39, %s16586_s24 }
0x121f   : > { %v8440_v32 = vpop.permute.xlu0 %8439 }
0x1220   : > { %v8442_v3 = vunpack.i.h.bf16 %v8440_v32  ;;  %v8441_v36 = vunpack.i.l.bf16 %v8440_v32  ;;  %v5135_v32 = vsel %vm489_vm0, 0.0, %v8351_v0 }
0x1221   : > { %8614 = vrot.lane.b32.xlu2 %v8613_v18, %s16585_s28  ;;  %8589 = vrot.lane.b32.xlu1 %v8608_v28, %s16664_s21 }
0x1222   : > { %v5641_v56 = vsel %vm540_vm4, %v8442_v3, %v8446_v20  ;;  %v5640_v49 = vsel %vm540_vm4, %v8441_v36, %v8442_v3  ;;  %v5138_v36 = vsel %vm489_vm0, %v8347_v35, 0.0 }
0x1223   : > { %v14076_v11 = vpop.permute.xlu2 %5214  ;;  %v14078_v26 = vpop.permute.xlu1 %5206  ;;  %v5656_v63 = vsel %vm9427_vm7, %v5640_v49, 0.0  ;;  %v5657_v31 = vsel %vm9415_vm2, %v5641_v56, 0.0 }
0x1224   : > { %16676 = vst [vmem:[#allocation25_spill] sm:$0xff] %v14076_v11  ;;  %v14084_v19 = vpack.i.bf16 %v5657_v31, %v5656_v63  ;;  %v8683_v63 = vpack.i.bf16 %v5135_v32, %v5138_v36 }
0x1225   : > { %8659 = vrot.lane.b32.xlu0 %v8638_v39, %s16664_s21 }
0x1227   : > { %v14087_v5 = vpop.permute.xlu0 %8459 }
0x1228   : > { %16677 = vst [vmem:[#allocation15_spill] sm:$0xff] %v14087_v5  ;;  %v14113_v5 = vsel %vm489_vm0, %v13790_v4, %v13891_v41 }
0x1229   : > { %8619 = vrot.lane.b32.xlu2 %v8613_v18, %s16586_s24  ;;  %8599 = vrot.lane.b32.xlu1 %v8608_v28, %s9265_s17  ;;  %16682 = vst [vmem:[#allocation35_spill] sm:$0xff] %v14113_v5  ;;  %v8713_v32 = vpack.i.bf16 %v14113_v5, %v13795_v40 }
0x122b   : > { %v14091_v3 = vpop.permute.xlu2 %8524  ;;  %v14093_v20 = vpop.permute.xlu1 %8509 }
0x122c   : > { %16678 = vst [vmem:[#allocation28_spill] sm:$0xff] %v14091_v3 }
0x122d   : > { %16679 = vst [vmem:[#allocation32_spill] sm:$0xff] %v14093_v20  ;;  %8669 = vrot.lane.b32.xlu0 %v8638_v39, %s9265_s17 }
0x122f   : > { %v14097_v49 = vpop.permute.xlu0 %8469 }
0x1231   : > { %8624 = vrot.lane.b32.xlu2 %v8613_v18, %s16664_s21  ;;  %8634 = vrot.lane.b32.xlu1 %v8613_v18, %s9266_s18 }
0x1233   : > { %v14103_v56 = vpop.permute.xlu2 %5867  ;;  %v14105_v28 = vpop.permute.xlu1 %5859 }
0x1234   : > { %16680 = vst [vmem:[#allocation26_spill] sm:$0xff] %v14103_v56 }
0x1235   : > { %16681 = vst [vmem:[#allocation30_spill] sm:$0xff] %v14105_v28  ;;  %8684 = vrot.lane.b32.xlu0 %v8683_v63, %s9266_s18  ;;  %v8352_v28 = vunpack.i.h.bf16 %v13912_v16  ;;  %v14141_v16 = vsel %vm489_vm0, %v13813_v57, %v13962_v24 }
0x1236   : > { %16688 = vst [vmem:[#allocation43_spill] sm:$0xff] %v14141_v16 }
0x1237   : > { %v14108_v31 = vpop.permute.xlu0 %8489 }
0x1239   : > { %8629 = vrot.lane.b32.xlu2 %v8613_v18, %s9265_s17  ;;  %8644 = vrot.lane.b32.xlu1 %v8683_v63, %s16585_s28 }
0x123b   : > { %v14117_v60 = vpop.permute.xlu2 %8529  ;;  %v14119_v35 = vpop.permute.xlu1 %8519 }
0x123c   : > { %16683 = vst [vmem:[#allocation24_spill] sm:$0xff] %v14117_v60  ;;  %v5139_v60 = vsel %vm489_vm0, %v8352_v28, 0.0 }
0x123d   : > { %16684 = vst [vmem:[#allocation18_spill] sm:$0xff] %v14119_v35  ;;  %8714 = vrot.lane.b32.xlu0 %v8713_v32, %s16585_s28  ;;  %v5123_v35 = vsel %vm489_vm0, %v8351_v0, %v8352_v28  ;;  %v8743_v0 = vpack.i.bf16 %v14141_v16, %v13820_v2 }
0x123e   : > { %v8688_v59 = vpack.i.bf16 %v5139_v60, %v5123_v35 }
0x123f   : > { %v14124_v36 = vpop.permute.xlu0 %8504 }
0x1240   : > { %16685 = vst [vmem:[#allocation23_spill] sm:$0xff] %v14124_v36  ;;  %v8402_v36 = vunpack.i.h.bf16 %v13985_v25 }
0x1241   : > { %8679 = vrot.lane.b32.xlu2 %v8638_v39, %s9266_s18  ;;  %8654 = vrot.lane.b32.xlu1 %v8683_v63, %s16586_s24 }
0x1243   : > { %v14129_v4 = vpop.permute.xlu2 %5220  ;;  %v14131_v18 = vpop.permute.xlu1 %5212 }
0x1244   : > { %16686 = vst [vmem:[#allocation21_spill] sm:$0xff] %v14129_v4 }
0x1245   : > { %8724 = vrot.lane.b32.xlu0 %v8713_v32, %s16586_s24  ;;  %v8367_v32 = vunpack.i.h.bf16 %v13989_v15 }
0x1247   : > { %v14136_v56 = vpop.permute.xlu0 %8514 }
0x1248   : > { %16687 = vst [vmem:[#allocation42_spill] sm:$0xff] %v14136_v56  ;;  %v8366_v56 = vunpack.i.l.bf16 %v13989_v15 }
0x1249   : > { %8689 = vrot.lane.b32.xlu2 %v8688_v59, %s16585_s28  ;;  %8664 = vrot.lane.b32.xlu1 %v8683_v63, %s16664_s21 }
0x124b   : > { %v14145_v39 = vpop.permute.xlu2 %5873  ;;  %v14147_v1 = vpop.permute.xlu1 %5865 }
0x124c   : > { %16689 = vst [vmem:[#allocation44_spill] sm:$0xff] %v14145_v39 }
0x124d   : > { %16690 = vst [vmem:[#allocation45_spill] sm:$0xff] %v14147_v1  ;;  %8744 = vrot.lane.b32.xlu0 %v8743_v0, %s16585_s28  ;;  %v8371_v1 = vunpack.i.l.bf16 %v13942_v37 }
0x124f   : > { %v14152_v28 = vpop.permute.xlu0 %8534  ;;  %v5637_v17 = vsel %vm540_vm4, %v8367_v32, %v8371_v1  ;;  %v8427_v1 = vunpack.i.h.bf16 %v13951_v47 }
0x1250   : > { %16691 = vst [vmem:[#allocation46_spill] sm:$0xff] %v14152_v28  ;;  %v5653_v8 = vsel %vm9415_vm2, %v5637_v17, 0.0  ;;  %v5184_v17 = vsel %vm489_vm0, %v13891_v41, 0.0 }
0x1251   : > { %8694 = vrot.lane.b32.xlu2 %v8688_v59, %s16586_s24  ;;  %8674 = vrot.lane.b32.xlu1 %v8683_v63, %s9265_s17 }
0x1253   : > { %v14156_v57 = vpop.permute.xlu2 %5226  ;;  %v14158_v60 = vpop.permute.xlu1 %5218 }
0x1254   : > { %16692 = vst [vmem:[#allocation47_spill] sm:$0xff] %v14156_v57 }
0x1255   : > { %8754 = vrot.lane.b32.xlu0 %v8743_v0, %s16586_s24  ;;  %v5636_v0 = vsel %vm540_vm4, %v8366_v56, %v8367_v32  ;;  %v8426_v56 = vunpack.i.l.bf16 %v13951_v47  ;;  %v8718_v47 = vpack.i.bf16 %v13807_v61, %v5184_v17 }
0x1256   : > { %v5652_v15 = vsel %vm9427_vm7, %v5636_v0, 0.0 }
0x1257   : > { %v14161_v35 = vpop.permute.xlu0 %8544  ;;  %v14192_v20 = vpack.i.bf16 %v5653_v8, %v5652_v15  ;;  %v6011_v0 = vsel %vm566_vm1, %v8402_v36, %v8426_v56 }
0x1258   : > { %16693 = vst [vmem:[#allocation48_spill] sm:$0xff] %v14161_v35 }
0x1259   : > { %8699 = vrot.lane.b32.xlu2 %v8688_v59, %s16664_s21  ;;  %8709 = vrot.lane.b32.xlu1 %v8688_v59, %s9266_s18 }
0x125b   : > { %v14168_v39 = vpop.permute.xlu2 %8554  ;;  %v14170_v63 = vpop.permute.xlu1 %8539 }
0x125c   : > { %16694 = vst [vmem:[#allocation49_spill] sm:$0xff] %v14168_v39 }
0x125d   : > { %16695 = vst [vmem:[#allocation50_spill] sm:$0xff] %v14170_v63  ;;  %8764 = vrot.lane.b32.xlu0 %v13965_v9, %s16585_s28 }
0x125f   : > { %v14176_v35 = vpop.permute.xlu0 %8564 }
0x1261   : > { %8704 = vrot.lane.b32.xlu2 %v8688_v59, %s9265_s17  ;;  %5262 = vrot.lane.b32.xlu1 %v14113_v5, %s9266_s18  ;;  %v6012_v59 = vsel %vm566_vm1, %v8426_v56, %v8427_v1  ;;  %v5185_v56 = vsel %vm489_vm0, %v13917_v42, 0.0  ;;  %s9274_s17 = smov 1  }
0x1262   : > { %v6028_v41 = vsel %vm9415_vm2, %v6012_v59, 0.0  ;;  %v14227_v59 = vsel %vm489_vm0, %v13799_v48, %v13917_v42  ;;  %v14256_v42 = vsel %vm527_vm5, %v13847_v34, %v14131_v18 }
0x1263   : > { %v14188_v32 = vpop.permute.xlu2 %5879  ;;  %v14190_v9 = vpop.permute.xlu1 %5871  ;;  %16700 = vst [vmem:[#allocation55_spill] sm:$0xff] %v14227_v59  ;;  %v8733_v48 = vpack.i.bf16 %v5185_v56, %v14227_v59 }
0x1264   : > { %16696 = vst [vmem:[#allocation51_spill] sm:$0xff] %v14188_v32  ;;  %v6027_v32 = vsel %vm9427_vm7, %v6011_v0, 0.0 }
0x1265   : > { %16697 = vst [vmem:[#allocation52_spill] sm:$0xff] %v14190_v9  ;;  %8774 = vrot.lane.b32.xlu0 %v14192_v20, %s9264_s16  ;;  %v8813_v15 = vpack.i.bf16 %v6028_v41, %v6027_v32  ;;  %v14266_v41 = vsel %vm527_vm5, %v13824_v53, %v14078_v26 }
0x1266   : > { %16702 = vst [vmem:[#allocation57_spill] sm:$0xff] %v14266_v41 }
0x1267   : > { %v14200_v5 = vpop.permute.xlu0 %8574 }
0x1269   : > { %5264 = vrot.lane.b32.xlu2 %v5184_v17, %s9266_s18  ;;  %8719 = vrot.lane.b32.xlu1 %v8718_v47, %s16585_s28 }
0x126b   : > { %v14209_v8 = vpop.permute.xlu2 %8559  ;;  %v14211_v36 = vpop.permute.xlu1 %8549 }
0x126c   : > { %16698 = vst [vmem:[#allocation53_spill] sm:$0xff] %v14209_v8 }
0x126d   : > { %16699 = vst [vmem:[#allocation54_spill] sm:$0xff] %v14211_v36  ;;  %8814 = vrot.lane.b32.xlu0 %v8813_v15, %s9264_s16 }
0x126f   : > { %v14214_v1 = vpop.permute.xlu0 %8584 }
0x1271   : > { %5270 = vrot.lane.b32.xlu2 %v5185_v56, %s9266_s18  ;;  %8729 = vrot.lane.b32.xlu1 %v8718_v47, %s16586_s24  ;;  %v14242_v47 = vsel %vm527_vm5, %v13859_v14, %v14158_v60 }
0x1272   : > { %16701 = vst [vmem:[#allocation56_spill] sm:$0xff] %v14242_v47 }
0x1273   : > { %v14220_v17 = vpop.permute.xlu2 %8604  ;;  %v14222_v0 = vpop.permute.xlu1 %5224 }
0x1274   : > { %v14232_v32 = vsel %vm527_vm5, %v13873_v46, %v14222_v0 }
0x1275   : > { %7655 = vmatpush.msk.msrb.mxu2 %vm9443_vm11, %v14232_v32  ;;  %8819 = vrot.lane.b32.xlu0 %v14037_v23, %s16585_s28  ;;  %v5186_v23 = vsel %vm489_vm0, %v13962_v24, 0.0  ;;  %v14304_v24 = vsel %vm527_vm5, %v14078_v26, %v14052_v22 }
0x1276   : > { %v8748_v3 = vpack.i.bf16 %v13830_v13, %v5186_v23  ;;  %16705 = vst [vmem:[#allocation60_spill] sm:$0xff] %v14304_v24 }
0x1277   : > { %7656 = vmatpush.msk.msrb.mxu2 %vm9443_vm11, %v14242_v47  ;;  %v14248_v46 = vpop.permute.xlu0 %8594 }
0x1279   : > { %8734 = vrot.lane.b32.xlu2 %v8733_v48, %s16585_s28  ;;  %5268 = vrot.lane.b32.xlu1 %v14227_v59, %s9266_s18  ;;  %v8397_v59 = vunpack.i.h.bf16 %v14013_v38 }
0x127a   : > { %7657 = vmatpush.msk.msrb.mxu2 %vm9443_vm11, %v14256_v42 }
0x127b   : > { %v14261_v14 = vpop.permute.xlu2 %8614  ;;  %v14268_v15 = vpop.permute.xlu1 %5877 }
0x127c   : > { %16703 = vst [vmem:[#allocation58_spill] sm:$0xff] %v14268_v15  ;;  %7658 = vmatpush.msk.msrb.mxu2 %vm9443_vm11, %v14266_v41  ;;  %v8396_v15 = vunpack.i.l.bf16 %v14013_v38 }
0x127d   : > { %8824 = vrot.lane.b32.xlu0 %v14084_v19, %s9274_s17 }
0x127e   : > { %v6009_v28 = vsel %vm566_vm1, %v8396_v15, %v8397_v59 }
0x127f   : > { %v14275_v34 = vpop.permute.xlu0 %8609 }
0x1281   : > { %8739 = vrot.lane.b32.xlu2 %v8733_v48, %s16586_s24  ;;  %5274 = vrot.lane.b32.xlu1 %v14141_v16, %s9266_s18  ;;  %v8401_v16 = vunpack.i.l.bf16 %v13985_v25  ;;  %v14314_v25 = vpack.i.bf16 %v14304_v24, %v14266_v41  ;;  %v14334_v24 = vsel %vm527_vm5, %v14158_v60, %v14129_v4 }
0x1282   : > { %16708 = vst [vmem:[#allocation63_spill] sm:$0xff] %v14334_v24 }
0x1283   : > { %v14280_v56 = vpop.permute.xlu2 %8619  ;;  %v14282_v53 = vpop.permute.xlu1 %8569  ;;  %v6010_v38 = vsel %vm566_vm1, %v8397_v59, %v8401_v16  ;;  %16706 = vst [vmem:[#allocation61_spill] sm:$0xff] %v14314_v25  ;;  %v6025_v16 = vsel %vm9427_vm7, %v6009_v28, 0.0 }
0x1284   : > { %v8622_v36 = vunpack.i.h.bf16 %v14280_v56  ;;  %v16210_v8 = vunpack.i.l.bf16 %v14280_v56  ;;  %v6026_v59 = vsel %vm9415_vm2, %v6010_v38, 0.0 }
0x1285   : > { %8854 = vrot.lane.b32.xlu0 %v14020_v50, %s9264_s16  ;;  %v8778_v41 = vpack.i.bf16 %v6026_v59, %v6025_v16  ;;  %v5187_v59 = vsel %vm489_vm0, %v13909_v29, 0.0 }
0x1286   : > { %v14295_v48 = vsel %vm599_vm10, %v16210_v8, %v8622_v36 }
0x1287   : > { %16704 = vst [vmem:[#allocation59_spill] sm:$0xff] %v14295_v48  ;;  %v14298_v9 = vpop.permute.xlu0 %8639  ;;  %v16217_v48 = vunpack.i.h.bf16 %v14200_v5 }
0x1289   : > { %5276 = vrot.lane.b32.xlu2 %v5186_v23, %s9266_s18  ;;  %8749 = vrot.lane.b32.xlu1 %v8748_v3, %s16585_s28 }
0x128b   : > { %v8625_v36 = vpop.permute.xlu2 %8624  ;;  %v14310_v8 = vpop.permute.xlu1 %8579 }
0x128c   : > { %v8581_v26 = vunpack.i.l.bf16 %v14310_v8  ;;  %v8627_v28 = vunpack.i.h.bf16 %v8625_v36  ;;  %v8626_v63 = vunpack.i.l.bf16 %v8625_v36 }
0x128d   : > { %8864 = vrot.lane.b32.xlu0 %v14314_v25, %s16585_s28 }
0x128e   : > { %v14327_v23 = vsel %vm599_vm10, %v16217_v48, %v8581_v26  ;;  %v14340_v26 = vpack.i.bf16 %v14334_v24, %v14242_v47  ;;  %v5591_v48 = vsel %vm514_vm9, %v8626_v63, %v8627_v28  ;;  %v14357_v28 = vsel %vm527_vm5, %v14222_v0, %v14156_v57 }
0x128f   : > { %16707 = vst [vmem:[#allocation62_spill] sm:$0xff] %v14327_v23  ;;  %v14329_v15 = vpop.permute.xlu0 %8649  ;;  %v5607_v36 = vsel %vm9415_vm2, %v5591_v48, 0.0 }
0x1290   : > { %16709 = vst [vmem:[#allocation64_spill] sm:$0xff] %v14340_v26 }
0x1291   : > { %8759 = vrot.lane.b32.xlu1 %v8748_v3, %s16586_s24  ;;  %8779 = vrot.lane.b32.xlu2 %v8778_v41, %s9264_s16  ;;  %16710 = vst [vmem:[#allocation65_spill] sm:$0xff] %v14357_v28 }
0x1293   : > { %v8630_v38 = vpop.permute.xlu2 %8629  ;;  %v8590_v25 = vpop.permute.xlu1 %8589 }
0x1294   : > { %v8592_v16 = vunpack.i.h.bf16 %v8590_v25  ;;  %v8632_v48 = vunpack.i.h.bf16 %v8630_v38  ;;  %v8631_v47 = vunpack.i.l.bf16 %v8630_v38  ;;  %v8611_v38 = vunpack.i.l.bf16 %v14275_v34 }
0x1295   : > { %8879 = vrot.lane.b32.xlu0 %v14340_v26, %s16585_s28  ;;  %v8597_v26 = vunpack.i.h.bf16 %v14248_v46 }
0x1296   : > { %v5590_v60 = vsel %vm514_vm9, %v8592_v16, %v8626_v63  ;;  %v8596_v63 = vunpack.i.l.bf16 %v14248_v46  ;;  %v8893_v46 = vpack.i.bf16 %v14357_v28, %v14232_v32  ;;  %v5687_v39 = vsel %vm540_vm4, %v8631_v47, %v8632_v48 }
0x1297   : > { %v5606_v3 = vsel %vm9427_vm7, %v5590_v60, 0.0  ;;  %v14350_v41 = vpop.permute.xlu0 %8659  ;;  %v14369_v60 = vsel %vm489_vm0, %v13802_v33, %v13909_v29  ;;  %v8606_v33 = vunpack.i.l.bf16 %v14220_v17 }
0x1298   : > { %v14361_v16 = vpack.i.bf16 %v5607_v36, %v5606_v3  ;;  %16711 = vst [vmem:[#allocation66_spill] sm:$0xff] %v14369_v60  ;;  %v5684_v36 = vsel %vm540_vm4, %v8596_v63, %v8597_v26  ;;  %v8783_v63 = vpack.i.bf16 %v5187_v59, %v14369_v60 }
0x1299   : > { %5282 = vrot.lane.b32.xlu2 %v5187_v59, %s9266_s18  ;;  %8769 = vrot.lane.b32.xlu1 %v14192_v20, %s9274_s17  ;;  %v8607_v20 = vunpack.i.h.bf16 %v14220_v17  ;;  %v5700_v40 = vsel %vm9427_vm7, %v5684_v36, 0.0  ;;  %v5703_v17 = vsel %vm9415_vm2, %v5687_v39, 0.0  ;;  %v8586_v36 = vunpack.i.l.bf16 %v14214_v1 }
0x129b   : > { %v14371_v0 = vpop.permute.xlu2 %8679  ;;  %v8600_v24 = vpop.permute.xlu1 %8599  ;;  %v5822_v62 = vsel %vm527_vm5, %v8607_v20, %v8611_v38  ;;  %v5821_v59 = vsel %vm527_vm5, %v8606_v33, %v8607_v20  ;;  %v8412_v20 = vunpack.i.h.bf16 %v13929_v12  ;;  %v8411_v33 = vunpack.i.l.bf16 %v13929_v12 }
0x129c   : > { %v8602_v3 = vunpack.i.h.bf16 %v8600_v24  ;;  %v8601_v23 = vunpack.i.l.bf16 %v8600_v24 }
0x129d   : > { %8894 = vrot.lane.b32.xlu0 %v8893_v46, %s16586_s24  ;;  %v5639_v12 = vsel %vm540_vm4, %v8411_v33, %v8412_v20 }
0x129e   : > { %v5686_v29 = vsel %vm540_vm4, %v8602_v3, %v8631_v47  ;;  %v5685_v43 = vsel %vm540_vm4, %v8597_v26, %v8601_v23  ;;  %v8591_v23 = vunpack.i.l.bf16 %v8590_v25  ;;  %v8898_v3 = vpack.i.bf16 %v5822_v62, %v5821_v59 }
0x129f   : > { %v5702_v24 = vsel %vm9427_vm7, %v5686_v29, 0.0  ;;  %v5701_v48 = vsel %vm9415_vm2, %v5685_v43, 0.0  ;;  %v14390_v46 = vpop.permute.xlu0 %8669  ;;  %v8587_v43 = vunpack.i.h.bf16 %v14214_v1  ;;  %v8612_v25 = vunpack.i.h.bf16 %v14275_v34 }
0x12a0   : > { %v14395_v47 = vpack.i.bf16 %v5701_v48, %v5700_v40  ;;  %v14400_v26 = vpack.i.bf16 %v5703_v17, %v5702_v24  ;;  %v8372_v40 = vunpack.i.h.bf16 %v13942_v37  ;;  %v8793_v34 = vpack.i.bf16 %v14046_v7, %v13956_v21 }
0x12a1   : > { %8784 = vrot.lane.b32.xlu2 %v8783_v63, %s16585_s28  ;;  %5280 = vrot.lane.b32.xlu1 %v14369_v60, %s9266_s18  ;;  %v5589_v24 = vsel %vm514_vm9, %v8587_v43, %v8591_v23  ;;  %v5588_v1 = vsel %vm514_vm9, %v8586_v36, %v8587_v43  ;;  %v16228_v43 = vunpack.i.h.bf16 %v14298_v9  ;;  %v5655_v20 = vsel %vm9415_vm2, %v5639_v12, 0.0 }
0x12a2   : > { %v5638_v23 = vsel %vm540_vm4, %v8372_v40, %v8411_v33  ;;  %v5605_v59 = vsel %vm9415_vm2, %v5589_v24, 0.0  ;;  %v8471_v33 = vunpack.i.l.bf16 %v14097_v49  ;;  %v8798_v12 = vpack.i.bf16 %v14041_v45, %v14050_v55 }
0x12a3   : > { %v14405_v29 = vpop.permute.xlu2 %8689  ;;  %v14407_v39 = vpop.permute.xlu1 %8634  ;;  %v5654_v40 = vsel %vm9427_vm7, %v5638_v23, 0.0  ;;  %v8582_v45 = vunpack.i.h.bf16 %v14310_v8 }
0x12a4   : > { %v16225_v48 = vunpack.i.l.bf16 %v14407_v39  ;;  %v16227_v36 = vunpack.i.l.bf16 %v14405_v29 }
0x12a5   : > { %8899 = vrot.lane.b32.xlu0 %v8898_v3, %s16585_s28 }
0x12a6   : > { %v5823_v62 = vsel %vm527_vm5, %v8612_v25, %v16225_v48 }
0x12a7   : > { %v14420_v17 = vpack.i.bf16 %v5823_v62, %v8611_v38  ;;  %v14422_v37 = vpop.permute.xlu0 %8684  ;;  %v5604_v38 = vsel %vm9427_vm7, %v5588_v1, 0.0 }
0x12a8   : > { %v8903_v62 = vpack.i.bf16 %v5605_v59, %v5604_v38 }
0x12a9   : > { %8789 = vrot.lane.b32.xlu2 %v8783_v63, %s16586_s24  ;;  %8794 = vrot.lane.b32.xlu1 %v8793_v34, %s16585_s28  ;;  %v8472_v34 = vunpack.i.h.bf16 %v14097_v49  ;;  %v8476_v49 = vunpack.i.l.bf16 %v14067_v27 }
0x12ab   : > { %v8695_v3 = vpop.permute.xlu2 %8694  ;;  %v8645_v25 = vpop.permute.xlu1 %8644 }
0x12ac   : > { %v8697_v24 = vunpack.i.h.bf16 %v8695_v3  ;;  %v8696_v48 = vunpack.i.l.bf16 %v8695_v3  ;;  %v8647_v63 = vunpack.i.h.bf16 %v8645_v25  ;;  %v8646_v21 = vunpack.i.l.bf16 %v8645_v25 }
0x12ad   : > { %8904 = vrot.lane.b32.xlu0 %v8903_v62, %s9274_s17  ;;  %v8808_v3 = vpack.i.bf16 %v5655_v20, %v5654_v40  ;;  %v6014_v25 = vsel %vm566_vm1, %v8472_v34, %v8476_v49  ;;  %v6013_v62 = vsel %vm566_vm1, %v8471_v33, %v8472_v34  ;;  %v8682_v33 = vunpack.i.h.bf16 %v14371_v0 }
0x12ae   : > { %v14446_v1 = vsel %vm582_vm13, %v8647_v63, %v16227_v36  ;;  %v14449_v23 = vsel %vm599_vm10, %v8696_v48, %v8697_v24  ;;  %v14454_v59 = vsel %vm582_vm13, %v16228_v43, %v8646_v21  ;;  %v8652_v24 = vunpack.i.h.bf16 %v14329_v15 }
0x12af   : > { %16712 = vst [vmem:[#allocation67_spill] sm:$0xff] %v14446_v1  ;;  %v14456_v38 = vpop.permute.xlu0 %8714  ;;  %v8651_v36 = vunpack.i.l.bf16 %v14329_v15  ;;  %v6030_v34 = vsel %vm9415_vm2, %v6014_v25, 0.0  ;;  %v8681_v49 = vunpack.i.l.bf16 %v14371_v0  ;;  %v8576_v43 = vunpack.i.l.bf16 %v14200_v5 }
0x12b0   : > { %16713 = vst [vmem:[#allocation68_spill] sm:$0xff] %v14454_v59 }
0x12b1   : > { %8799 = vrot.lane.b32.xlu2 %v8798_v12, %s16585_s28  ;;  %8809 = vrot.lane.b32.xlu1 %v8808_v3, %s9264_s16  ;;  %v6029_v12 = vsel %vm9427_vm7, %v6013_v62, 0.0  ;;  %v16716_v62 = vunpack.i.l.bf16 %v14422_v37  ;;  %v14493_v7 = vsel %vm599_vm10, %v8651_v36, %v8652_v24 }
0x12b2   : > { %16717 = vst [vmem:[#allocation71_spill] sm:$0xff] %v14493_v7  ;;  %v8833_v0 = vpack.i.bf16 %v6030_v34, %v6029_v12 }
0x12b3   : > { %v14466_v21 = vpop.permute.xlu2 %8699  ;;  %v8655_v63 = vpop.permute.xlu1 %8654  ;;  %v5826_v25 = vsel %vm527_vm5, %v8682_v33, %v16716_v62  ;;  %v8457_v62 = vunpack.i.h.bf16 %v13971_v6 }
0x12b4   : > { %v8657_v40 = vunpack.i.h.bf16 %v8655_v63  ;;  %v8656_v20 = vunpack.i.l.bf16 %v8655_v63 }
0x12b5   : > { %8934 = vrot.lane.b32.xlu0 %v14400_v26, %s9274_s17 }
0x12b6   : > { %v14480_v15 = vsel %vm599_vm10, %v8657_v40, %v8696_v48  ;;  %v14483_v63 = vsel %vm599_vm10, %v8652_v24, %v8656_v20  ;;  %v8491_v48 = vunpack.i.l.bf16 %v14108_v31  ;;  %v5825_v40 = vsel %vm527_vm5, %v8681_v49, %v8682_v33 }
0x12b7   : > { %16714 = vst [vmem:[#allocation69_spill] sm:$0xff] %v14480_v15  ;;  %6621 = vmatpush.msra.mxu3 %v14480_v15  ;;  %v14486_v8 = vpop.permute.xlu0 %8724  ;;  %v16718_v20 = vunpack.i.l.bf16 %v14280_v56  ;;  %v8943_v36 = vpack.i.bf16 %v5826_v25, %v5825_v40  ;;  %v8672_v56 = vunpack.i.h.bf16 %v14390_v46  ;;  %v8671_v49 = vunpack.i.l.bf16 %v14390_v46 }
0x12b8   : > { %16715 = vst [vmem:[#allocation70_spill] sm:$0xff] %v14483_v63  ;;  %v14517_v33 = vsel %vm527_vm5, %v8457_v62, %v8491_v48 }
0x12b9   : > { %6622 = vmatpush.msra.mxu3 %v14493_v7  ;;  %8804 = vrot.lane.b32.xlu2 %v8808_v3, %s9274_s17  ;;  %v14503_v15 = vsel %vm599_vm10, %v8582_v45, %v16718_v20  ;;  %v16720_v3 = vunpack.i.h.bf16 %v14200_v5  ;;  %16722 = vst [vmem:[#allocation74_spill] sm:$0xff] %v14517_v33  ;;  %v14524_v45 = vunpack.i.h.bf16 %v14108_v31  ;;  %v8838_v5 = vpack.i.bf16 %v14517_v33, %v14030_v54 }
0x12ba   : > { %8834 = vrot.lane.b32.xlu1 %v8833_v0, %s9264_s16  ;;  %16719 = vst [vmem:[#allocation72_spill] sm:$0xff] %v14503_v15  ;;  %v8477_v0 = vunpack.i.h.bf16 %v14067_v27  ;;  %v5688_v46 = vsel %vm540_vm4, %v8671_v49, %v8672_v56  ;;  %v8501_v20 = vunpack.i.l.bf16 %v14027_v10  ;;  %v16247_v54 = vunpack.i.h.bf16 %v14486_v8 }
0x12bb   : > { %v14506_v24 = vpop.permute.xlu2 %8704  ;;  %v14508_v12 = vpop.permute.xlu1 %8664  ;;  %6623 = vmatpush.msra.mxu3 %v14503_v15  ;;  %v14514_v34 = vsel %vm599_vm10, %v8576_v43, %v16720_v3  ;;  %16723 = vst [vmem:[#allocation75_spill] sm:$0xff] %v14524_v45  ;;  %v14540_v31 = vsel %vm527_vm5, %v8491_v48, %v14524_v45  ;;  %v5704_v3 = vsel %vm9427_vm7, %v5688_v46, 0.0  ;;  %v8701_v15 = vunpack.i.l.bf16 %v14466_v21 }
0x12bc   : > { %16721 = vst [vmem:[#allocation73_spill] sm:$0xff] %v14514_v34  ;;  %v8843_v49 = vpack.i.bf16 %v14524_v45, %v14540_v31 }
0x12bd   : > { %6624 = vmatpush.msra.mxu3 %v14514_v34  ;;  %8944 = vrot.lane.b32.xlu0 %v8943_v36, %s16585_s28  ;;  %16724 = vst [vmem:[#allocation76_spill] sm:$0xff] %v14540_v31  ;;  %v8502_v36 = vunpack.i.h.bf16 %v14027_v10  ;;  %v8702_v34 = vunpack.i.h.bf16 %v14466_v21  ;;  %v8662_v31 = vunpack.i.h.bf16 %v14350_v41 }
0x12bf   : > { %v14521_v6 = vpop.permute.xlu0 %8744  ;;  %v6016_v46 = vsel %vm566_vm1, %v8501_v20, %v8502_v36 }
0x12c1   : > { %8829 = vrot.lane.b32.xlu2 %v14084_v19, %s9264_s16  ;;  %v8667_v19 = vunpack.i.h.bf16 %v14508_v12 }
0x12c2   : > { %8839 = vrot.lane.b32.xlu1 %v8838_v5, %s16585_s28  ;;  %v6015_v5 = vsel %vm566_vm1, %v8477_v0, %v8501_v20  ;;  %v8687_v0 = vunpack.i.h.bf16 %v14422_v37  ;;  %vm5732_vm1 = vcmask 7168  }
0x12c3   : > { %v14533_v43 = vpop.permute.xlu2 %5264  ;;  %v14535_v25 = vpop.permute.xlu1 %8674  ;;  %v5594_v10 = vsel %vm514_vm9, %v8667_v19, %v8701_v15  ;;  %v6031_v21 = vsel %vm9427_vm7, %v6015_v5, 0.0 }
0x12c4   : > { %v8676_v40 = vunpack.i.l.bf16 %v14535_v25  ;;  %v5610_v20 = vsel %vm9427_vm7, %v5594_v10, 0.0 }
0x12c6   : > { %v5689_v62 = vsel %vm540_vm4, %v8672_v56, %v8676_v40 }
0x12c7   : > { %v5705_v27 = vsel %vm9415_vm2, %v5689_v62, 0.0  ;;  %v14552_v48 = vpop.permute.xlu0 %8754 }
0x12c8   : > { %v14559_v56 = vpack.i.bf16 %v5705_v27, %v5704_v3  ;;  %v5595_v3 = vsel %vm514_vm9, %v8701_v15, %v8702_v34  ;;  %v6032_v15 = vsel %vm9415_vm2, %v6016_v46, 0.0 }
0x12c9   : > { %8844 = vrot.lane.b32.xlu2 %v8843_v49, %s16585_s28  ;;  %v5611_v34 = vsel %vm9415_vm2, %v5595_v3, 0.0  ;;  %v8858_v10 = vpack.i.bf16 %v6032_v15, %v6031_v21  ;;  %v14610_v3 = vsel %vm527_vm5, %v14131_v18, %v14076_v11  ;;  %v8883_v15 = vpack.i.bf16 %v14232_v32, %v14129_v4 }
0x12ca   : > { %8849 = vrot.lane.b32.xlu1 %v14020_v50, %s9274_s17  ;;  %8959 = vrot.lane.b32.xlu0 %v14559_v56, %s9264_s16  ;;  %v8973_v7 = vpack.i.bf16 %v5611_v34, %v5610_v20  ;;  %16725 = vst [vmem:[#allocation77_spill] sm:$0xff] %v14610_v3  ;;  %v8873_v20 = vpack.i.bf16 %v14076_v11, %v14610_v3  ;;  %v8666_v4 = vunpack.i.l.bf16 %v14508_v12 }
0x12cb   : > { %v14569_v40 = vpop.permute.xlu2 %5270  ;;  %v14571_v62 = vpop.permute.xlu1 %8709 }
0x12cc   : > { %v16239_v50 = vunpack.i.h.bf16 %v14571_v62  ;;  %v8711_v27 = vunpack.i.l.bf16 %v14571_v62 }
0x12ce   : > { %v14583_v36 = vsel %vm527_vm5, %v8687_v0, %v8711_v27  ;;  %v14588_v49 = vsel %vm527_vm5, %v8711_v27, %v16239_v50  ;;  %v8868_v0 = vpack.i.bf16 %v14256_v42, %v14052_v22 }
0x12cf   : > { %v14596_v19 = vpop.permute.xlu0 %8764 }
0x12d1   : > { %8859 = vrot.lane.b32.xlu2 %v8858_v10, %s9264_s16  ;;  %v16242_v10 = vunpack.i.h.bf16 %v14456_v38 }
0x12d2   : > { %8869 = vrot.lane.b32.xlu1 %v8868_v0, %s16585_s28  ;;  %8974 = vrot.lane.b32.xlu0 %v8973_v7, %s9274_s17 }
0x12d3   : > { %v14603_v46 = vpop.permute.xlu2 %8734  ;;  %v14605_v27 = vpop.permute.xlu1 %5262 }
0x12d4   : > { %v16256_v44 = vunpack.i.l.bf16 %v14603_v46 }
0x12d7   : > { %v14612_v21 = vpop.permute.xlu0 %8774 }
0x12d8   : > { %16726 = vst [vmem:[#allocation78_spill] sm:$0xff] %v14612_v21 }
0x12d9   : > { %8874 = vrot.lane.b32.xlu2 %v8873_v20, %s16585_s28  ;;  %v8888_v20 = vpack.i.bf16 %v14156_v57, %v14357_v28 }
0x12da   : > { %8884 = vrot.lane.b32.xlu1 %v8883_v15, %s16585_s28 }
0x12db   : > { %v14620_v7 = vpop.permute.xlu2 %8739  ;;  %v14622_v34 = vpop.permute.xlu1 %8719 }
0x12dc   : > { %v8721_v18 = vunpack.i.l.bf16 %v14622_v34 }
0x12de   : > { %v14629_v0 = vsel %vm582_vm13, %v16242_v10, %v8721_v18  ;;  %v8637_v10 = vunpack.i.h.bf16 %v14407_v39 }
0x12df   : > { %16727 = vst [vmem:[#allocation79_spill] sm:$0xff] %v14629_v0  ;;  %v14631_v5 = vpop.permute.xlu0 %8814 }
0x12e1   : > { %8889 = vrot.lane.b32.xlu2 %v8888_v20, %s16585_s28  ;;  %v16729_v20 = vunpack.i.l.bf16 %v14407_v39 }
0x12e2   : > { %8914 = vrot.lane.b32.xlu1 %v14395_v47, %s9264_s16 }
0x12e3   : > { %v14638_v15 = vpop.permute.xlu2 %5276  ;;  %v14640_v50 = vpop.permute.xlu1 %8729  ;;  %v5824_v45 = vsel %vm527_vm5, %v16729_v20, %v8637_v10 }
0x12e4   : > { %v8731_v22 = vunpack.i.l.bf16 %v14640_v50  ;;  %v8923_v20 = vpack.i.bf16 %v8637_v10, %v5824_v45  ;;  %v8661_v45 = vunpack.i.l.bf16 %v14350_v41  ;;  %v8707_v10 = vunpack.i.h.bf16 %v14506_v24 }
0x12e6   : > { %v14647_v18 = vsel %vm599_vm10, %v16247_v54, %v8731_v22  ;;  %v16253_v22 = vunpack.i.h.bf16 %v14631_v5  ;;  %v5592_v12 = vsel %vm514_vm9, %v8661_v45, %v8662_v31  ;;  %v8722_v45 = vunpack.i.h.bf16 %v14622_v34 }
0x12e7   : > { %16728 = vst [vmem:[#allocation80_spill] sm:$0xff] %v14647_v18  ;;  %v14650_v11 = vpop.permute.xlu0 %8819 }
0x12e8   : > { %v14746_v30 = vsel %vm582_vm13, %v8722_v45, %v16256_v44  ;;  %v14761_v45 = vsel %vm527_vm5, %v13903_v51, %v14605_v27  ;;  %v16741_v51 = vunpack.i.l.bf16 %v14422_v37 }
0x12e9   : > { %8909 = vrot.lane.b32.xlu2 %v14395_v47, %s9274_s17  ;;  %16735 = vst [vmem:[#allocation85_spill] sm:$0xff] %v14746_v30 }
0x12ea   : > { %8919 = vrot.lane.b32.xlu1 %v14420_v17, %s16585_s28 }
0x12eb   : > { %v5269_v57 = vpop.permute.xlu1 %5268  ;;  %v14659_v33 = vpop.permute.xlu2 %8779 }
0x12ec   : > { %v14664_v54 = vsel %vm527_vm5, %v13925_v52, %v5269_v57  ;;  %v14668_v55 = vsel %vm527_vm5, %v5269_v57, %v14569_v40  ;;  %v16252_v47 = vunpack.i.h.bf16 %v14659_v33 }
0x12ed   : > { %16730 = vst [vmem:[#allocation81_spill] sm:$0xff] %v14668_v55  ;;  %v8998_v39 = vpack.i.bf16 %v14668_v55, %v14664_v54 }
0x12ee   : > { %v14677_v17 = vpack.i.bf16 %v16252_v47, %v16253_v22  ;;  %v8677_v47 = vunpack.i.h.bf16 %v14535_v25 }
0x12ef   : > { %8999 = vrot.lane.b32.xlu0 %v8998_v39, %s16585_s28  ;;  %v14680_v52 = vpop.permute.xlu0 %8824  ;;  %v8706_v39 = vunpack.i.l.bf16 %v14506_v24 }
0x12f0   : > { %16731 = vst [vmem:[#allocation82_spill] sm:$0xff] %v14677_v17 }
0x12f1   : > { %8924 = vrot.lane.b32.xlu2 %v8923_v20, %s16585_s28  ;;  %v5690_v22 = vsel %vm540_vm4, %v8677_v47, %v8706_v39  ;;  %v5691_v41 = vsel %vm540_vm4, %v8706_v39, %v8707_v10  ;;  %vm7109_vm4 = vcmask 1041409  }
0x12f2   : > { %8929 = vrot.lane.b32.xlu1 %v14361_v16, %s9274_s17  ;;  %v5593_v16 = vsel %vm514_vm9, %v8662_v31, %v8666_v4  ;;  %v5706_v31 = vsel %vm9427_vm7, %v5690_v22, 0.0  ;;  %v5707_v39 = vsel %vm9415_vm2, %v5691_v41, 0.0  ;;  %v8716_v22 = vunpack.i.l.bf16 %v14456_v38 }
0x12f3   : > { %v14685_v57 = vpop.permute.xlu1 %5274  ;;  %v14687_v21 = vpop.permute.xlu2 %5282  ;;  %v5609_v25 = vsel %vm9415_vm2, %v5593_v16, 0.0  ;;  %v14737_v60 = vpack.i.bf16 %v5707_v39, %v5706_v31  ;;  %v16736_v31 = vunpack.i.h.bf16 %v14456_v38  ;;  %v14766_v39 = vsel %vm527_vm5, %v14605_v27, %v14533_v43 }
0x12f4   : > { %16738 = vst [vmem:[#allocation87_spill] sm:$0xff] %v14766_v39  ;;  %vm7098_vm2 = vcmask 1042434   ;;  %vm7113_vm9 = vcmask 1042433  }
0x12f7   : > { %v14695_v20 = vpop.permute.xlu0 %8854 }
0x12f9   : > { %8939 = vrot.lane.b32.xlu2 %v14400_v26, %s9264_s16  ;;  %v8746_v26 = vunpack.i.l.bf16 %v14521_v6 }
0x12fa   : > { %8954 = vrot.lane.b32.xlu1 %v14559_v56, %s9274_s17  ;;  %v5608_v56 = vsel %vm9427_vm7, %v5592_v12, 0.0  ;;  %v16733_v12 = vunpack.i.h.bf16 %v14521_v6  ;;  %vm7100_vm7 = vcmask 1041408  }
0x12fb   : > { %v14707_v24 = vpop.permute.xlu1 %8749  ;;  %v14709_v17 = vpop.permute.xlu2 %8784  ;;  %v8948_v4 = vpack.i.bf16 %v5609_v25, %v5608_v56  ;;  %v14756_v56 = vsel %vm582_vm13, %v8716_v22, %v16736_v31  ;;  %v8566_v22 = vunpack.i.l.bf16 %v14176_v35  ;;  %v16740_v31 = vunpack.i.h.bf16 %v14571_v62 }
0x12fc   : > { %v8752_v47 = vunpack.i.h.bf16 %v14707_v24  ;;  %v16257_v18 = vunpack.i.l.bf16 %v14709_v17  ;;  %v14735_v34 = vsel %vm582_vm13, %v8746_v26, %v16733_v12  ;;  %v8641_v26 = vunpack.i.l.bf16 %v14298_v9  ;;  %16737 = vst [vmem:[#allocation86_spill] sm:$0xff] %v14756_v56 }
0x12fd   : > { %16734 = vst [vmem:[#allocation84_spill] sm:$0xff] %v14735_v34  ;;  %v8572_v12 = vunpack.i.h.bf16 %v14282_v53 }
0x12fe   : > { %v14723_v10 = vsel %vm582_vm13, %v8752_v47, %v16257_v18  ;;  %v8757_v47 = vunpack.i.h.bf16 %v14552_v48  ;;  %v8963_v18 = vpack.i.bf16 %v16741_v51, %v16740_v31 }
0x12ff   : > { %16732 = vst [vmem:[#allocation83_spill] sm:$0xff] %v14723_v10  ;;  %6605 = vmatpush.msrb.mxu2 %v14723_v10  ;;  %v14728_v16 = vpop.permute.xlu0 %8864 }
0x1301   : > { %8949 = vrot.lane.b32.xlu2 %v8948_v4, %s9274_s17  ;;  %6606 = vmatpush.msrb.mxu2 %v14735_v34 }
0x1302   : > { %8984 = vrot.lane.b32.xlu1 %v14737_v60, %s9264_s16 }
0x1303   : > { %v8760_v41 = vpop.permute.xlu1 %8759  ;;  %v14748_v25 = vpop.permute.xlu2 %8789  ;;  %6607 = vmatpush.msrb.mxu2 %v14746_v30  ;;  %v8988_v30 = vpack.i.bf16 %v14766_v39, %v14761_v45 }
0x1304   : > { %v8761_v4 = vunpack.i.l.bf16 %v8760_v41 }
0x1305   : > { %6608 = vmatpush.msrb.mxu2 %v14756_v56  ;;  %v16260_v56 = vunpack.i.l.bf16 %v14261_v14 }
0x1306   : > { %v14771_v44 = vsel %vm599_vm10, %v8757_v47, %v8761_v4  ;;  %v16742_v4 = vunpack.i.h.bf16 %v14298_v9  ;;  %v16745_v9 = vunpack.i.h.bf16 %v14176_v35 }
0x1307   : > { %16739 = vst [vmem:[#allocation88_spill] sm:$0xff] %v14771_v44  ;;  %6609 = vmatpush.msrb.mxu2 %v14446_v1  ;;  %v14780_v27 = vpop.permute.xlu0 %8879  ;;  %v14796_v37 = vsel %vm582_vm13, %v8572_v12, %v16260_v56 }
0x1308   : > { %v14788_v38 = vsel %vm582_vm13, %v8641_v26, %v16742_v4  ;;  %16744 = vst [vmem:[#allocation90_spill] sm:$0xff] %v14796_v37  ;;  %v14806_v26 = vsel %vm582_vm13, %v8566_v22, %v16745_v9 }
0x1309   : > { %16743 = vst [vmem:[#allocation89_spill] sm:$0xff] %v14788_v38  ;;  %8964 = vrot.lane.b32.xlu2 %v8963_v18, %s16585_s28  ;;  %6610 = vmatpush.msrb.mxu2 %v14788_v38  ;;  %v16264_v38 = vunpack.i.l.bf16 %v14748_v25 }
0x130a   : > { %8989 = vrot.lane.b32.xlu1 %v8988_v30, %s16585_s28  ;;  %16746 = vst [vmem:[#allocation91_spill] sm:$0xff] %v14806_v26 }
0x130b   : > { %v14798_v62 = vpop.permute.xlu2 %8799  ;;  %6611 = vmatpush.msrb.mxu2 %v14796_v37  ;;  %v14801_v31 = vpop.permute.xlu1 %8769  ;;  %v8762_v37 = vunpack.i.h.bf16 %v8760_v41 }
0x130c   : > { %v8802_v18 = vunpack.i.h.bf16 %v14798_v62  ;;  %v16265_v30 = vunpack.i.l.bf16 %v14798_v62  ;;  %v16266_v51 = vunpack.i.h.bf16 %v14801_v31  ;;  %v8771_v12 = vunpack.i.l.bf16 %v14801_v31 }
0x130d   : > { %6612 = vmatpush.msrb.mxu2 %v14806_v26  ;;  %v16749_v26 = vpack.i.bf16 %v14588_v49, %v14583_v36  ;;  %v16751_v49 = vld [vmem:[#allocation34_spill] sm:$0xff] }
0x130e   : > { %v5793_v4 = vsel %vm5732_vm1, %v8771_v12, %v16266_v51  ;;  %v14819_v22 = vsel %vm582_vm13, %v16265_v30, %v8802_v18  ;;  %v16750_v18 = vpack.i.bf16 %v14533_v43, %v14569_v40  ;;  %v16752_v40 = vld [vmem:[#allocation20_spill] sm:$0xff]  ;;  %v8826_v30 = vunpack.i.l.bf16 %v14680_v52 }
0x130f   : > { %16747 = vst [vmem:[#allocation92_spill] sm:$0xff] %v14819_v22  ;;  %v9008_v9 = vpack.i.bf16 %v5793_v4, %v8771_v12  ;;  %7659 = vmatpush.msk.msrb.mxu2 %vm9443_vm11, %v13830_v13  ;;  %v14824_v56 = vpop.permute.xlu0 %8894  ;;  %v8756_v13 = vunpack.i.l.bf16 %v14552_v48  ;;  %v8732_v48 = vunpack.i.h.bf16 %v14640_v50  ;;  %v16754_v12 = vld [vmem:[#allocation33_spill] sm:$0xff]  ;;  %v6582_v50 = vld [vmem:[%s16086_s11 + $0x8] sm:$0xf] }
0x1310   : > { %16748 = vst [vmem:[#allocation93_spill] sm:$0xff] %v14824_v56  ;;  %v5288_v4 = vsel %vm527_vm5, %v16754_v12, %v14685_v57  ;;  %v16774_v56 = vunpack.i.h.bf16 %v14801_v31 }
0x1311   : > { %8969 = vrot.lane.b32.xlu2 %v16749_v26, %s16585_s28  ;;  %7660 = vmatpush.msk.msrb.mxu2 %vm9443_vm11, %v13820_v2  ;;  %v14847_v2 = vld.sshfl [vmem:[#allocation1] sm:$0xff pattern:$0x75316420]  ;;  %6593 = vst [vmem:[#allocation1 + $0x10] ss:$2 sm:$0xff] %v6582_v50  ;;  %v16765_v50 = vld [vmem:[#allocation28_spill] sm:$0xff] }
0x1312   : > { %8994 = vrot.lane.b32.xlu1 %v16750_v18, %s16585_s28  ;;  %9009 = vrot.lane.b32.xlu0 %v9008_v9, %s16585_s28  ;;  %v14875_v18 = vsel %vm599_vm10, %v8756_v13, %v8757_v47  ;;  %v16757_v47 = vld [vmem:[#allocation49_spill] sm:$0xff] }
0x1313   : > { %v14840_v41 = vpop.permute.xlu2 %8804  ;;  %7661 = vmatpush.msk.msrb.mxu2 %vm9443_vm11, %v13807_v61  ;;  %v5281_v36 = vpop.permute.xlu1 %5280  ;;  %v14861_v61 = vsel %vm599_vm10, %v8762_v37, %v16264_v38  ;;  %16756 = vst [vmem:[#allocation33_spill] sm:$0xff] %v14875_v18  ;;  %v8726_v37 = vunpack.i.l.bf16 %v14486_v8  ;;  %v9013_v38 = vpack.i.bf16 %v14638_v15, %v14687_v21 }
0x1314   : > { %v5290_v26 = vsel %vm527_vm5, %v16751_v49, %v5281_v36  ;;  %v14851_v43 = vsel %vm527_vm5, %v5281_v36, %v14687_v21  ;;  %16753 = vst [vmem:[#allocation34_spill] sm:$0xff] %v14861_v61  ;;  %v16267_v36 = vunpack.i.l.bf16 %v14620_v7 }
0x1315   : > { %7662 = vmatpush.msk.msrb.mxu2 %vm9443_vm11, %v16752_v40  ;;  %7663 = vmatpush.msk.msra.mxu3 %vm9443_vm11, %v5290_v26  ;;  %v9018_v49 = vpack.i.bf16 %v14851_v43, %v5290_v26  ;;  %v16758_v40 = vld [vmem:[#allocation50_spill] sm:$0xff] }
0x1316   : > { %7683 = vmatpush.msk.msra.mxu1 %vm9443_vm11, %v5290_v26  ;;  %6617 = vmatmul.f32.vlgmr.msrb.gmra.mxu2 %v14847_v2  ;;  %v8542_v12 = vunpack.i.h.bf16 %v16758_v40  ;;  %v14905_v21 = vsel %vm599_vm10, %v8732_v48, %v16267_v36  ;;  %v8806_v48 = vunpack.i.l.bf16 %v14840_v41 }
0x1317   : > { %6653 = vmatpush.msra.mxu2 %v14861_v61  ;;  %v14870_v9 = vpop.permute.xlu0 %8899  ;;  %7664 = vmatpush.msk.msra.mxu3 %vm9443_vm11, %v5288_v4  ;;  %16759 = vst [vmem:[#allocation49_spill] sm:$0xff] %v14905_v21  ;;  %v16769_v61 = vunpack.i.h.bf16 %v14680_v52 }
0x1318   : > { %16755 = vst [vmem:[#allocation20_spill] sm:$0xff] %v14870_v9  ;;  %7684 = vmatpush.msk.msra.mxu1 %vm9443_vm11, %v5288_v4  ;;  %v9023_v1 = vpack.i.bf16 %v8806_v48, %v16774_v56  ;;  %v14973_v31 = vld.sshfl [vmem:[#allocation1 + $0x10] sm:$0xff pattern:$0x75316420]  ;;  %v16790_v9 = vld [vmem:[#allocation62_spill] sm:$0xff] }
0x1319   : > { %6654 = vmatpush.msra.mxu2 %v14875_v18  ;;  %8979 = vrot.lane.b32.xlu2 %v14737_v60, %s9274_s17  ;;  %v16760_v60 = vld [vmem:[#allocation46_spill] sm:$0xff]  ;;  %16778 = vst [vmem:[#allocation95_spill] sm:$0xff] %v14973_v31 }
0x131a   : > { %7665 = vmatpush.msk.msra.mxu3 %vm9443_vm11, %v14664_v54  ;;  %9019 = vrot.lane.b32.xlu1 %v9018_v49, %s16585_s28  ;;  %v8536_v51 = vunpack.i.l.bf16 %v16760_v60 }
0x131b   : > { %7685 = vmatpush.msk.msra.mxu1 %vm9443_vm11, %v14664_v54  ;;  %9014 = vrot.lane.b32.xlu0 %v9013_v38, %s16585_s28  ;;  %v14911_v26 = vpop.permute.xlu2 %8829  ;;  %v14913_v49 = vpop.permute.xlu1 %8794  ;;  %v14918_v54 = vsel %vm527_vm5, %v14685_v57, %v14638_v15  ;;  %v16763_v38 = vunpack.i.h.bf16 %v14486_v8  ;;  %v16767_v57 = vunpack.i.l.bf16 %v16757_v47  ;;  %v16770_v8 = vld [vmem:[#allocation23_spill] sm:$0xff]  ;;  %vm7111_vm5 = vcmask 1043459  }
0x131c   : > { %6655 = vmatpush.msra.mxu2 %v14905_v21  ;;  %16761 = vst [vmem:[#allocation50_spill] sm:$0xff] %v14911_v26  ;;  %7666 = vmatpush.msk.msra.mxu3 %vm9443_vm11, %v14761_v45  ;;  %v16766_v21 = vld [vmem:[#allocation32_spill] sm:$0xff]  ;;  %v9003_v13 = vpack.i.bf16 %v14918_v54, %v5288_v4 }
0x131d   : > { %16762 = vst [vmem:[#allocation46_spill] sm:$0xff] %v14918_v54  ;;  %7686 = vmatpush.msk.msra.mxu1 %vm9443_vm11, %v14761_v45  ;;  %v14930_v36 = vsel %vm599_vm10, %v8726_v37, %v16763_v38  ;;  %v8512_v15 = vunpack.i.h.bf16 %v16766_v21  ;;  %v14938_v18 = vsel %vm599_vm10, %v8542_v12, %v16767_v57  ;;  %v5795_v45 = vsel %vm5732_vm1, %v8826_v30, %v16769_v61  ;;  %v16775_v37 = vld [vmem:[#allocation14_spill] sm:$0xff] }
0x131e   : > { %16764 = vst [vmem:[#allocation94_spill] sm:$0xff] %v14930_v36  ;;  %6656 = vmatpush.msra.mxu2 %v14930_v36  ;;  %6629 = vmatpush.msra.mxu3 %v14938_v18  ;;  %v8506_v38 = vunpack.i.l.bf16 %v16770_v8  ;;  %v16772_v12 = vunpack.i.h.bf16 %v16760_v60  ;;  %v8807_v61 = vunpack.i.h.bf16 %v14840_v41  ;;  %v8437_v4 = vunpack.i.h.bf16 %v16775_v37 }
0x131f   : > { %16768 = vst [vmem:[#allocation28_spill] sm:$0xff] %v14938_v18  ;;  %6845 = vmatpush.msra.mxu1 %v14938_v18  ;;  %v14949_v36 = vpop.permute.xlu0 %8904  ;;  %v9033_v34 = vpack.i.bf16 %v5795_v45, %v8826_v30  ;;  %v16776_v18 = vunpack.i.l.bf16 %v16765_v50  ;;  %v16779_v30 = vld [vmem:[#allocation36_spill] sm:$0xff]  ;;  %v16784_v45 = vld [vmem:[#allocation59_spill] sm:$0xff]  ;;  %7667 = vmatmul.msk.f32.vlgmr.msra.gmra.mxu2 %vm1187_vm15, %v14973_v31 }
0x1320   : > { %6681 = vmatpush.msrb.mxu2 %v14449_v23  ;;  %16771 = vst [vmem:[#allocation32_spill] sm:$0xff] %v14949_v36  ;;  %v14954_v57 = vsel %vm599_vm10, %v8536_v51, %v16772_v12  ;;  %v8906_v56 = vunpack.i.l.bf16 %v14949_v36  ;;  %v16780_v12 = vld [vmem:[#allocation27_spill] sm:$0xff]  ;;  %v5794_v10 = vsel %vm5732_vm1, %v8806_v48, %v8807_v61  ;;  %v16786_v26 = vunpack.i.l.bf16 %v16779_v30  ;;  %v16788_v48 = vld [vmem:[#allocation37_spill] sm:$0xff] }
0x1321   : > { %16773 = vst [vmem:[#allocation23_spill] sm:$0xff] %v14954_v57  ;;  %6630 = vmatpush.msra.mxu3 %v14954_v57  ;;  %6846 = vmatpush.msra.mxu1 %v14954_v57  ;;  %v14967_v51 = vsel %vm599_vm10, %v8512_v15, %v16776_v18  ;;  %v16781_v15 = vunpack.i.h.bf16 %v16770_v8  ;;  %v9028_v31 = vpack.i.bf16 %v8807_v61, %v5794_v10  ;;  %v16796_v10 = vunpack.i.l.bf16 %v16788_v48 }
0x1322   : > { %6682 = vmatpush.msrb.mxu2 %v14483_v63  ;;  %9004 = vrot.lane.b32.xlu2 %v9003_v13, %s16585_s28  ;;  %16777 = vst [vmem:[#allocation14_spill] sm:$0xff] %v14967_v51  ;;  %v8431_v13 = vunpack.i.l.bf16 %v16780_v12  ;;  %v16823_v58 = vunpack.i.l.bf16 %v16779_v30 }
0x1323   : > { %6631 = vmatpush.msra.mxu3 %v14967_v51  ;;  %9024 = vrot.lane.b32.xlu1 %v9023_v1, %s16585_s28  ;;  %v14980_v18 = vpop.permute.xlu2 %8844  ;;  %v14985_v41 = vsel %vm599_vm10, %v8506_v38, %v16781_v15  ;;  %v14987_v1 = vpop.permute.xlu1 %8809  ;;  %v14999_v38 = vsel %vm599_vm10, %v8437_v4, %v16786_v26  ;;  %v16792_v26 = vld [vmem:[#allocation8_spill] sm:$0xff]  ;;  %v16793_v15 = vunpack.i.h.bf16 %v16780_v12 }
0x1324   : > { %6847 = vmatpush.msra.mxu1 %v14967_v51  ;;  %9034 = vrot.lane.b32.xlu0 %v9033_v34, %s16585_s28  ;;  %16782 = vst [vmem:[#allocation36_spill] sm:$0xff] %v14985_v41  ;;  %v8847_v57 = vunpack.i.h.bf16 %v14980_v18  ;;  %v16785_v34 = vld [vmem:[#allocation11_spill] sm:$0xff]  ;;  %v16291_v4 = vunpack.i.h.bf16 %v16792_v26  ;;  %v8356_v63 = vunpack.i.l.bf16 %v16792_v26 }
0x1325   : > { %16783 = vst [vmem:[#allocation27_spill] sm:$0xff] %v14987_v1  ;;  %6683 = vmatpush.msrb.mxu2 %v16784_v45  ;;  %6632 = vmatpush.msra.mxu3 %v14985_v41  ;;  %v8362_v51 = vunpack.i.h.bf16 %v16785_v34  ;;  %v16789_v1 = vunpack.i.h.bf16 %v14949_v36 }
0x1326   : > { %6848 = vmatpush.msra.mxu1 %v14985_v41  ;;  %16787 = vst [vmem:[#allocation11_spill] sm:$0xff] %v14999_v38  ;;  %v16791_v41 = vunpack.i.l.bf16 %v14980_v18 }
0x1327   : > { %v5733_v22 = vsel %vm5732_vm1, %v8906_v56, %v16789_v1  ;;  %6684 = vmatpush.msrb.mxu2 %v16790_v9  ;;  %6633 = vmatpush.msra.mxu3 %v14999_v38  ;;  %v15020_v1 = vsel %vm599_vm10, %v8431_v13, %v16793_v15  ;;  %v15032_v61 = vsel %vm599_vm10, %v8362_v51, %v16796_v10  ;;  %v8557_v15 = vunpack.i.h.bf16 %v16757_v47 }
0x1328   : > { %v15012_v45 = vsel %vm582_vm13, %v16791_v41, %v8847_v57  ;;  %6849 = vmatpush.msra.mxu1 %v14999_v38  ;;  %16794 = vst [vmem:[#allocation37_spill] sm:$0xff] %v15020_v1  ;;  %v16294_v57 = vunpack.i.l.bf16 %v14631_v5  ;;  %v9053_v41 = vpack.i.bf16 %v5733_v22, %v8906_v56  ;;  %v15047_v51 = vsel %vm599_vm10, %v8356_v63, %v16291_v4  ;;  %v15067_v4 = vld.sshfl [vmem:[#allocation1 + $0x8] sm:$0xff pattern:$0x75316420]  ;;  %v16806_v38 = vld [vmem:[#allocation40_spill] sm:$0xff] }
0x1329   : > { %7676 = vmatpush.msk.msrb.mxu2 %vm9467_vm12, %v14851_v43  ;;  %6634 = vmatpush.msra.mxu3 %v15020_v1  ;;  %16797 = vst [vmem:[#allocation62_spill] sm:$0xff] %v15032_v61  ;;  %v8541_v10 = vunpack.i.l.bf16 %v16758_v40  ;;  %v16800_v40 = vunpack.i.h.bf16 %v14659_v33 }
0x132a   : > { %6850 = vmatpush.msra.mxu1 %v15020_v1  ;;  %9029 = vrot.lane.b32.xlu2 %v9028_v31, %s16585_s28  ;;  %16798 = vst [vmem:[#allocation8_spill] sm:$0xff] %v15047_v51  ;;  %v16801_v1 = vunpack.i.l.bf16 %v14659_v33 }
0x132b   : > { %7677 = vmatpush.msk.msrb.mxu2 %vm9467_vm12, %v14918_v54  ;;  %6635 = vmatpush.msra.mxu3 %v15032_v61  ;;  %v15042_v22 = vpop.permute.xlu2 %8859  ;;  %v16818_v54 = vld [vmem:[#allocation57_spill] sm:$0xff] }
0x132c   : > { %6851 = vmatpush.msra.mxu1 %v15032_v61  ;;  %9054 = vrot.lane.b32.xlu0 %v9053_v41, %s16585_s28  ;;  %v16296_v56 = vunpack.i.h.bf16 %v15042_v22  ;;  %v15053_v31 = vpop.permute.xlu1 %8834  ;;  %v16799_v41 = vunpack.i.h.bf16 %v14631_v5 }
0x132d   : > { %7678 = vmatpush.msk.msrb.mxu2 %vm9467_vm12, %v14668_v55  ;;  %6636 = vmatpush.msra.mxu3 %v15047_v51  ;;  %v16298_v63 = vunpack.i.h.bf16 %v15053_v31 }
0x132e   : > { %v6098_v13 = vsel %vm489_vm0, %v16294_v57, %v16799_v41  ;;  %6852 = vmatpush.msra.mxu1 %v15047_v51  ;;  %v6097_v41 = vsel %vm489_vm0, %v16801_v1, %v16800_v40  ;;  %6637 = vmatmul.f32.vlgmr.msra.gmra.mxu3 %v15067_v4  ;;  %v8527_v57 = vunpack.i.h.bf16 %v16765_v50  ;;  %v16805_v1 = vld [vmem:[#allocation63_spill] sm:$0xff]  ;;  %v8787_v40 = vunpack.i.h.bf16 %v14709_v17 }
0x132f   : > { %7668 = vmatpush.msk.msrb.mxu3 %vm9467_vm12, %v14357_v28  ;;  %v15071_v61 = vpack.i.bf16 %v16296_v56, %v6098_v13  ;;  %7679 = vmatpush.msk.msrb.mxu2 %vm9467_vm12, %v14766_v39  ;;  %v15085_v51 = vpack.i.bf16 %v16298_v63, %v6097_v41  ;;  %v16803_v13 = vunpack.i.l.bf16 %v16757_v47  ;;  %v8497_v41 = vunpack.i.h.bf16 %v16806_v38  ;;  %v16810_v63 = vld [vmem:[#allocation15_spill] sm:$0xff]  ;;  %v16816_v39 = vld [vmem:[#allocation16_spill] sm:$0xff] }
0x1330   : > { %7687 = vmatpush.msk.msra.mxu1 %vm9443_vm11, %v14232_v32  ;;  %v16807_v47 = vunpack.i.h.bf16 %v16760_v60  ;;  %v8751_v32 = vunpack.i.l.bf16 %v14707_v24  ;;  %v8511_v60 = vunpack.i.l.bf16 %v16766_v21  ;;  %v8737_v28 = vunpack.i.h.bf16 %v14603_v46 }
0x1331   : > { %16802 = vst [vmem:[#allocation3_spill] sm:$0xff] %v15085_v51  ;;  %v15090_v56 = vsel %vm599_vm10, %v16803_v13, %v8557_v15  ;;  %7669 = vmatpush.msk.msrb.mxu3 %vm9467_vm12, %v16805_v1  ;;  %v16809_v13 = vld [vmem:[#allocation56_spill] sm:$0xff]  ;;  %v8482_v1 = vunpack.i.h.bf16 %v16779_v30  ;;  %v8466_v51 = vunpack.i.l.bf16 %v16816_v39 }
0x1332   : > { %16804 = vst [vmem:[#allocation96_spill] sm:$0xff] %v15090_v56  ;;  %6689 = vmatpush.msrb.mxu2 %v15090_v56  ;;  %v15105_v15 = vsel %vm599_vm10, %v16807_v47, %v8541_v10  ;;  %7688 = vmatpush.msk.msra.mxu1 %vm9443_vm11, %v16809_v13  ;;  %v16811_v10 = vunpack.i.l.bf16 %v16765_v50  ;;  %v16812_v13 = vld [vmem:[#allocation60_spill] sm:$0xff]  ;;  %v16814_v50 = vunpack.i.l.bf16 %v14709_v17  ;;  %v16819_v17 = vunpack.i.l.bf16 %v16806_v38 }
0x1333   : > { %16808 = vst [vmem:[#allocation97_spill] sm:$0xff] %v15105_v15  ;;  %7670 = vmatpush.msk.msrb.mxu3 %vm9467_vm12, %v14610_v3  ;;  %v15129_v24 = vpop.permute.xlu2 %8874  ;;  %v15167_v38 = vsel %vm599_vm10, %v16823_v58, %v8482_v1  ;;  %v8361_v58 = vunpack.i.l.bf16 %v16785_v34  ;;  %v16828_v1 = vld [vmem:[#allocation41_spill] sm:$0xff] }
0x1334   : > { %6690 = vmatpush.msrb.mxu2 %v15105_v15  ;;  %v15121_v47 = vsel %vm599_vm10, %v16811_v10, %v8527_v57  ;;  %7689 = vmatpush.msk.msra.mxu1 %vm9443_vm11, %v14256_v42  ;;  %v16813_v15 = vld [vmem:[#allocation6_spill] sm:$0xff]  ;;  %v15134_v21 = vpop.permute.xlu1 %8839  ;;  %v15139_v57 = vsel %vm582_vm13, %v16814_v50, %v8787_v40  ;;  %v5936_v40 = vsel %vm616_vm8, %v16819_v17, %v8497_v41  ;;  %v8407_v50 = vunpack.i.h.bf16 %v16788_v48  ;;  %v16822_v10 = vld [vmem:[#allocation7_spill] sm:$0xff] }
0x1335   : > { %7671 = vmatpush.msk.msrb.mxu3 %vm9467_vm12, %v16812_v13  ;;  %v8422_v56 = vunpack.i.h.bf16 %v16813_v15  ;;  %16815 = vst [vmem:[#allocation56_spill] sm:$0xff] %v15139_v57  ;;  %v16817_v13 = vunpack.i.h.bf16 %v16770_v8  ;;  %v16820_v8 = vunpack.i.h.bf16 %v14521_v6  ;;  %v16825_v41 = vunpack.i.h.bf16 %v16810_v63 }
0x1336   : > { %6691 = vmatpush.msrb.mxu2 %v15121_v47  ;;  %7690 = vmatpush.msk.msra.mxu1 %vm9443_vm11, %v16818_v54  ;;  %v16310_v54 = vunpack.i.h.bf16 %v16822_v10  ;;  %16824 = vst [vmem:[#allocation98_spill] sm:$0xff] %v15167_v38  ;;  %v8692_v6 = vunpack.i.h.bf16 %v14405_v29  ;;  %v8797_v10 = vunpack.i.h.bf16 %v14913_v49 }
0x1337   : > { %v15146_v55 = vsel %vm599_vm10, %v16817_v13, %v8511_v60  ;;  %6665 = vmatpush.msrb.mxu3 %v15139_v57  ;;  %v15160_v60 = vsel %vm582_vm13, %v16820_v8, %v8751_v32  ;;  %v8436_v13 = vunpack.i.l.bf16 %v16775_v37  ;;  %v5934_v17 = vsel %vm616_vm8, %v16825_v41, %v8466_v51  ;;  %6857 = vmatmul.f32.vlgmr.msra.gmra.mxu1 %v14847_v2 }
0x1338   : > { %6692 = vmatpush.msrb.mxu2 %v15146_v55  ;;  %6921 = vmatpush.msrb.mxu1 %v5936_v40  ;;  %16821 = vst [vmem:[#allocation57_spill] sm:$0xff] %v15160_v60  ;;  %v16826_v37 = vunpack.i.l.bf16 %v14603_v46  ;;  %v8391_v32 = vunpack.i.l.bf16 %v16828_v1  ;;  %v16829_v40 = vunpack.i.h.bf16 %v16780_v12  ;;  %v16831_v8 = vunpack.i.l.bf16 %v16813_v15 }
0x1339   : > { %6666 = vmatpush.msrb.mxu3 %v15160_v60  ;;  %v8842_v46 = vunpack.i.h.bf16 %v15134_v21 }
0x133a   : > { %6693 = vmatpush.msrb.mxu2 %v15167_v38  ;;  %6922 = vmatpush.msrb.mxu1 %v5934_v17  ;;  %v15179_v30 = vsel %vm582_vm13, %v16826_v37, %v8737_v28  ;;  %v15186_v51 = vsel %vm599_vm10, %v16829_v40, %v8436_v13  ;;  %v5932_v41 = vsel %vm616_vm8, %v16831_v8, %v8422_v56  ;;  %v16832_v28 = vunpack.i.l.bf16 %v16788_v48  ;;  %v16836_v37 = vld [vmem:[#allocation44_spill] sm:$0xff] }
0x133b   : > { %16827 = vst [vmem:[#allocation99_spill] sm:$0xff] %v15179_v30  ;;  %6667 = vmatpush.msrb.mxu3 %v15179_v30  ;;  %v5930_v12 = vsel %vm616_vm8, %v16310_v54, %v8391_v32  ;;  %v15203_v13 = vpop.permute.xlu2 %8889  ;;  %v16834_v56 = vunpack.i.h.bf16 %v16792_v26  ;;  %v16837_v40 = vld [vmem:[#allocation52_spill] sm:$0xff] }
0x133c   : > { %16830 = vst [vmem:[#allocation100_spill] sm:$0xff] %v15186_v51  ;;  %6694 = vmatpush.msrb.mxu2 %v15186_v51  ;;  %6923 = vmatpush.msrb.mxu1 %v5932_v41  ;;  %v15197_v34 = vsel %vm599_vm10, %v16832_v28, %v8407_v50  ;;  %v5886_v48 = vsel %vm553_vm6, %v16837_v40, %v16836_v37  ;;  %v8617_v50 = vunpack.i.h.bf16 %v14261_v14  ;;  %v8821_v41 = vunpack.i.l.bf16 %v14650_v11  ;;  %v8850_v32 = vpop.permute.xlu1 %8849  ;;  %v16840_v37 = vld [vmem:[#allocation51_spill] sm:$0xff]  ;;  %v16841_v40 = vld [vmem:[#allocation58_spill] sm:$0xff] }
0x133d   : > { %16833 = vst [vmem:[#allocation101_spill] sm:$0xff] %v15197_v34  ;;  %6668 = vmatpush.msrb.mxu3 %v14629_v0  ;;  %v15208_v17 = vsel %vm599_vm10, %v16834_v56, %v8361_v58  ;;  %v16838_v28 = vunpack.i.l.bf16 %v14405_v29  ;;  %v8571_v58 = vunpack.i.l.bf16 %v14282_v53  ;;  %v8852_v56 = vunpack.i.h.bf16 %v8850_v32 }
0x133e   : > { %16835 = vst [vmem:[#allocation102_spill] sm:$0xff] %v15208_v17  ;;  %6695 = vmatpush.msrb.mxu2 %v15197_v34  ;;  %6924 = vmatpush.msrb.mxu1 %v5930_v12  ;;  %v8851_v54 = vunpack.i.l.bf16 %v8850_v32  ;;  %v5888_v8 = vsel %vm553_vm6, %v16841_v40, %v16840_v37  ;;  %v8766_v12 = vunpack.i.l.bf16 %v14596_v19  ;;  %v16842_v29 = vunpack.i.l.bf16 %v14980_v18 }
0x133f   : > { %v15220_v26 = vsel %vm582_vm13, %v16838_v28, %v8692_v6  ;;  %v16313_v6 = vunpack.i.h.bf16 %v14695_v20  ;;  %v8856_v32 = vunpack.i.l.bf16 %v14695_v20  ;;  %v16843_v37 = vunpack.i.h.bf16 %v14680_v52 }
0x1340   : > { %16839 = vst [vmem:[#allocation44_spill] sm:$0xff] %v15220_v26  ;;  %6669 = vmatpush.msrb.mxu3 %v15220_v26  ;;  %6696 = vmatpush.msrb.mxu2 %v15208_v17  ;;  %v6283_v53 = vsel %vm582_vm13, %v8842_v46, %v16842_v29  ;;  %v5796_v28 = vsel %vm5732_vm1, %v8851_v54, %v8852_v56  ;;  %v8792_v40 = vunpack.i.h.bf16 %v14748_v25  ;;  %v16844_v18 = vunpack.i.h.bf16 %v14650_v11  ;;  %v16848_v29 = vld [vmem:[#allocation45_spill] sm:$0xff]  ;;  %v16878_v26 = vld [vmem:[#allocation27_spill] sm:$0xff] }
0x1341   : > { %7704 = vmatpush.msk.msrb.mxu1 %vm9467_vm12, %v5888_v8  ;;  %v9038_v15 = vpack.i.bf16 %v8851_v54, %v16843_v37  ;;  %v9043_v1 = vpack.i.bf16 %v8852_v56, %v5796_v28  ;;  %v16845_v8 = vunpack.i.l.bf16 %v14261_v14  ;;  %v16847_v54 = vld [vmem:[#allocation26_spill] sm:$0xff]  ;;  %v8742_v28 = vunpack.i.h.bf16 %v14620_v7  ;;  %6697 = vmatmul.f32.vlgmr.msrb.gmra.mxu2 %v15067_v4 }
0x1342   : > { %6721 = vmatpush.msra.mxu2 %v6283_v53  ;;  %6670 = vmatpush.msrb.mxu3 %v14454_v59  ;;  %v6281_v46 = vsel %vm582_vm13, %v8821_v41, %v16844_v18  ;;  %v5884_v56 = vsel %vm553_vm6, %v16848_v29, %v16847_v54  ;;  %v15257_v53 = vpop.permute.xlu0 %8934  ;;  %v16849_v41 = vunpack.i.l.bf16 %v14798_v62  ;;  %v16851_v14 = vld [vmem:[#allocation30_spill] sm:$0xff]  ;;  %v6052_v37 = vsel %vm489_vm0, %v8856_v32, %v16313_v6 }
0x1343   : > { %7705 = vmatpush.msk.msrb.mxu1 %vm9467_vm12, %v5886_v48  ;;  %9039 = vrot.lane.b32.xlu1 %v9038_v15, %s16585_s28  ;;  %v15252_v52 = vsel %vm582_vm13, %v16845_v8, %v8617_v50  ;;  %v16850_v15 = vld [vmem:[#allocation17_spill] sm:$0xff]  ;;  %v16852_v62 = vunpack.i.h.bf16 %v14176_v35  ;;  %v16854_v18 = vunpack.i.h.bf16 %v14596_v19  ;;  %v8910_v8 = vpop.permute.xlu2 %8909  ;;  %v16855_v35 = vunpack.i.l.bf16 %v14748_v25  ;;  %v16857_v54 = vld [vmem:[#allocation66_spill] sm:$0xff] }
0x1344   : > { %6722 = vmatpush.msra.mxu2 %v6281_v46  ;;  %16846 = vst [vmem:[#allocation51_spill] sm:$0xff] %v15252_v52  ;;  %6671 = vmatpush.msrb.mxu3 %v15252_v52  ;;  %v6279_v48 = vsel %vm582_vm13, %v8797_v10, %v16849_v41  ;;  %v5882_v50 = vsel %vm553_vm6, %v16851_v14, %v16850_v15  ;;  %v8911_v41 = vunpack.i.l.bf16 %v8910_v8  ;;  %v8812_v0 = vunpack.i.h.bf16 %v16878_v26 }
0x1345   : > { %7706 = vmatpush.msk.msrb.mxu1 %vm9467_vm12, %v5884_v56  ;;  %9044 = vrot.lane.b32.xlu2 %v9043_v1, %s16585_s28  ;;  %v15276_v10 = vsel %vm582_vm13, %v16852_v62, %v8571_v58  ;;  %v6277_v46 = vsel %vm582_vm13, %v8766_v12, %v16854_v18  ;;  %v8912_v56 = vunpack.i.h.bf16 %v8910_v8  ;;  %v8870_v1 = vpop.permute.xlu1 %8869  ;;  %v15288_v58 = vsel %vm599_vm10, %v16855_v35, %v8792_v40 }
0x1346   : > { %6723 = vmatpush.msra.mxu2 %v6279_v48  ;;  %16853 = vst [vmem:[#allocation26_spill] sm:$0xff] %v15276_v10  ;;  %6672 = vmatpush.msrb.mxu3 %v15276_v10  ;;  %v16318_v48 = vunpack.i.h.bf16 %v15257_v53  ;;  %v16314_v12 = vunpack.i.l.bf16 %v15129_v24  ;;  %v8872_v15 = vunpack.i.h.bf16 %v8870_v1  ;;  %v8871_v62 = vunpack.i.l.bf16 %v8870_v1 }
0x1347   : > { %7707 = vmatpush.msk.msrb.mxu1 %vm9467_vm12, %v5882_v50  ;;  %16856 = vst [vmem:[#allocation17_spill] sm:$0xff] %v15288_v58  ;;  %v9048_v18 = vpack.i.bf16 %v6052_v37, %v8856_v32  ;;  %v5853_v6 = vsel %vm5732_vm1, %v8911_v41, %v8912_v56  ;;  %v16858_v32 = vunpack.i.h.bf16 %v14728_v16  ;;  %v16315_v1 = vunpack.i.h.bf16 %v14780_v27 }
0x1348   : > { %6724 = vmatpush.msra.mxu2 %v6277_v46  ;;  %7672 = vmatpush.msk.msrb.mxu3 %vm9467_vm12, %v16857_v54  ;;  %v9058_v25 = vpack.i.bf16 %v5853_v6, %v8911_v41  ;;  %v9068_v40 = vpack.i.bf16 %v8912_v56, %v16318_v48  ;;  %v15303_v50 = vsel %vm582_vm13, %v8872_v15, %v16314_v12  ;;  %v16859_v46 = vld [vmem:[#allocation43_spill] sm:$0xff]  ;;  %v16860_v6 = vunpack.i.l.bf16 %v14620_v7  ;;  %v16864_v7 = vld [vmem:[#allocation80_spill] sm:$0xff] }
0x1349   : > { %6929 = vmatpush.msrb.mxu1 %v15288_v58  ;;  %v15308_v37 = vsel %vm582_vm13, %v16858_v32, %v8871_v62  ;;  %v16862_v54 = vld [vmem:[#allocation55_spill] sm:$0xff]  ;;  %v16316_v35 = vunpack.i.l.bf16 %v15203_v13  ;;  %v8811_v30 = vunpack.i.l.bf16 %v16878_v26  ;;  %v9118_v26 = vpack.i.bf16 %v14610_v3, %v14256_v42  ;;  %v16884_v3 = vld [vmem:[#allocation74_spill] sm:$0xff] }
0x134a   : > { %7673 = vmatpush.msk.msrb.mxu3 %vm9467_vm12, %v16859_v46  ;;  %v15318_v8 = vsel %vm599_vm10, %v16860_v6, %v8742_v28  ;;  %9059 = vrot.lane.b32.xlu0 %v9058_v25, %s16585_s28  ;;  %v16863_v41 = vld [vmem:[#allocation35_spill] sm:$0xff] }
0x134b   : > { %6930 = vmatpush.msrb.mxu1 %v14771_v44  ;;  %9049 = vrot.lane.b32.xlu1 %v9048_v18, %s16586_s24  ;;  %16861 = vst [vmem:[#allocation66_spill] sm:$0xff] %v15318_v8  ;;  %v15326_v56 = vpop.permute.xlu2 %8924  ;;  %v16866_v32 = vld [vmem:[#allocation59_spill] sm:$0xff] }
0x134c   : > { %7674 = vmatpush.msk.msrb.mxu3 %vm9467_vm12, %v16862_v54 }
0x134d   : > { %6931 = vmatpush.msrb.mxu1 %v15318_v8  ;;  %9069 = vrot.lane.b32.xlu2 %v9068_v40, %s16585_s28  ;;  %v8885_v28 = vpop.permute.xlu1 %8884  ;;  %v16865_v40 = vld [vmem:[#allocation70_spill] sm:$0xff] }
0x134e   : > { %7675 = vmatpush.msk.msrb.mxu3 %vm9467_vm12, %v16863_v41  ;;  %v8887_v15 = vunpack.i.h.bf16 %v8885_v28  ;;  %v8886_v62 = vunpack.i.l.bf16 %v8885_v28  ;;  %v16867_v41 = vunpack.i.l.bf16 %v14631_v5  ;;  %v15378_v5 = vpop.permute.xlu0 %8944 }
0x134f   : > { %6932 = vmatpush.msrb.mxu1 %v16864_v7  ;;  %6677 = vmatmul.f32.vlgmr.msrb.gmra.mxu3 %v14847_v2 }
0x1350   : > { %6713 = vmatpush.msra.mxu3 %v15288_v58  ;;  %v15341_v18 = vsel %vm582_vm13, %v8887_v15, %v16316_v35  ;;  %v15346_v25 = vsel %vm582_vm13, %v16315_v1, %v8886_v62  ;;  %v16868_v15 = vld [vmem:[#allocation95_spill] sm:$0xff]  ;;  %v16869_v62 = vunpack.i.l.bf16 %v14659_v33  ;;  %v16870_v35 = vld [vmem:[#allocation20_spill] sm:$0xff] }
0x1351   : > { %6933 = vmatpush.msrb.mxu1 %v14449_v23 }
0x1352   : > { %6714 = vmatpush.msra.mxu3 %v14771_v44 }
0x1353   : > { %6934 = vmatpush.msrb.mxu1 %v16865_v40  ;;  %v15352_v2 = vpop.permute.xlu2 %8939 }
0x1354   : > { %6715 = vmatpush.msra.mxu3 %v15318_v8  ;;  %v16317_v46 = vunpack.i.h.bf16 %v15352_v2 }
0x1355   : > { %6935 = vmatpush.msrb.mxu1 %v16866_v32  ;;  %v15356_v6 = vpop.permute.xlu1 %8914 }
0x1356   : > { %6716 = vmatpush.msra.mxu3 %v16864_v7  ;;  %v16319_v54 = vunpack.i.h.bf16 %v15356_v6  ;;  %v15364_v28 = vpack.i.bf16 %v16867_v41, %v16317_v46  ;;  %v16324_v46 = vunpack.i.h.bf16 %v16870_v35  ;;  %v15398_v8 = vpop.permute.xlu0 %8959 }
0x1357   : > { %6936 = vmatpush.msrb.mxu1 %v16790_v9  ;;  %7680 = vmatmul.msk.f32.vlgmr.msra.gmra.mxu3 %vm1187_vm15, %v16868_v15 }
0x1358   : > { %6937 = vmatmul.f32.vlgmr.msrb.gmra.mxu1 %v15067_v4  ;;  %v15373_v12 = vpack.i.bf16 %v16869_v62, %v16319_v54 }
0x1359   : > { %7021 = vmatpush.msra.mxu1 %v14449_v23 }
0x135b   : > { %7022 = vmatpush.msra.mxu1 %v16865_v40  ;;  %v8950_v23 = vpop.permute.xlu2 %8949 }
0x135c   : > { %v8952_v41 = vunpack.i.h.bf16 %v8950_v23  ;;  %v8951_v1 = vunpack.i.l.bf16 %v8950_v23 }
0x135d   : > { %7023 = vmatpush.msra.mxu1 %v16866_v32  ;;  %v15380_v15 = vpop.permute.xlu1 %8919 }
0x135e   : > { %v8921_v48 = vunpack.i.l.bf16 %v15380_v15  ;;  %v5735_v33 = vsel %vm5732_vm1, %v8951_v1, %v8952_v41 }
0x135f   : > { %7024 = vmatpush.msra.mxu1 %v16790_v9  ;;  %v9083_v62 = vpack.i.bf16 %v5735_v33, %v8951_v1  ;;  %v16871_v9 = vld [vmem:[#allocation50_spill] sm:$0xff] }
0x1360   : > { %v15388_v40 = vsel %vm582_vm13, %v16324_v46, %v8921_v48  ;;  %v16326_v32 = vunpack.i.h.bf16 %v16871_v9  ;;  %v8831_v54 = vunpack.i.l.bf16 %v16871_v9  ;;  %v16872_v46 = vld [vmem:[#allocation32_spill] sm:$0xff] }
0x1361   : > { %9084 = vrot.lane.b32.xlu0 %v9083_v62, %s16585_s28  ;;  %v16873_v14 = vunpack.i.h.bf16 %v16872_v46  ;;  %v8936_v62 = vunpack.i.l.bf16 %v15257_v53  ;;  %v8975_v46 = vpop.permute.xlu0 %8974 }
0x1362   : > { %v6051_v7 = vsel %vm489_vm0, %v8831_v54, %v16326_v32 }
0x1363   : > { %v15393_v23 = vpop.permute.xlu2 %8964  ;;  %v9113_v58 = vpack.i.bf16 %v6051_v7, %v8831_v54 }
0x1365   : > { %v8930_v1 = vpop.permute.xlu1 %8929 }
0x1366   : > { %v8932_v33 = vunpack.i.h.bf16 %v8930_v1  ;;  %v8931_v44 = vunpack.i.l.bf16 %v8930_v1  ;;  %v16874_v1 = vunpack.i.h.bf16 %v15257_v53 }
0x1368   : > { %v5734_v48 = vsel %vm5732_vm1, %v8931_v44, %v8932_v33  ;;  %v9063_v29 = vpack.i.bf16 %v8931_v44, %v16873_v14  ;;  %v5854_v7 = vsel %vm5732_vm1, %v8936_v62, %v16874_v1 }
0x1369   : > { %v9073_v63 = vpack.i.bf16 %v8932_v33, %v5734_v48  ;;  %9114 = vrot.lane.b32.xlu0 %v9113_v58, %s16586_s24  ;;  %v9078_v14 = vpack.i.bf16 %v5854_v7, %v8936_v62  ;;  %v8977_v48 = vunpack.i.h.bf16 %v8975_v46  ;;  %v16875_v58 = vld [vmem:[#allocation61_spill] sm:$0xff] }
0x136a   : > { %9064 = vrot.lane.b32.xlu1 %v9063_v29, %s16585_s28  ;;  %v8976_v29 = vunpack.i.l.bf16 %v8975_v46  ;;  %v9000_v46 = vpop.permute.xlu0 %8999 }
0x136b   : > { %9074 = vrot.lane.b32.xlu2 %v9073_v63, %s16585_s28  ;;  %v15407_v32 = vpop.permute.xlu2 %8969  ;;  %v9002_v34 = vunpack.i.h.bf16 %v9000_v46  ;;  %v9001_v51 = vunpack.i.l.bf16 %v9000_v46 }
0x136c   : > { %v9093_v7 = vpack.i.bf16 %v8976_v29, %v8952_v41 }
0x136d   : > { %v8955_v39 = vpop.permute.xlu1 %8954 }
0x136e   : > { %v8957_v54 = vunpack.i.h.bf16 %v8955_v39  ;;  %v8956_v10 = vunpack.i.l.bf16 %v8955_v39  ;;  %v5736_v39 = vsel %vm5732_vm1, %v8976_v29, %v8977_v48  ;;  %v16880_v29 = vld [vmem:[#allocation78_spill] sm:$0xff] }
0x1370   : > { %v5855_v44 = vsel %vm5732_vm1, %v8956_v10, %v8957_v54 }
0x1371   : > { %v9088_v33 = vpack.i.bf16 %v5855_v44, %v8956_v10  ;;  %9129 = vrot.lane.b32.xlu0 %v16875_v58, %s16586_s24  ;;  %v9103_v10 = vpack.i.bf16 %v8977_v48, %v5736_v39  ;;  %v6050_v48 = vsel %vm489_vm0, %v8811_v30, %v8812_v0  ;;  %v16344_v39 = vunpack.i.h.bf16 %v16880_v29 }
0x1373   : > { %9079 = vrot.lane.b32.xlu2 %v9078_v14, %s16585_s28  ;;  %9089 = vrot.lane.b32.xlu1 %v9088_v33, %s16585_s28  ;;  %v8980_v63 = vpop.permute.xlu2 %8979  ;;  %v16876_v14 = vld [vmem:[#allocation76_spill] sm:$0xff]  ;;  %v16877_v33 = vld [vmem:[#allocation21_spill] sm:$0xff] }
0x1374   : > { %v8982_v53 = vunpack.i.h.bf16 %v8980_v63  ;;  %v8981_v52 = vunpack.i.l.bf16 %v8980_v63  ;;  %v9148_v58 = vpack.i.bf16 %v16877_v33, %v16876_v14 }
0x1375   : > { %v15417_v1 = vpop.permute.xlu1 %8984 }
0x1376   : > { %v5856_v59 = vsel %vm5732_vm1, %v8981_v52, %v8982_v53  ;;  %v9098_v63 = vpack.i.bf16 %v8957_v54, %v8982_v53  ;;  %v8776_v54 = vunpack.i.l.bf16 %v16880_v29  ;;  %v9123_v53 = vpack.i.bf16 %v6050_v48, %v8811_v30 }
0x1377   : > { %v9143_v62 = vpack.i.bf16 %v5856_v59, %v8981_v52  ;;  %v16879_v59 = vld [vmem:[#allocation64_spill] sm:$0xff]  ;;  %vm7130_vm1 = vcmask 1045504  }
0x1378   : > { %v6049_v33 = vsel %vm489_vm0, %v8776_v54, %v16344_v39 }
0x1379   : > { %9144 = vrot.lane.b32.xlu0 %v9143_v62, %s16585_s28  ;;  %v16881_v62 = vld [vmem:[#allocation13_spill] sm:$0xff] }
0x137b   : > { %9104 = vrot.lane.b32.xlu2 %v9103_v10, %s16585_s28  ;;  %9094 = vrot.lane.b32.xlu1 %v9093_v7, %s16585_s28  ;;  %v16882_v10 = vld [vmem:[#allocation5_spill] sm:$0xff] }
0x137c   : > { %v16883_v7 = vpack.i.bf16 %v16881_v62, %v16882_v10  ;;  %v9005_v14 = vpop.permute.xlu2 %9004  ;;  %v9138_v62 = vpack.i.bf16 %v16884_v3, %v6049_v33  ;;  %v16885_v10 = vld [vmem:[#allocation47_spill] sm:$0xff]  ;;  %v8971_v33 = vunpack.i.l.bf16 %v15407_v32 }
0x137d   : > { %v15424_v44 = vpop.permute.xlu1 %8989  ;;  %v9007_v48 = vunpack.i.h.bf16 %v9005_v14  ;;  %v9006_v42 = vunpack.i.l.bf16 %v9005_v14  ;;  %v8961_v14 = vunpack.i.l.bf16 %v15398_v8 }
0x137e   : > { %v8991_v3 = vunpack.i.l.bf16 %v15424_v44 }
0x137f   : > { %v6313_v46 = vsel %vm582_vm13, %v9006_v42, %v9007_v48  ;;  %v8922_v42 = vunpack.i.h.bf16 %v15380_v15 }
0x1381   : > { %9149 = vrot.lane.b32.xlu0 %v9148_v58, %s16586_s24 }
0x1383   : > { %9109 = vrot.lane.b32.xlu2 %v16879_v59, %s16586_s24  ;;  %9099 = vrot.lane.b32.xlu1 %v9098_v63, %s16585_s28 }
0x1384   : > { %v15434_v41 = vpop.permute.xlu0 %9009 }
0x1385   : > { %v8995_v52 = vpop.permute.xlu1 %8994 }
0x1386   : > { %v8996_v38 = vunpack.i.l.bf16 %v8995_v52 }
0x1389   : > { %9164 = vrot.lane.b32.xlu0 %v16883_v7, %s16586_s24  ;;  %v9133_v7 = vpack.i.bf16 %v8776_v54, %v16885_v10  ;;  %v8972_v54 = vunpack.i.h.bf16 %v15407_v32 }
0x138b   : > { %9124 = vrot.lane.b32.xlu2 %v9123_v53, %s16586_s24  ;;  %9119 = vrot.lane.b32.xlu1 %v9118_v26, %s16586_s24  ;;  %v16886_v53 = vld [vmem:[#allocation75_spill] sm:$0xff] }
0x138c   : > { %v9178_v17 = vpack.i.bf16 %v8812_v0, %v16886_v53  ;;  %v8997_v0 = vunpack.i.h.bf16 %v8995_v52  ;;  %v8946_v52 = vunpack.i.l.bf16 %v15378_v5  ;;  %v8927_v53 = vunpack.i.h.bf16 %v15326_v56 }
0x138d   : > { %v9020_v58 = vpop.permute.xlu1 %9019  ;;  %v9015_v59 = vpop.permute.xlu0 %9014 }
0x138e   : > { %v9022_v63 = vunpack.i.h.bf16 %v9020_v58  ;;  %v9021_v30 = vunpack.i.l.bf16 %v9020_v58  ;;  %v9017_v60 = vunpack.i.h.bf16 %v9015_v59  ;;  %v9016_v57 = vunpack.i.l.bf16 %v9015_v59 }
0x138f   : > { %v8962_v58 = vunpack.i.h.bf16 %v15398_v8  ;;  %v8992_v59 = vunpack.i.h.bf16 %v15424_v44  ;;  %v8947_v44 = vunpack.i.h.bf16 %v15378_v5  ;;  %v16888_v5 = vunpack.i.h.bf16 %v14695_v20  ;;  %v16889_v20 = vld [vmem:[#allocation39_spill] sm:$0xff] }
0x1390   : > { %v6315_v26 = vsel %vm582_vm13, %v9021_v30, %v9022_v63  ;;  %v6316_v39 = vsel %vm582_vm13, %v9022_v63, %v9016_v57  ;;  %v6314_v57 = vsel %vm582_vm13, %v9007_v48, %v9017_v60  ;;  %v15470_v63 = vpop.permute.xlu2 %9029  ;;  %v8966_v30 = vunpack.i.l.bf16 %v15393_v23 }
0x1391   : > { %6741 = vmatpush.msrb.mxu3 %v6315_v26  ;;  %6801 = vmatpush.msrb.mxu0 %v6316_v39  ;;  %v6311_v39 = vsel %vm582_vm13, %v9001_v51, %v9002_v34  ;;  %v6071_v60 = vsel %vm489_vm0, %v8961_v14, %v8962_v58  ;;  %v6309_v32 = vsel %vm582_vm13, %v8991_v3, %v8992_v59  ;;  %v8926_v26 = vunpack.i.l.bf16 %v15326_v56 }
0x1392   : > { %9179 = vrot.lane.b32.xlu0 %v9178_v17, %s16586_s24  ;;  %v6312_v17 = vsel %vm582_vm13, %v9002_v34, %v8996_v38  ;;  %v6310_v51 = vsel %vm582_vm13, %v8992_v59, %v8997_v0  ;;  %v8967_v38 = vunpack.i.h.bf16 %v15393_v23  ;;  %v16887_v34 = vld [vmem:[#allocation25_spill] sm:$0xff]  ;;  %v6308_v10 = vsel %vm582_vm13, %v8972_v54, %v8966_v30 }
0x1393   : > { %9139 = vrot.lane.b32.xlu2 %v9138_v62, %s16586_s24  ;;  %9134 = vrot.lane.b32.xlu1 %v9133_v7, %s16586_s24  ;;  %v9158_v48 = vpack.i.bf16 %v16888_v5, %v16887_v34  ;;  %v6307_v62 = vsel %vm582_vm13, %v8971_v33, %v8972_v54  ;;  %v9188_v7 = vpack.i.bf16 %v6071_v60, %v8961_v14  ;;  %v8901_v23 = vunpack.i.l.bf16 %v16870_v35  ;;  %v16896_v34 = vld [vmem:[#allocation19_spill] sm:$0xff] }
0x1394   : > { %6742 = vmatpush.msrb.mxu3 %v6313_v46  ;;  %6802 = vmatpush.msrb.mxu0 %v6314_v57  ;;  %v8916_v59 = vunpack.i.l.bf16 %v15356_v6  ;;  %v6305_v15 = vsel %vm582_vm13, %v8946_v52, %v8947_v44  ;;  %v6306_v14 = vsel %vm582_vm13, %v8947_v44, %v8967_v38  ;;  %v6303_v56 = vsel %vm582_vm13, %v8922_v42, %v8926_v26  ;;  %v16892_v52 = vld [vmem:[#allocation31_spill] sm:$0xff]  ;;  %v16898_v42 = vld [vmem:[#allocation4_spill] sm:$0xff] }
0x1395   : > { %v6304_v0 = vsel %vm582_vm13, %v8926_v26, %v8927_v53  ;;  %v16890_v46 = vunpack.i.h.bf16 %v15356_v6  ;;  %v16893_v60 = vunpack.i.h.bf16 %v16871_v9  ;;  %v8836_v6 = vunpack.i.l.bf16 %v15053_v31 }
0x1396   : > { %6743 = vmatpush.msrb.mxu3 %v6311_v39  ;;  %6803 = vmatpush.msrb.mxu0 %v6312_v17  ;;  %v16891_v39 = vunpack.i.h.bf16 %v16870_v35  ;;  %v8941_v35 = vunpack.i.l.bf16 %v15352_v2  ;;  %v16897_v9 = vunpack.i.h.bf16 %v16880_v29  ;;  %v8987_v53 = vunpack.i.h.bf16 %v15417_v1  ;;  %v16900_v29 = vld [vmem:[#allocation22_spill] sm:$0xff] }
0x1397   : > { %v6069_v57 = vsel %vm489_vm0, %v8916_v59, %v16890_v46  ;;  %v9168_v30 = vpack.i.bf16 %v16893_v60, %v16892_v52  ;;  %v8861_v26 = vunpack.i.l.bf16 %v15042_v22 }
0x1398   : > { %6744 = vmatpush.msrb.mxu3 %v6309_v32  ;;  %6804 = vmatpush.msrb.mxu0 %v6310_v51  ;;  %v6301_v17 = vsel %vm582_vm13, %v8901_v23, %v16891_v39  ;;  %v9203_v32 = vpack.i.bf16 %v6069_v57, %v8916_v59  ;;  %v16894_v51 = vld [vmem:[#allocation29_spill] sm:$0xff]  ;;  %v9183_v5 = vpack.i.bf16 %v16897_v9, %v16896_v34  ;;  %v8877_v9 = vunpack.i.h.bf16 %v15129_v24 }
0x1399   : > { %v9208_v59 = vpack.i.bf16 %v8861_v26, %v8987_v53 }
0x139a   : > { %6745 = vmatpush.msrb.mxu3 %v6307_v62  ;;  %6805 = vmatpush.msrb.mxu0 %v6308_v10  ;;  %v9193_v62 = vpack.i.bf16 %v8941_v35, %v16898_v42  ;;  %v9025_v10 = vpop.permute.xlu1 %9024 }
0x139b   : > { %9159 = vrot.lane.b32.xlu2 %v9158_v48, %s16586_s24  ;;  %9154 = vrot.lane.b32.xlu1 %v16889_v20, %s16586_s24  ;;  %v9035_v20 = vpop.permute.xlu0 %9034  ;;  %v9026_v52 = vunpack.i.l.bf16 %v9025_v10 }
0x139c   : > { %9189 = vrot.lane.b32.xlu0 %v9188_v7, %s16586_s24  ;;  %6746 = vmatpush.msrb.mxu3 %v6305_v15  ;;  %v16899_v7 = vunpack.i.h.bf16 %v15352_v2  ;;  %v8986_v15 = vunpack.i.l.bf16 %v15417_v1 }
0x139d   : > { %6806 = vmatpush.msrb.mxu0 %v6306_v14  ;;  %v9032_v14 = vunpack.i.h.bf16 %v15470_v63 }
0x139e   : > { %6747 = vmatpush.msrb.mxu3 %v6303_v56  ;;  %v9031_v56 = vunpack.i.l.bf16 %v15470_v63 }
0x139f   : > { %v9045_v3 = vpop.permute.xlu2 %9044  ;;  %6807 = vmatpush.msrb.mxu0 %v6304_v0  ;;  %v9036_v0 = vunpack.i.l.bf16 %v9035_v20 }
0x13a0   : > { %v9047_v54 = vunpack.i.h.bf16 %v9045_v3  ;;  %v9046_v33 = vunpack.i.l.bf16 %v9045_v3  ;;  %6748 = vmatpush.msrb.mxu3 %v6301_v17  ;;  %v9037_v3 = vunpack.i.h.bf16 %v9035_v20  ;;  %v16901_v17 = vunpack.i.h.bf16 %v15042_v22  ;;  %v16915_v20 = vld [vmem:[#allocation97_spill] sm:$0xff] }
0x13a1   : > { %6808 = vmatpush.msrb.mxu0 %v15388_v40  ;;  %v16895_v40 = vunpack.i.h.bf16 %v15053_v31  ;;  %v6070_v31 = vsel %vm489_vm0, %v8941_v35, %v16899_v7  ;;  %v16903_v7 = vunpack.i.h.bf16 %v14780_v27 }
0x13a2   : > { %v6300_v44 = vsel %vm582_vm13, %v9046_v33, %v9047_v54  ;;  %v9198_v23 = vpack.i.bf16 %v16900_v29, %v6070_v31  ;;  %v6072_v54 = vsel %vm489_vm0, %v8986_v15, %v8987_v53  ;;  %v6100_v63 = vsel %vm489_vm0, %v8861_v26, %v16901_v17  ;;  %v16912_v29 = vld [vmem:[#allocation87_spill] sm:$0xff]  ;;  %v16920_v17 = vld [vmem:[#allocation65_spill] sm:$0xff] }
0x13a3   : > { %6809 = vmatpush.msrb.mxu0 %v6300_v44  ;;  %9174 = vrot.lane.b32.xlu2 %v16894_v51, %s16586_s24  ;;  %v6099_v38 = vsel %vm489_vm0, %v8836_v6, %v16895_v40  ;;  %v9027_v44 = vunpack.i.h.bf16 %v9025_v10  ;;  %v6297_v60 = vsel %vm582_vm13, %v9036_v0, %v9037_v3  ;;  %v9223_v22 = vpack.i.bf16 %v6072_v54, %v8986_v15  ;;  %v15583_v26 = vpop.permute.xlu0 %9054 }
0x13a4   : > { %9169 = vrot.lane.b32.xlu1 %v9168_v30, %s16586_s24  ;;  %9204 = vrot.lane.b32.xlu0 %v9203_v32, %s16586_s24  ;;  %v9218_v48 = vpack.i.bf16 %v6099_v38, %v8836_v6  ;;  %v6296_v30 = vsel %vm582_vm13, %v9031_v56, %v9032_v14  ;;  %v8892_v32 = vunpack.i.h.bf16 %v15203_v13  ;;  %v9012_v6 = vunpack.i.h.bf16 %v15434_v41 }
0x13a5   : > { %v9011_v51 = vunpack.i.l.bf16 %v15434_v41  ;;  %v8881_v41 = vunpack.i.l.bf16 %v14780_v27  ;;  %v8866_v10 = vunpack.i.l.bf16 %v14728_v16  ;;  %vm7096_vm0 = vcmask 1040384  }
0x13a6   : > { %v6294_v35 = vsel %vm582_vm13, %v9012_v6, %v9026_v52 }
0x13a7   : > { %v15559_v40 = vpop.permute.xlu2 %9069  ;;  %v6289_v31 = vsel %vm582_vm13, %v8881_v41, %v16903_v7  ;;  %v9056_v7 = vunpack.i.l.bf16 %v15583_v26 }
0x13ab   : > { %9184 = vrot.lane.b32.xlu2 %v9183_v5, %s16586_s24  ;;  %v6293_v5 = vsel %vm582_vm13, %v9011_v51, %v9012_v6 }
0x13ac   : > { %9194 = vrot.lane.b32.xlu1 %v9193_v62, %s16586_s24  ;;  %9219 = vrot.lane.b32.xlu0 %v9218_v48, %s16586_s24  ;;  %v16902_v48 = vunpack.i.l.bf16 %v15203_v13  ;;  %v16904_v13 = vunpack.i.l.bf16 %v15129_v24  ;;  %v16905_v24 = vunpack.i.h.bf16 %v14728_v16  ;;  %v16908_v16 = vld [vmem:[#allocation81_spill] sm:$0xff] }
0x13ae   : > { %v6292_v42 = vsel %vm582_vm13, %v16902_v48, %v8892_v32  ;;  %v6288_v53 = vsel %vm582_vm13, %v16904_v13, %v8877_v9 }
0x13b3   : > { %9199 = vrot.lane.b32.xlu2 %v9198_v23, %s16586_s24 }
0x13b4   : > { %9209 = vrot.lane.b32.xlu1 %v9208_v59, %s16586_s24  ;;  %9239 = vrot.lane.b32.xlu0 %v15373_v12, %s16586_s24  ;;  %v9213_v12 = vpack.i.bf16 %v8962_v58, %v6100_v63  ;;  %v6295_v58 = vsel %vm582_vm13, %v9027_v44, %v9031_v56  ;;  %v16914_v59 = vld [vmem:[#allocation96_spill] sm:$0xff]  ;;  %v16921_v63 = vld [vmem:[#allocation63_spill] sm:$0xff]  ;;  %v16922_v44 = vld [vmem:[#allocation77_spill] sm:$0xff] }
0x13b5   : > { %v9040_v2 = vpop.permute.xlu1 %9039 }
0x13b6   : > { %v9042_v46 = vunpack.i.h.bf16 %v9040_v2  ;;  %v9041_v57 = vunpack.i.l.bf16 %v9040_v2 }
0x13b8   : > { %v6299_v1 = vsel %vm582_vm13, %v9042_v46, %v9046_v33  ;;  %v6298_v39 = vsel %vm582_vm13, %v9037_v3, %v9041_v57  ;;  %v6583_v33 = vld [vmem:[%s16087_s12] sm:$0xf]  ;;  %v16916_v3 = vld [vmem:[#allocation98_spill] sm:$0xff] }
0x13b9   : > { %6749 = vmatpush.msrb.mxu3 %v6299_v1  ;;  %6810 = vmatpush.msrb.mxu0 %v6298_v39  ;;  %v16918_v46 = vld [vmem:[#allocation101_spill] sm:$0xff]  ;;  %v16919_v1 = vld [vmem:[#allocation102_spill] sm:$0xff] }
0x13bb   : > { %6750 = vmatpush.msrb.mxu3 %v6297_v60  ;;  %6811 = vmatpush.msrb.mxu0 %v6296_v30 }
0x13bc   : > { %9214 = vrot.lane.b32.xlu2 %v9213_v12, %s16586_s24  ;;  %9224 = vrot.lane.b32.xlu1 %v9223_v22, %s16586_s24  ;;  %v16923_v12 = vld [vmem:[#allocation60_spill] sm:$0xff] }
0x13bd   : > { %6586 = vperm.xlu0 %7772, %v6583_v33   ;;  %v15555_v8 = vpop.permute.xlu1 %9049  ;;  %6751 = vmatpush.msrb.mxu3 %v6295_v58  ;;  %v15659_v33 = vld.sshfl [vmem:[#allocation1] sm:$0xff pattern:$0x75316420] }
0x13be   : > { %v9052_v38 = vunpack.i.h.bf16 %v15555_v8  ;;  %v9051_v34 = vunpack.i.l.bf16 %v15555_v8  ;;  %6812 = vmatpush.msrb.mxu0 %v6294_v35  ;;  %v16931_v8 = vld [vmem:[#allocation86_spill] sm:$0xff] }
0x13bf   : > { %6752 = vmatpush.msrb.mxu3 %v6293_v5 }
0x13c0   : > { %6813 = vmatpush.msrb.mxu0 %v6292_v42  ;;  %v15572_v62 = vsel %vm599_vm10, %v9051_v34, %v9052_v38 }
0x13c1   : > { %6753 = vmatpush.msrb.mxu3 %v15341_v18  ;;  %v8841_v18 = vunpack.i.l.bf16 %v15134_v21  ;;  %v16907_v21 = vunpack.i.h.bf16 %v14650_v11  ;;  %v16911_v11 = vld [vmem:[#allocation92_spill] sm:$0xff] }
0x13c2   : > { %6814 = vmatpush.msrb.mxu0 %v15346_v25  ;;  %v6285_v25 = vsel %vm582_vm13, %v8866_v10, %v16905_v24  ;;  %v9057_v10 = vunpack.i.h.bf16 %v15583_v26 }
0x13c3   : > { %6754 = vmatpush.msrb.mxu3 %v6289_v31 }
0x13c4   : > { %6815 = vmatpush.msrb.mxu0 %v6288_v53  ;;  %9234 = vrot.lane.b32.xlu2 %v15071_v61, %s16586_s24  ;;  %v16906_v61 = vld [vmem:[#allocation46_spill] sm:$0xff] }
0x13c5   : > { %9229 = vrot.lane.b32.xlu1 %v15364_v28, %s16586_s24  ;;  %6755 = vmatpush.msrb.mxu3 %v15303_v50  ;;  %v15592_v27 = vpop.permute.xlu2 %9074  ;;  %v6282_v50 = vsel %vm582_vm13, %v16907_v21, %v8841_v18  ;;  %v16910_v28 = vld [vmem:[#allocation3_spill] sm:$0xff]  ;;  %v16924_v21 = vld [vmem:[#allocation56_spill] sm:$0xff] }
0x13c6   : > { %6816 = vmatpush.msrb.mxu0 %v15308_v37  ;;  %v15613_v37 = vpop.permute.xlu0 %9059  ;;  %v9077_v22 = vunpack.i.h.bf16 %v15592_v27  ;;  %v9076_v6 = vunpack.i.l.bf16 %v15592_v27 }
0x13c7   : > { %6756 = vmatpush.msrb.mxu3 %v6285_v25  ;;  %6817 = vmatmul.f32.vlgmr.msrb.gmra.mxu0 %v15067_v4 }
0x13c8   : > { %7696 = vmatpush.msk.msra.mxu0 %vm9467_vm12, %v14851_v43  ;;  %6757 = vmatmul.f32.vlgmr.msrb.gmra.mxu3 %v15067_v4  ;;  %v8796_v43 = vunpack.i.l.bf16 %v14913_v49  ;;  %v16913_v4 = vunpack.i.h.bf16 %v14596_v19  ;;  %v16917_v19 = vld [vmem:[#allocation100_spill] sm:$0xff]  ;;  %v6272_v13 = vsel %vm582_vm13, %v9076_v6, %v9077_v22 }
0x13c9   : > { %6781 = vmatpush.msra.mxu3 %v15012_v45  ;;  %v16909_v45 = vld [vmem:[#allocation82_spill] sm:$0xff] }
0x13ca   : > { %7697 = vmatpush.msk.msra.mxu0 %vm9467_vm12, %v16906_v61  ;;  %v6278_v23 = vsel %vm582_vm13, %v16913_v4, %v8796_v43  ;;  %v6269_v61 = vsel %vm582_vm13, %v9056_v7, %v9057_v10  ;;  %v16925_v43 = vld [vmem:[#allocation83_spill] sm:$0xff]  ;;  %v16929_v4 = vld [vmem:[#allocation85_spill] sm:$0xff] }
0x13cb   : > { %6782 = vmatpush.msra.mxu3 %v6282_v50 }
0x13cc   : > { %7698 = vmatpush.msk.msra.mxu0 %vm9467_vm12, %v16908_v16  ;;  %9249 = vrot.lane.b32.xlu2 %v16909_v45, %s16586_s24  ;;  %v16926_v16 = vld [vmem:[#allocation57_spill] sm:$0xff]  ;;  %v16927_v45 = vld [vmem:[#allocation84_spill] sm:$0xff] }
0x13cd   : > { %9244 = vrot.lane.b32.xlu1 %v16910_v28, %s16586_s24  ;;  %6783 = vmatpush.msra.mxu3 %v16911_v11  ;;  %v15623_v49 = vpop.permute.xlu2 %9079  ;;  %v16928_v28 = vld [vmem:[#allocation99_spill] sm:$0xff]  ;;  %s7714_s24 = sshll.u32 %s16987_s26, 5 }
0x13ce   : > { %7699 = vmatpush.msk.msra.mxu0 %vm9467_vm12, %v16912_v29  ;;  %s440_s15 = scalar_lea.vmem %s16088_s13, %s7714_s24 }
0x13cf   : > { %6784 = vmatpush.msra.mxu3 %v6278_v23  ;;  %v16930_v23 = vld [vmem:[#allocation79_spill] sm:$0xff] }
0x13d0   : > { %6905 = vmatpush.msra.mxu0 %v16914_v59 }
0x13d2   : > { %6906 = vmatpush.msra.mxu0 %v16915_v20 }
0x13d3   : > { %v9085_v15 = vpop.permute.xlu0 %9084 }
0x13d4   : > { %6907 = vmatpush.msra.mxu0 %v15121_v47  ;;  %v9087_v35 = vunpack.i.h.bf16 %v9085_v15  ;;  %v9086_v36 = vunpack.i.l.bf16 %v9085_v15  ;;  %v16933_v15 = vld [vmem:[#allocation67_spill] sm:$0xff] }
0x13d5   : > { %v9105_v14 = vpop.permute.xlu2 %9104 }
0x13d6   : > { %6908 = vmatpush.msra.mxu0 %v15146_v55  ;;  %v9107_v56 = vunpack.i.h.bf16 %v9105_v14  ;;  %v9106_v2 = vunpack.i.l.bf16 %v9105_v14  ;;  %v6273_v31 = vsel %vm582_vm13, %v9086_v36, %v9087_v35  ;;  %v16934_v14 = vld [vmem:[#allocation68_spill] sm:$0xff] }
0x13d8   : > { %6909 = vmatpush.msra.mxu0 %v16916_v3  ;;  %v6276_v0 = vsel %vm582_vm13, %v9106_v2, %v9107_v56  ;;  %v16935_v56 = vld [vmem:[#allocation53_spill] sm:$0xff] }
0x13d9   : > { %6785 = vmatpush.msra.mxu3 %v6276_v0  ;;  %v16936_v0 = vld [vmem:[#allocation54_spill] sm:$0xff] }
0x13da   : > { %6910 = vmatpush.msra.mxu0 %v16917_v19 }
0x13db   : > { %v15636_v54 = vpop.permute.xlu0 %9114 }
0x13dc   : > { %6911 = vmatpush.msra.mxu0 %v16918_v46  ;;  %v9065_v57 = vpop.permute.xlu1 %9064 }
0x13dd   : > { %v15639_v39 = vpop.permute.xlu2 %9109  ;;  %v9067_v9 = vunpack.i.h.bf16 %v9065_v57  ;;  %v9066_v5 = vunpack.i.l.bf16 %v9065_v57  ;;  %v8552_v57 = vunpack.i.h.bf16 %v16936_v0 }
0x13de   : > { %6912 = vmatpush.msra.mxu0 %v16919_v1 }
0x13df   : > { %v6271_v18 = vsel %vm582_vm13, %v9067_v9, %v9076_v6  ;;  %v6270_v27 = vsel %vm582_vm13, %v9057_v10, %v9066_v5  ;;  %v16942_v9 = vld [vmem:[#allocation26_spill] sm:$0xff] }
0x13e0   : > { %7700 = vmatpush.msk.msra.mxu0 %vm9467_vm12, %v16920_v17  ;;  %v16937_v17 = vld [vmem:[#allocation89_spill] sm:$0xff]  ;;  %v16943_v5 = vld [vmem:[#allocation18_spill] sm:$0xff] }
0x13e2   : > { %7701 = vmatpush.msk.msra.mxu0 %vm9467_vm12, %v16921_v63  ;;  %v16938_v63 = vld [vmem:[#allocation51_spill] sm:$0xff] }
0x13e3   : > { %v15650_v52 = vpop.permute.xlu0 %9129 }
0x13e4   : > { %7702 = vmatpush.msk.msra.mxu0 %vm9467_vm12, %v16922_v44  ;;  %v16939_v44 = vld [vmem:[#allocation48_spill] sm:$0xff] }
0x13e5   : > { %v15655_v60 = vpop.permute.xlu2 %9124  ;;  %v15657_v30 = vpop.permute.xlu1 %9089  ;;  %v8546_v22 = vunpack.i.l.bf16 %v16939_v44 }
0x13e6   : > { %7703 = vmatpush.msk.msra.mxu0 %vm9467_vm12, %v16923_v12  ;;  %v8547_v12 = vunpack.i.h.bf16 %v16939_v44  ;;  %v9091_v10 = vunpack.i.l.bf16 %v15657_v30  ;;  %v16946_v44 = vld [vmem:[#allocation93_spill] sm:$0xff]  ;;  %vm7104_vm12 = vcmask 1046534  }
0x13e7   : > { %6917 = vmatmul.f32.vlgmr.msra.gmra.mxu0 %v15659_v33 }
0x13eb   : > { %v15662_v32 = vpop.permute.xlu0 %9144 }
0x13ec   : > { %v9147_v6 = vunpack.i.h.bf16 %v15662_v32 }
0x13ed   : > { %v15666_v51 = vpop.permute.xlu2 %9139  ;;  %v9095_v58 = vpop.permute.xlu1 %9094 }
0x13ee   : > { %v9097_v34 = vunpack.i.h.bf16 %v9095_v58  ;;  %v9096_v41 = vunpack.i.l.bf16 %v9095_v58  ;;  %v9146_v58 = vunpack.i.l.bf16 %v15662_v32 }
0x13f0   : > { %v6275_v48 = vsel %vm582_vm13, %v9097_v34, %v9106_v2  ;;  %v6274_v42 = vsel %vm582_vm13, %v9087_v35, %v9096_v41  ;;  %v8561_v2 = vunpack.i.l.bf16 %v16935_v56  ;;  %v16940_v35 = vld [vmem:[#allocation24_spill] sm:$0xff]  ;;  %v16941_v41 = vld [vmem:[#allocation90_spill] sm:$0xff] }
0x13f1   : > { %6725 = vmatpush.msra.mxu2 %v6275_v48  ;;  %6786 = vmatpush.msra.mxu3 %v6274_v42  ;;  %v8531_v36 = vunpack.i.l.bf16 %v16940_v35  ;;  %v8522_v48 = vunpack.i.h.bf16 %v16943_v5  ;;  %v9092_v42 = vunpack.i.h.bf16 %v15657_v30  ;;  %v6323_v30 = vsel %vm582_vm13, %v9146_v58, %v9147_v6 }
0x13f2   : > { %v5975_v32 = vsel %vm616_vm8, %v8552_v57, %v8561_v2  ;;  %v15747_v57 = vld.sshfl [vmem:[#allocation1 + $0x10] sm:$0xff pattern:$0x75316420]  ;;  %v8896_v58 = vunpack.i.l.bf16 %v16946_v44 }
0x13f3   : > { %6726 = vmatpush.msra.mxu2 %v6273_v31  ;;  %6787 = vmatpush.msra.mxu3 %v6272_v13  ;;  %v15674_v53 = vpop.permute.xlu0 %9149  ;;  %v16944_v13 = vld [vmem:[#allocation42_spill] sm:$0xff] }
0x13f5   : > { %v15678_v24 = vpop.permute.xlu2 %9159  ;;  %v15680_v25 = vpop.permute.xlu1 %9099  ;;  %6727 = vmatpush.msra.mxu2 %v6271_v18  ;;  %6788 = vmatpush.msra.mxu3 %v6270_v27  ;;  %v8517_v18 = vunpack.i.h.bf16 %v16944_v13  ;;  %v8516_v27 = vunpack.i.l.bf16 %v16944_v13  ;;  %v9111_v13 = vunpack.i.l.bf16 %v15639_v39 }
0x13f6   : > { %v9162_v26 = vunpack.i.h.bf16 %v15678_v24 }
0x13f7   : > { %6728 = vmatpush.msra.mxu2 %v6269_v61  ;;  %6789 = vmatpush.msra.mxu3 %v16924_v21  ;;  %v9082_v61 = vunpack.i.h.bf16 %v15623_v49  ;;  %v9081_v21 = vunpack.i.l.bf16 %v15623_v49  ;;  %v8551_v49 = vunpack.i.l.bf16 %v16936_v0 }
0x13f8   : > { %v6508_v50 = vsel %vm599_vm10, %v9052_v38, %v9162_v26  ;;  %v16932_v38 = vld [vmem:[#allocation44_spill] sm:$0xff]  ;;  %v16945_v26 = vld [vmem:[#allocation91_spill] sm:$0xff] }
0x13f9   : > { %6729 = vmatpush.msra.mxu2 %v16925_v43  ;;  %6790 = vmatpush.msra.mxu3 %v16926_v16  ;;  %v8562_v43 = vunpack.i.h.bf16 %v16935_v56  ;;  %v9062_v16 = vunpack.i.h.bf16 %v15613_v37 }
0x13fa   : > { %7025 = vmatpush.msra.mxu1 %v6508_v50  ;;  %v5973_v50 = vsel %vm616_vm8, %v8546_v22, %v8547_v12  ;;  %v8897_v22 = vunpack.i.h.bf16 %v16946_v44 }
0x13fb   : > { %6730 = vmatpush.msra.mxu2 %v16927_v45  ;;  %6791 = vmatpush.msra.mxu3 %v16928_v28  ;;  %v15692_v11 = vpop.permute.xlu0 %9164  ;;  %v9061_v45 = vunpack.i.l.bf16 %v15613_v37  ;;  %v6321_v28 = vsel %vm582_vm13, %v9091_v10, %v9092_v42  ;;  %v5976_v56 = vsel %vm616_vm8, %v8561_v2, %v8562_v43  ;;  %v9072_v10 = vunpack.i.h.bf16 %v15559_v40 }
0x13fc   : > { %v9117_v43 = vunpack.i.h.bf16 %v15636_v54 }
0x13fd   : > { %v15694_v29 = vpop.permute.xlu1 %9119  ;;  %6731 = vmatpush.msra.mxu2 %v16929_v4  ;;  %6792 = vmatpush.msra.mxu3 %v16930_v23  ;;  %v15718_v7 = vpop.permute.xlu2 %9174  ;;  %v5971_v4 = vsel %vm616_vm8, %v8522_v48, %v8531_v36  ;;  %v9101_v23 = vunpack.i.l.bf16 %v15680_v25  ;;  %v6317_v0 = vsel %vm582_vm13, %v9061_v45, %v9062_v16  ;;  %v16950_v45 = vld [vmem:[#allocation40_spill] sm:$0xff] }
0x13ff   : > { %6732 = vmatpush.msra.mxu2 %v16931_v8  ;;  %6793 = vmatpush.msra.mxu3 %v16932_v38  ;;  %v6319_v8 = vsel %vm582_vm13, %v9081_v21, %v9082_v61  ;;  %v5969_v38 = vsel %vm616_vm8, %v8516_v27, %v8517_v18  ;;  %v9122_v21 = vunpack.i.h.bf16 %v15694_v29 }
0x1401   : > { %6733 = vmatpush.msra.mxu2 %v16933_v15  ;;  %6794 = vmatpush.msra.mxu3 %v16934_v14  ;;  %v8532_v15 = vunpack.i.h.bf16 %v16940_v35  ;;  %v9102_v14 = vunpack.i.h.bf16 %v15680_v25  ;;  %v8521_v25 = vunpack.i.l.bf16 %v16943_v5 }
0x1403   : > { %6734 = vmatpush.msra.mxu2 %v16937_v17  ;;  %6795 = vmatpush.msra.mxu3 %v16938_v63  ;;  %v6324_v17 = vsel %vm582_vm13, %v9147_v6, %v9101_v23  ;;  %v5974_v63 = vsel %vm616_vm8, %v8547_v12, %v8551_v49  ;;  %v6322_v6 = vsel %vm582_vm13, %v9092_v42, %v9102_v14  ;;  %v16948_v42 = vld [vmem:[#allocation15_spill] sm:$0xff]  ;;  %v9132_v49 = vunpack.i.h.bf16 %v15650_v52 }
0x1404   : > { %v15720_v31 = vpop.permute.xlu0 %9179  ;;  %v5972_v12 = vsel %vm616_vm8, %v8531_v36, %v8532_v15  ;;  %v5970_v48 = vsel %vm616_vm8, %v8517_v18, %v8521_v25  ;;  %v6531_v36 = vsel %vm599_vm10, %v8896_v58, %v8897_v22  ;;  %v9121_v18 = vunpack.i.l.bf16 %v15694_v29 }
0x1405   : > { %v15711_v34 = vpop.permute.xlu1 %9134  ;;  %6735 = vmatpush.msra.mxu2 %v16941_v41  ;;  %6796 = vmatpush.msra.mxu3 %v16942_v9  ;;  %v15756_v2 = vpop.permute.xlu2 %9184  ;;  %v9071_v41 = vunpack.i.l.bf16 %v15559_v40  ;;  %v16947_v9 = vld [vmem:[#allocation16_spill] sm:$0xff]  ;;  %v6318_v40 = vsel %vm582_vm13, %v9062_v16, %v9072_v10  ;;  %v9131_v23 = vunpack.i.l.bf16 %v15650_v52  ;;  %v9182_v14 = vunpack.i.h.bf16 %v15720_v31 }
0x1406   : > { %6797 = vmatmul.f32.vlgmr.msra.gmra.mxu3 %v15659_v33  ;;  %v8467_v5 = vunpack.i.h.bf16 %v16947_v9  ;;  %v9127_v58 = vunpack.i.h.bf16 %v15655_v60  ;;  %v16954_v9 = vld [vmem:[#allocation6_spill] sm:$0xff]  ;;  %v9142_v10 = vunpack.i.h.bf16 %v15666_v51  ;;  %v9181_v44 = vunpack.i.l.bf16 %v15720_v31 }
0x1407   : > { %6893 = vmatpush.msrb.mxu3 %v5975_v32  ;;  %6736 = vmatpush.msra.mxu2 %v16945_v26  ;;  %v9112_v32 = vunpack.i.h.bf16 %v15639_v39  ;;  %v6320_v27 = vsel %vm582_vm13, %v9082_v61, %v9071_v41  ;;  %v8461_v26 = vunpack.i.l.bf16 %v16948_v42  ;;  %v9187_v41 = vunpack.i.h.bf16 %v15756_v2 }
0x1408   : > { %6737 = vmatmul.f32.vlgmr.msra.gmra.mxu2 %v15659_v33  ;;  %vm7117_vm13 = vcmask 1046528  }
0x1409   : > { %6773 = vmatpush.msrb.mxu2 %v6323_v30  ;;  %6894 = vmatpush.msrb.mxu3 %v5973_v50  ;;  %v16949_v30 = vld [vmem:[#allocation41_spill] sm:$0xff]  ;;  %v6529_v16 = vsel %vm599_vm10, %v9111_v13, %v9112_v32 }
0x140a   : > { %v8392_v50 = vunpack.i.h.bf16 %v16949_v30 }
0x140b   : > { %6774 = vmatpush.msrb.mxu2 %v6321_v28  ;;  %6895 = vmatpush.msrb.mxu3 %v5971_v4  ;;  %v16951_v28 = vunpack.i.l.bf16 %v16950_v45 }
0x140d   : > { %6775 = vmatpush.msrb.mxu2 %v6319_v8  ;;  %6896 = vmatpush.msrb.mxu3 %v5969_v38  ;;  %v15743_v37 = vpop.permute.xlu1 %9154  ;;  %v5935_v4 = vsel %vm616_vm8, %v8467_v5, %v16951_v28  ;;  %v16952_v38 = vld [vmem:[#allocation7_spill] sm:$0xff]  ;;  %v16955_v5 = vunpack.i.l.bf16 %v16954_v9  ;;  %v16962_v9 = vld [vmem:[#allocation45_spill] sm:$0xff] }
0x140e   : > { %7695 = vmatmul.msk.f32.vlgmr.msrb.gmra.mxu3 %vm1187_vm15, %v15747_v57  ;;  %v15758_v35 = vpop.permute.xlu0 %9189  ;;  %v8386_v15 = vunpack.i.l.bf16 %v16952_v38  ;;  %v9157_v13 = vunpack.i.h.bf16 %v15743_v37  ;;  %v16956_v30 = vunpack.i.h.bf16 %v16952_v38  ;;  %v16958_v38 = vld [vmem:[#allocation9_spill] sm:$0xff] }
0x140f   : > { %6953 = vmatpush.msra.mxu3 %v5976_v56  ;;  %6776 = vmatpush.msrb.mxu2 %v6317_v0  ;;  %v9151_v56 = vunpack.i.l.bf16 %v15674_v53  ;;  %v16953_v0 = vunpack.i.h.bf16 %v16948_v42  ;;  %v9141_v42 = vunpack.i.l.bf16 %v15666_v51  ;;  %v9186_v51 = vunpack.i.l.bf16 %v15756_v2 }
0x1410   : > { %7681 = vmatmul.msk.f32.vlgmr.msrb.gmra.mxu2 %vm1187_vm15, %v15747_v57 }
0x1411   : > { %6833 = vmatpush.msra.mxu2 %v6324_v17  ;;  %6954 = vmatpush.msra.mxu3 %v5974_v63  ;;  %v5933_v17 = vsel %vm616_vm8, %v8461_v26, %v16953_v0  ;;  %v6527_v63 = vsel %vm599_vm10, %v9121_v18, %v9122_v21  ;;  %v6504_v26 = vsel %vm599_vm10, %v9127_v58, %v9182_v14  ;;  %v9167_v18 = vunpack.i.h.bf16 %v15692_v11 }
0x1412   : > { %v6523_v45 = vsel %vm599_vm10, %v9142_v10, %v9151_v56  ;;  %v9191_v0 = vunpack.i.l.bf16 %v15758_v35  ;;  %v6524_v29 = vsel %vm599_vm10, %v9151_v56, %v9181_v44  ;;  %v6522_v52 = vsel %vm599_vm10, %v9157_v13, %v9186_v51 }
0x1413   : > { %6834 = vmatpush.msra.mxu2 %v6322_v6  ;;  %6955 = vmatpush.msra.mxu3 %v5972_v12  ;;  %v15809_v6 = vpop.permute.xlu2 %9199 }
0x1414   : > { %v9202_v31 = vunpack.i.h.bf16 %v15809_v6 }
0x1415   : > { %6835 = vmatpush.msra.mxu2 %v6320_v27  ;;  %6956 = vmatpush.msra.mxu3 %v5970_v48  ;;  %v5931_v48 = vsel %vm616_vm8, %v8392_v50, %v16955_v5  ;;  %v9156_v27 = vunpack.i.l.bf16 %v15743_v37  ;;  %v5929_v50 = vsel %vm616_vm8, %v8386_v15, %v16956_v30  ;;  %v16963_v5 = vld [vmem:[#allocation38_spill] sm:$0xff]  ;;  %vm7115_vm8 = vcmask 1045509  }
0x1416   : > { %v15780_v61 = vpop.permute.xlu1 %9169  ;;  %7708 = vmatmul.msk.f32.vlgmr.msra.gmra.mxu3 %vm1187_vm15, %v15747_v57  ;;  %v15811_v12 = vpop.permute.xlu0 %9204 }
0x1417   : > { %6981 = vmatpush.msrb.mxu3 %v6531_v36  ;;  %6836 = vmatpush.msra.mxu2 %v6318_v40  ;;  %v9172_v8 = vunpack.i.h.bf16 %v15780_v61  ;;  %v6525_v36 = vsel %vm599_vm10, %v9131_v23, %v9132_v49  ;;  %v9166_v40 = vunpack.i.l.bf16 %v15692_v11  ;;  %v9177_v23 = vunpack.i.h.bf16 %v15718_v7 }
0x1418   : > { %7682 = vmatmul.msk.f32.vlgmr.msra.gmra.mxu2 %vm1187_vm15, %v15747_v57  ;;  %v6521_v14 = vsel %vm599_vm10, %v9156_v27, %v9157_v13 }
0x1419   : > { %6861 = vmatpush.msrb.mxu2 %v5935_v4  ;;  %6982 = vmatpush.msrb.mxu3 %v6529_v16  ;;  %v6506_v25 = vsel %vm599_vm10, %v9117_v43, %v9172_v8  ;;  %v6502_v4 = vsel %vm599_vm10, %v9141_v42, %v9187_v41  ;;  %v9176_v8 = vunpack.i.l.bf16 %v15718_v7  ;;  %v16957_v16 = vld [vmem:[#allocation58_spill] sm:$0xff]  ;;  %v6519_v41 = vsel %vm599_vm10, %v9166_v40, %v9167_v18 }
0x141a   : > { %7026 = vmatpush.msra.mxu1 %v6506_v25  ;;  %v5887_v15 = vsel %vm553_vm6, %v16958_v38, %v16957_v16  ;;  %v16967_v16 = vld [vmem:[#allocation33_spill] sm:$0xff]  ;;  %v6518_v37 = vsel %vm599_vm10, %v9177_v23, %v9202_v31 }
0x141b   : > { %6862 = vmatpush.msrb.mxu2 %v5933_v17  ;;  %6983 = vmatpush.msrb.mxu3 %v6527_v63  ;;  %v16960_v17 = vld [vmem:[#allocation52_spill] sm:$0xff]  ;;  %v16961_v63 = vld [vmem:[#allocation10_spill] sm:$0xff]  ;;  %v15865_v10 = vpop.permute.xlu2 %9214 }
0x141c   : > { %7027 = vmatpush.msra.mxu1 %v6504_v26  ;;  %v5885_v25 = vsel %vm553_vm6, %v16961_v63, %v16960_v17  ;;  %v9216_v30 = vunpack.i.l.bf16 %v15865_v10  ;;  %v16970_v63 = vld [vmem:[#allocation69_spill] sm:$0xff] }
0x141d   : > { %6863 = vmatpush.msrb.mxu2 %v5931_v48  ;;  %6984 = vmatpush.msrb.mxu3 %v6525_v36  ;;  %v5883_v48 = vsel %vm553_vm6, %v16963_v5, %v16962_v9  ;;  %v16964_v36 = vld [vmem:[#allocation30_spill] sm:$0xff]  ;;  %v9201_v9 = vunpack.i.l.bf16 %v15809_v6 }
0x141e   : > { %v15834_v28 = vpop.permute.xlu1 %9194  ;;  %7028 = vmatpush.msra.mxu1 %v6502_v4  ;;  %v15867_v27 = vpop.permute.xlu0 %9219 }
0x141f   : > { %6864 = vmatpush.msrb.mxu2 %v5929_v50  ;;  %6985 = vmatpush.msrb.mxu3 %v6523_v45  ;;  %v9222_v50 = vunpack.i.h.bf16 %v15867_v27  ;;  %v9221_v45 = vunpack.i.l.bf16 %v15867_v27  ;;  %v16984_v27 = vld [vmem:[#allocation66_spill] sm:$0xff] }
0x1420   : > { %7029 = vmatpush.msra.mxu1 %v16914_v59  ;;  %v6517_v59 = vsel %vm599_vm10, %v9176_v8, %v9177_v23 }
0x1421   : > { %7691 = vmatpush.msk.msrb.mxu2 %vm9443_vm11, %v5887_v15  ;;  %6986 = vmatpush.msrb.mxu3 %v6521_v14  ;;  %v6537_v38 = vsel %vm599_vm10, %v9221_v45, %v9222_v50  ;;  %v16968_v15 = vld [vmem:[#allocation49_spill] sm:$0xff]  ;;  %v9192_v14 = vunpack.i.h.bf16 %v15758_v35 }
0x1422   : > { %7030 = vmatpush.msra.mxu1 %v16915_v20  ;;  %v16965_v20 = vld [vmem:[#allocation12_spill] sm:$0xff] }
0x1423   : > { %7692 = vmatpush.msk.msrb.mxu2 %vm9443_vm11, %v5885_v25  ;;  %6987 = vmatpush.msrb.mxu3 %v6519_v41  ;;  %v5881_v26 = vsel %vm553_vm6, %v16965_v20, %v16964_v36  ;;  %v16971_v41 = vld [vmem:[#allocation71_spill] sm:$0xff]  ;;  %v6513_v5 = vsel %vm599_vm10, %v9191_v0, %v9192_v14  ;;  %v16972_v36 = vld [vmem:[#allocation72_spill] sm:$0xff]  ;;  %vm7102_vm6 = vcmask 1044484  }
0x1424   : > { %7031 = vmatpush.msra.mxu1 %v15121_v47  ;;  %v16966_v47 = vld [vmem:[#allocation34_spill] sm:$0xff] }
0x1425   : > { %7693 = vmatpush.msk.msrb.mxu2 %vm9443_vm11, %v5883_v48  ;;  %6988 = vmatpush.msrb.mxu3 %v6517_v59  ;;  %v9206_v48 = vunpack.i.l.bf16 %v15811_v12  ;;  %v15917_v59 = vpop.permute.xlu2 %9234 }
0x1426   : > { %v15877_v40 = vpop.permute.xlu1 %9209  ;;  %7032 = vmatpush.msra.mxu1 %v15146_v55  ;;  %v16969_v55 = vld [vmem:[#allocation94_spill] sm:$0xff] }
0x1427   : > { %7694 = vmatpush.msk.msrb.mxu2 %vm9443_vm11, %v5881_v26  ;;  %v9212_v4 = vunpack.i.h.bf16 %v15877_v40  ;;  %v16973_v26 = vld [vmem:[#allocation73_spill] sm:$0xff]  ;;  %v9211_v56 = vunpack.i.l.bf16 %v15877_v40  ;;  %vm7137_vm11 = vcmask 1044483  }
0x1428   : > { %7033 = vmatpush.msra.mxu1 %v16916_v3 }
0x1429   : > { %6869 = vmatpush.msrb.mxu2 %v16966_v47  ;;  %v6539_v8 = vsel %vm599_vm10, %v9212_v4, %v9216_v30  ;;  %v9236_v4 = vunpack.i.l.bf16 %v15917_v59 }
0x142a   : > { %7013 = vmatpush.msrb.mxu0 %v6539_v8  ;;  %7034 = vmatpush.msra.mxu1 %v16917_v19 }
0x142b   : > { %6870 = vmatpush.msrb.mxu2 %v16967_v16 }
0x142c   : > { %7014 = vmatpush.msrb.mxu0 %v6537_v38  ;;  %7035 = vmatpush.msra.mxu1 %v16918_v46  ;;  %v9197_v46 = vunpack.i.h.bf16 %v15834_v28  ;;  %v15928_v38 = vld.sshfl [vmem:[#allocation1 + $0x8] sm:$0xff pattern:$0x75316420] }
0x142d   : > { %6871 = vmatpush.msrb.mxu2 %v16968_v15 }
0x142e   : > { %v15897_v3 = vpop.permute.xlu1 %9224  ;;  %7036 = vmatpush.msra.mxu1 %v16919_v1  ;;  %v9207_v1 = vunpack.i.h.bf16 %v15811_v12  ;;  %v6511_v20 = vsel %vm599_vm10, %v9197_v46, %v9201_v9  ;;  %v15940_v46 = vpop.permute.xlu0 %9239 }
0x142f   : > { %6872 = vmatpush.msrb.mxu2 %v16969_v55  ;;  %v9227_v17 = vunpack.i.h.bf16 %v15897_v3  ;;  %v9226_v19 = vunpack.i.l.bf16 %v15897_v3  ;;  %7037 = vmatmul.f32.vlgmr.msra.gmra.mxu1 %v15659_v33  ;;  %v9241_v40 = vunpack.i.l.bf16 %v15940_v46 }
0x1430   : > { %v6509_v0 = vsel %vm599_vm10, %v9206_v48, %v9207_v1  ;;  %v9126_v48 = vunpack.i.l.bf16 %v15655_v60 }
0x1431   : > { %6873 = vmatpush.msrb.mxu2 %v16970_v63  ;;  %v6515_v25 = vsel %vm599_vm10, %v9226_v19, %v9227_v17  ;;  %v6516_v11 = vsel %vm599_vm10, %v9227_v17, %v9211_v56  ;;  %v6510_v35 = vsel %vm599_vm10, %v9207_v1, %v9241_v40  ;;  %v6618_v1 = vpop.f32.mrf.mxu2 }
0x1432   : > { %6989 = vmatpush.msrb.mxu3 %v6515_v25  ;;  %v9136_v25 = vunpack.i.l.bf16 %v15711_v34 }
0x1433   : > { %6874 = vmatpush.msrb.mxu2 %v16971_v41 }
0x1434   : > { %6990 = vmatpush.msrb.mxu3 %v6513_v5 }
0x1435   : > { %6875 = vmatpush.msrb.mxu2 %v16972_v36 }
0x1436   : > { %6991 = vmatpush.msrb.mxu3 %v6511_v20 }
0x1437   : > { %6876 = vmatpush.msrb.mxu2 %v16973_v26  ;;  %v15924_v45 = vpop.permute.xlu1 %9229 }
0x1438   : > { %v9232_v8 = vunpack.i.h.bf16 %v15924_v45  ;;  %6877 = vmatmul.f32.vlgmr.msrb.gmra.mxu2 %v15928_v38  ;;  %6992 = vmatpush.msrb.mxu3 %v6509_v0  ;;  %v9231_v13 = vunpack.i.l.bf16 %v15924_v45  ;;  %v16981_v45 = vld [vmem:[#allocation8_spill] sm:$0xff] }
0x1439   : > { %6961 = vmatpush.msra.mxu2 %v16970_v63  ;;  %v9116_v63 = vunpack.i.l.bf16 %v15636_v54  ;;  %v9161_v54 = vunpack.i.l.bf16 %v15678_v24 }
0x143a   : > { %v6535_v19 = vsel %vm599_vm10, %v9232_v8, %v9236_v4  ;;  %6993 = vmatpush.msrb.mxu3 %v16966_v47  ;;  %v6512_v3 = vsel %vm599_vm10, %v9201_v9, %v9231_v13  ;;  %v6638_v9 = vpop.f32.mrf.mxu3 }
0x143b   : > { %6962 = vmatpush.msra.mxu2 %v16971_v41  ;;  %7015 = vmatpush.msrb.mxu0 %v6535_v19  ;;  %v9242_v41 = vunpack.i.h.bf16 %v15940_v46  ;;  %v6505_v20 = vsel %vm599_vm10, %v9116_v63, %v9117_v43  ;;  %v6528_v24 = vsel %vm599_vm10, %v9122_v21, %v9161_v54  ;;  %v16976_v21 = vld [vmem:[#allocation14_spill] sm:$0xff] }
0x143c   : > { %6994 = vmatpush.msrb.mxu3 %v16967_v16  ;;  %v9137_v16 = vunpack.i.h.bf16 %v15711_v34  ;;  %v9171_v34 = vunpack.i.l.bf16 %v15780_v61  ;;  %v16975_v61 = vld [vmem:[#allocation23_spill] sm:$0xff] }
0x143d   : > { %6963 = vmatpush.msra.mxu2 %v16972_v36  ;;  %v9152_v36 = vunpack.i.h.bf16 %v15674_v53  ;;  %v9217_v53 = vunpack.i.h.bf16 %v15865_v10  ;;  %v16982_v10 = vld [vmem:[#allocation17_spill] sm:$0xff] }
0x143e   : > { %6995 = vmatpush.msrb.mxu3 %v16968_v15  ;;  %v6532_v15 = vsel %vm599_vm10, %v8897_v22, %v9136_v25  ;;  %v6501_v60 = vsel %vm599_vm10, %v9137_v16, %v9141_v42  ;;  %v16974_v22 = vld [vmem:[#allocation28_spill] sm:$0xff]  ;;  %v6526_v39 = vsel %vm599_vm10, %v9132_v49, %v9171_v34  ;;  %v16979_v42 = vld [vmem:[#allocation37_spill] sm:$0xff] }
0x143f   : > { %6964 = vmatpush.msra.mxu2 %v16973_v26  ;;  %v15947_v5 = vpop.permute.xlu1 %9244  ;;  %v6530_v43 = vsel %vm599_vm10, %v9112_v32, %v9152_v36  ;;  %v9196_v32 = vunpack.i.l.bf16 %v15834_v28  ;;  %v16977_v49 = vld [vmem:[#allocation36_spill] sm:$0xff]  ;;  %v9250_v28 = vpop.permute.xlu2 %9249  ;;  %v6514_v7 = vsel %vm599_vm10, %v9192_v14, %v9217_v53 }
0x1440   : > { %v9246_v47 = vunpack.i.l.bf16 %v15947_v5  ;;  %6996 = vmatpush.msrb.mxu3 %v16969_v55  ;;  %v16980_v55 = vld [vmem:[#allocation62_spill] sm:$0xff]  ;;  %v9247_v23 = vunpack.i.h.bf16 %v15947_v5  ;;  %v9251_v17 = vunpack.i.l.bf16 %v9250_v28  ;;  %v9252_v6 = vunpack.i.h.bf16 %v9250_v28  ;;  %v6858_v36 = vpop.f32.mrf.mxu1 }
0x1441   : > { %6965 = vmatpush.msra.mxu2 %v15572_v62  ;;  %v6503_v62 = vsel %vm599_vm10, %v9126_v48, %v9127_v58  ;;  %6997 = vmatmul.f32.vlgmr.msrb.gmra.mxu3 %v15928_v38  ;;  %v6520_v2 = vsel %vm599_vm10, %v9167_v18, %v9196_v32  ;;  %v16978_v58 = vld [vmem:[#allocation11_spill] sm:$0xff]  ;;  %v9237_v18 = vunpack.i.h.bf16 %v15917_v59 }
0x1442   : > { %v6533_v26 = vsel %vm599_vm10, %v9242_v41, %v9246_v47  ;;  %v6538_v14 = vsel %vm599_vm10, %v9222_v50, %v9247_v23  ;;  %v6534_v12 = vsel %vm599_vm10, %v9246_v47, %v9252_v6  ;;  %v16985_v50 = vld [vmem:[#allocation80_spill] sm:$0xff]  ;;  %v6678_v59 = vpop.f32.mrf.mxu3  ;;  %v6587_v41 = vpop.permute.xlu0 %6586 }
0x1443   : > { %6966 = vmatpush.msra.mxu2 %v6505_v20  ;;  %7016 = vmatpush.msrb.mxu0 %v6533_v26  ;;  %v6540_v8 = vsel %vm599_vm10, %v9216_v30, %v9237_v18  ;;  %v16983_v30 = vld [vmem:[#allocation88_spill] sm:$0xff]  ;;  %v6679_v16 = vadd.f32 %v6678_v59, %v6587_v41 }
0x1444   : > { %7709 = vmatmul.msk.f32.vlgmr.msrb.gmra.mxu0 %vm1187_vm15, %v15747_v57  ;;  %v6818_v48 = vpop.f32.mrf.mxu0 }
0x1445   : > { %7041 = vmatpush.msra.mxu0 %v6532_v15  ;;  %6967 = vmatpush.msra.mxu2 %v6503_v62 }
0x1447   : > { %7042 = vmatpush.msra.mxu0 %v6530_v43  ;;  %6968 = vmatpush.msra.mxu2 %v6501_v60 }
0x1448   : > { %v6938_v60 = vpop.f32.mrf.mxu1 }
0x1449   : > { %7043 = vmatpush.msra.mxu0 %v6528_v24  ;;  %6969 = vmatpush.msra.mxu2 %v16974_v22  ;;  %v6859_v22 = vadd.f32 %v6858_v36, %v6587_v41 }
0x144a   : > { %v6718_v0 = vpop.f32.mrf.mxu3 }
0x144b   : > { %7044 = vmatpush.msra.mxu0 %v6526_v39  ;;  %6970 = vmatpush.msra.mxu2 %v16975_v61 }
0x144d   : > { %7045 = vmatpush.msra.mxu0 %v6524_v29  ;;  %6971 = vmatpush.msra.mxu2 %v16976_v21 }
0x144f   : > { %7046 = vmatpush.msra.mxu0 %v6522_v52  ;;  %6972 = vmatpush.msra.mxu2 %v16977_v49 }
0x1451   : > { %7047 = vmatpush.msra.mxu0 %v6520_v2  ;;  %6973 = vmatpush.msra.mxu2 %v16978_v58 }
0x1452   : > { %v6758_v46 = vpop.f32.mrf.mxu3 }
0x1453   : > { %7048 = vmatpush.msra.mxu0 %v6518_v37  ;;  %6974 = vmatpush.msra.mxu2 %v16979_v42 }
0x1455   : > { %7049 = vmatpush.msra.mxu0 %v6516_v11  ;;  %6975 = vmatpush.msra.mxu2 %v16980_v55 }
0x1457   : > { %7050 = vmatpush.msra.mxu0 %v6514_v7  ;;  %6976 = vmatpush.msra.mxu2 %v16981_v45 }
0x1458   : > { %6977 = vmatmul.f32.vlgmr.msra.gmra.mxu2 %v15659_v33  ;;  %v6536_v33 = vsel %vm599_vm10, %v9236_v4, %v9251_v17  ;;  %v6658_v4 = vpop.f32.mrf.mxu2  ;;  %vm7126_vm10 = vcmask 1043458  }
0x1459   : > { %7051 = vmatpush.msra.mxu0 %v6512_v3  ;;  %7073 = vmatpush.msrb.mxu2 %v6540_v8 }
0x145b   : > { %7052 = vmatpush.msra.mxu0 %v6510_v35  ;;  %7074 = vmatpush.msrb.mxu2 %v6538_v14 }
0x145d   : > { %7053 = vmatpush.msra.mxu0 %v16982_v10  ;;  %7075 = vmatpush.msrb.mxu2 %v6536_v33 }
0x145f   : > { %7054 = vmatpush.msra.mxu0 %v16983_v30  ;;  %7076 = vmatpush.msrb.mxu2 %v6534_v12 }
0x1460   : > { %7710 = vmatmul.msk.f32.vlgmr.msrb.gmra.mxu2 %vm1187_vm15, %v15747_v57  ;;  %v6698_v19 = vpop.f32.mrf.mxu2  ;;  %vm7119_vm15 = vcmask 1046533  }
0x1461   : > { %7055 = vmatpush.msra.mxu0 %v16984_v27  ;;  %v6699_v26 = vadd.f32 %v6698_v19, %v6679_v16 }
0x1463   : > { %7056 = vmatpush.msra.mxu0 %v16985_v50  ;;  %v6719_v43 = vadd.f32 %v6718_v0, %v6699_v26 }
0x1464   : > { %7057 = vmatmul.f32.vlgmr.msra.gmra.mxu0 %v15928_v38  ;;  %v6918_v20 = vpop.f32.mrf.mxu0  ;;  %v6619_v38 = vadd.f32 %v6618_v1, %v6587_v41 }
0x1465   : > { %v7089_v61 = vrot.slane %v6719_v43, 7  ;;  %v6919_v29 = vadd.f32 %v6918_v20, %v6587_v41 }
0x1466   : > { %v6639_v24 = vadd.f32 %v6638_v9, %v6619_v38  ;;  %v9275_v9 = vmov 1966171168  }
0x1467   : > { %v6939_v58 = vadd.f32 %v6938_v60, %v6919_v29  ;;  %v7151_v1 = vunpack.c.l.s4 %v9275_v9 }
0x1468   : > { %v6659_v52 = vadd.f32 %v6658_v4, %v6639_v24 }
0x146a   : > { %v7097_v56 = vsel %vm7096_vm0, %v6659_v52, %v7089_v61  ;;  %v7110_v11 = vsel %vm7109_vm4, %v6659_v52, %v7089_v61  ;;  %v7124_v18 = vsel %vm7098_vm2, %v6659_v52, %v7089_v61  ;;  %v7135_v35 = vsel %vm7111_vm5, %v6659_v52, %v7089_v61 }
0x1489   : > { %v6798_v25 = vpop.f32.mrf.mxu3 }
0x148a   : > { %v6799_v15 = vadd.f32 %v6798_v25, %v6587_v41 }
0x148b   : > { %v6738_v63 = vpop.f32.mrf.mxu2 }
0x148c   : > { %v6739_v62 = vadd.f32 %v6738_v63, %v6587_v41  ;;  %v6819_v44 = vadd.f32 %v6818_v48, %v6799_v15  ;;  %v7152_v48 = vunpack.c.0.s8 %v7151_v1 }
0x148e   : > { %v6759_v51 = vadd.f32 %v6758_v46, %v6739_v62 }
0x1491   : > { %v6898_v47 = vpop.f32.mrf.mxu3 }
0x1493   : > { %v6778_v5 = vpop.f32.mrf.mxu2 }
0x1494   : > { %v6779_v21 = vadd.f32 %v6778_v5, %v6759_v51 }
0x1496   : > { %v7090_v28 = vrot.slane %v6779_v21, 6 }
0x1499   : > { %v6958_v54 = vpop.f32.mrf.mxu3 }
0x149a   : > { %v6959_v40 = vadd.f32 %v6958_v54, %v6939_v58 }
0x149b   : > { %v6838_v57 = vpop.f32.mrf.mxu2 }
0x149c   : > { %v6839_v32 = vadd.f32 %v6838_v57, %v6819_v44  ;;  %v7093_v33 = vrot.slane %v6959_v40, 3 }
0x149e   : > { %v7091_v49 = vrot.slane %v6839_v32, 5 }
0x14a0   : > { %v7099_v7 = vsel %vm7098_vm2, %v7090_v28, %v7091_v49  ;;  %v7112_v45 = vsel %vm7111_vm5, %v7090_v28, %v7091_v49  ;;  %v7125_v3 = vsel %vm7102_vm6, %v7090_v28, %v7091_v49  ;;  %v7136_v14 = vsel %vm7115_vm8, %v7090_v28, %v7091_v49 }
0x14a1   : > { %v7101_v12 = vsel %vm7100_vm7, %v7097_v56, %v7099_v7  ;;  %v7114_v30 = vsel %vm7113_vm9, %v7110_v11, %v7112_v45  ;;  %v7127_v27 = vsel %vm7126_vm10, %v7124_v18, %v7125_v3  ;;  %v7138_v59 = vsel %vm7137_vm11, %v7135_v35, %v7136_v14 }
0x14a2   : > { %vm7141_vm2 = vcmask 1046529   ;;  %vm7121_vm5 = vcmask 1044481   ;;  %vm7132_vm7 = vcmask 1045506   ;;  %vm7143_vm9 = vcmask 1046531  }
0x14ac   : > { %v7038_v37 = vpop.f32.mrf.mxu1 }
0x14ad   : > { %v7039_v23 = vadd.f32 %v7038_v37, %v6587_v41 }
0x14bb   : > { %v6878_v34 = vpop.f32.mrf.mxu2 }
0x14bc   : > { %v6879_v31 = vadd.f32 %v6878_v34, %v6859_v22 }
0x14be   : > { %v6899_v13 = vadd.f32 %v6898_v47, %v6879_v31 }
0x14c0   : > { %v7092_v17 = vrot.slane %v6899_v13, 4 }
0x14c1   : > { %v7018_v39 = vpop.f32.mrf.mxu0 }
0x14c2   : > { %v7103_v4 = vsel %vm7102_vm6, %v7092_v17, %v7093_v33  ;;  %v7116_v0 = vsel %vm7115_vm8, %v7092_v17, %v7093_v33  ;;  %v7128_v46 = vsel %vm7104_vm12, %v7092_v17, %v7093_v33  ;;  %v7139_v63 = vsel %vm7117_vm13, %v7093_v33, %v7092_v17 }
0x14c4   : > { %v6998_v53 = vpop.f32.mrf.mxu3 }
0x14db   : > { %v6978_v2 = vpop.f32.mrf.mxu2 }
0x14dc   : > { %v6979_v42 = vadd.f32 %v6978_v2, %v6587_v41 }
0x14de   : > { %v6999_v55 = vadd.f32 %v6998_v53, %v6979_v42 }
0x14e0   : > { %v7019_v10 = vadd.f32 %v7018_v39, %v6999_v55 }
0x14e1   : > { %v7058_v8 = vpop.f32.mrf.mxu0 }
0x14e2   : > { %v7059_v6 = vadd.f32 %v7058_v8, %v7039_v23  ;;  %v7094_v25 = vrot.slane %v7019_v10, 2 }
0x14e3   : > { %v7078_v50 = vpop.f32.mrf.mxu2 }
0x14e4   : > { %v7079_v19 = vadd.f32 %v7078_v50, %v7059_v6 }
0x14e6   : > { %v7095_v5 = vrot.slane %v7079_v19, 1 }
0x14e8   : > { %v7105_v41 = vsel %vm7104_vm12, %v7094_v25, %v7095_v5  ;;  %v7118_v47 = vsel %vm7117_vm13, %v7095_v5, %v7094_v25  ;;  %v7129_v57 = vsel %vm7096_vm0, %v7094_v25, %v7095_v5  ;;  %v7140_v36 = vsel %vm7109_vm4, %v7094_v25, %v7095_v5 }
0x14e9   : > { %v7107_v16 = vsel %vm7106_vm14, %v7103_v4, %v7105_v41  ;;  %v7120_v20 = vsel %vm7119_vm15, %v7116_v0, %v7118_v47  ;;  %v7131_v26 = vsel %vm7130_vm1, %v7129_v57, %v7128_v46  ;;  %v7142_v15 = vsel %vm7141_vm2, %v7140_v36, %v7139_v63 }
0x14ea   : > { %v7108_v38 = vsel %vm621_vm3, %v7101_v12, %v7107_v16  ;;  %v7122_v62 = vsel %vm7121_vm5, %v7114_v30, %v7120_v20  ;;  %v7133_v54 = vsel %vm7132_vm7, %v7127_v27, %v7131_v26  ;;  %v7144_v34 = vsel %vm7143_vm9, %v7138_v59, %v7142_v15 }
0x14eb   : > { %v7123_v43 = vrot.slane %v7122_v62, 1  ;;  %v7134_v60 = vrot.slane %v7133_v54, 2  ;;  %v7145_v44 = vrot.slane %v7144_v34, 3  ;;  %v7153_v24 = vperm.slane %v7108_v38, %v7152_v48 }
0x14ed   : > { %v7157_v22 = vperm.slane %v7123_v43, %v7152_v48  ;;  %v7161_v39 = vperm.slane %v7134_v60, %v7152_v48  ;;  %v7165_v51 = vperm.slane %v7145_v44, %v7152_v48  ;;  %7170 = vst [vmem:[#allocation1] ss:$2 sm:$0xff] %v7153_v24 }
0x14ef   : > { %7172 = vst [vmem:[#allocation1 + $0x1] ss:$2 sm:$0xff] %v7157_v22 }
0x14f0   : > { %7174 = vst [vmem:[#allocation1 + $0x10] ss:$2 sm:$0xff] %v7161_v39 }
0x14f1   : > { %7176 = vst [vmem:[#allocation1 + $0x11] ss:$2 sm:$0xff] %v7165_v51 }
0x14f6   : > { %v7177_v32 = vld.sshfl [vmem:[#allocation1] sm:$0xff pattern:$0x75316420]  ;;  %v7178_v61 = vld.sshfl [vmem:[#allocation1 + $0x8] sm:$0xff pattern:$0x75316420] }
0x14f7   : > { %7185 = vst [vmem:[%s440_s15] sm:$0xff] %v7177_v32 }
0x14f8   : > { %v7179_v29 = vld.sshfl [vmem:[#allocation1 + $0x10] sm:$0xff pattern:$0x75316420]  ;;  %v7180_v31 = vld.sshfl [vmem:[#allocation1 + $0x18] sm:$0xff pattern:$0x75316420] }
0x14f9   : > { %7186 = vst [vmem:[%s440_s15 + $0x8] sm:$0xff] %v7178_v61 }
0x14fa   : > { %7187 = vst [vmem:[%s440_s15 + $0x10] sm:$0xff] %v7179_v29 }
0x14fb   : > { %7188 = vst [vmem:[%s440_s15 + $0x18] sm:$0xff] %v7180_v31 }
0x14fc PF: > { %s23_s25 = sadd.s32 1, %s9262_s25  }
0x14fd   : > { %p20_p4 = scmp.ge.s32.totalorder %s23_s25, 4  }
0x14ff   :  { %22 = sbr.rel (!%p20_p4) target bundleno = 1 (0x1), region = 110 }

</bundles_post_ra>
